<compile_context>
chip_gen: v7x
topology: tpu7x:2x2x1
jax: 0.10.0
libtpu: 0.0.40
codegen_flags: <defaults>
</compile_context>

<pallas_src>
import math

import jax
import jax.numpy as jnp
from jax.experimental import pallas as pl
from jax.experimental.pallas import tpu as pltpu

BN_EPS = 1e-5
DP_EPS = 1e-15
MXU_DTYPE = jnp.bfloat16                 # matmul operand dtype (accumulate in f32)


# ----------------------------------------------------------------------------
# Small helpers.
# ----------------------------------------------------------------------------
def _graphs_per_block(batch, cap=8):
    """Largest divisor of `batch` that is <= cap (graphs processed per grid step)."""
    g = 1
    for d in range(1, min(batch, cap) + 1):
        if batch % d == 0:
            g = d
    return g


def _compiler_params(blocks):
    """blocks: iterable of (block_shape, dtype). Derives a VMEM budget from the actual
    per-step block bytes (double-buffered inputs/outputs + headroom), clamped under
    v7x's 64 MiB physical VMEM so the same kernel is portable to v5e/v6e/v7x."""
    total = 0
    for shape, dtype in blocks:
        total += math.prod(shape) * jnp.dtype(dtype).itemsize
    limit = int(min(64 * 2**20, max(16 * 2**20, 3 * total)))
    return pltpu.CompilerParams(
        dimension_semantics=("parallel",),
        vmem_limit_bytes=limit,
    )


def _adj_norm_vectors(adj):
    """Per-stage (hoisted) degree normalization vectors.
    dinv  = (rowsum(adj) - diag(adj) + 1)^-1/2   (degree with diag forced to 1)
    selfc = dinv^2 * (1 - diag(adj))             (self-loop correction coefficient)
    so that  D'^-1/2 A' D'^-1/2 z  ==  dinv * (A @ (dinv*z)) + selfc * z."""
    a = adj.astype(jnp.float32)
    diag = jnp.diagonal(a, axis1=1, axis2=2)                    # (B, N)
    deg = jnp.sum(a, axis=-1) - diag + 1.0
    dinv = jax.lax.rsqrt(jnp.maximum(deg, 1.0))
    selfc = dinv * dinv * (1.0 - diag)
    return dinv[..., None], selfc[..., None]                    # (B, N, 1) each


def _bn_stats(stats, count):
    """stats: (num_blocks, 2, F) per-block [sum; sumsq] partials -> training-mode BN."""
    s = jnp.sum(stats, axis=0)                                  # (2, F)
    mean = s[0] / count
    var = jnp.maximum(s[1] / count - mean * mean, 0.0)          # biased variance
    inv = jax.lax.rsqrt(var + BN_EPS)
    return mean[None, :], inv[None, :]                          # (1, F) each


# ----------------------------------------------------------------------------
# GCN layer math (per graph, all 2D -> plain MXU matmuls).
# ----------------------------------------------------------------------------
def _gcn_graph(x, adj16, mask, dinv, selfc, w16, b, mu, inv):
    """One DenseGCNConv (+ fused BN of the input) + bias + mask + ReLU for one graph.
    x: (N, Fin) f32, adj16: (N, N) bf16, mask/dinv/selfc: (N, 1) f32,
    w16: (Fin, Fout) bf16, b/mu/inv: (1, *) f32."""
    xn = (x - mu) * inv                                         # fused input BN
    xw = jnp.dot(xn.astype(MXU_DTYPE), w16,
                 preferred_element_type=jnp.float32)            # (N, Fout)
    z = dinv * xw
    az = jnp.dot(adj16, z.astype(MXU_DTYPE),
                 preferred_element_type=jnp.float32)            # A @ (dinv*XW)
    out = dinv * az + selfc * xw + b                            # + self-loop term + bias
    return jnp.maximum(out * mask, 0.0)                         # mask + ReLU


# ----------------------------------------------------------------------------
# Kernel 1a: fused pool+embed DenseGCNConv layer (adjacency DMA'd once per layer).
# ----------------------------------------------------------------------------
def _dual_gcn_kernel(xp_ref, xe_ref, adj_ref, mask_ref, dinv_ref, selfc_ref,
                     wp_ref, bp_ref, mup_ref, invp_ref,
                     we_ref, be_ref, mue_ref, inve_ref,
                     yp_ref, ye_ref, sp_ref, se_ref):
    g = xp_ref.shape[0]
    fpo = yp_ref.shape[2]
    feo = ye_ref.shape[2]
    wp = wp_ref[...]; bp = bp_ref[...]; mup = mup_ref[...]; invp = invp_ref[...]
    we = we_ref[...]; be = be_ref[...]; mue = mue_ref[...]; inve = inve_ref[...]

    p1 = jnp.zeros((1, fpo), jnp.float32); p2 = jnp.zeros((1, fpo), jnp.float32)
    e1 = jnp.zeros((1, feo), jnp.float32); e2 = jnp.zeros((1, feo), jnp.float32)
    for gi in range(g):
        adj16 = adj_ref[gi].astype(MXU_DTYPE)
        mask = mask_ref[gi]; dinv = dinv_ref[gi]; selfc = selfc_ref[gi]
        yp = _gcn_graph(xp_ref[gi], adj16, mask, dinv, selfc, wp, bp, mup, invp)
        ye = _gcn_graph(xe_ref[gi], adj16, mask, dinv, selfc, we, be, mue, inve)
        yp_ref[gi] = yp.astype(yp_ref.dtype)
        ye_ref[gi] = ye.astype(ye_ref.dtype)
        p1 = p1 + jnp.sum(yp, axis=0, keepdims=True)
        p2 = p2 + jnp.sum(yp * yp, axis=0, keepdims=True)
        e1 = e1 + jnp.sum(ye, axis=0, keepdims=True)
        e2 = e2 + jnp.sum(ye * ye, axis=0, keepdims=True)
    sp_ref[0] = jnp.concatenate([p1, p2], axis=0).astype(sp_ref.dtype)
    se_ref[0] = jnp.concatenate([e1, e2], axis=0).astype(se_ref.dtype)


def _dual_gcn_layer(xp, xe, adj, mask3, dinv, selfc,
                    wp, bp, mup, invp, we, be, mue, inve):
    B, N, fpi = xp.shape
    fei = xe.shape[2]
    fpo = wp.shape[1]
    feo = we.shape[1]
    G = _graphs_per_block(B)
    NB = B // G
    b3 = lambda i: (i, 0, 0)
    sh = lambda i: (0, 0)
    blocks = [((G, N, fpi), jnp.float32), ((G, N, fei), jnp.float32),
              ((G, N, N), adj.dtype), ((G, N, 1), jnp.float32),
              ((G, N, 1), jnp.float32), ((G, N, 1), jnp.float32),
              ((fpi, fpo), MXU_DTYPE), ((1, fpo), jnp.float32),
              ((1, fpi), jnp.float32), ((1, fpi), jnp.float32),
              ((fei, feo), MXU_DTYPE), ((1, feo), jnp.float32),
              ((1, fei), jnp.float32), ((1, fei), jnp.float32),
              ((G, N, fpo), jnp.float32), ((G, N, feo), jnp.float32),
              ((1, 2, fpo), jnp.float32), ((1, 2, feo), jnp.float32)]
    return pl.pallas_call(
        _dual_gcn_kernel,
        grid=(NB,),
        in_specs=[
            pl.BlockSpec((G, N, fpi), b3),
            pl.BlockSpec((G, N, fei), b3),
            pl.BlockSpec((G, N, N), b3),
            pl.BlockSpec((G, N, 1), b3),
            pl.BlockSpec((G, N, 1), b3),
            pl.BlockSpec((G, N, 1), b3),
            pl.BlockSpec((fpi, fpo), sh),
            pl.BlockSpec((1, fpo), sh),
            pl.BlockSpec((1, fpi), sh),
            pl.BlockSpec((1, fpi), sh),
            pl.BlockSpec((fei, feo), sh),
            pl.BlockSpec((1, feo), sh),
            pl.BlockSpec((1, fei), sh),
            pl.BlockSpec((1, fei), sh),
        ],
        out_specs=(
            pl.BlockSpec((G, N, fpo), b3),
            pl.BlockSpec((G, N, feo), b3),
            pl.BlockSpec((1, 2, fpo), b3),
            pl.BlockSpec((1, 2, feo), b3),
        ),
        out_shape=(
            jax.ShapeDtypeStruct((B, N, fpo), jnp.float32),
            jax.ShapeDtypeStruct((B, N, feo), jnp.float32),
            jax.ShapeDtypeStruct((NB, 2, fpo), jnp.float32),
            jax.ShapeDtypeStruct((NB, 2, feo), jnp.float32),
        ),
        compiler_params=_compiler_params(blocks),
    )(xp, xe, adj, mask3, dinv, selfc,
      wp.astype(MXU_DTYPE), bp, mup, invp,
      we.astype(MXU_DTYPE), be, mue, inve)


# ----------------------------------------------------------------------------
# Kernel 1b: single DenseGCNConv layer (stage-3 embed GNN).
# ----------------------------------------------------------------------------
def _gcn_kernel(x_ref, adj_ref, mask_ref, dinv_ref, selfc_ref,
                w_ref, b_ref, mu_ref, inv_ref, y_ref, stat_ref):
    g = x_ref.shape[0]
    fout = y_ref.shape[2]
    w = w_ref[...]; b = b_ref[...]; mu = mu_ref[...]; inv = inv_ref[...]
    s1 = jnp.zeros((1, fout), jnp.float32)
    s2 = jnp.zeros((1, fout), jnp.float32)
    for gi in range(g):
        y = _gcn_graph(x_ref[gi], adj_ref[gi].astype(MXU_DTYPE), mask_ref[gi],
                       dinv_ref[gi], selfc_ref[gi], w, b, mu, inv)
        y_ref[gi] = y.astype(y_ref.dtype)
        s1 = s1 + jnp.sum(y, axis=0, keepdims=True)
        s2 = s2 + jnp.sum(y * y, axis=0, keepdims=True)
    stat_ref[0] = jnp.concatenate([s1, s2], axis=0).astype(stat_ref.dtype)


def _gcn_layer(x, adj, mask3, dinv, selfc, w, b, mu, inv):
    B, N, fin = x.shape
    fout = w.shape[1]
    G = _graphs_per_block(B)
    NB = B // G
    b3 = lambda i: (i, 0, 0)
    sh = lambda i: (0, 0)
    blocks = [((G, N, fin), jnp.float32), ((G, N, N), adj.dtype),
              ((G, N, 1), jnp.float32), ((G, N, 1), jnp.float32), ((G, N, 1), jnp.float32),
              ((fin, fout), MXU_DTYPE), ((1, fout), jnp.float32),
              ((1, fin), jnp.float32), ((1, fin), jnp.float32),
              ((G, N, fout), jnp.float32), ((1, 2, fout), jnp.float32)]
    return pl.pallas_call(
        _gcn_kernel,
        grid=(NB,),
        in_specs=[
            pl.BlockSpec((G, N, fin), b3),
            pl.BlockSpec((G, N, N), b3),
            pl.BlockSpec((G, N, 1), b3),
            pl.BlockSpec((G, N, 1), b3),
            pl.BlockSpec((G, N, 1), b3),
            pl.BlockSpec((fin, fout), sh),
            pl.BlockSpec((1, fout), sh),
            pl.BlockSpec((1, fin), sh),
            pl.BlockSpec((1, fin), sh),
        ],
        out_specs=(
            pl.BlockSpec((G, N, fout), b3),
            pl.BlockSpec((1, 2, fout), b3),
        ),
        out_shape=(
            jax.ShapeDtypeStruct((B, N, fout), jnp.float32),
            jax.ShapeDtypeStruct((NB, 2, fout), jnp.float32),
        ),
        compiler_params=_compiler_params(blocks),
    )(x, adj, mask3, dinv, selfc, w.astype(MXU_DTYPE), b, mu, inv)


def _mask3(mask, B, N):
    if mask is None:
        return jnp.ones((B, N, 1), jnp.float32)
    return mask.reshape(B, N, 1).astype(jnp.float32)


def dual_gnn_forward(pool_params, embed_params, x, adj, mask=None):
    """gnn*_pool and gnn*_embed fused layer-by-layer (3x DenseGCNConv + ReLU + BN each).
    Returns the *pre-BN* last-layer output of each GNN plus its BN (mean, inv_std); the
    final normalization is fused into the consumer kernel (diff-pool)."""
    B, N, fin = x.shape
    mask3 = _mask3(mask, B, N)
    dinv, selfc = _adj_norm_vectors(adj)
    mup = jnp.zeros((1, fin), jnp.float32); invp = jnp.ones((1, fin), jnp.float32)
    mue = mup; inve = invp
    xp = x; xe = x
    for (wp, bp), (we, be) in zip(pool_params, embed_params):
        xp, xe, sp, se = _dual_gcn_layer(xp, xe, adj, mask3, dinv, selfc,
                                         wp, bp, mup, invp, we, be, mue, inve)
        mup, invp = _bn_stats(sp, float(B * N))
        mue, inve = _bn_stats(se, float(B * N))
    return (xp, mup, invp), (xe, mue, inve)


def gnn_forward(layer_params, x, adj, mask=None):
    """Single GNN block (stage 3); final BN fused into the readout kernel."""
    B, N, fin = x.shape
    mask3 = _mask3(mask, B, N)
    dinv, selfc = _adj_norm_vectors(adj)
    mu = jnp.zeros((1, fin), jnp.float32)
    inv = jnp.ones((1, fin), jnp.float32)
    y = x
    for (w, b) in layer_params:
        y, stats = _gcn_layer(y, adj, mask3, dinv, selfc, w, b, mu, inv)
        mu, inv = _bn_stats(stats, float(B * N))
    return y, mu, inv


# ----------------------------------------------------------------------------
# Kernel 2: dense_diff_pool (with fused BN of both of its inputs).
# ----------------------------------------------------------------------------
def _diff_pool_kernel(x_ref, xmu_ref, xinv_ref, adj_ref, s_ref, smu_ref, sinv_ref,
                      ox_ref, oa_ref, loss_ref):
    g = x_ref.shape[0]
    xmu = xmu_ref[...]; xinv = xinv_ref[...]
    smu = smu_ref[...]; sinv = sinv_ref[...]
    link_acc = jnp.zeros((), jnp.float32)
    ent_acc = jnp.zeros((), jnp.float32)
    for gi in range(g):
        x = (x_ref[gi] - xmu) * xinv                  # fused BN  (N, F)
        logits = (s_ref[gi] - smu) * sinv             # fused BN  (N, C)
        adj_f = adj_ref[gi].astype(jnp.float32)       # (N, N)

        # Softmax over clusters (f32; reciprocal on the EUP).
        m = jnp.max(logits, axis=-1, keepdims=True)
        e = jnp.exp(logits - m)
        s = e * pl.reciprocal(jnp.sum(e, axis=-1, keepdims=True), approx=True)

        s16 = s.astype(MXU_DTYPE)
        st16 = s16.T                                  # one bf16 transpose, reused 3x
        x16 = x.astype(MXU_DTYPE)
        a16 = adj_ref[gi].astype(MXU_DTYPE)

        out_x = jnp.dot(st16, x16, preferred_element_type=jnp.float32)     # (C, F)
        a_s = jnp.dot(a16, s16, preferred_element_type=jnp.float32)        # A@S, M=N
        out_adj = jnp.dot(st16, a_s.astype(MXU_DTYPE),
                          preferred_element_type=jnp.float32)              # S^T(A S)
        sts = jnp.dot(st16, s16, preferred_element_type=jnp.float32)       # (C, C)

        # ||A - S S^T||_F^2 = sum(A*A) - 2*trace(S^T A S) + ||S^T S||_F^2
        # (no S S^T and no eye matrix: trace(S^T A S) == sum(S * (A S))).
        trace_sas = jnp.sum(s * a_s)
        link_acc = link_acc + (jnp.sum(adj_f * adj_f) - 2.0 * trace_sas
                               + jnp.sum(sts * sts))
        ent_acc = ent_acc + jnp.sum(-s * jnp.log(s + DP_EPS))

        ox_ref[gi] = out_x.astype(ox_ref.dtype)
        oa_ref[gi] = out_adj.astype(oa_ref.dtype)
    loss_ref[0] = jnp.concatenate(
        [link_acc.reshape(1, 1), ent_acc.reshape(1, 1)], axis=1).astype(loss_ref.dtype)


def dense_diff_pool(x_raw, x_mu, x_inv, adj, s_raw, s_mu, s_inv):
    B, N, F = x_raw.shape
    C = s_raw.shape[2]
    G = _graphs_per_block(B)
    NB = B // G
    b3 = lambda i: (i, 0, 0)
    sh = lambda i: (0, 0)
    blocks = [((G, N, F), jnp.float32), ((1, F), jnp.float32), ((1, F), jnp.float32),
              ((G, N, N), adj.dtype), ((G, N, C), jnp.float32),
              ((1, C), jnp.float32), ((1, C), jnp.float32),
              ((G, C, F), jnp.float32), ((G, C, C), jnp.float32), ((1, 1, 2), jnp.float32)]
    out_x, out_adj, loss = pl.pallas_call(
        _diff_pool_kernel,
        grid=(NB,),
        in_specs=[
            pl.BlockSpec((G, N, F), b3),
            pl.BlockSpec((1, F), sh),
            pl.BlockSpec((1, F), sh),
            pl.BlockSpec((G, N, N), b3),
            pl.BlockSpec((G, N, C), b3),
            pl.BlockSpec((1, C), sh),
            pl.BlockSpec((1, C), sh),
        ],
        out_specs=(
            pl.BlockSpec((G, C, F), b3),
            pl.BlockSpec((G, C, C), b3),
            pl.BlockSpec((1, 1, 2), b3),
        ),
        out_shape=(
            jax.ShapeDtypeStruct((B, C, F), jnp.float32),
            jax.ShapeDtypeStruct((B, C, C), jnp.float32),
            jax.ShapeDtypeStruct((NB, 1, 2), jnp.float32),
        ),
        compiler_params=_compiler_params(blocks),
    )(x_raw, x_mu, x_inv, adj, s_raw, s_mu, s_inv)
    # Same reductions as PyG dense_diff_pool (Frobenius norm over the whole batch
    # divided by adj.numel(); entropy mean over (B, N)).
    link_loss = jnp.sqrt(jnp.maximum(jnp.sum(loss[:, 0, 0]), 0.0)) / float(B * N * N)
    ent_loss = jnp.sum(loss[:, 0, 1]) / float(B * N)
    return out_x, out_adj, link_loss, ent_loss


# ----------------------------------------------------------------------------
# Kernel 3: fused final BN + readout (mean over nodes -> Linear -> ReLU -> Linear),
#           with the two linears batched over the G graphs of the block (M=G matmuls).
# ----------------------------------------------------------------------------
def _bn_readout_kernel(y_ref, mu_ref, inv_ref, w1_ref, b1_ref, w2_ref, b2_ref, out_ref):
    g = y_ref.shape[0]
    mu = mu_ref[...]; inv = inv_ref[...]
    rows = []
    for gi in range(g):
        xn = (y_ref[gi] - mu) * inv                          # fused final BN (N, D)
        rows.append(jnp.mean(xn, axis=0, keepdims=True))     # node mean (1, D)
    xm = rows[0] if g == 1 else jnp.concatenate(rows, axis=0)   # (G, D)
    h = jnp.dot(xm, w1_ref[...], preferred_element_type=jnp.float32) + b1_ref[...]
    h = jnp.maximum(h, 0.0)
    out = jnp.dot(h, w2_ref[...], preferred_element_type=jnp.float32) + b2_ref[...]
    for gi in range(g):
        out_ref[gi] = out[gi:gi + 1, :].astype(out_ref.dtype)


def bn_readout(y_raw, mu, inv, w1, b1, w2, b2):
    B, N, D = y_raw.shape
    nc = w2.shape[1]
    G = _graphs_per_block(B)
    NB = B // G
    b3 = lambda i: (i, 0, 0)
    sh = lambda i: (0, 0)
    blocks = [((G, N, D), jnp.float32), ((1, D), jnp.float32), ((1, D), jnp.float32),
              ((D, D), jnp.float32), ((1, D), jnp.float32),
              ((D, nc), jnp.float32), ((1, nc), jnp.float32), ((G, 1, nc), jnp.float32)]
    out = pl.pallas_call(
        _bn_readout_kernel,
        grid=(NB,),
        in_specs=[
            pl.BlockSpec((G, N, D), b3),
            pl.BlockSpec((1, D), sh),
            pl.BlockSpec((1, D), sh),
            pl.BlockSpec((D, D), sh),
            pl.BlockSpec((1, D), sh),
            pl.BlockSpec((D, nc), sh),
            pl.BlockSpec((1, nc), sh),
        ],
        out_specs=pl.BlockSpec((G, 1, nc), b3),
        out_shape=jax.ShapeDtypeStruct((B, 1, nc), jnp.float32),
        compiler_params=_compiler_params(blocks),
    )(y_raw, mu, inv, w1, b1, w2, b2)
    return out[:, 0, :]


# ----------------------------------------------------------------------------
# Model glue (plain JAX): parameter init and layer sequencing.
# ----------------------------------------------------------------------------
def _glorot(key, shape):
    fan_in, fan_out = shape
    limit = math.sqrt(6.0 / (fan_in + fan_out))
    return jax.random.uniform(key, shape, jnp.float32, -limit, limit)


def init_gnn_params(key, in_ch, hid_ch, out_ch):
    ks = jax.random.split(key, 3)
    dims = [(in_ch, hid_ch), (hid_ch, hid_ch), (hid_ch, out_ch)]
    return [(_glorot(k, d), jnp.zeros((1, d[1]), jnp.float32)) for k, d in zip(ks, dims)]


def init_diffpool_params(key, max_nodes, num_features, dim, num_classes):
    n1 = math.ceil(0.25 * max_nodes)
    n2 = math.ceil(0.25 * n1)
    ks = jax.random.split(key, 7)
    return {
        'gnn1_pool': init_gnn_params(ks[0], num_features, dim, n1),
        'gnn1_embed': init_gnn_params(ks[1], num_features, dim, dim),
        'gnn2_pool': init_gnn_params(ks[2], dim, dim, n2),
        'gnn2_embed': init_gnn_params(ks[3], dim, dim, dim),
        'gnn3_embed': init_gnn_params(ks[4], dim, dim, dim),
        'lin1_w': _glorot(ks[5], (dim, dim)),
        'lin1_b': jnp.zeros((1, dim), jnp.float32),
        'lin2_w': _glorot(ks[6], (dim, num_classes)),
        'lin2_b': jnp.zeros((1, num_classes), jnp.float32),
    }


def diffpool_forward(params, x, adj, mask):
    # The input adjacency is exactly 0/1 -> bf16 storage is lossless and halves both
    # HBM traffic and the VMEM block size of the dominant operand. Pooled adjacencies
    # (not 0/1) stay f32; degree / sum(adj*adj) reductions are always done in f32.
    adj0 = adj.astype(MXU_DTYPE)
    # Stage 1 (reference calls dense_diff_pool without a mask; same here).
    (s_raw, s_mu, s_inv), (x_raw, x_mu, x_inv) = dual_gnn_forward(
        params['gnn1_pool'], params['gnn1_embed'], x, adj0, mask)
    x1, adj1, l1, e1 = dense_diff_pool(x_raw, x_mu, x_inv, adj0, s_raw, s_mu, s_inv)
    # Stage 2
    (s_raw, s_mu, s_inv), (x_raw, x_mu, x_inv) = dual_gnn_forward(
        params['gnn2_pool'], params['gnn2_embed'], x1, adj1)
    x2, adj2, l2, e2 = dense_diff_pool(x_raw, x_mu, x_inv, adj1, s_raw, s_mu, s_inv)
    # Stage 3 + readout (final BN fused into the readout kernel).
    y_raw, y_mu, y_inv = gnn_forward(params['gnn3_embed'], x2, adj2)
    logits = bn_readout(y_raw, y_mu, y_inv,
                        params['lin1_w'], params['lin1_b'],
                        params['lin2_w'], params['lin2_b'])
    return l1 + l2, e1 + e2, logits


# ----------------------------------------------------------------------------
if __name__ == "__main__":
    key = jax.random.PRNGKey(0)
    k_param, k_x, k_adj = jax.random.split(key, 3)

    batch = 2
    max_nodes = 16
    num_features = 8
    dim = 32
    num_classes = 4

    # Deterministic synthetic graph batch.
    x = jax.random.normal(k_x, (batch, max_nodes, num_features), jnp.float32)
    a = (jax.random.uniform(k_adj, (batch, max_nodes, max_nodes)) < 0.3).astype(jnp.float32)
    adj = jnp.maximum(a, jnp.transpose(a, (0, 2, 1)))            # symmetric 0/1 adjacency
    lengths = jnp.array([12, 16], jnp.int32)
    node_ids = jnp.arange(max_nodes, dtype=jnp.int32)[None, :]
    mask = (node_ids < lengths[:, None]).astype(jnp.float32)     # (B, N)

    params = init_diffpool_params(k_param, max_nodes, num_features, dim, num_classes)

    fwd = jax.jit(diffpool_forward)
    link_loss, ent_loss, logits = fwd(params, x, adj, mask)
    jax.block_until_ready((link_loss, ent_loss, logits))

    assert logits.shape == (batch, num_classes)
    assert bool(jnp.all(jnp.isfinite(logits)))
    assert bool(jnp.isfinite(link_loss)) and bool(jnp.isfinite(ent_loss))
    print("KERNEL_OK")
</pallas_src>

<mosaic_0001>
module attributes {stable_mosaic.version = 11 : i64} {
  func.func @_dual_gcn_kernel(%arg0: i32, %arg1: memref<2x16x8xf32, #tpu.memory_space<vmem>>, %arg2: memref<2x16x8xf32, #tpu.memory_space<vmem>>, %arg3: memref<2x16x16xbf16, #tpu.memory_space<vmem>>, %arg4: memref<2x16x1xf32, #tpu.memory_space<vmem>>, %arg5: memref<2x16x1xf32, #tpu.memory_space<vmem>>, %arg6: memref<2x16x1xf32, #tpu.memory_space<vmem>>, %arg7: memref<8x32xbf16, #tpu.memory_space<vmem>>, %arg8: memref<1x32xf32, #tpu.memory_space<vmem>>, %arg9: memref<1x8xf32, #tpu.memory_space<vmem>>, %arg10: memref<1x8xf32, #tpu.memory_space<vmem>>, %arg11: memref<8x32xbf16, #tpu.memory_space<vmem>>, %arg12: memref<1x32xf32, #tpu.memory_space<vmem>>, %arg13: memref<1x8xf32, #tpu.memory_space<vmem>>, %arg14: memref<1x8xf32, #tpu.memory_space<vmem>>, %arg15: memref<2x16x32xf32, #tpu.memory_space<vmem>>, %arg16: memref<2x16x32xf32, #tpu.memory_space<vmem>>, %arg17: memref<1x2x32xf32, #tpu.memory_space<vmem>>, %arg18: memref<1x2x32xf32, #tpu.memory_space<vmem>>) attributes {dimension_semantics = [#tpu.dimension_semantics<parallel>], iteration_bounds = array<i64: 1>, scalar_prefetch = 0 : i64, scratch_operands = 0 : i64, tpu.core_type = #tpu.core_type<tc>, window_params = [{transform_indices = @transform_0, window_bounds = array<i64: 2, 16, 8>}, {transform_indices = @transform_1, window_bounds = array<i64: 2, 16, 8>}, {transform_indices = @transform_2, window_bounds = array<i64: 2, 16, 16>}, {transform_indices = @transform_3, window_bounds = array<i64: 2, 16, 1>}, {transform_indices = @transform_4, window_bounds = array<i64: 2, 16, 1>}, {transform_indices = @transform_5, window_bounds = array<i64: 2, 16, 1>}, {pipeline_mode = #tpu.pipeline_mode<synchronous>, transform_indices = @transform_6, window_bounds = array<i64: 8, 32>}, {pipeline_mode = #tpu.pipeline_mode<synchronous>, transform_indices = @transform_7, window_bounds = array<i64: 1, 32>}, {pipeline_mode = #tpu.pipeline_mode<synchronous>, transform_indices = @transform_8, window_bounds = array<i64: 1, 8>}, {pipeline_mode = #tpu.pipeline_mode<synchronous>, transform_indices = @transform_9, window_bounds = array<i64: 1, 8>}, {pipeline_mode = #tpu.pipeline_mode<synchronous>, transform_indices = @transform_10, window_bounds = array<i64: 8, 32>}, {pipeline_mode = #tpu.pipeline_mode<synchronous>, transform_indices = @transform_11, window_bounds = array<i64: 1, 32>}, {pipeline_mode = #tpu.pipeline_mode<synchronous>, transform_indices = @transform_12, window_bounds = array<i64: 1, 8>}, {pipeline_mode = #tpu.pipeline_mode<synchronous>, transform_indices = @transform_13, window_bounds = array<i64: 1, 8>}, {transform_indices = @transform_14, window_bounds = array<i64: 2, 16, 32>}, {transform_indices = @transform_15, window_bounds = array<i64: 2, 16, 32>}, {transform_indices = @transform_16, window_bounds = array<i64: 1, 2, 32>}, {transform_indices = @transform_17, window_bounds = array<i64: 1, 2, 32>}]} {
    %c0 = arith.constant 0 : index
    %c0_0 = arith.constant 0 : index
    %0 = vector.load %arg7[%c0, %c0_0] : memref<8x32xbf16, #tpu.memory_space<vmem>>, vector<8x32xbf16>
    %c0_1 = arith.constant 0 : index
    %c0_2 = arith.constant 0 : index
    %1 = vector.load %arg8[%c0_1, %c0_2] : memref<1x32xf32, #tpu.memory_space<vmem>>, vector<1x32xf32>
    %c0_3 = arith.constant 0 : index
    %c0_4 = arith.constant 0 : index
    %2 = vector.load %arg9[%c0_3, %c0_4] : memref<1x8xf32, #tpu.memory_space<vmem>>, vector<1x8xf32>
    %c0_5 = arith.constant 0 : index
    %c0_6 = arith.constant 0 : index
    %3 = vector.load %arg10[%c0_5, %c0_6] : memref<1x8xf32, #tpu.memory_space<vmem>>, vector<1x8xf32>
    %c0_7 = arith.constant 0 : index
    %c0_8 = arith.constant 0 : index
    %4 = vector.load %arg11[%c0_7, %c0_8] : memref<8x32xbf16, #tpu.memory_space<vmem>>, vector<8x32xbf16>
    %c0_9 = arith.constant 0 : index
    %c0_10 = arith.constant 0 : index
    %5 = vector.load %arg12[%c0_9, %c0_10] : memref<1x32xf32, #tpu.memory_space<vmem>>, vector<1x32xf32>
    %c0_11 = arith.constant 0 : index
    %c0_12 = arith.constant 0 : index
    %6 = vector.load %arg13[%c0_11, %c0_12] : memref<1x8xf32, #tpu.memory_space<vmem>>, vector<1x8xf32>
    %c0_13 = arith.constant 0 : index
    %c0_14 = arith.constant 0 : index
    %7 = vector.load %arg14[%c0_13, %c0_14] : memref<1x8xf32, #tpu.memory_space<vmem>>, vector<1x8xf32>
    %cst = arith.constant 0.000000e+00 : f32
    %8 = vector.broadcast %cst : f32 to vector<1x32xf32>
    %cst_15 = arith.constant 0.000000e+00 : f32
    %9 = vector.broadcast %cst_15 : f32 to vector<1x32xf32>
    %cst_16 = arith.constant 0.000000e+00 : f32
    %10 = vector.broadcast %cst_16 : f32 to vector<1x32xf32>
    %cst_17 = arith.constant 0.000000e+00 : f32
    %11 = vector.broadcast %cst_17 : f32 to vector<1x32xf32>
    %c0_18 = arith.constant 0 : index
    %c0_19 = arith.constant 0 : index
    %c0_20 = arith.constant 0 : index
    %12 = vector.load %arg3[%c0_18, %c0_19, %c0_20] : memref<2x16x16xbf16, #tpu.memory_space<vmem>>, vector<1x16x16xbf16>
    %13 = vector.shape_cast %12 : vector<1x16x16xbf16> to vector<16x16xbf16>
    %c0_21 = arith.constant 0 : index
    %c0_22 = arith.constant 0 : index
    %c0_23 = arith.constant 0 : index
    %14 = vector.load %arg4[%c0_21, %c0_22, %c0_23] : memref<2x16x1xf32, #tpu.memory_space<vmem>>, vector<1x16x1xf32>
    %15 = vector.shape_cast %14 : vector<1x16x1xf32> to vector<16x1xf32>
    %c0_24 = arith.constant 0 : index
    %c0_25 = arith.constant 0 : index
    %c0_26 = arith.constant 0 : index
    %16 = vector.load %arg5[%c0_24, %c0_25, %c0_26] : memref<2x16x1xf32, #tpu.memory_space<vmem>>, vector<1x16x1xf32>
    %17 = vector.shape_cast %16 : vector<1x16x1xf32> to vector<16x1xf32>
    %c0_27 = arith.constant 0 : index
    %c0_28 = arith.constant 0 : index
    %c0_29 = arith.constant 0 : index
    %18 = vector.load %arg6[%c0_27, %c0_28, %c0_29] : memref<2x16x1xf32, #tpu.memory_space<vmem>>, vector<1x16x1xf32>
    %19 = vector.shape_cast %18 : vector<1x16x1xf32> to vector<16x1xf32>
    %c0_30 = arith.constant 0 : index
    %c0_31 = arith.constant 0 : index
    %c0_32 = arith.constant 0 : index
    %20 = vector.load %arg1[%c0_30, %c0_31, %c0_32] : memref<2x16x8xf32, #tpu.memory_space<vmem>>, vector<1x16x8xf32>
    %21 = vector.shape_cast %20 : vector<1x16x8xf32> to vector<16x8xf32>
    %22 = vector.broadcast %2 : vector<1x8xf32> to vector<16x8xf32>
    %23 = arith.subf %21, %22 : vector<16x8xf32>
    %24 = vector.broadcast %3 : vector<1x8xf32> to vector<16x8xf32>
    %25 = arith.mulf %23, %24 : vector<16x8xf32>
    %26 = arith.truncf %25 : vector<16x8xf32> to vector<16x8xbf16>
    %cst_33 = arith.constant dense<0.000000e+00> : vector<16x32xf32>
    %27 = tpu.matmul %26, %0, %cst_33 {dimension_numbers = #tpu.dot_dimension_numbers<[1], [0], [0], [1], [0, 0, 1, 1], [], []>} : vector<16x8xbf16>, vector<8x32xbf16>, vector<16x32xf32> -> vector<16x32xf32>
    %28 = vector.broadcast %17 : vector<16x1xf32> to vector<16x32xf32>
    %29 = arith.mulf %28, %27 : vector<16x32xf32>
    %30 = arith.truncf %29 : vector<16x32xf32> to vector<16x32xbf16>
    %cst_34 = arith.constant dense<0.000000e+00> : vector<16x32xf32>
    %31 = tpu.matmul %13, %30, %cst_34 {dimension_numbers = #tpu.dot_dimension_numbers<[1], [0], [0], [1], [0, 0, 1, 1], [], []>} : vector<16x16xbf16>, vector<16x32xbf16>, vector<16x32xf32> -> vector<16x32xf32>
    %32 = vector.broadcast %17 : vector<16x1xf32> to vector<16x32xf32>
    %33 = arith.mulf %32, %31 : vector<16x32xf32>
    %34 = vector.broadcast %19 : vector<16x1xf32> to vector<16x32xf32>
    %35 = arith.mulf %34, %27 : vector<16x32xf32>
    %36 = arith.addf %33, %35 : vector<16x32xf32>
    %37 = vector.broadcast %1 : vector<1x32xf32> to vector<16x32xf32>
    %38 = arith.addf %36, %37 : vector<16x32xf32>
    %39 = vector.broadcast %15 : vector<16x1xf32> to vector<16x32xf32>
    %40 = arith.mulf %38, %39 : vector<16x32xf32>
    %cst_35 = arith.constant 0.000000e+00 : f32
    %41 = vector.broadcast %cst_35 : f32 to vector<16x32xf32>
    %42 = arith.maximumf %40, %41 : vector<16x32xf32>
    %c0_36 = arith.constant 0 : index
    %c0_37 = arith.constant 0 : index
    %c0_38 = arith.constant 0 : index
    %43 = vector.load %arg2[%c0_36, %c0_37, %c0_38] : memref<2x16x8xf32, #tpu.memory_space<vmem>>, vector<1x16x8xf32>
    %44 = vector.shape_cast %43 : vector<1x16x8xf32> to vector<16x8xf32>
    %45 = vector.broadcast %6 : vector<1x8xf32> to vector<16x8xf32>
    %46 = arith.subf %44, %45 : vector<16x8xf32>
    %47 = vector.broadcast %7 : vector<1x8xf32> to vector<16x8xf32>
    %48 = arith.mulf %46, %47 : vector<16x8xf32>
    %49 = arith.truncf %48 : vector<16x8xf32> to vector<16x8xbf16>
    %cst_39 = arith.constant dense<0.000000e+00> : vector<16x32xf32>
    %50 = tpu.matmul %49, %4, %cst_39 {dimension_numbers = #tpu.dot_dimension_numbers<[1], [0], [0], [1], [0, 0, 1, 1], [], []>} : vector<16x8xbf16>, vector<8x32xbf16>, vector<16x32xf32> -> vector<16x32xf32>
    %51 = vector.broadcast %17 : vector<16x1xf32> to vector<16x32xf32>
    %52 = arith.mulf %51, %50 : vector<16x32xf32>
    %53 = arith.truncf %52 : vector<16x32xf32> to vector<16x32xbf16>
    %cst_40 = arith.constant dense<0.000000e+00> : vector<16x32xf32>
    %54 = tpu.matmul %13, %53, %cst_40 {dimension_numbers = #tpu.dot_dimension_numbers<[1], [0], [0], [1], [0, 0, 1, 1], [], []>} : vector<16x16xbf16>, vector<16x32xbf16>, vector<16x32xf32> -> vector<16x32xf32>
    %55 = vector.broadcast %17 : vector<16x1xf32> to vector<16x32xf32>
    %56 = arith.mulf %55, %54 : vector<16x32xf32>
    %57 = vector.broadcast %19 : vector<16x1xf32> to vector<16x32xf32>
    %58 = arith.mulf %57, %50 : vector<16x32xf32>
    %59 = arith.addf %56, %58 : vector<16x32xf32>
    %60 = vector.broadcast %5 : vector<1x32xf32> to vector<16x32xf32>
    %61 = arith.addf %59, %60 : vector<16x32xf32>
    %62 = vector.broadcast %15 : vector<16x1xf32> to vector<16x32xf32>
    %63 = arith.mulf %61, %62 : vector<16x32xf32>
    %cst_41 = arith.constant 0.000000e+00 : f32
    %64 = vector.broadcast %cst_41 : f32 to vector<16x32xf32>
    %65 = arith.maximumf %63, %64 : vector<16x32xf32>
    %c0_42 = arith.constant 0 : index
    %c0_43 = arith.constant 0 : index
    %c0_44 = arith.constant 0 : index
    %66 = vector.load %arg15[%c0_42, %c0_43, %c0_44] : memref<2x16x32xf32, #tpu.memory_space<vmem>>, vector<1x16x32xf32>
    %67 = vector.shape_cast %66 : vector<1x16x32xf32> to vector<16x32xf32>
    %68 = vector.shape_cast %42 : vector<16x32xf32> to vector<1x16x32xf32>
    tpu.vector_store %arg15[%c0_42, %c0_43, %c0_44], %68 {strides = array<i32>} : memref<2x16x32xf32, #tpu.memory_space<vmem>>, vector<1x16x32xf32>,
    %c0_45 = arith.constant 0 : index
    %c0_46 = arith.constant 0 : index
    %c0_47 = arith.constant 0 : index
    %69 = vector.load %arg16[%c0_45, %c0_46, %c0_47] : memref<2x16x32xf32, #tpu.memory_space<vmem>>, vector<1x16x32xf32>
    %70 = vector.shape_cast %69 : vector<1x16x32xf32> to vector<16x32xf32>
    %71 = vector.shape_cast %65 : vector<16x32xf32> to vector<1x16x32xf32>
    tpu.vector_store %arg16[%c0_45, %c0_46, %c0_47], %71 {strides = array<i32>} : memref<2x16x32xf32, #tpu.memory_space<vmem>>, vector<1x16x32xf32>,
    %cst_48 = arith.constant dense<0.000000e+00> : vector<32xf32>
    %72 = vector.multi_reduction <add>, %42, %cst_48 [0] : vector<16x32xf32> to vector<32xf32>
    %73 = vector.shape_cast %72 : vector<32xf32> to vector<1x32xf32>
    %74 = arith.addf %8, %73 : vector<1x32xf32>
    %75 = arith.mulf %42, %42 : vector<16x32xf32>
    %cst_49 = arith.constant dense<0.000000e+00> : vector<32xf32>
    %76 = vector.multi_reduction <add>, %75, %cst_49 [0] : vector<16x32xf32> to vector<32xf32>
    %77 = vector.shape_cast %76 : vector<32xf32> to vector<1x32xf32>
    %78 = arith.addf %9, %77 : vector<1x32xf32>
    %cst_50 = arith.constant dense<0.000000e+00> : vector<32xf32>
    %79 = vector.multi_reduction <add>, %65, %cst_50 [0] : vector<16x32xf32> to vector<32xf32>
    %80 = vector.shape_cast %79 : vector<32xf32> to vector<1x32xf32>
    %81 = arith.addf %10, %80 : vector<1x32xf32>
    %82 = arith.mulf %65, %65 : vector<16x32xf32>
    %cst_51 = arith.constant dense<0.000000e+00> : vector<32xf32>
    %83 = vector.multi_reduction <add>, %82, %cst_51 [0] : vector<16x32xf32> to vector<32xf32>
    %84 = vector.shape_cast %83 : vector<32xf32> to vector<1x32xf32>
    %85 = arith.addf %11, %84 : vector<1x32xf32>
    %c1 = arith.constant 1 : index
    %c0_52 = arith.constant 0 : index
    %c0_53 = arith.constant 0 : index
    %86 = vector.load %arg3[%c1, %c0_52, %c0_53] : memref<2x16x16xbf16, #tpu.memory_space<vmem>>, vector<1x16x16xbf16>
    %87 = vector.shape_cast %86 : vector<1x16x16xbf16> to vector<16x16xbf16>
    %c1_54 = arith.constant 1 : index
    %c0_55 = arith.constant 0 : index
    %c0_56 = arith.constant 0 : index
    %88 = vector.load %arg4[%c1_54, %c0_55, %c0_56] : memref<2x16x1xf32, #tpu.memory_space<vmem>>, vector<1x16x1xf32>
    %89 = vector.shape_cast %88 : vector<1x16x1xf32> to vector<16x1xf32>
    %c1_57 = arith.constant 1 : index
    %c0_58 = arith.constant 0 : index
    %c0_59 = arith.constant 0 : index
    %90 = vector.load %arg5[%c1_57, %c0_58, %c0_59] : memref<2x16x1xf32, #tpu.memory_space<vmem>>, vector<1x16x1xf32>
    %91 = vector.shape_cast %90 : vector<1x16x1xf32> to vector<16x1xf32>
    %c1_60 = arith.constant 1 : index
    %c0_61 = arith.constant 0 : index
    %c0_62 = arith.constant 0 : index
    %92 = vector.load %arg6[%c1_60, %c0_61, %c0_62] : memref<2x16x1xf32, #tpu.memory_space<vmem>>, vector<1x16x1xf32>
    %93 = vector.shape_cast %92 : vector<1x16x1xf32> to vector<16x1xf32>
    %c1_63 = arith.constant 1 : index
    %c0_64 = arith.constant 0 : index
    %c0_65 = arith.constant 0 : index
    %94 = vector.load %arg1[%c1_63, %c0_64, %c0_65] : memref<2x16x8xf32, #tpu.memory_space<vmem>>, vector<1x16x8xf32>
    %95 = vector.shape_cast %94 : vector<1x16x8xf32> to vector<16x8xf32>
    %96 = vector.broadcast %2 : vector<1x8xf32> to vector<16x8xf32>
    %97 = arith.subf %95, %96 : vector<16x8xf32>
    %98 = vector.broadcast %3 : vector<1x8xf32> to vector<16x8xf32>
    %99 = arith.mulf %97, %98 : vector<16x8xf32>
    %100 = arith.truncf %99 : vector<16x8xf32> to vector<16x8xbf16>
    %cst_66 = arith.constant dense<0.000000e+00> : vector<16x32xf32>
    %101 = tpu.matmul %100, %0, %cst_66 {dimension_numbers = #tpu.dot_dimension_numbers<[1], [0], [0], [1], [0, 0, 1, 1], [], []>} : vector<16x8xbf16>, vector<8x32xbf16>, vector<16x32xf32> -> vector<16x32xf32>
    %102 = vector.broadcast %91 : vector<16x1xf32> to vector<16x32xf32>
    %103 = arith.mulf %102, %101 : vector<16x32xf32>
    %104 = arith.truncf %103 : vector<16x32xf32> to vector<16x32xbf16>
    %cst_67 = arith.constant dense<0.000000e+00> : vector<16x32xf32>
    %105 = tpu.matmul %87, %104, %cst_67 {dimension_numbers = #tpu.dot_dimension_numbers<[1], [0], [0], [1], [0, 0, 1, 1], [], []>} : vector<16x16xbf16>, vector<16x32xbf16>, vector<16x32xf32> -> vector<16x32xf32>
    %106 = vector.broadcast %91 : vector<16x1xf32> to vector<16x32xf32>
    %107 = arith.mulf %106, %105 : vector<16x32xf32>
    %108 = vector.broadcast %93 : vector<16x1xf32> to vector<16x32xf32>
    %109 = arith.mulf %108, %101 : vector<16x32xf32>
    %110 = arith.addf %107, %109 : vector<16x32xf32>
    %111 = vector.broadcast %1 : vector<1x32xf32> to vector<16x32xf32>
    %112 = arith.addf %110, %111 : vector<16x32xf32>
    %113 = vector.broadcast %89 : vector<16x1xf32> to vector<16x32xf32>
    %114 = arith.mulf %112, %113 : vector<16x32xf32>
    %cst_68 = arith.constant 0.000000e+00 : f32
    %115 = vector.broadcast %cst_68 : f32 to vector<16x32xf32>
    %116 = arith.maximumf %114, %115 : vector<16x32xf32>
    %c1_69 = arith.constant 1 : index
    %c0_70 = arith.constant 0 : index
    %c0_71 = arith.constant 0 : index
    %117 = vector.load %arg2[%c1_69, %c0_70, %c0_71] : memref<2x16x8xf32, #tpu.memory_space<vmem>>, vector<1x16x8xf32>
    %118 = vector.shape_cast %117 : vector<1x16x8xf32> to vector<16x8xf32>
    %119 = vector.broadcast %6 : vector<1x8xf32> to vector<16x8xf32>
    %120 = arith.subf %118, %119 : vector<16x8xf32>
    %121 = vector.broadcast %7 : vector<1x8xf32> to vector<16x8xf32>
    %122 = arith.mulf %120, %121 : vector<16x8xf32>
    %123 = arith.truncf %122 : vector<16x8xf32> to vector<16x8xbf16>
    %cst_72 = arith.constant dense<0.000000e+00> : vector<16x32xf32>
    %124 = tpu.matmul %123, %4, %cst_72 {dimension_numbers = #tpu.dot_dimension_numbers<[1], [0], [0], [1], [0, 0, 1, 1], [], []>} : vector<16x8xbf16>, vector<8x32xbf16>, vector<16x32xf32> -> vector<16x32xf32>
    %125 = vector.broadcast %91 : vector<16x1xf32> to vector<16x32xf32>
    %126 = arith.mulf %125, %124 : vector<16x32xf32>
    %127 = arith.truncf %126 : vector<16x32xf32> to vector<16x32xbf16>
    %cst_73 = arith.constant dense<0.000000e+00> : vector<16x32xf32>
    %128 = tpu.matmul %87, %127, %cst_73 {dimension_numbers = #tpu.dot_dimension_numbers<[1], [0], [0], [1], [0, 0, 1, 1], [], []>} : vector<16x16xbf16>, vector<16x32xbf16>, vector<16x32xf32> -> vector<16x32xf32>
    %129 = vector.broadcast %91 : vector<16x1xf32> to vector<16x32xf32>
    %130 = arith.mulf %129, %128 : vector<16x32xf32>
    %131 = vector.broadcast %93 : vector<16x1xf32> to vector<16x32xf32>
    %132 = arith.mulf %131, %124 : vector<16x32xf32>
    %133 = arith.addf %130, %132 : vector<16x32xf32>
    %134 = vector.broadcast %5 : vector<1x32xf32> to vector<16x32xf32>
    %135 = arith.addf %133, %134 : vector<16x32xf32>
    %136 = vector.broadcast %89 : vector<16x1xf32> to vector<16x32xf32>
    %137 = arith.mulf %135, %136 : vector<16x32xf32>
    %cst_74 = arith.constant 0.000000e+00 : f32
    %138 = vector.broadcast %cst_74 : f32 to vector<16x32xf32>
    %139 = arith.maximumf %137, %138 : vector<16x32xf32>
    %c1_75 = arith.constant 1 : index
    %c0_76 = arith.constant 0 : index
    %c0_77 = arith.constant 0 : index
    %140 = vector.load %arg15[%c1_75, %c0_76, %c0_77] : memref<2x16x32xf32, #tpu.memory_space<vmem>>, vector<1x16x32xf32>
    %141 = vector.shape_cast %140 : vector<1x16x32xf32> to vector<16x32xf32>
    %142 = vector.shape_cast %116 : vector<16x32xf32> to vector<1x16x32xf32>
    tpu.vector_store %arg15[%c1_75, %c0_76, %c0_77], %142 {strides = array<i32>} : memref<2x16x32xf32, #tpu.memory_space<vmem>>, vector<1x16x32xf32>,
    %c1_78 = arith.constant 1 : index
    %c0_79 = arith.constant 0 : index
    %c0_80 = arith.constant 0 : index
    %143 = vector.load %arg16[%c1_78, %c0_79, %c0_80] : memref<2x16x32xf32, #tpu.memory_space<vmem>>, vector<1x16x32xf32>
    %144 = vector.shape_cast %143 : vector<1x16x32xf32> to vector<16x32xf32>
    %145 = vector.shape_cast %139 : vector<16x32xf32> to vector<1x16x32xf32>
    tpu.vector_store %arg16[%c1_78, %c0_79, %c0_80], %145 {strides = array<i32>} : memref<2x16x32xf32, #tpu.memory_space<vmem>>, vector<1x16x32xf32>,
    %cst_81 = arith.constant dense<0.000000e+00> : vector<32xf32>
    %146 = vector.multi_reduction <add>, %116, %cst_81 [0] : vector<16x32xf32> to vector<32xf32>
    %147 = vector.shape_cast %146 : vector<32xf32> to vector<1x32xf32>
    %148 = arith.addf %74, %147 : vector<1x32xf32>
    %149 = arith.mulf %116, %116 : vector<16x32xf32>
    %cst_82 = arith.constant dense<0.000000e+00> : vector<32xf32>
    %150 = vector.multi_reduction <add>, %149, %cst_82 [0] : vector<16x32xf32> to vector<32xf32>
    %151 = vector.shape_cast %150 : vector<32xf32> to vector<1x32xf32>
    %152 = arith.addf %78, %151 : vector<1x32xf32>
    %cst_83 = arith.constant dense<0.000000e+00> : vector<32xf32>
    %153 = vector.multi_reduction <add>, %139, %cst_83 [0] : vector<16x32xf32> to vector<32xf32>
    %154 = vector.shape_cast %153 : vector<32xf32> to vector<1x32xf32>
    %155 = arith.addf %81, %154 : vector<1x32xf32>
    %156 = arith.mulf %139, %139 : vector<16x32xf32>
    %cst_84 = arith.constant dense<0.000000e+00> : vector<32xf32>
    %157 = vector.multi_reduction <add>, %156, %cst_84 [0] : vector<16x32xf32> to vector<32xf32>
    %158 = vector.shape_cast %157 : vector<32xf32> to vector<1x32xf32>
    %159 = arith.addf %85, %158 : vector<1x32xf32>
    %160 = tpu.concatenate %148, %152 in 0 : vector<1x32xf32>, vector<1x32xf32> -> vector<2x32xf32>
    %c0_85 = arith.constant 0 : index
    %c0_86 = arith.constant 0 : index
    %c0_87 = arith.constant 0 : index
    %161 = vector.load %arg17[%c0_85, %c0_86, %c0_87] : memref<1x2x32xf32, #tpu.memory_space<vmem>>, vector<1x2x32xf32>
    %162 = vector.shape_cast %161 : vector<1x2x32xf32> to vector<2x32xf32>
    %163 = vector.shape_cast %160 : vector<2x32xf32> to vector<1x2x32xf32>
    tpu.vector_store %arg17[%c0_85, %c0_86, %c0_87], %163 {strides = array<i32>} : memref<1x2x32xf32, #tpu.memory_space<vmem>>, vector<1x2x32xf32>,
    %164 = tpu.concatenate %155, %159 in 0 : vector<1x32xf32>, vector<1x32xf32> -> vector<2x32xf32>
    %c0_88 = arith.constant 0 : index
    %c0_89 = arith.constant 0 : index
    %c0_90 = arith.constant 0 : index
    %165 = vector.load %arg18[%c0_88, %c0_89, %c0_90] : memref<1x2x32xf32, #tpu.memory_space<vmem>>, vector<1x2x32xf32>
    %166 = vector.shape_cast %165 : vector<1x2x32xf32> to vector<2x32xf32>
    %167 = vector.shape_cast %164 : vector<2x32xf32> to vector<1x2x32xf32>
    tpu.vector_store %arg18[%c0_88, %c0_89, %c0_90], %167 {strides = array<i32>} : memref<1x2x32xf32, #tpu.memory_space<vmem>>, vector<1x2x32xf32>,
    return
  }
  func.func @transform_0(%arg0: i32) -> (i32, i32, i32) {
    %c0_i32 = arith.constant 0 : i32
    %c0_i32_0 = arith.constant 0 : i32
    %c0_i32_1 = arith.constant 0 : i32
    return %arg0, %c0_i32, %c0_i32_0 : i32, i32, i32
  }
  func.func @transform_1(%arg0: i32) -> (i32, i32, i32) {
    %c0_i32 = arith.constant 0 : i32
    %c0_i32_0 = arith.constant 0 : i32
    %c0_i32_1 = arith.constant 0 : i32
    return %arg0, %c0_i32, %c0_i32_0 : i32, i32, i32
  }
  func.func @transform_2(%arg0: i32) -> (i32, i32, i32) {
    %c0_i32 = arith.constant 0 : i32
    %c0_i32_0 = arith.constant 0 : i32
    %c0_i32_1 = arith.constant 0 : i32
    return %arg0, %c0_i32, %c0_i32_0 : i32, i32, i32
  }
  func.func @transform_3(%arg0: i32) -> (i32, i32, i32) {
    %c0_i32 = arith.constant 0 : i32
    %c0_i32_0 = arith.constant 0 : i32
    %c0_i32_1 = arith.constant 0 : i32
    return %arg0, %c0_i32, %c0_i32_0 : i32, i32, i32
  }
  func.func @transform_4(%arg0: i32) -> (i32, i32, i32) {
    %c0_i32 = arith.constant 0 : i32
    %c0_i32_0 = arith.constant 0 : i32
    %c0_i32_1 = arith.constant 0 : i32
    return %arg0, %c0_i32, %c0_i32_0 : i32, i32, i32
  }
  func.func @transform_5(%arg0: i32) -> (i32, i32, i32) {
    %c0_i32 = arith.constant 0 : i32
    %c0_i32_0 = arith.constant 0 : i32
    %c0_i32_1 = arith.constant 0 : i32
    return %arg0, %c0_i32, %c0_i32_0 : i32, i32, i32
  }
  func.func @transform_6(%arg0: i32) -> (i32, i32) {
    %c0_i32 = arith.constant 0 : i32
    %c0_i32_0 = arith.constant 0 : i32
    %c0_i32_1 = arith.constant 0 : i32
    return %c0_i32, %c0_i32_0 : i32, i32
  }
  func.func @transform_7(%arg0: i32) -> (i32, i32) {
    %c0_i32 = arith.constant 0 : i32
    %c0_i32_0 = arith.constant 0 : i32
    %c0_i32_1 = arith.constant 0 : i32
    return %c0_i32, %c0_i32_0 : i32, i32
  }
  func.func @transform_8(%arg0: i32) -> (i32, i32) {
    %c0_i32 = arith.constant 0 : i32
    %c0_i32_0 = arith.constant 0 : i32
    %c0_i32_1 = arith.constant 0 : i32
    return %c0_i32, %c0_i32_0 : i32, i32
  }
  func.func @transform_9(%arg0: i32) -> (i32, i32) {
    %c0_i32 = arith.constant 0 : i32
    %c0_i32_0 = arith.constant 0 : i32
    %c0_i32_1 = arith.constant 0 : i32
    return %c0_i32, %c0_i32_0 : i32, i32
  }
  func.func @transform_10(%arg0: i32) -> (i32, i32) {
    %c0_i32 = arith.constant 0 : i32
    %c0_i32_0 = arith.constant 0 : i32
    %c0_i32_1 = arith.constant 0 : i32
    return %c0_i32, %c0_i32_0 : i32, i32
  }
  func.func @transform_11(%arg0: i32) -> (i32, i32) {
    %c0_i32 = arith.constant 0 : i32
    %c0_i32_0 = arith.constant 0 : i32
    %c0_i32_1 = arith.constant 0 : i32
    return %c0_i32, %c0_i32_0 : i32, i32
  }
  func.func @transform_12(%arg0: i32) -> (i32, i32) {
    %c0_i32 = arith.constant 0 : i32
    %c0_i32_0 = arith.constant 0 : i32
    %c0_i32_1 = arith.constant 0 : i32
    return %c0_i32, %c0_i32_0 : i32, i32
  }
  func.func @transform_13(%arg0: i32) -> (i32, i32) {
    %c0_i32 = arith.constant 0 : i32
    %c0_i32_0 = arith.constant 0 : i32
    %c0_i32_1 = arith.constant 0 : i32
    return %c0_i32, %c0_i32_0 : i32, i32
  }
  func.func @transform_14(%arg0: i32) -> (i32, i32, i32) {
    %c0_i32 = arith.constant 0 : i32
    %c0_i32_0 = arith.constant 0 : i32
    %c0_i32_1 = arith.constant 0 : i32
    return %arg0, %c0_i32, %c0_i32_0 : i32, i32, i32
  }
  func.func @transform_15(%arg0: i32) -> (i32, i32, i32) {
    %c0_i32 = arith.constant 0 : i32
    %c0_i32_0 = arith.constant 0 : i32
    %c0_i32_1 = arith.constant 0 : i32
    return %arg0, %c0_i32, %c0_i32_0 : i32, i32, i32
  }
  func.func @transform_16(%arg0: i32) -> (i32, i32, i32) {
    %c0_i32 = arith.constant 0 : i32
    %c0_i32_0 = arith.constant 0 : i32
    %c0_i32_1 = arith.constant 0 : i32
    return %arg0, %c0_i32, %c0_i32_0 : i32, i32, i32
  }
  func.func @transform_17(%arg0: i32) -> (i32, i32, i32) {
    %c0_i32 = arith.constant 0 : i32
    %c0_i32_0 = arith.constant 0 : i32
    %c0_i32_1 = arith.constant 0 : i32
    return %arg0, %c0_i32, %c0_i32_0 : i32, i32, i32
  }
}

module attributes {stable_mosaic.version = 11 : i64} {
  func.func @_dual_gcn_kernel(%arg0: i32, %arg1: memref<2x16x32xf32, #tpu.memory_space<vmem>>, %arg2: memref<2x16x32xf32, #tpu.memory_space<vmem>>, %arg3: memref<2x16x16xbf16, #tpu.memory_space<vmem>>, %arg4: memref<2x16x1xf32, #tpu.memory_space<vmem>>, %arg5: memref<2x16x1xf32, #tpu.memory_space<vmem>>, %arg6: memref<2x16x1xf32, #tpu.memory_space<vmem>>, %arg7: memref<32x32xbf16, #tpu.memory_space<vmem>>, %arg8: memref<1x32xf32, #tpu.memory_space<vmem>>, %arg9: memref<1x32xf32, #tpu.memory_space<vmem>>, %arg10: memref<1x32xf32, #tpu.memory_space<vmem>>, %arg11: memref<32x32xbf16, #tpu.memory_space<vmem>>, %arg12: memref<1x32xf32, #tpu.memory_space<vmem>>, %arg13: memref<1x32xf32, #tpu.memory_space<vmem>>, %arg14: memref<1x32xf32, #tpu.memory_space<vmem>>, %arg15: memref<2x16x32xf32, #tpu.memory_space<vmem>>, %arg16: memref<2x16x32xf32, #tpu.memory_space<vmem>>, %arg17: memref<1x2x32xf32, #tpu.memory_space<vmem>>, %arg18: memref<1x2x32xf32, #tpu.memory_space<vmem>>) attributes {dimension_semantics = [#tpu.dimension_semantics<parallel>], iteration_bounds = array<i64: 1>, scalar_prefetch = 0 : i64, scratch_operands = 0 : i64, tpu.core_type = #tpu.core_type<tc>, window_params = [{transform_indices = @transform_0, window_bounds = array<i64: 2, 16, 32>}, {transform_indices = @transform_1, window_bounds = array<i64: 2, 16, 32>}, {transform_indices = @transform_2, window_bounds = array<i64: 2, 16, 16>}, {transform_indices = @transform_3, window_bounds = array<i64: 2, 16, 1>}, {transform_indices = @transform_4, window_bounds = array<i64: 2, 16, 1>}, {transform_indices = @transform_5, window_bounds = array<i64: 2, 16, 1>}, {pipeline_mode = #tpu.pipeline_mode<synchronous>, transform_indices = @transform_6, window_bounds = array<i64: 32, 32>}, {pipeline_mode = #tpu.pipeline_mode<synchronous>, transform_indices = @transform_7, window_bounds = array<i64: 1, 32>}, {pipeline_mode = #tpu.pipeline_mode<synchronous>, transform_indices = @transform_8, window_bounds = array<i64: 1, 32>}, {pipeline_mode = #tpu.pipeline_mode<synchronous>, transform_indices = @transform_9, window_bounds = array<i64: 1, 32>}, {pipeline_mode = #tpu.pipeline_mode<synchronous>, transform_indices = @transform_10, window_bounds = array<i64: 32, 32>}, {pipeline_mode = #tpu.pipeline_mode<synchronous>, transform_indices = @transform_11, window_bounds = array<i64: 1, 32>}, {pipeline_mode = #tpu.pipeline_mode<synchronous>, transform_indices = @transform_12, window_bounds = array<i64: 1, 32>}, {pipeline_mode = #tpu.pipeline_mode<synchronous>, transform_indices = @transform_13, window_bounds = array<i64: 1, 32>}, {transform_indices = @transform_14, window_bounds = array<i64: 2, 16, 32>}, {transform_indices = @transform_15, window_bounds = array<i64: 2, 16, 32>}, {transform_indices = @transform_16, window_bounds = array<i64: 1, 2, 32>}, {transform_indices = @transform_17, window_bounds = array<i64: 1, 2, 32>}]} {
    %c0 = arith.constant 0 : index
    %c0_0 = arith.constant 0 : index
    %0 = vector.load %arg7[%c0, %c0_0] : memref<32x32xbf16, #tpu.memory_space<vmem>>, vector<32x32xbf16>
    %c0_1 = arith.constant 0 : index
    %c0_2 = arith.constant 0 : index
    %1 = vector.load %arg8[%c0_1, %c0_2] : memref<1x32xf32, #tpu.memory_space<vmem>>, vector<1x32xf32>
    %c0_3 = arith.constant 0 : index
    %c0_4 = arith.constant 0 : index
    %2 = vector.load %arg9[%c0_3, %c0_4] : memref<1x32xf32, #tpu.memory_space<vmem>>, vector<1x32xf32>
    %c0_5 = arith.constant 0 : index
    %c0_6 = arith.constant 0 : index
    %3 = vector.load %arg10[%c0_5, %c0_6] : memref<1x32xf32, #tpu.memory_space<vmem>>, vector<1x32xf32>
    %c0_7 = arith.constant 0 : index
    %c0_8 = arith.constant 0 : index
    %4 = vector.load %arg11[%c0_7, %c0_8] : memref<32x32xbf16, #tpu.memory_space<vmem>>, vector<32x32xbf16>
    %c0_9 = arith.constant 0 : index
    %c0_10 = arith.constant 0 : index
    %5 = vector.load %arg12[%c0_9, %c0_10] : memref<1x32xf32, #tpu.memory_space<vmem>>, vector<1x32xf32>
    %c0_11 = arith.constant 0 : index
    %c0_12 = arith.constant 0 : index
    %6 = vector.load %arg13[%c0_11, %c0_12] : memref<1x32xf32, #tpu.memory_space<vmem>>, vector<1x32xf32>
    %c0_13 = arith.constant 0 : index
    %c0_14 = arith.constant 0 : index
    %7 = vector.load %arg14[%c0_13, %c0_14] : memref<1x32xf32, #tpu.memory_space<vmem>>, vector<1x32xf32>
    %cst = arith.constant 0.000000e+00 : f32
    %8 = vector.broadcast %cst : f32 to vector<1x32xf32>
    %cst_15 = arith.constant 0.000000e+00 : f32
    %9 = vector.broadcast %cst_15 : f32 to vector<1x32xf32>
    %cst_16 = arith.constant 0.000000e+00 : f32
    %10 = vector.broadcast %cst_16 : f32 to vector<1x32xf32>
    %cst_17 = arith.constant 0.000000e+00 : f32
    %11 = vector.broadcast %cst_17 : f32 to vector<1x32xf32>
    %c0_18 = arith.constant 0 : index
    %c0_19 = arith.constant 0 : index
    %c0_20 = arith.constant 0 : index
    %12 = vector.load %arg3[%c0_18, %c0_19, %c0_20] : memref<2x16x16xbf16, #tpu.memory_space<vmem>>, vector<1x16x16xbf16>
    %13 = vector.shape_cast %12 : vector<1x16x16xbf16> to vector<16x16xbf16>
    %c0_21 = arith.constant 0 : index
    %c0_22 = arith.constant 0 : index
    %c0_23 = arith.constant 0 : index
    %14 = vector.load %arg4[%c0_21, %c0_22, %c0_23] : memref<2x16x1xf32, #tpu.memory_space<vmem>>, vector<1x16x1xf32>
    %15 = vector.shape_cast %14 : vector<1x16x1xf32> to vector<16x1xf32>
    %c0_24 = arith.constant 0 : index
    %c0_25 = arith.constant 0 : index
    %c0_26 = arith.constant 0 : index
    %16 = vector.load %arg5[%c0_24, %c0_25, %c0_26] : memref<2x16x1xf32, #tpu.memory_space<vmem>>, vector<1x16x1xf32>
    %17 = vector.shape_cast %16 : vector<1x16x1xf32> to vector<16x1xf32>
    %c0_27 = arith.constant 0 : index
    %c0_28 = arith.constant 0 : index
    %c0_29 = arith.constant 0 : index
    %18 = vector.load %arg6[%c0_27, %c0_28, %c0_29] : memref<2x16x1xf32, #tpu.memory_space<vmem>>, vector<1x16x1xf32>
    %19 = vector.shape_cast %18 : vector<1x16x1xf32> to vector<16x1xf32>
    %c0_30 = arith.constant 0 : index
    %c0_31 = arith.constant 0 : index
    %c0_32 = arith.constant 0 : index
    %20 = vector.load %arg1[%c0_30, %c0_31, %c0_32] : memref<2x16x32xf32, #tpu.memory_space<vmem>>, vector<1x16x32xf32>
    %21 = vector.shape_cast %20 : vector<1x16x32xf32> to vector<16x32xf32>
    %22 = vector.broadcast %2 : vector<1x32xf32> to vector<16x32xf32>
    %23 = arith.subf %21, %22 : vector<16x32xf32>
    %24 = vector.broadcast %3 : vector<1x32xf32> to vector<16x32xf32>
    %25 = arith.mulf %23, %24 : vector<16x32xf32>
    %26 = arith.truncf %25 : vector<16x32xf32> to vector<16x32xbf16>
    %cst_33 = arith.constant dense<0.000000e+00> : vector<16x32xf32>
    %27 = tpu.matmul %26, %0, %cst_33 {dimension_numbers = #tpu.dot_dimension_numbers<[1], [0], [0], [1], [0, 0, 1, 1], [], []>} : vector<16x32xbf16>, vector<32x32xbf16>, vector<16x32xf32> -> vector<16x32xf32>
    %28 = vector.broadcast %17 : vector<16x1xf32> to vector<16x32xf32>
    %29 = arith.mulf %28, %27 : vector<16x32xf32>
    %30 = arith.truncf %29 : vector<16x32xf32> to vector<16x32xbf16>
    %cst_34 = arith.constant dense<0.000000e+00> : vector<16x32xf32>
    %31 = tpu.matmul %13, %30, %cst_34 {dimension_numbers = #tpu.dot_dimension_numbers<[1], [0], [0], [1], [0, 0, 1, 1], [], []>} : vector<16x16xbf16>, vector<16x32xbf16>, vector<16x32xf32> -> vector<16x32xf32>
    %32 = vector.broadcast %17 : vector<16x1xf32> to vector<16x32xf32>
    %33 = arith.mulf %32, %31 : vector<16x32xf32>
    %34 = vector.broadcast %19 : vector<16x1xf32> to vector<16x32xf32>
    %35 = arith.mulf %34, %27 : vector<16x32xf32>
    %36 = arith.addf %33, %35 : vector<16x32xf32>
    %37 = vector.broadcast %1 : vector<1x32xf32> to vector<16x32xf32>
    %38 = arith.addf %36, %37 : vector<16x32xf32>
    %39 = vector.broadcast %15 : vector<16x1xf32> to vector<16x32xf32>
    %40 = arith.mulf %38, %39 : vector<16x32xf32>
    %cst_35 = arith.constant 0.000000e+00 : f32
    %41 = vector.broadcast %cst_35 : f32 to vector<16x32xf32>
    %42 = arith.maximumf %40, %41 : vector<16x32xf32>
    %c0_36 = arith.constant 0 : index
    %c0_37 = arith.constant 0 : index
    %c0_38 = arith.constant 0 : index
    %43 = vector.load %arg2[%c0_36, %c0_37, %c0_38] : memref<2x16x32xf32, #tpu.memory_space<vmem>>, vector<1x16x32xf32>
    %44 = vector.shape_cast %43 : vector<1x16x32xf32> to vector<16x32xf32>
    %45 = vector.broadcast %6 : vector<1x32xf32> to vector<16x32xf32>
    %46 = arith.subf %44, %45 : vector<16x32xf32>
    %47 = vector.broadcast %7 : vector<1x32xf32> to vector<16x32xf32>
    %48 = arith.mulf %46, %47 : vector<16x32xf32>
    %49 = arith.truncf %48 : vector<16x32xf32> to vector<16x32xbf16>
    %cst_39 = arith.constant dense<0.000000e+00> : vector<16x32xf32>
    %50 = tpu.matmul %49, %4, %cst_39 {dimension_numbers = #tpu.dot_dimension_numbers<[1], [0], [0], [1], [0, 0, 1, 1], [], []>} : vector<16x32xbf16>, vector<32x32xbf16>, vector<16x32xf32> -> vector<16x32xf32>
    %51 = vector.broadcast %17 : vector<16x1xf32> to vector<16x32xf32>
    %52 = arith.mulf %51, %50 : vector<16x32xf32>
    %53 = arith.truncf %52 : vector<16x32xf32> to vector<16x32xbf16>
    %cst_40 = arith.constant dense<0.000000e+00> : vector<16x32xf32>
    %54 = tpu.matmul %13, %53, %cst_40 {dimension_numbers = #tpu.dot_dimension_numbers<[1], [0], [0], [1], [0, 0, 1, 1], [], []>} : vector<16x16xbf16>, vector<16x32xbf16>, vector<16x32xf32> -> vector<16x32xf32>
    %55 = vector.broadcast %17 : vector<16x1xf32> to vector<16x32xf32>
    %56 = arith.mulf %55, %54 : vector<16x32xf32>
    %57 = vector.broadcast %19 : vector<16x1xf32> to vector<16x32xf32>
    %58 = arith.mulf %57, %50 : vector<16x32xf32>
    %59 = arith.addf %56, %58 : vector<16x32xf32>
    %60 = vector.broadcast %5 : vector<1x32xf32> to vector<16x32xf32>
    %61 = arith.addf %59, %60 : vector<16x32xf32>
    %62 = vector.broadcast %15 : vector<16x1xf32> to vector<16x32xf32>
    %63 = arith.mulf %61, %62 : vector<16x32xf32>
    %cst_41 = arith.constant 0.000000e+00 : f32
    %64 = vector.broadcast %cst_41 : f32 to vector<16x32xf32>
    %65 = arith.maximumf %63, %64 : vector<16x32xf32>
    %c0_42 = arith.constant 0 : index
    %c0_43 = arith.constant 0 : index
    %c0_44 = arith.constant 0 : index
    %66 = vector.load %arg15[%c0_42, %c0_43, %c0_44] : memref<2x16x32xf32, #tpu.memory_space<vmem>>, vector<1x16x32xf32>
    %67 = vector.shape_cast %66 : vector<1x16x32xf32> to vector<16x32xf32>
    %68 = vector.shape_cast %42 : vector<16x32xf32> to vector<1x16x32xf32>
    tpu.vector_store %arg15[%c0_42, %c0_43, %c0_44], %68 {strides = array<i32>} : memref<2x16x32xf32, #tpu.memory_space<vmem>>, vector<1x16x32xf32>,
    %c0_45 = arith.constant 0 : index
    %c0_46 = arith.constant 0 : index
    %c0_47 = arith.constant 0 : index
    %69 = vector.load %arg16[%c0_45, %c0_46, %c0_47] : memref<2x16x32xf32, #tpu.memory_space<vmem>>, vector<1x16x32xf32>
    %70 = vector.shape_cast %69 : vector<1x16x32xf32> to vector<16x32xf32>
    %71 = vector.shape_cast %65 : vector<16x32xf32> to vector<1x16x32xf32>
    tpu.vector_store %arg16[%c0_45, %c0_46, %c0_47], %71 {strides = array<i32>} : memref<2x16x32xf32, #tpu.memory_space<vmem>>, vector<1x16x32xf32>,
    %cst_48 = arith.constant dense<0.000000e+00> : vector<32xf32>
    %72 = vector.multi_reduction <add>, %42, %cst_48 [0] : vector<16x32xf32> to vector<32xf32>
    %73 = vector.shape_cast %72 : vector<32xf32> to vector<1x32xf32>
    %74 = arith.addf %8, %73 : vector<1x32xf32>
    %75 = arith.mulf %42, %42 : vector<16x32xf32>
    %cst_49 = arith.constant dense<0.000000e+00> : vector<32xf32>
    %76 = vector.multi_reduction <add>, %75, %cst_49 [0] : vector<16x32xf32> to vector<32xf32>
    %77 = vector.shape_cast %76 : vector<32xf32> to vector<1x32xf32>
    %78 = arith.addf %9, %77 : vector<1x32xf32>
    %cst_50 = arith.constant dense<0.000000e+00> : vector<32xf32>
    %79 = vector.multi_reduction <add>, %65, %cst_50 [0] : vector<16x32xf32> to vector<32xf32>
    %80 = vector.shape_cast %79 : vector<32xf32> to vector<1x32xf32>
    %81 = arith.addf %10, %80 : vector<1x32xf32>
    %82 = arith.mulf %65, %65 : vector<16x32xf32>
    %cst_51 = arith.constant dense<0.000000e+00> : vector<32xf32>
    %83 = vector.multi_reduction <add>, %82, %cst_51 [0] : vector<16x32xf32> to vector<32xf32>
    %84 = vector.shape_cast %83 : vector<32xf32> to vector<1x32xf32>
    %85 = arith.addf %11, %84 : vector<1x32xf32>
    %c1 = arith.constant 1 : index
    %c0_52 = arith.constant 0 : index
    %c0_53 = arith.constant 0 : index
    %86 = vector.load %arg3[%c1, %c0_52, %c0_53] : memref<2x16x16xbf16, #tpu.memory_space<vmem>>, vector<1x16x16xbf16>
    %87 = vector.shape_cast %86 : vector<1x16x16xbf16> to vector<16x16xbf16>
    %c1_54 = arith.constant 1 : index
    %c0_55 = arith.constant 0 : index
    %c0_56 = arith.constant 0 : index
    %88 = vector.load %arg4[%c1_54, %c0_55, %c0_56] : memref<2x16x1xf32, #tpu.memory_space<vmem>>, vector<1x16x1xf32>
    %89 = vector.shape_cast %88 : vector<1x16x1xf32> to vector<16x1xf32>
    %c1_57 = arith.constant 1 : index
    %c0_58 = arith.constant 0 : index
    %c0_59 = arith.constant 0 : index
    %90 = vector.load %arg5[%c1_57, %c0_58, %c0_59] : memref<2x16x1xf32, #tpu.memory_space<vmem>>, vector<1x16x1xf32>
    %91 = vector.shape_cast %90 : vector<1x16x1xf32> to vector<16x1xf32>
    %c1_60 = arith.constant 1 : index
    %c0_61 = arith.constant 0 : index
    %c0_62 = arith.constant 0 : index
    %92 = vector.load %arg6[%c1_60, %c0_61, %c0_62] : memref<2x16x1xf32, #tpu.memory_space<vmem>>, vector<1x16x1xf32>
    %93 = vector.shape_cast %92 : vector<1x16x1xf32> to vector<16x1xf32>
    %c1_63 = arith.constant 1 : index
    %c0_64 = arith.constant 0 : index
    %c0_65 = arith.constant 0 : index
    %94 = vector.load %arg1[%c1_63, %c0_64, %c0_65] : memref<2x16x32xf32, #tpu.memory_space<vmem>>, vector<1x16x32xf32>
    %95 = vector.shape_cast %94 : vector<1x16x32xf32> to vector<16x32xf32>
    %96 = vector.broadcast %2 : vector<1x32xf32> to vector<16x32xf32>
    %97 = arith.subf %95, %96 : vector<16x32xf32>
    %98 = vector.broadcast %3 : vector<1x32xf32> to vector<16x32xf32>
    %99 = arith.mulf %97, %98 : vector<16x32xf32>
    %100 = arith.truncf %99 : vector<16x32xf32> to vector<16x32xbf16>
    %cst_66 = arith.constant dense<0.000000e+00> : vector<16x32xf32>
    %101 = tpu.matmul %100, %0, %cst_66 {dimension_numbers = #tpu.dot_dimension_numbers<[1], [0], [0], [1], [0, 0, 1, 1], [], []>} : vector<16x32xbf16>, vector<32x32xbf16>, vector<16x32xf32> -> vector<16x32xf32>
    %102 = vector.broadcast %91 : vector<16x1xf32> to vector<16x32xf32>
    %103 = arith.mulf %102, %101 : vector<16x32xf32>
    %104 = arith.truncf %103 : vector<16x32xf32> to vector<16x32xbf16>
    %cst_67 = arith.constant dense<0.000000e+00> : vector<16x32xf32>
    %105 = tpu.matmul %87, %104, %cst_67 {dimension_numbers = #tpu.dot_dimension_numbers<[1], [0], [0], [1], [0, 0, 1, 1], [], []>} : vector<16x16xbf16>, vector<16x32xbf16>, vector<16x32xf32> -> vector<16x32xf32>
    %106 = vector.broadcast %91 : vector<16x1xf32> to vector<16x32xf32>
    %107 = arith.mulf %106, %105 : vector<16x32xf32>
    %108 = vector.broadcast %93 : vector<16x1xf32> to vector<16x32xf32>
    %109 = arith.mulf %108, %101 : vector<16x32xf32>
    %110 = arith.addf %107, %109 : vector<16x32xf32>
    %111 = vector.broadcast %1 : vector<1x32xf32> to vector<16x32xf32>
    %112 = arith.addf %110, %111 : vector<16x32xf32>
    %113 = vector.broadcast %89 : vector<16x1xf32> to vector<16x32xf32>
    %114 = arith.mulf %112, %113 : vector<16x32xf32>
    %cst_68 = arith.constant 0.000000e+00 : f32
    %115 = vector.broadcast %cst_68 : f32 to vector<16x32xf32>
    %116 = arith.maximumf %114, %115 : vector<16x32xf32>
    %c1_69 = arith.constant 1 : index
    %c0_70 = arith.constant 0 : index
    %c0_71 = arith.constant 0 : index
    %117 = vector.load %arg2[%c1_69, %c0_70, %c0_71] : memref<2x16x32xf32, #tpu.memory_space<vmem>>, vector<1x16x32xf32>
    %118 = vector.shape_cast %117 : vector<1x16x32xf32> to vector<16x32xf32>
    %119 = vector.broadcast %6 : vector<1x32xf32> to vector<16x32xf32>
    %120 = arith.subf %118, %119 : vector<16x32xf32>
    %121 = vector.broadcast %7 : vector<1x32xf32> to vector<16x32xf32>
    %122 = arith.mulf %120, %121 : vector<16x32xf32>
    %123 = arith.truncf %122 : vector<16x32xf32> to vector<16x32xbf16>
    %cst_72 = arith.constant dense<0.000000e+00> : vector<16x32xf32>
    %124 = tpu.matmul %123, %4, %cst_72 {dimension_numbers = #tpu.dot_dimension_numbers<[1], [0], [0], [1], [0, 0, 1, 1], [], []>} : vector<16x32xbf16>, vector<32x32xbf16>, vector<16x32xf32> -> vector<16x32xf32>
    %125 = vector.broadcast %91 : vector<16x1xf32> to vector<16x32xf32>
    %126 = arith.mulf %125, %124 : vector<16x32xf32>
    %127 = arith.truncf %126 : vector<16x32xf32> to vector<16x32xbf16>
    %cst_73 = arith.constant dense<0.000000e+00> : vector<16x32xf32>
    %128 = tpu.matmul %87, %127, %cst_73 {dimension_numbers = #tpu.dot_dimension_numbers<[1], [0], [0], [1], [0, 0, 1, 1], [], []>} : vector<16x16xbf16>, vector<16x32xbf16>, vector<16x32xf32> -> vector<16x32xf32>
    %129 = vector.broadcast %91 : vector<16x1xf32> to vector<16x32xf32>
    %130 = arith.mulf %129, %128 : vector<16x32xf32>
    %131 = vector.broadcast %93 : vector<16x1xf32> to vector<16x32xf32>
    %132 = arith.mulf %131, %124 : vector<16x32xf32>
    %133 = arith.addf %130, %132 : vector<16x32xf32>
    %134 = vector.broadcast %5 : vector<1x32xf32> to vector<16x32xf32>
    %135 = arith.addf %133, %134 : vector<16x32xf32>
    %136 = vector.broadcast %89 : vector<16x1xf32> to vector<16x32xf32>
    %137 = arith.mulf %135, %136 : vector<16x32xf32>
    %cst_74 = arith.constant 0.000000e+00 : f32
    %138 = vector.broadcast %cst_74 : f32 to vector<16x32xf32>
    %139 = arith.maximumf %137, %138 : vector<16x32xf32>
    %c1_75 = arith.constant 1 : index
    %c0_76 = arith.constant 0 : index
    %c0_77 = arith.constant 0 : index
    %140 = vector.load %arg15[%c1_75, %c0_76, %c0_77] : memref<2x16x32xf32, #tpu.memory_space<vmem>>, vector<1x16x32xf32>
    %141 = vector.shape_cast %140 : vector<1x16x32xf32> to vector<16x32xf32>
    %142 = vector.shape_cast %116 : vector<16x32xf32> to vector<1x16x32xf32>
    tpu.vector_store %arg15[%c1_75, %c0_76, %c0_77], %142 {strides = array<i32>} : memref<2x16x32xf32, #tpu.memory_space<vmem>>, vector<1x16x32xf32>,
    %c1_78 = arith.constant 1 : index
    %c0_79 = arith.constant 0 : index
    %c0_80 = arith.constant 0 : index
    %143 = vector.load %arg16[%c1_78, %c0_79, %c0_80] : memref<2x16x32xf32, #tpu.memory_space<vmem>>, vector<1x16x32xf32>
    %144 = vector.shape_cast %143 : vector<1x16x32xf32> to vector<16x32xf32>
    %145 = vector.shape_cast %139 : vector<16x32xf32> to vector<1x16x32xf32>
    tpu.vector_store %arg16[%c1_78, %c0_79, %c0_80], %145 {strides = array<i32>} : memref<2x16x32xf32, #tpu.memory_space<vmem>>, vector<1x16x32xf32>,
    %cst_81 = arith.constant dense<0.000000e+00> : vector<32xf32>
    %146 = vector.multi_reduction <add>, %116, %cst_81 [0] : vector<16x32xf32> to vector<32xf32>
    %147 = vector.shape_cast %146 : vector<32xf32> to vector<1x32xf32>
    %148 = arith.addf %74, %147 : vector<1x32xf32>
    %149 = arith.mulf %116, %116 : vector<16x32xf32>
    %cst_82 = arith.constant dense<0.000000e+00> : vector<32xf32>
    %150 = vector.multi_reduction <add>, %149, %cst_82 [0] : vector<16x32xf32> to vector<32xf32>
    %151 = vector.shape_cast %150 : vector<32xf32> to vector<1x32xf32>
    %152 = arith.addf %78, %151 : vector<1x32xf32>
    %cst_83 = arith.constant dense<0.000000e+00> : vector<32xf32>
    %153 = vector.multi_reduction <add>, %139, %cst_83 [0] : vector<16x32xf32> to vector<32xf32>
    %154 = vector.shape_cast %153 : vector<32xf32> to vector<1x32xf32>
    %155 = arith.addf %81, %154 : vector<1x32xf32>
    %156 = arith.mulf %139, %139 : vector<16x32xf32>
    %cst_84 = arith.constant dense<0.000000e+00> : vector<32xf32>
    %157 = vector.multi_reduction <add>, %156, %cst_84 [0] : vector<16x32xf32> to vector<32xf32>
    %158 = vector.shape_cast %157 : vector<32xf32> to vector<1x32xf32>
    %159 = arith.addf %85, %158 : vector<1x32xf32>
    %160 = tpu.concatenate %148, %152 in 0 : vector<1x32xf32>, vector<1x32xf32> -> vector<2x32xf32>
    %c0_85 = arith.constant 0 : index
    %c0_86 = arith.constant 0 : index
    %c0_87 = arith.constant 0 : index
    %161 = vector.load %arg17[%c0_85, %c0_86, %c0_87] : memref<1x2x32xf32, #tpu.memory_space<vmem>>, vector<1x2x32xf32>
    %162 = vector.shape_cast %161 : vector<1x2x32xf32> to vector<2x32xf32>
    %163 = vector.shape_cast %160 : vector<2x32xf32> to vector<1x2x32xf32>
    tpu.vector_store %arg17[%c0_85, %c0_86, %c0_87], %163 {strides = array<i32>} : memref<1x2x32xf32, #tpu.memory_space<vmem>>, vector<1x2x32xf32>,
    %164 = tpu.concatenate %155, %159 in 0 : vector<1x32xf32>, vector<1x32xf32> -> vector<2x32xf32>
    %c0_88 = arith.constant 0 : index
    %c0_89 = arith.constant 0 : index
    %c0_90 = arith.constant 0 : index
    %165 = vector.load %arg18[%c0_88, %c0_89, %c0_90] : memref<1x2x32xf32, #tpu.memory_space<vmem>>, vector<1x2x32xf32>
    %166 = vector.shape_cast %165 : vector<1x2x32xf32> to vector<2x32xf32>
    %167 = vector.shape_cast %164 : vector<2x32xf32> to vector<1x2x32xf32>
    tpu.vector_store %arg18[%c0_88, %c0_89, %c0_90], %167 {strides = array<i32>} : memref<1x2x32xf32, #tpu.memory_space<vmem>>, vector<1x2x32xf32>,
    return
  }
  func.func @transform_0(%arg0: i32) -> (i32, i32, i32) {
    %c0_i32 = arith.constant 0 : i32
    %c0_i32_0 = arith.constant 0 : i32
    %c0_i32_1 = arith.constant 0 : i32
    return %arg0, %c0_i32, %c0_i32_0 : i32, i32, i32
  }
  func.func @transform_1(%arg0: i32) -> (i32, i32, i32) {
    %c0_i32 = arith.constant 0 : i32
    %c0_i32_0 = arith.constant 0 : i32
    %c0_i32_1 = arith.constant 0 : i32
    return %arg0, %c0_i32, %c0_i32_0 : i32, i32, i32
  }
  func.func @transform_2(%arg0: i32) -> (i32, i32, i32) {
    %c0_i32 = arith.constant 0 : i32
    %c0_i32_0 = arith.constant 0 : i32
    %c0_i32_1 = arith.constant 0 : i32
    return %arg0, %c0_i32, %c0_i32_0 : i32, i32, i32
  }
  func.func @transform_3(%arg0: i32) -> (i32, i32, i32) {
    %c0_i32 = arith.constant 0 : i32
    %c0_i32_0 = arith.constant 0 : i32
    %c0_i32_1 = arith.constant 0 : i32
    return %arg0, %c0_i32, %c0_i32_0 : i32, i32, i32
  }
  func.func @transform_4(%arg0: i32) -> (i32, i32, i32) {
    %c0_i32 = arith.constant 0 : i32
    %c0_i32_0 = arith.constant 0 : i32
    %c0_i32_1 = arith.constant 0 : i32
    return %arg0, %c0_i32, %c0_i32_0 : i32, i32, i32
  }
  func.func @transform_5(%arg0: i32) -> (i32, i32, i32) {
    %c0_i32 = arith.constant 0 : i32
    %c0_i32_0 = arith.constant 0 : i32
    %c0_i32_1 = arith.constant 0 : i32
    return %arg0, %c0_i32, %c0_i32_0 : i32, i32, i32
  }
  func.func @transform_6(%arg0: i32) -> (i32, i32) {
    %c0_i32 = arith.constant 0 : i32
    %c0_i32_0 = arith.constant 0 : i32
    %c0_i32_1 = arith.constant 0 : i32
    return %c0_i32, %c0_i32_0 : i32, i32
  }
  func.func @transform_7(%arg0: i32) -> (i32, i32) {
    %c0_i32 = arith.constant 0 : i32
    %c0_i32_0 = arith.constant 0 : i32
    %c0_i32_1 = arith.constant 0 : i32
    return %c0_i32, %c0_i32_0 : i32, i32
  }
  func.func @transform_8(%arg0: i32) -> (i32, i32) {
    %c0_i32 = arith.constant 0 : i32
    %c0_i32_0 = arith.constant 0 : i32
    %c0_i32_1 = arith.constant 0 : i32
    return %c0_i32, %c0_i32_0 : i32, i32
  }
  func.func @transform_9(%arg0: i32) -> (i32, i32) {
    %c0_i32 = arith.constant 0 : i32
    %c0_i32_0 = arith.constant 0 : i32
    %c0_i32_1 = arith.constant 0 : i32
    return %c0_i32, %c0_i32_0 : i32, i32
  }
  func.func @transform_10(%arg0: i32) -> (i32, i32) {
    %c0_i32 = arith.constant 0 : i32
    %c0_i32_0 = arith.constant 0 : i32
    %c0_i32_1 = arith.constant 0 : i32
    return %c0_i32, %c0_i32_0 : i32, i32
  }
  func.func @transform_11(%arg0: i32) -> (i32, i32) {
    %c0_i32 = arith.constant 0 : i32
    %c0_i32_0 = arith.constant 0 : i32
    %c0_i32_1 = arith.constant 0 : i32
    return %c0_i32, %c0_i32_0 : i32, i32
  }
  func.func @transform_12(%arg0: i32) -> (i32, i32) {
    %c0_i32 = arith.constant 0 : i32
    %c0_i32_0 = arith.constant 0 : i32
    %c0_i32_1 = arith.constant 0 : i32
    return %c0_i32, %c0_i32_0 : i32, i32
  }
  func.func @transform_13(%arg0: i32) -> (i32, i32) {
    %c0_i32 = arith.constant 0 : i32
    %c0_i32_0 = arith.constant 0 : i32
    %c0_i32_1 = arith.constant 0 : i32
    return %c0_i32, %c0_i32_0 : i32, i32
  }
  func.func @transform_14(%arg0: i32) -> (i32, i32, i32) {
    %c0_i32 = arith.constant 0 : i32
    %c0_i32_0 = arith.constant 0 : i32
    %c0_i32_1 = arith.constant 0 : i32
    return %arg0, %c0_i32, %c0_i32_0 : i32, i32, i32
  }
  func.func @transform_15(%arg0: i32) -> (i32, i32, i32) {
    %c0_i32 = arith.constant 0 : i32
    %c0_i32_0 = arith.constant 0 : i32
    %c0_i32_1 = arith.constant 0 : i32
    return %arg0, %c0_i32, %c0_i32_0 : i32, i32, i32
  }
  func.func @transform_16(%arg0: i32) -> (i32, i32, i32) {
    %c0_i32 = arith.constant 0 : i32
    %c0_i32_0 = arith.constant 0 : i32
    %c0_i32_1 = arith.constant 0 : i32
    return %arg0, %c0_i32, %c0_i32_0 : i32, i32, i32
  }
  func.func @transform_17(%arg0: i32) -> (i32, i32, i32) {
    %c0_i32 = arith.constant 0 : i32
    %c0_i32_0 = arith.constant 0 : i32
    %c0_i32_1 = arith.constant 0 : i32
    return %arg0, %c0_i32, %c0_i32_0 : i32, i32, i32
  }
}

module attributes {stable_mosaic.version = 11 : i64} {
  func.func @_dual_gcn_kernel(%arg0: i32, %arg1: memref<2x16x32xf32, #tpu.memory_space<vmem>>, %arg2: memref<2x16x32xf32, #tpu.memory_space<vmem>>, %arg3: memref<2x16x16xbf16, #tpu.memory_space<vmem>>, %arg4: memref<2x16x1xf32, #tpu.memory_space<vmem>>, %arg5: memref<2x16x1xf32, #tpu.memory_space<vmem>>, %arg6: memref<2x16x1xf32, #tpu.memory_space<vmem>>, %arg7: memref<32x4xbf16, #tpu.memory_space<vmem>>, %arg8: memref<1x4xf32, #tpu.memory_space<vmem>>, %arg9: memref<1x32xf32, #tpu.memory_space<vmem>>, %arg10: memref<1x32xf32, #tpu.memory_space<vmem>>, %arg11: memref<32x32xbf16, #tpu.memory_space<vmem>>, %arg12: memref<1x32xf32, #tpu.memory_space<vmem>>, %arg13: memref<1x32xf32, #tpu.memory_space<vmem>>, %arg14: memref<1x32xf32, #tpu.memory_space<vmem>>, %arg15: memref<2x16x4xf32, #tpu.memory_space<vmem>>, %arg16: memref<2x16x32xf32, #tpu.memory_space<vmem>>, %arg17: memref<1x2x4xf32, #tpu.memory_space<vmem>>, %arg18: memref<1x2x32xf32, #tpu.memory_space<vmem>>) attributes {dimension_semantics = [#tpu.dimension_semantics<parallel>], iteration_bounds = array<i64: 1>, scalar_prefetch = 0 : i64, scratch_operands = 0 : i64, tpu.core_type = #tpu.core_type<tc>, window_params = [{transform_indices = @transform_0, window_bounds = array<i64: 2, 16, 32>}, {transform_indices = @transform_1, window_bounds = array<i64: 2, 16, 32>}, {transform_indices = @transform_2, window_bounds = array<i64: 2, 16, 16>}, {transform_indices = @transform_3, window_bounds = array<i64: 2, 16, 1>}, {transform_indices = @transform_4, window_bounds = array<i64: 2, 16, 1>}, {transform_indices = @transform_5, window_bounds = array<i64: 2, 16, 1>}, {pipeline_mode = #tpu.pipeline_mode<synchronous>, transform_indices = @transform_6, window_bounds = array<i64: 32, 4>}, {pipeline_mode = #tpu.pipeline_mode<synchronous>, transform_indices = @transform_7, window_bounds = array<i64: 1, 4>}, {pipeline_mode = #tpu.pipeline_mode<synchronous>, transform_indices = @transform_8, window_bounds = array<i64: 1, 32>}, {pipeline_mode = #tpu.pipeline_mode<synchronous>, transform_indices = @transform_9, window_bounds = array<i64: 1, 32>}, {pipeline_mode = #tpu.pipeline_mode<synchronous>, transform_indices = @transform_10, window_bounds = array<i64: 32, 32>}, {pipeline_mode = #tpu.pipeline_mode<synchronous>, transform_indices = @transform_11, window_bounds = array<i64: 1, 32>}, {pipeline_mode = #tpu.pipeline_mode<synchronous>, transform_indices = @transform_12, window_bounds = array<i64: 1, 32>}, {pipeline_mode = #tpu.pipeline_mode<synchronous>, transform_indices = @transform_13, window_bounds = array<i64: 1, 32>}, {transform_indices = @transform_14, window_bounds = array<i64: 2, 16, 4>}, {transform_indices = @transform_15, window_bounds = array<i64: 2, 16, 32>}, {transform_indices = @transform_16, window_bounds = array<i64: 1, 2, 4>}, {transform_indices = @transform_17, window_bounds = array<i64: 1, 2, 32>}]} {
    %c0 = arith.constant 0 : index
    %c0_0 = arith.constant 0 : index
    %0 = vector.load %arg7[%c0, %c0_0] : memref<32x4xbf16, #tpu.memory_space<vmem>>, vector<32x4xbf16>
    %c0_1 = arith.constant 0 : index
    %c0_2 = arith.constant 0 : index
    %1 = vector.load %arg8[%c0_1, %c0_2] : memref<1x4xf32, #tpu.memory_space<vmem>>, vector<1x4xf32>
    %c0_3 = arith.constant 0 : index
    %c0_4 = arith.constant 0 : index
    %2 = vector.load %arg9[%c0_3, %c0_4] : memref<1x32xf32, #tpu.memory_space<vmem>>, vector<1x32xf32>
    %c0_5 = arith.constant 0 : index
    %c0_6 = arith.constant 0 : index
    %3 = vector.load %arg10[%c0_5, %c0_6] : memref<1x32xf32, #tpu.memory_space<vmem>>, vector<1x32xf32>
    %c0_7 = arith.constant 0 : index
    %c0_8 = arith.constant 0 : index
    %4 = vector.load %arg11[%c0_7, %c0_8] : memref<32x32xbf16, #tpu.memory_space<vmem>>, vector<32x32xbf16>
    %c0_9 = arith.constant 0 : index
    %c0_10 = arith.constant 0 : index
    %5 = vector.load %arg12[%c0_9, %c0_10] : memref<1x32xf32, #tpu.memory_space<vmem>>, vector<1x32xf32>
    %c0_11 = arith.constant 0 : index
    %c0_12 = arith.constant 0 : index
    %6 = vector.load %arg13[%c0_11, %c0_12] : memref<1x32xf32, #tpu.memory_space<vmem>>, vector<1x32xf32>
    %c0_13 = arith.constant 0 : index
    %c0_14 = arith.constant 0 : index
    %7 = vector.load %arg14[%c0_13, %c0_14] : memref<1x32xf32, #tpu.memory_space<vmem>>, vector<1x32xf32>
    %cst = arith.constant 0.000000e+00 : f32
    %8 = vector.broadcast %cst : f32 to vector<1x4xf32>
    %cst_15 = arith.constant 0.000000e+00 : f32
    %9 = vector.broadcast %cst_15 : f32 to vector<1x4xf32>
    %cst_16 = arith.constant 0.000000e+00 : f32
    %10 = vector.broadcast %cst_16 : f32 to vector<1x32xf32>
    %cst_17 = arith.constant 0.000000e+00 : f32
    %11 = vector.broadcast %cst_17 : f32 to vector<1x32xf32>
    %c0_18 = arith.constant 0 : index
    %c0_19 = arith.constant 0 : index
    %c0_20 = arith.constant 0 : index
    %12 = vector.load %arg3[%c0_18, %c0_19, %c0_20] : memref<2x16x16xbf16, #tpu.memory_space<vmem>>, vector<1x16x16xbf16>
    %13 = vector.shape_cast %12 : vector<1x16x16xbf16> to vector<16x16xbf16>
    %c0_21 = arith.constant 0 : index
    %c0_22 = arith.constant 0 : index
    %c0_23 = arith.constant 0 : index
    %14 = vector.load %arg4[%c0_21, %c0_22, %c0_23] : memref<2x16x1xf32, #tpu.memory_space<vmem>>, vector<1x16x1xf32>
    %15 = vector.shape_cast %14 : vector<1x16x1xf32> to vector<16x1xf32>
    %c0_24 = arith.constant 0 : index
    %c0_25 = arith.constant 0 : index
    %c0_26 = arith.constant 0 : index
    %16 = vector.load %arg5[%c0_24, %c0_25, %c0_26] : memref<2x16x1xf32, #tpu.memory_space<vmem>>, vector<1x16x1xf32>
    %17 = vector.shape_cast %16 : vector<1x16x1xf32> to vector<16x1xf32>
    %c0_27 = arith.constant 0 : index
    %c0_28 = arith.constant 0 : index
    %c0_29 = arith.constant 0 : index
    %18 = vector.load %arg6[%c0_27, %c0_28, %c0_29] : memref<2x16x1xf32, #tpu.memory_space<vmem>>, vector<1x16x1xf32>
    %19 = vector.shape_cast %18 : vector<1x16x1xf32> to vector<16x1xf32>
    %c0_30 = arith.constant 0 : index
    %c0_31 = arith.constant 0 : index
    %c0_32 = arith.constant 0 : index
    %20 = vector.load %arg1[%c0_30, %c0_31, %c0_32] : memref<2x16x32xf32, #tpu.memory_space<vmem>>, vector<1x16x32xf32>
    %21 = vector.shape_cast %20 : vector<1x16x32xf32> to vector<16x32xf32>
    %22 = vector.broadcast %2 : vector<1x32xf32> to vector<16x32xf32>
    %23 = arith.subf %21, %22 : vector<16x32xf32>
    %24 = vector.broadcast %3 : vector<1x32xf32> to vector<16x32xf32>
    %25 = arith.mulf %23, %24 : vector<16x32xf32>
    %26 = arith.truncf %25 : vector<16x32xf32> to vector<16x32xbf16>
    %cst_33 = arith.constant dense<0.000000e+00> : vector<16x4xf32>
    %27 = tpu.matmul %26, %0, %cst_33 {dimension_numbers = #tpu.dot_dimension_numbers<[1], [0], [0], [1], [0, 0, 1, 1], [], []>} : vector<16x32xbf16>, vector<32x4xbf16>, vector<16x4xf32> -> vector<16x4xf32>
    %28 = vector.broadcast %17 : vector<16x1xf32> to vector<16x4xf32>
    %29 = arith.mulf %28, %27 : vector<16x4xf32>
    %30 = arith.truncf %29 : vector<16x4xf32> to vector<16x4xbf16>
    %cst_34 = arith.constant dense<0.000000e+00> : vector<16x4xf32>
    %31 = tpu.matmul %13, %30, %cst_34 {dimension_numbers = #tpu.dot_dimension_numbers<[1], [0], [0], [1], [0, 0, 1, 1], [], []>} : vector<16x16xbf16>, vector<16x4xbf16>, vector<16x4xf32> -> vector<16x4xf32>
    %32 = vector.broadcast %17 : vector<16x1xf32> to vector<16x4xf32>
    %33 = arith.mulf %32, %31 : vector<16x4xf32>
    %34 = vector.broadcast %19 : vector<16x1xf32> to vector<16x4xf32>
    %35 = arith.mulf %34, %27 : vector<16x4xf32>
    %36 = arith.addf %33, %35 : vector<16x4xf32>
    %37 = vector.broadcast %1 : vector<1x4xf32> to vector<16x4xf32>
    %38 = arith.addf %36, %37 : vector<16x4xf32>
    %39 = vector.broadcast %15 : vector<16x1xf32> to vector<16x4xf32>
    %40 = arith.mulf %38, %39 : vector<16x4xf32>
    %cst_35 = arith.constant 0.000000e+00 : f32
    %41 = vector.broadcast %cst_35 : f32 to vector<16x4xf32>
    %42 = arith.maximumf %40, %41 : vector<16x4xf32>
    %c0_36 = arith.constant 0 : index
    %c0_37 = arith.constant 0 : index
    %c0_38 = arith.constant 0 : index
    %43 = vector.load %arg2[%c0_36, %c0_37, %c0_38] : memref<2x16x32xf32, #tpu.memory_space<vmem>>, vector<1x16x32xf32>
    %44 = vector.shape_cast %43 : vector<1x16x32xf32> to vector<16x32xf32>
    %45 = vector.broadcast %6 : vector<1x32xf32> to vector<16x32xf32>
    %46 = arith.subf %44, %45 : vector<16x32xf32>
    %47 = vector.broadcast %7 : vector<1x32xf32> to vector<16x32xf32>
    %48 = arith.mulf %46, %47 : vector<16x32xf32>
    %49 = arith.truncf %48 : vector<16x32xf32> to vector<16x32xbf16>
    %cst_39 = arith.constant dense<0.000000e+00> : vector<16x32xf32>
    %50 = tpu.matmul %49, %4, %cst_39 {dimension_numbers = #tpu.dot_dimension_numbers<[1], [0], [0], [1], [0, 0, 1, 1], [], []>} : vector<16x32xbf16>, vector<32x32xbf16>, vector<16x32xf32> -> vector<16x32xf32>
    %51 = vector.broadcast %17 : vector<16x1xf32> to vector<16x32xf32>
    %52 = arith.mulf %51, %50 : vector<16x32xf32>
    %53 = arith.truncf %52 : vector<16x32xf32> to vector<16x32xbf16>
    %cst_40 = arith.constant dense<0.000000e+00> : vector<16x32xf32>
    %54 = tpu.matmul %13, %53, %cst_40 {dimension_numbers = #tpu.dot_dimension_numbers<[1], [0], [0], [1], [0, 0, 1, 1], [], []>} : vector<16x16xbf16>, vector<16x32xbf16>, vector<16x32xf32> -> vector<16x32xf32>
    %55 = vector.broadcast %17 : vector<16x1xf32> to vector<16x32xf32>
    %56 = arith.mulf %55, %54 : vector<16x32xf32>
    %57 = vector.broadcast %19 : vector<16x1xf32> to vector<16x32xf32>
    %58 = arith.mulf %57, %50 : vector<16x32xf32>
    %59 = arith.addf %56, %58 : vector<16x32xf32>
    %60 = vector.broadcast %5 : vector<1x32xf32> to vector<16x32xf32>
    %61 = arith.addf %59, %60 : vector<16x32xf32>
    %62 = vector.broadcast %15 : vector<16x1xf32> to vector<16x32xf32>
    %63 = arith.mulf %61, %62 : vector<16x32xf32>
    %cst_41 = arith.constant 0.000000e+00 : f32
    %64 = vector.broadcast %cst_41 : f32 to vector<16x32xf32>
    %65 = arith.maximumf %63, %64 : vector<16x32xf32>
    %c0_42 = arith.constant 0 : index
    %c0_43 = arith.constant 0 : index
    %c0_44 = arith.constant 0 : index
    %66 = vector.load %arg15[%c0_42, %c0_43, %c0_44] : memref<2x16x4xf32, #tpu.memory_space<vmem>>, vector<1x16x4xf32>
    %67 = vector.shape_cast %66 : vector<1x16x4xf32> to vector<16x4xf32>
    %68 = vector.shape_cast %42 : vector<16x4xf32> to vector<1x16x4xf32>
    tpu.vector_store %arg15[%c0_42, %c0_43, %c0_44], %68 {strides = array<i32>} : memref<2x16x4xf32, #tpu.memory_space<vmem>>, vector<1x16x4xf32>,
    %c0_45 = arith.constant 0 : index
    %c0_46 = arith.constant 0 : index
    %c0_47 = arith.constant 0 : index
    %69 = vector.load %arg16[%c0_45, %c0_46, %c0_47] : memref<2x16x32xf32, #tpu.memory_space<vmem>>, vector<1x16x32xf32>
    %70 = vector.shape_cast %69 : vector<1x16x32xf32> to vector<16x32xf32>
    %71 = vector.shape_cast %65 : vector<16x32xf32> to vector<1x16x32xf32>
    tpu.vector_store %arg16[%c0_45, %c0_46, %c0_47], %71 {strides = array<i32>} : memref<2x16x32xf32, #tpu.memory_space<vmem>>, vector<1x16x32xf32>,
    %cst_48 = arith.constant dense<0.000000e+00> : vector<4xf32>
    %72 = vector.multi_reduction <add>, %42, %cst_48 [0] : vector<16x4xf32> to vector<4xf32>
    %73 = vector.shape_cast %72 : vector<4xf32> to vector<1x4xf32>
    %74 = arith.addf %8, %73 : vector<1x4xf32>
    %75 = arith.mulf %42, %42 : vector<16x4xf32>
    %cst_49 = arith.constant dense<0.000000e+00> : vector<4xf32>
    %76 = vector.multi_reduction <add>, %75, %cst_49 [0] : vector<16x4xf32> to vector<4xf32>
    %77 = vector.shape_cast %76 : vector<4xf32> to vector<1x4xf32>
    %78 = arith.addf %9, %77 : vector<1x4xf32>
    %cst_50 = arith.constant dense<0.000000e+00> : vector<32xf32>
    %79 = vector.multi_reduction <add>, %65, %cst_50 [0] : vector<16x32xf32> to vector<32xf32>
    %80 = vector.shape_cast %79 : vector<32xf32> to vector<1x32xf32>
    %81 = arith.addf %10, %80 : vector<1x32xf32>
    %82 = arith.mulf %65, %65 : vector<16x32xf32>
    %cst_51 = arith.constant dense<0.000000e+00> : vector<32xf32>
    %83 = vector.multi_reduction <add>, %82, %cst_51 [0] : vector<16x32xf32> to vector<32xf32>
    %84 = vector.shape_cast %83 : vector<32xf32> to vector<1x32xf32>
    %85 = arith.addf %11, %84 : vector<1x32xf32>
    %c1 = arith.constant 1 : index
    %c0_52 = arith.constant 0 : index
    %c0_53 = arith.constant 0 : index
    %86 = vector.load %arg3[%c1, %c0_52, %c0_53] : memref<2x16x16xbf16, #tpu.memory_space<vmem>>, vector<1x16x16xbf16>
    %87 = vector.shape_cast %86 : vector<1x16x16xbf16> to vector<16x16xbf16>
    %c1_54 = arith.constant 1 : index
    %c0_55 = arith.constant 0 : index
    %c0_56 = arith.constant 0 : index
    %88 = vector.load %arg4[%c1_54, %c0_55, %c0_56] : memref<2x16x1xf32, #tpu.memory_space<vmem>>, vector<1x16x1xf32>
    %89 = vector.shape_cast %88 : vector<1x16x1xf32> to vector<16x1xf32>
    %c1_57 = arith.constant 1 : index
    %c0_58 = arith.constant 0 : index
    %c0_59 = arith.constant 0 : index
    %90 = vector.load %arg5[%c1_57, %c0_58, %c0_59] : memref<2x16x1xf32, #tpu.memory_space<vmem>>, vector<1x16x1xf32>
    %91 = vector.shape_cast %90 : vector<1x16x1xf32> to vector<16x1xf32>
    %c1_60 = arith.constant 1 : index
    %c0_61 = arith.constant 0 : index
    %c0_62 = arith.constant 0 : index
    %92 = vector.load %arg6[%c1_60, %c0_61, %c0_62] : memref<2x16x1xf32, #tpu.memory_space<vmem>>, vector<1x16x1xf32>
    %93 = vector.shape_cast %92 : vector<1x16x1xf32> to vector<16x1xf32>
    %c1_63 = arith.constant 1 : index
    %c0_64 = arith.constant 0 : index
    %c0_65 = arith.constant 0 : index
    %94 = vector.load %arg1[%c1_63, %c0_64, %c0_65] : memref<2x16x32xf32, #tpu.memory_space<vmem>>, vector<1x16x32xf32>
    %95 = vector.shape_cast %94 : vector<1x16x32xf32> to vector<16x32xf32>
    %96 = vector.broadcast %2 : vector<1x32xf32> to vector<16x32xf32>
    %97 = arith.subf %95, %96 : vector<16x32xf32>
    %98 = vector.broadcast %3 : vector<1x32xf32> to vector<16x32xf32>
    %99 = arith.mulf %97, %98 : vector<16x32xf32>
    %100 = arith.truncf %99 : vector<16x32xf32> to vector<16x32xbf16>
    %cst_66 = arith.constant dense<0.000000e+00> : vector<16x4xf32>
    %101 = tpu.matmul %100, %0, %cst_66 {dimension_numbers = #tpu.dot_dimension_numbers<[1], [0], [0], [1], [0, 0, 1, 1], [], []>} : vector<16x32xbf16>, vector<32x4xbf16>, vector<16x4xf32> -> vector<16x4xf32>
    %102 = vector.broadcast %91 : vector<16x1xf32> to vector<16x4xf32>
    %103 = arith.mulf %102, %101 : vector<16x4xf32>
    %104 = arith.truncf %103 : vector<16x4xf32> to vector<16x4xbf16>
    %cst_67 = arith.constant dense<0.000000e+00> : vector<16x4xf32>
    %105 = tpu.matmul %87, %104, %cst_67 {dimension_numbers = #tpu.dot_dimension_numbers<[1], [0], [0], [1], [0, 0, 1, 1], [], []>} : vector<16x16xbf16>, vector<16x4xbf16>, vector<16x4xf32> -> vector<16x4xf32>
    %106 = vector.broadcast %91 : vector<16x1xf32> to vector<16x4xf32>
    %107 = arith.mulf %106, %105 : vector<16x4xf32>
    %108 = vector.broadcast %93 : vector<16x1xf32> to vector<16x4xf32>
    %109 = arith.mulf %108, %101 : vector<16x4xf32>
    %110 = arith.addf %107, %109 : vector<16x4xf32>
    %111 = vector.broadcast %1 : vector<1x4xf32> to vector<16x4xf32>
    %112 = arith.addf %110, %111 : vector<16x4xf32>
    %113 = vector.broadcast %89 : vector<16x1xf32> to vector<16x4xf32>
    %114 = arith.mulf %112, %113 : vector<16x4xf32>
    %cst_68 = arith.constant 0.000000e+00 : f32
    %115 = vector.broadcast %cst_68 : f32 to vector<16x4xf32>
    %116 = arith.maximumf %114, %115 : vector<16x4xf32>
    %c1_69 = arith.constant 1 : index
    %c0_70 = arith.constant 0 : index
    %c0_71 = arith.constant 0 : index
    %117 = vector.load %arg2[%c1_69, %c0_70, %c0_71] : memref<2x16x32xf32, #tpu.memory_space<vmem>>, vector<1x16x32xf32>
    %118 = vector.shape_cast %117 : vector<1x16x32xf32> to vector<16x32xf32>
    %119 = vector.broadcast %6 : vector<1x32xf32> to vector<16x32xf32>
    %120 = arith.subf %118, %119 : vector<16x32xf32>
    %121 = vector.broadcast %7 : vector<1x32xf32> to vector<16x32xf32>
    %122 = arith.mulf %120, %121 : vector<16x32xf32>
    %123 = arith.truncf %122 : vector<16x32xf32> to vector<16x32xbf16>
    %cst_72 = arith.constant dense<0.000000e+00> : vector<16x32xf32>
    %124 = tpu.matmul %123, %4, %cst_72 {dimension_numbers = #tpu.dot_dimension_numbers<[1], [0], [0], [1], [0, 0, 1, 1], [], []>} : vector<16x32xbf16>, vector<32x32xbf16>, vector<16x32xf32> -> vector<16x32xf32>
    %125 = vector.broadcast %91 : vector<16x1xf32> to vector<16x32xf32>
    %126 = arith.mulf %125, %124 : vector<16x32xf32>
    %127 = arith.truncf %126 : vector<16x32xf32> to vector<16x32xbf16>
    %cst_73 = arith.constant dense<0.000000e+00> : vector<16x32xf32>
    %128 = tpu.matmul %87, %127, %cst_73 {dimension_numbers = #tpu.dot_dimension_numbers<[1], [0], [0], [1], [0, 0, 1, 1], [], []>} : vector<16x16xbf16>, vector<16x32xbf16>, vector<16x32xf32> -> vector<16x32xf32>
    %129 = vector.broadcast %91 : vector<16x1xf32> to vector<16x32xf32>
    %130 = arith.mulf %129, %128 : vector<16x32xf32>
    %131 = vector.broadcast %93 : vector<16x1xf32> to vector<16x32xf32>
    %132 = arith.mulf %131, %124 : vector<16x32xf32>
    %133 = arith.addf %130, %132 : vector<16x32xf32>
    %134 = vector.broadcast %5 : vector<1x32xf32> to vector<16x32xf32>
    %135 = arith.addf %133, %134 : vector<16x32xf32>
    %136 = vector.broadcast %89 : vector<16x1xf32> to vector<16x32xf32>
    %137 = arith.mulf %135, %136 : vector<16x32xf32>
    %cst_74 = arith.constant 0.000000e+00 : f32
    %138 = vector.broadcast %cst_74 : f32 to vector<16x32xf32>
    %139 = arith.maximumf %137, %138 : vector<16x32xf32>
    %c1_75 = arith.constant 1 : index
    %c0_76 = arith.constant 0 : index
    %c0_77 = arith.constant 0 : index
    %140 = vector.load %arg15[%c1_75, %c0_76, %c0_77] : memref<2x16x4xf32, #tpu.memory_space<vmem>>, vector<1x16x4xf32>
    %141 = vector.shape_cast %140 : vector<1x16x4xf32> to vector<16x4xf32>
    %142 = vector.shape_cast %116 : vector<16x4xf32> to vector<1x16x4xf32>
    tpu.vector_store %arg15[%c1_75, %c0_76, %c0_77], %142 {strides = array<i32>} : memref<2x16x4xf32, #tpu.memory_space<vmem>>, vector<1x16x4xf32>,
    %c1_78 = arith.constant 1 : index
    %c0_79 = arith.constant 0 : index
    %c0_80 = arith.constant 0 : index
    %143 = vector.load %arg16[%c1_78, %c0_79, %c0_80] : memref<2x16x32xf32, #tpu.memory_space<vmem>>, vector<1x16x32xf32>
    %144 = vector.shape_cast %143 : vector<1x16x32xf32> to vector<16x32xf32>
    %145 = vector.shape_cast %139 : vector<16x32xf32> to vector<1x16x32xf32>
    tpu.vector_store %arg16[%c1_78, %c0_79, %c0_80], %145 {strides = array<i32>} : memref<2x16x32xf32, #tpu.memory_space<vmem>>, vector<1x16x32xf32>,
    %cst_81 = arith.constant dense<0.000000e+00> : vector<4xf32>
    %146 = vector.multi_reduction <add>, %116, %cst_81 [0] : vector<16x4xf32> to vector<4xf32>
    %147 = vector.shape_cast %146 : vector<4xf32> to vector<1x4xf32>
    %148 = arith.addf %74, %147 : vector<1x4xf32>
    %149 = arith.mulf %116, %116 : vector<16x4xf32>
    %cst_82 = arith.constant dense<0.000000e+00> : vector<4xf32>
    %150 = vector.multi_reduction <add>, %149, %cst_82 [0] : vector<16x4xf32> to vector<4xf32>
    %151 = vector.shape_cast %150 : vector<4xf32> to vector<1x4xf32>
    %152 = arith.addf %78, %151 : vector<1x4xf32>
    %cst_83 = arith.constant dense<0.000000e+00> : vector<32xf32>
    %153 = vector.multi_reduction <add>, %139, %cst_83 [0] : vector<16x32xf32> to vector<32xf32>
    %154 = vector.shape_cast %153 : vector<32xf32> to vector<1x32xf32>
    %155 = arith.addf %81, %154 : vector<1x32xf32>
    %156 = arith.mulf %139, %139 : vector<16x32xf32>
    %cst_84 = arith.constant dense<0.000000e+00> : vector<32xf32>
    %157 = vector.multi_reduction <add>, %156, %cst_84 [0] : vector<16x32xf32> to vector<32xf32>
    %158 = vector.shape_cast %157 : vector<32xf32> to vector<1x32xf32>
    %159 = arith.addf %85, %158 : vector<1x32xf32>
    %160 = tpu.concatenate %148, %152 in 0 : vector<1x4xf32>, vector<1x4xf32> -> vector<2x4xf32>
    %c0_85 = arith.constant 0 : index
    %c0_86 = arith.constant 0 : index
    %c0_87 = arith.constant 0 : index
    %161 = vector.load %arg17[%c0_85, %c0_86, %c0_87] : memref<1x2x4xf32, #tpu.memory_space<vmem>>, vector<1x2x4xf32>
    %162 = vector.shape_cast %161 : vector<1x2x4xf32> to vector<2x4xf32>
    %163 = vector.shape_cast %160 : vector<2x4xf32> to vector<1x2x4xf32>
    tpu.vector_store %arg17[%c0_85, %c0_86, %c0_87], %163 {strides = array<i32>} : memref<1x2x4xf32, #tpu.memory_space<vmem>>, vector<1x2x4xf32>,
    %164 = tpu.concatenate %155, %159 in 0 : vector<1x32xf32>, vector<1x32xf32> -> vector<2x32xf32>
    %c0_88 = arith.constant 0 : index
    %c0_89 = arith.constant 0 : index
    %c0_90 = arith.constant 0 : index
    %165 = vector.load %arg18[%c0_88, %c0_89, %c0_90] : memref<1x2x32xf32, #tpu.memory_space<vmem>>, vector<1x2x32xf32>
    %166 = vector.shape_cast %165 : vector<1x2x32xf32> to vector<2x32xf32>
    %167 = vector.shape_cast %164 : vector<2x32xf32> to vector<1x2x32xf32>
    tpu.vector_store %arg18[%c0_88, %c0_89, %c0_90], %167 {strides = array<i32>} : memref<1x2x32xf32, #tpu.memory_space<vmem>>, vector<1x2x32xf32>,
    return
  }
  func.func @transform_0(%arg0: i32) -> (i32, i32, i32) {
    %c0_i32 = arith.constant 0 : i32
    %c0_i32_0 = arith.constant 0 : i32
    %c0_i32_1 = arith.constant 0 : i32
    return %arg0, %c0_i32, %c0_i32_0 : i32, i32, i32
  }
  func.func @transform_1(%arg0: i32) -> (i32, i32, i32) {
    %c0_i32 = arith.constant 0 : i32
    %c0_i32_0 = arith.constant 0 : i32
    %c0_i32_1 = arith.constant 0 : i32
    return %arg0, %c0_i32, %c0_i32_0 : i32, i32, i32
  }
  func.func @transform_2(%arg0: i32) -> (i32, i32, i32) {
    %c0_i32 = arith.constant 0 : i32
    %c0_i32_0 = arith.constant 0 : i32
    %c0_i32_1 = arith.constant 0 : i32
    return %arg0, %c0_i32, %c0_i32_0 : i32, i32, i32
  }
  func.func @transform_3(%arg0: i32) -> (i32, i32, i32) {
    %c0_i32 = arith.constant 0 : i32
    %c0_i32_0 = arith.constant 0 : i32
    %c0_i32_1 = arith.constant 0 : i32
    return %arg0, %c0_i32, %c0_i32_0 : i32, i32, i32
  }
  func.func @transform_4(%arg0: i32) -> (i32, i32, i32) {
    %c0_i32 = arith.constant 0 : i32
    %c0_i32_0 = arith.constant 0 : i32
    %c0_i32_1 = arith.constant 0 : i32
    return %arg0, %c0_i32, %c0_i32_0 : i32, i32, i32
  }
  func.func @transform_5(%arg0: i32) -> (i32, i32, i32) {
    %c0_i32 = arith.constant 0 : i32
    %c0_i32_0 = arith.constant 0 : i32
    %c0_i32_1 = arith.constant 0 : i32
    return %arg0, %c0_i32, %c0_i32_0 : i32, i32, i32
  }
  func.func @transform_6(%arg0: i32) -> (i32, i32) {
    %c0_i32 = arith.constant 0 : i32
    %c0_i32_0 = arith.constant 0 : i32
    %c0_i32_1 = arith.constant 0 : i32
    return %c0_i32, %c0_i32_0 : i32, i32
  }
  func.func @transform_7(%arg0: i32) -> (i32, i32) {
    %c0_i32 = arith.constant 0 : i32
    %c0_i32_0 = arith.constant 0 : i32
    %c0_i32_1 = arith.constant 0 : i32
    return %c0_i32, %c0_i32_0 : i32, i32
  }
  func.func @transform_8(%arg0: i32) -> (i32, i32) {
    %c0_i32 = arith.constant 0 : i32
    %c0_i32_0 = arith.constant 0 : i32
    %c0_i32_1 = arith.constant 0 : i32
    return %c0_i32, %c0_i32_0 : i32, i32
  }
  func.func @transform_9(%arg0: i32) -> (i32, i32) {
    %c0_i32 = arith.constant 0 : i32
    %c0_i32_0 = arith.constant 0 : i32
    %c0_i32_1 = arith.constant 0 : i32
    return %c0_i32, %c0_i32_0 : i32, i32
  }
  func.func @transform_10(%arg0: i32) -> (i32, i32) {
    %c0_i32 = arith.constant 0 : i32
    %c0_i32_0 = arith.constant 0 : i32
    %c0_i32_1 = arith.constant 0 : i32
    return %c0_i32, %c0_i32_0 : i32, i32
  }
  func.func @transform_11(%arg0: i32) -> (i32, i32) {
    %c0_i32 = arith.constant 0 : i32
    %c0_i32_0 = arith.constant 0 : i32
    %c0_i32_1 = arith.constant 0 : i32
    return %c0_i32, %c0_i32_0 : i32, i32
  }
  func.func @transform_12(%arg0: i32) -> (i32, i32) {
    %c0_i32 = arith.constant 0 : i32
    %c0_i32_0 = arith.constant 0 : i32
    %c0_i32_1 = arith.constant 0 : i32
    return %c0_i32, %c0_i32_0 : i32, i32
  }
  func.func @transform_13(%arg0: i32) -> (i32, i32) {
    %c0_i32 = arith.constant 0 : i32
    %c0_i32_0 = arith.constant 0 : i32
    %c0_i32_1 = arith.constant 0 : i32
    return %c0_i32, %c0_i32_0 : i32, i32
  }
  func.func @transform_14(%arg0: i32) -> (i32, i32, i32) {
    %c0_i32 = arith.constant 0 : i32
    %c0_i32_0 = arith.constant 0 : i32
    %c0_i32_1 = arith.constant 0 : i32
    return %arg0, %c0_i32, %c0_i32_0 : i32, i32, i32
  }
  func.func @transform_15(%arg0: i32) -> (i32, i32, i32) {
    %c0_i32 = arith.constant 0 : i32
    %c0_i32_0 = arith.constant 0 : i32
    %c0_i32_1 = arith.constant 0 : i32
    return %arg0, %c0_i32, %c0_i32_0 : i32, i32, i32
  }
  func.func @transform_16(%arg0: i32) -> (i32, i32, i32) {
    %c0_i32 = arith.constant 0 : i32
    %c0_i32_0 = arith.constant 0 : i32
    %c0_i32_1 = arith.constant 0 : i32
    return %arg0, %c0_i32, %c0_i32_0 : i32, i32, i32
  }
  func.func @transform_17(%arg0: i32) -> (i32, i32, i32) {
    %c0_i32 = arith.constant 0 : i32
    %c0_i32_0 = arith.constant 0 : i32
    %c0_i32_1 = arith.constant 0 : i32
    return %arg0, %c0_i32, %c0_i32_0 : i32, i32, i32
  }
}

module attributes {stable_mosaic.version = 11 : i64} {
  func.func @_diff_pool_kernel(%arg0: i32, %arg1: memref<2x16x32xf32, #tpu.memory_space<vmem>>, %arg2: memref<1x32xf32, #tpu.memory_space<vmem>>, %arg3: memref<1x32xf32, #tpu.memory_space<vmem>>, %arg4: memref<2x16x16xbf16, #tpu.memory_space<vmem>>, %arg5: memref<2x16x4xf32, #tpu.memory_space<vmem>>, %arg6: memref<1x4xf32, #tpu.memory_space<vmem>>, %arg7: memref<1x4xf32, #tpu.memory_space<vmem>>, %arg8: memref<2x4x32xf32, #tpu.memory_space<vmem>>, %arg9: memref<2x4x4xf32, #tpu.memory_space<vmem>>, %arg10: memref<1x1x2xf32, #tpu.memory_space<vmem>>) attributes {dimension_semantics = [#tpu.dimension_semantics<parallel>], iteration_bounds = array<i64: 1>, scalar_prefetch = 0 : i64, scratch_operands = 0 : i64, tpu.core_type = #tpu.core_type<tc>, window_params = [{transform_indices = @transform_0, window_bounds = array<i64: 2, 16, 32>}, {pipeline_mode = #tpu.pipeline_mode<synchronous>, transform_indices = @transform_1, window_bounds = array<i64: 1, 32>}, {pipeline_mode = #tpu.pipeline_mode<synchronous>, transform_indices = @transform_2, window_bounds = array<i64: 1, 32>}, {transform_indices = @transform_3, window_bounds = array<i64: 2, 16, 16>}, {transform_indices = @transform_4, window_bounds = array<i64: 2, 16, 4>}, {pipeline_mode = #tpu.pipeline_mode<synchronous>, transform_indices = @transform_5, window_bounds = array<i64: 1, 4>}, {pipeline_mode = #tpu.pipeline_mode<synchronous>, transform_indices = @transform_6, window_bounds = array<i64: 1, 4>}, {transform_indices = @transform_7, window_bounds = array<i64: 2, 4, 32>}, {transform_indices = @transform_8, window_bounds = array<i64: 2, 4, 4>}, {transform_indices = @transform_9, window_bounds = array<i64: 1, 1, 2>}]} {
    %c0 = arith.constant 0 : index
    %c0_0 = arith.constant 0 : index
    %0 = vector.load %arg2[%c0, %c0_0] : memref<1x32xf32, #tpu.memory_space<vmem>>, vector<1x32xf32>
    %c0_1 = arith.constant 0 : index
    %c0_2 = arith.constant 0 : index
    %1 = vector.load %arg3[%c0_1, %c0_2] : memref<1x32xf32, #tpu.memory_space<vmem>>, vector<1x32xf32>
    %c0_3 = arith.constant 0 : index
    %c0_4 = arith.constant 0 : index
    %2 = vector.load %arg6[%c0_3, %c0_4] : memref<1x4xf32, #tpu.memory_space<vmem>>, vector<1x4xf32>
    %c0_5 = arith.constant 0 : index
    %c0_6 = arith.constant 0 : index
    %3 = vector.load %arg7[%c0_5, %c0_6] : memref<1x4xf32, #tpu.memory_space<vmem>>, vector<1x4xf32>
    %c0_7 = arith.constant 0 : index
    %c0_8 = arith.constant 0 : index
    %c0_9 = arith.constant 0 : index
    %4 = vector.load %arg1[%c0_7, %c0_8, %c0_9] : memref<2x16x32xf32, #tpu.memory_space<vmem>>, vector<1x16x32xf32>
    %5 = vector.shape_cast %4 : vector<1x16x32xf32> to vector<16x32xf32>
    %6 = vector.broadcast %0 : vector<1x32xf32> to vector<16x32xf32>
    %7 = arith.subf %5, %6 : vector<16x32xf32>
    %8 = vector.broadcast %1 : vector<1x32xf32> to vector<16x32xf32>
    %9 = arith.mulf %7, %8 : vector<16x32xf32>
    %c0_10 = arith.constant 0 : index
    %c0_11 = arith.constant 0 : index
    %c0_12 = arith.constant 0 : index
    %10 = vector.load %arg5[%c0_10, %c0_11, %c0_12] : memref<2x16x4xf32, #tpu.memory_space<vmem>>, vector<1x16x4xf32>
    %11 = vector.shape_cast %10 : vector<1x16x4xf32> to vector<16x4xf32>
    %12 = vector.broadcast %2 : vector<1x4xf32> to vector<16x4xf32>
    %13 = arith.subf %11, %12 : vector<16x4xf32>
    %14 = vector.broadcast %3 : vector<1x4xf32> to vector<16x4xf32>
    %15 = arith.mulf %13, %14 : vector<16x4xf32>
    %c0_13 = arith.constant 0 : index
    %c0_14 = arith.constant 0 : index
    %c0_15 = arith.constant 0 : index
    %16 = vector.load %arg4[%c0_13, %c0_14, %c0_15] : memref<2x16x16xbf16, #tpu.memory_space<vmem>>, vector<1x16x16xbf16>
    %17 = vector.shape_cast %16 : vector<1x16x16xbf16> to vector<16x16xbf16>
    %18 = arith.extf %17 : vector<16x16xbf16> to vector<16x16xf32>
    %cst = arith.constant dense<0xFF800000> : vector<16xf32>
    %19 = vector.multi_reduction <maximumf>, %15, %cst [1] : vector<16x4xf32> to vector<16xf32>
    %20 = vector.shape_cast %19 : vector<16xf32> to vector<16x1xf32>
    %21 = vector.broadcast %20 : vector<16x1xf32> to vector<16x4xf32>
    %22 = arith.subf %15, %21 : vector<16x4xf32>
    %23 = math.exp %22 : vector<16x4xf32>
    %cst_16 = arith.constant dense<0.000000e+00> : vector<16xf32>
    %24 = vector.multi_reduction <add>, %23, %cst_16 [1] : vector<16x4xf32> to vector<16xf32>
    %25 = vector.shape_cast %24 : vector<16xf32> to vector<16x1xf32>
    %26 = tpu.reciprocal %25 {approx = true} : vector<16x1xf32> -> vector<16x1xf32>
    %27 = vector.broadcast %26 : vector<16x1xf32> to vector<16x4xf32>
    %28 = arith.mulf %23, %27 : vector<16x4xf32>
    %29 = arith.truncf %28 : vector<16x4xf32> to vector<16x4xbf16>
    %30 = tpu.transpose %29, [1, 0] : vector<16x4xbf16> -> vector<4x16xbf16>
    %31 = arith.truncf %9 : vector<16x32xf32> to vector<16x32xbf16>
    %c0_17 = arith.constant 0 : index
    %c0_18 = arith.constant 0 : index
    %c0_19 = arith.constant 0 : index
    %32 = vector.load %arg4[%c0_17, %c0_18, %c0_19] : memref<2x16x16xbf16, #tpu.memory_space<vmem>>, vector<1x16x16xbf16>
    %33 = vector.shape_cast %32 : vector<1x16x16xbf16> to vector<16x16xbf16>
    %cst_20 = arith.constant dense<0.000000e+00> : vector<4x32xf32>
    %34 = tpu.matmul %30, %31, %cst_20 {dimension_numbers = #tpu.dot_dimension_numbers<[1], [0], [0], [1], [0, 0, 1, 1], [], []>} : vector<4x16xbf16>, vector<16x32xbf16>, vector<4x32xf32> -> vector<4x32xf32>
    %cst_21 = arith.constant dense<0.000000e+00> : vector<16x4xf32>
    %35 = tpu.matmul %33, %29, %cst_21 {dimension_numbers = #tpu.dot_dimension_numbers<[1], [0], [0], [1], [0, 0, 1, 1], [], []>} : vector<16x16xbf16>, vector<16x4xbf16>, vector<16x4xf32> -> vector<16x4xf32>
    %36 = arith.truncf %35 : vector<16x4xf32> to vector<16x4xbf16>
    %cst_22 = arith.constant dense<0.000000e+00> : vector<4x4xf32>
    %37 = tpu.matmul %30, %36, %cst_22 {dimension_numbers = #tpu.dot_dimension_numbers<[1], [0], [0], [1], [0, 0, 1, 1], [], []>} : vector<4x16xbf16>, vector<16x4xbf16>, vector<4x4xf32> -> vector<4x4xf32>
    %cst_23 = arith.constant dense<0.000000e+00> : vector<4x4xf32>
    %38 = tpu.matmul %30, %29, %cst_23 {dimension_numbers = #tpu.dot_dimension_numbers<[1], [0], [0], [1], [0, 0, 1, 1], [], []>} : vector<4x16xbf16>, vector<16x4xbf16>, vector<4x4xf32> -> vector<4x4xf32>
    %39 = arith.mulf %28, %35 : vector<16x4xf32>
    %40 = vector.shape_cast %39 : vector<16x4xf32> to vector<1x16x4xf32>
    %cst_24 = arith.constant dense<0.000000e+00> : vector<1xf32>
    %41 = vector.multi_reduction <add>, %40, %cst_24 [1, 2] : vector<1x16x4xf32> to vector<1xf32>
    %42 = vector.shape_cast %41 : vector<1xf32> to vector<1x1x1xf32>
    %43 = vector.extract %42[0, 0, 0] : f32 from vector<1x1x1xf32>
    %44 = arith.mulf %18, %18 : vector<16x16xf32>
    %45 = vector.shape_cast %44 : vector<16x16xf32> to vector<1x16x16xf32>
    %cst_25 = arith.constant dense<0.000000e+00> : vector<1xf32>
    %46 = vector.multi_reduction <add>, %45, %cst_25 [1, 2] : vector<1x16x16xf32> to vector<1xf32>
    %47 = vector.shape_cast %46 : vector<1xf32> to vector<1x1x1xf32>
    %48 = vector.extract %47[0, 0, 0] : f32 from vector<1x1x1xf32>
    %cst_26 = arith.constant 2.000000e+00 : f32
    %49 = arith.mulf %cst_26, %43 : f32
    %50 = arith.subf %48, %49 : f32
    %51 = arith.mulf %38, %38 : vector<4x4xf32>
    %52 = vector.shape_cast %51 : vector<4x4xf32> to vector<1x4x4xf32>
    %cst_27 = arith.constant dense<0.000000e+00> : vector<1xf32>
    %53 = vector.multi_reduction <add>, %52, %cst_27 [1, 2] : vector<1x4x4xf32> to vector<1xf32>
    %54 = vector.shape_cast %53 : vector<1xf32> to vector<1x1x1xf32>
    %55 = vector.extract %54[0, 0, 0] : f32 from vector<1x1x1xf32>
    %56 = arith.addf %50, %55 : f32
    %cst_28 = arith.constant 0.000000e+00 : f32
    %57 = arith.addf %cst_28, %56 : f32
    %cst_29 = arith.constant 0.000000e+00 : f32
    %58 = vector.broadcast %cst_29 : f32 to vector<16x4xf32>
    %59 = arith.subf %58, %28 : vector<16x4xf32>
    %cst_30 = arith.constant 1.000000e-15 : f32
    %60 = vector.broadcast %cst_30 : f32 to vector<16x4xf32>
    %61 = arith.addf %28, %60 : vector<16x4xf32>
    %62 = math.log %61 : vector<16x4xf32>
    %63 = arith.mulf %59, %62 : vector<16x4xf32>
    %64 = vector.shape_cast %63 : vector<16x4xf32> to vector<1x16x4xf32>
    %cst_31 = arith.constant dense<0.000000e+00> : vector<1xf32>
    %65 = vector.multi_reduction <add>, %64, %cst_31 [1, 2] : vector<1x16x4xf32> to vector<1xf32>
    %66 = vector.shape_cast %65 : vector<1xf32> to vector<1x1x1xf32>
    %67 = vector.extract %66[0, 0, 0] : f32 from vector<1x1x1xf32>
    %cst_32 = arith.constant 0.000000e+00 : f32
    %68 = arith.addf %cst_32, %67 : f32
    %c0_33 = arith.constant 0 : index
    %c0_34 = arith.constant 0 : index
    %c0_35 = arith.constant 0 : index
    %69 = vector.load %arg8[%c0_33, %c0_34, %c0_35] : memref<2x4x32xf32, #tpu.memory_space<vmem>>, vector<1x4x32xf32>
    %70 = vector.shape_cast %69 : vector<1x4x32xf32> to vector<4x32xf32>
    %71 = vector.shape_cast %34 : vector<4x32xf32> to vector<1x4x32xf32>
    tpu.vector_store %arg8[%c0_33, %c0_34, %c0_35], %71 {strides = array<i32>} : memref<2x4x32xf32, #tpu.memory_space<vmem>>, vector<1x4x32xf32>,
    %c0_36 = arith.constant 0 : index
    %c0_37 = arith.constant 0 : index
    %c0_38 = arith.constant 0 : index
    %72 = vector.load %arg9[%c0_36, %c0_37, %c0_38] : memref<2x4x4xf32, #tpu.memory_space<vmem>>, vector<1x4x4xf32>
    %73 = vector.shape_cast %72 : vector<1x4x4xf32> to vector<4x4xf32>
    %74 = vector.shape_cast %37 : vector<4x4xf32> to vector<1x4x4xf32>
    tpu.vector_store %arg9[%c0_36, %c0_37, %c0_38], %74 {strides = array<i32>} : memref<2x4x4xf32, #tpu.memory_space<vmem>>, vector<1x4x4xf32>,
    %c1 = arith.constant 1 : index
    %c0_39 = arith.constant 0 : index
    %c0_40 = arith.constant 0 : index
    %75 = vector.load %arg1[%c1, %c0_39, %c0_40] : memref<2x16x32xf32, #tpu.memory_space<vmem>>, vector<1x16x32xf32>
    %76 = vector.shape_cast %75 : vector<1x16x32xf32> to vector<16x32xf32>
    %77 = vector.broadcast %0 : vector<1x32xf32> to vector<16x32xf32>
    %78 = arith.subf %76, %77 : vector<16x32xf32>
    %79 = vector.broadcast %1 : vector<1x32xf32> to vector<16x32xf32>
    %80 = arith.mulf %78, %79 : vector<16x32xf32>
    %c1_41 = arith.constant 1 : index
    %c0_42 = arith.constant 0 : index
    %c0_43 = arith.constant 0 : index
    %81 = vector.load %arg5[%c1_41, %c0_42, %c0_43] : memref<2x16x4xf32, #tpu.memory_space<vmem>>, vector<1x16x4xf32>
    %82 = vector.shape_cast %81 : vector<1x16x4xf32> to vector<16x4xf32>
    %83 = vector.broadcast %2 : vector<1x4xf32> to vector<16x4xf32>
    %84 = arith.subf %82, %83 : vector<16x4xf32>
    %85 = vector.broadcast %3 : vector<1x4xf32> to vector<16x4xf32>
    %86 = arith.mulf %84, %85 : vector<16x4xf32>
    %c1_44 = arith.constant 1 : index
    %c0_45 = arith.constant 0 : index
    %c0_46 = arith.constant 0 : index
    %87 = vector.load %arg4[%c1_44, %c0_45, %c0_46] : memref<2x16x16xbf16, #tpu.memory_space<vmem>>, vector<1x16x16xbf16>
    %88 = vector.shape_cast %87 : vector<1x16x16xbf16> to vector<16x16xbf16>
    %89 = arith.extf %88 : vector<16x16xbf16> to vector<16x16xf32>
    %cst_47 = arith.constant dense<0xFF800000> : vector<16xf32>
    %90 = vector.multi_reduction <maximumf>, %86, %cst_47 [1] : vector<16x4xf32> to vector<16xf32>
    %91 = vector.shape_cast %90 : vector<16xf32> to vector<16x1xf32>
    %92 = vector.broadcast %91 : vector<16x1xf32> to vector<16x4xf32>
    %93 = arith.subf %86, %92 : vector<16x4xf32>
    %94 = math.exp %93 : vector<16x4xf32>
    %cst_48 = arith.constant dense<0.000000e+00> : vector<16xf32>
    %95 = vector.multi_reduction <add>, %94, %cst_48 [1] : vector<16x4xf32> to vector<16xf32>
    %96 = vector.shape_cast %95 : vector<16xf32> to vector<16x1xf32>
    %97 = tpu.reciprocal %96 {approx = true} : vector<16x1xf32> -> vector<16x1xf32>
    %98 = vector.broadcast %97 : vector<16x1xf32> to vector<16x4xf32>
    %99 = arith.mulf %94, %98 : vector<16x4xf32>
    %100 = arith.truncf %99 : vector<16x4xf32> to vector<16x4xbf16>
    %101 = tpu.transpose %100, [1, 0] : vector<16x4xbf16> -> vector<4x16xbf16>
    %102 = arith.truncf %80 : vector<16x32xf32> to vector<16x32xbf16>
    %c1_49 = arith.constant 1 : index
    %c0_50 = arith.constant 0 : index
    %c0_51 = arith.constant 0 : index
    %103 = vector.load %arg4[%c1_49, %c0_50, %c0_51] : memref<2x16x16xbf16, #tpu.memory_space<vmem>>, vector<1x16x16xbf16>
    %104 = vector.shape_cast %103 : vector<1x16x16xbf16> to vector<16x16xbf16>
    %cst_52 = arith.constant dense<0.000000e+00> : vector<4x32xf32>
    %105 = tpu.matmul %101, %102, %cst_52 {dimension_numbers = #tpu.dot_dimension_numbers<[1], [0], [0], [1], [0, 0, 1, 1], [], []>} : vector<4x16xbf16>, vector<16x32xbf16>, vector<4x32xf32> -> vector<4x32xf32>
    %cst_53 = arith.constant dense<0.000000e+00> : vector<16x4xf32>
    %106 = tpu.matmul %104, %100, %cst_53 {dimension_numbers = #tpu.dot_dimension_numbers<[1], [0], [0], [1], [0, 0, 1, 1], [], []>} : vector<16x16xbf16>, vector<16x4xbf16>, vector<16x4xf32> -> vector<16x4xf32>
    %107 = arith.truncf %106 : vector<16x4xf32> to vector<16x4xbf16>
    %cst_54 = arith.constant dense<0.000000e+00> : vector<4x4xf32>
    %108 = tpu.matmul %101, %107, %cst_54 {dimension_numbers = #tpu.dot_dimension_numbers<[1], [0], [0], [1], [0, 0, 1, 1], [], []>} : vector<4x16xbf16>, vector<16x4xbf16>, vector<4x4xf32> -> vector<4x4xf32>
    %cst_55 = arith.constant dense<0.000000e+00> : vector<4x4xf32>
    %109 = tpu.matmul %101, %100, %cst_55 {dimension_numbers = #tpu.dot_dimension_numbers<[1], [0], [0], [1], [0, 0, 1, 1], [], []>} : vector<4x16xbf16>, vector<16x4xbf16>, vector<4x4xf32> -> vector<4x4xf32>
    %110 = arith.mulf %99, %106 : vector<16x4xf32>
    %111 = vector.shape_cast %110 : vector<16x4xf32> to vector<1x16x4xf32>
    %cst_56 = arith.constant dense<0.000000e+00> : vector<1xf32>
    %112 = vector.multi_reduction <add>, %111, %cst_56 [1, 2] : vector<1x16x4xf32> to vector<1xf32>
    %113 = vector.shape_cast %112 : vector<1xf32> to vector<1x1x1xf32>
    %114 = vector.extract %113[0, 0, 0] : f32 from vector<1x1x1xf32>
    %115 = arith.mulf %89, %89 : vector<16x16xf32>
    %116 = vector.shape_cast %115 : vector<16x16xf32> to vector<1x16x16xf32>
    %cst_57 = arith.constant dense<0.000000e+00> : vector<1xf32>
    %117 = vector.multi_reduction <add>, %116, %cst_57 [1, 2] : vector<1x16x16xf32> to vector<1xf32>
    %118 = vector.shape_cast %117 : vector<1xf32> to vector<1x1x1xf32>
    %119 = vector.extract %118[0, 0, 0] : f32 from vector<1x1x1xf32>
    %cst_58 = arith.constant 2.000000e+00 : f32
    %120 = arith.mulf %cst_58, %114 : f32
    %121 = arith.subf %119, %120 : f32
    %122 = arith.mulf %109, %109 : vector<4x4xf32>
    %123 = vector.shape_cast %122 : vector<4x4xf32> to vector<1x4x4xf32>
    %cst_59 = arith.constant dense<0.000000e+00> : vector<1xf32>
    %124 = vector.multi_reduction <add>, %123, %cst_59 [1, 2] : vector<1x4x4xf32> to vector<1xf32>
    %125 = vector.shape_cast %124 : vector<1xf32> to vector<1x1x1xf32>
    %126 = vector.extract %125[0, 0, 0] : f32 from vector<1x1x1xf32>
    %127 = arith.addf %121, %126 : f32
    %128 = arith.addf %57, %127 : f32
    %cst_60 = arith.constant 0.000000e+00 : f32
    %129 = vector.broadcast %cst_60 : f32 to vector<16x4xf32>
    %130 = arith.subf %129, %99 : vector<16x4xf32>
    %cst_61 = arith.constant 1.000000e-15 : f32
    %131 = vector.broadcast %cst_61 : f32 to vector<16x4xf32>
    %132 = arith.addf %99, %131 : vector<16x4xf32>
    %133 = math.log %132 : vector<16x4xf32>
    %134 = arith.mulf %130, %133 : vector<16x4xf32>
    %135 = vector.shape_cast %134 : vector<16x4xf32> to vector<1x16x4xf32>
    %cst_62 = arith.constant dense<0.000000e+00> : vector<1xf32>
    %136 = vector.multi_reduction <add>, %135, %cst_62 [1, 2] : vector<1x16x4xf32> to vector<1xf32>
    %137 = vector.shape_cast %136 : vector<1xf32> to vector<1x1x1xf32>
    %138 = vector.extract %137[0, 0, 0] : f32 from vector<1x1x1xf32>
    %139 = arith.addf %68, %138 : f32
    %c1_63 = arith.constant 1 : index
    %c0_64 = arith.constant 0 : index
    %c0_65 = arith.constant 0 : index
    %140 = vector.load %arg8[%c1_63, %c0_64, %c0_65] : memref<2x4x32xf32, #tpu.memory_space<vmem>>, vector<1x4x32xf32>
    %141 = vector.shape_cast %140 : vector<1x4x32xf32> to vector<4x32xf32>
    %142 = vector.shape_cast %105 : vector<4x32xf32> to vector<1x4x32xf32>
    tpu.vector_store %arg8[%c1_63, %c0_64, %c0_65], %142 {strides = array<i32>} : memref<2x4x32xf32, #tpu.memory_space<vmem>>, vector<1x4x32xf32>,
    %c1_66 = arith.constant 1 : index
    %c0_67 = arith.constant 0 : index
    %c0_68 = arith.constant 0 : index
    %143 = vector.load %arg9[%c1_66, %c0_67, %c0_68] : memref<2x4x4xf32, #tpu.memory_space<vmem>>, vector<1x4x4xf32>
    %144 = vector.shape_cast %143 : vector<1x4x4xf32> to vector<4x4xf32>
    %145 = vector.shape_cast %108 : vector<4x4xf32> to vector<1x4x4xf32>
    tpu.vector_store %arg9[%c1_66, %c0_67, %c0_68], %145 {strides = array<i32>} : memref<2x4x4xf32, #tpu.memory_space<vmem>>, vector<1x4x4xf32>,
    %146 = vector.broadcast %128 : f32 to vector<1x1xf32>
    %147 = vector.broadcast %139 : f32 to vector<1x1xf32>
    %148 = tpu.concatenate %146, %147 in 1 : vector<1x1xf32>, vector<1x1xf32> -> vector<1x2xf32>
    %c0_69 = arith.constant 0 : index
    %c0_70 = arith.constant 0 : index
    %c0_71 = arith.constant 0 : index
    %149 = vector.load %arg10[%c0_69, %c0_70, %c0_71] : memref<1x1x2xf32, #tpu.memory_space<vmem>>, vector<1x1x2xf32>
    %150 = vector.shape_cast %149 : vector<1x1x2xf32> to vector<1x2xf32>
    %151 = vector.shape_cast %148 : vector<1x2xf32> to vector<1x1x2xf32>
    tpu.vector_store %arg10[%c0_69, %c0_70, %c0_71], %151 {strides = array<i32>} : memref<1x1x2xf32, #tpu.memory_space<vmem>>, vector<1x1x2xf32>,
    return
  }
  func.func @transform_0(%arg0: i32) -> (i32, i32, i32) {
    %c0_i32 = arith.constant 0 : i32
    %c0_i32_0 = arith.constant 0 : i32
    %c0_i32_1 = arith.constant 0 : i32
    return %arg0, %c0_i32, %c0_i32_0 : i32, i32, i32
  }
  func.func @transform_1(%arg0: i32) -> (i32, i32) {
    %c0_i32 = arith.constant 0 : i32
    %c0_i32_0 = arith.constant 0 : i32
    %c0_i32_1 = arith.constant 0 : i32
    return %c0_i32, %c0_i32_0 : i32, i32
  }
  func.func @transform_2(%arg0: i32) -> (i32, i32) {
    %c0_i32 = arith.constant 0 : i32
    %c0_i32_0 = arith.constant 0 : i32
    %c0_i32_1 = arith.constant 0 : i32
    return %c0_i32, %c0_i32_0 : i32, i32
  }
  func.func @transform_3(%arg0: i32) -> (i32, i32, i32) {
    %c0_i32 = arith.constant 0 : i32
    %c0_i32_0 = arith.constant 0 : i32
    %c0_i32_1 = arith.constant 0 : i32
    return %arg0, %c0_i32, %c0_i32_0 : i32, i32, i32
  }
  func.func @transform_4(%arg0: i32) -> (i32, i32, i32) {
    %c0_i32 = arith.constant 0 : i32
    %c0_i32_0 = arith.constant 0 : i32
    %c0_i32_1 = arith.constant 0 : i32
    return %arg0, %c0_i32, %c0_i32_0 : i32, i32, i32
  }
  func.func @transform_5(%arg0: i32) -> (i32, i32) {
    %c0_i32 = arith.constant 0 : i32
    %c0_i32_0 = arith.constant 0 : i32
    %c0_i32_1 = arith.constant 0 : i32
    return %c0_i32, %c0_i32_0 : i32, i32
  }
  func.func @transform_6(%arg0: i32) -> (i32, i32) {
    %c0_i32 = arith.constant 0 : i32
    %c0_i32_0 = arith.constant 0 : i32
    %c0_i32_1 = arith.constant 0 : i32
    return %c0_i32, %c0_i32_0 : i32, i32
  }
  func.func @transform_7(%arg0: i32) -> (i32, i32, i32) {
    %c0_i32 = arith.constant 0 : i32
    %c0_i32_0 = arith.constant 0 : i32
    %c0_i32_1 = arith.constant 0 : i32
    return %arg0, %c0_i32, %c0_i32_0 : i32, i32, i32
  }
  func.func @transform_8(%arg0: i32) -> (i32, i32, i32) {
    %c0_i32 = arith.constant 0 : i32
    %c0_i32_0 = arith.constant 0 : i32
    %c0_i32_1 = arith.constant 0 : i32
    return %arg0, %c0_i32, %c0_i32_0 : i32, i32, i32
  }
  func.func @transform_9(%arg0: i32) -> (i32, i32, i32) {
    %c0_i32 = arith.constant 0 : i32
    %c0_i32_0 = arith.constant 0 : i32
    %c0_i32_1 = arith.constant 0 : i32
    return %arg0, %c0_i32, %c0_i32_0 : i32, i32, i32
  }
}

module attributes {stable_mosaic.version = 11 : i64} {
  func.func @_dual_gcn_kernel(%arg0: i32, %arg1: memref<2x4x32xf32, #tpu.memory_space<vmem>>, %arg2: memref<2x4x32xf32, #tpu.memory_space<vmem>>, %arg3: memref<2x4x4xf32, #tpu.memory_space<vmem>>, %arg4: memref<2x4x1xf32, #tpu.memory_space<vmem>>, %arg5: memref<2x4x1xf32, #tpu.memory_space<vmem>>, %arg6: memref<2x4x1xf32, #tpu.memory_space<vmem>>, %arg7: memref<32x32xbf16, #tpu.memory_space<vmem>>, %arg8: memref<1x32xf32, #tpu.memory_space<vmem>>, %arg9: memref<1x32xf32, #tpu.memory_space<vmem>>, %arg10: memref<1x32xf32, #tpu.memory_space<vmem>>, %arg11: memref<32x32xbf16, #tpu.memory_space<vmem>>, %arg12: memref<1x32xf32, #tpu.memory_space<vmem>>, %arg13: memref<1x32xf32, #tpu.memory_space<vmem>>, %arg14: memref<1x32xf32, #tpu.memory_space<vmem>>, %arg15: memref<2x4x32xf32, #tpu.memory_space<vmem>>, %arg16: memref<2x4x32xf32, #tpu.memory_space<vmem>>, %arg17: memref<1x2x32xf32, #tpu.memory_space<vmem>>, %arg18: memref<1x2x32xf32, #tpu.memory_space<vmem>>) attributes {dimension_semantics = [#tpu.dimension_semantics<parallel>], iteration_bounds = array<i64: 1>, scalar_prefetch = 0 : i64, scratch_operands = 0 : i64, tpu.core_type = #tpu.core_type<tc>, window_params = [{transform_indices = @transform_0, window_bounds = array<i64: 2, 4, 32>}, {transform_indices = @transform_1, window_bounds = array<i64: 2, 4, 32>}, {transform_indices = @transform_2, window_bounds = array<i64: 2, 4, 4>}, {transform_indices = @transform_3, window_bounds = array<i64: 2, 4, 1>}, {transform_indices = @transform_4, window_bounds = array<i64: 2, 4, 1>}, {transform_indices = @transform_5, window_bounds = array<i64: 2, 4, 1>}, {pipeline_mode = #tpu.pipeline_mode<synchronous>, transform_indices = @transform_6, window_bounds = array<i64: 32, 32>}, {pipeline_mode = #tpu.pipeline_mode<synchronous>, transform_indices = @transform_7, window_bounds = array<i64: 1, 32>}, {pipeline_mode = #tpu.pipeline_mode<synchronous>, transform_indices = @transform_8, window_bounds = array<i64: 1, 32>}, {pipeline_mode = #tpu.pipeline_mode<synchronous>, transform_indices = @transform_9, window_bounds = array<i64: 1, 32>}, {pipeline_mode = #tpu.pipeline_mode<synchronous>, transform_indices = @transform_10, window_bounds = array<i64: 32, 32>}, {pipeline_mode = #tpu.pipeline_mode<synchronous>, transform_indices = @transform_11, window_bounds = array<i64: 1, 32>}, {pipeline_mode = #tpu.pipeline_mode<synchronous>, transform_indices = @transform_12, window_bounds = array<i64: 1, 32>}, {pipeline_mode = #tpu.pipeline_mode<synchronous>, transform_indices = @transform_13, window_bounds = array<i64: 1, 32>}, {transform_indices = @transform_14, window_bounds = array<i64: 2, 4, 32>}, {transform_indices = @transform_15, window_bounds = array<i64: 2, 4, 32>}, {transform_indices = @transform_16, window_bounds = array<i64: 1, 2, 32>}, {transform_indices = @transform_17, window_bounds = array<i64: 1, 2, 32>}]} {
    %c0 = arith.constant 0 : index
    %c0_0 = arith.constant 0 : index
    %0 = vector.load %arg7[%c0, %c0_0] : memref<32x32xbf16, #tpu.memory_space<vmem>>, vector<32x32xbf16>
    %c0_1 = arith.constant 0 : index
    %c0_2 = arith.constant 0 : index
    %1 = vector.load %arg8[%c0_1, %c0_2] : memref<1x32xf32, #tpu.memory_space<vmem>>, vector<1x32xf32>
    %c0_3 = arith.constant 0 : index
    %c0_4 = arith.constant 0 : index
    %2 = vector.load %arg9[%c0_3, %c0_4] : memref<1x32xf32, #tpu.memory_space<vmem>>, vector<1x32xf32>
    %c0_5 = arith.constant 0 : index
    %c0_6 = arith.constant 0 : index
    %3 = vector.load %arg10[%c0_5, %c0_6] : memref<1x32xf32, #tpu.memory_space<vmem>>, vector<1x32xf32>
    %c0_7 = arith.constant 0 : index
    %c0_8 = arith.constant 0 : index
    %4 = vector.load %arg11[%c0_7, %c0_8] : memref<32x32xbf16, #tpu.memory_space<vmem>>, vector<32x32xbf16>
    %c0_9 = arith.constant 0 : index
    %c0_10 = arith.constant 0 : index
    %5 = vector.load %arg12[%c0_9, %c0_10] : memref<1x32xf32, #tpu.memory_space<vmem>>, vector<1x32xf32>
    %c0_11 = arith.constant 0 : index
    %c0_12 = arith.constant 0 : index
    %6 = vector.load %arg13[%c0_11, %c0_12] : memref<1x32xf32, #tpu.memory_space<vmem>>, vector<1x32xf32>
    %c0_13 = arith.constant 0 : index
    %c0_14 = arith.constant 0 : index
    %7 = vector.load %arg14[%c0_13, %c0_14] : memref<1x32xf32, #tpu.memory_space<vmem>>, vector<1x32xf32>
    %cst = arith.constant 0.000000e+00 : f32
    %8 = vector.broadcast %cst : f32 to vector<1x32xf32>
    %cst_15 = arith.constant 0.000000e+00 : f32
    %9 = vector.broadcast %cst_15 : f32 to vector<1x32xf32>
    %cst_16 = arith.constant 0.000000e+00 : f32
    %10 = vector.broadcast %cst_16 : f32 to vector<1x32xf32>
    %cst_17 = arith.constant 0.000000e+00 : f32
    %11 = vector.broadcast %cst_17 : f32 to vector<1x32xf32>
    %c0_18 = arith.constant 0 : index
    %c0_19 = arith.constant 0 : index
    %c0_20 = arith.constant 0 : index
    %12 = vector.load %arg3[%c0_18, %c0_19, %c0_20] : memref<2x4x4xf32, #tpu.memory_space<vmem>>, vector<1x4x4xf32>
    %13 = vector.shape_cast %12 : vector<1x4x4xf32> to vector<4x4xf32>
    %14 = arith.truncf %13 : vector<4x4xf32> to vector<4x4xbf16>
    %c0_21 = arith.constant 0 : index
    %c0_22 = arith.constant 0 : index
    %c0_23 = arith.constant 0 : index
    %15 = vector.load %arg4[%c0_21, %c0_22, %c0_23] : memref<2x4x1xf32, #tpu.memory_space<vmem>>, vector<1x4x1xf32>
    %16 = vector.shape_cast %15 : vector<1x4x1xf32> to vector<4x1xf32>
    %c0_24 = arith.constant 0 : index
    %c0_25 = arith.constant 0 : index
    %c0_26 = arith.constant 0 : index
    %17 = vector.load %arg5[%c0_24, %c0_25, %c0_26] : memref<2x4x1xf32, #tpu.memory_space<vmem>>, vector<1x4x1xf32>
    %18 = vector.shape_cast %17 : vector<1x4x1xf32> to vector<4x1xf32>
    %c0_27 = arith.constant 0 : index
    %c0_28 = arith.constant 0 : index
    %c0_29 = arith.constant 0 : index
    %19 = vector.load %arg6[%c0_27, %c0_28, %c0_29] : memref<2x4x1xf32, #tpu.memory_space<vmem>>, vector<1x4x1xf32>
    %20 = vector.shape_cast %19 : vector<1x4x1xf32> to vector<4x1xf32>
    %c0_30 = arith.constant 0 : index
    %c0_31 = arith.constant 0 : index
    %c0_32 = arith.constant 0 : index
    %21 = vector.load %arg1[%c0_30, %c0_31, %c0_32] : memref<2x4x32xf32, #tpu.memory_space<vmem>>, vector<1x4x32xf32>
    %22 = vector.shape_cast %21 : vector<1x4x32xf32> to vector<4x32xf32>
    %23 = vector.broadcast %2 : vector<1x32xf32> to vector<4x32xf32>
    %24 = arith.subf %22, %23 : vector<4x32xf32>
    %25 = vector.broadcast %3 : vector<1x32xf32> to vector<4x32xf32>
    %26 = arith.mulf %24, %25 : vector<4x32xf32>
    %27 = arith.truncf %26 : vector<4x32xf32> to vector<4x32xbf16>
    %cst_33 = arith.constant dense<0.000000e+00> : vector<4x32xf32>
    %28 = tpu.matmul %27, %0, %cst_33 {dimension_numbers = #tpu.dot_dimension_numbers<[1], [0], [0], [1], [0, 0, 1, 1], [], []>} : vector<4x32xbf16>, vector<32x32xbf16>, vector<4x32xf32> -> vector<4x32xf32>
    %29 = vector.broadcast %18 : vector<4x1xf32> to vector<4x32xf32>
    %30 = arith.mulf %29, %28 : vector<4x32xf32>
    %31 = arith.truncf %30 : vector<4x32xf32> to vector<4x32xbf16>
    %cst_34 = arith.constant dense<0.000000e+00> : vector<4x32xf32>
    %32 = tpu.matmul %14, %31, %cst_34 {dimension_numbers = #tpu.dot_dimension_numbers<[1], [0], [0], [1], [0, 0, 1, 1], [], []>} : vector<4x4xbf16>, vector<4x32xbf16>, vector<4x32xf32> -> vector<4x32xf32>
    %33 = vector.broadcast %18 : vector<4x1xf32> to vector<4x32xf32>
    %34 = arith.mulf %33, %32 : vector<4x32xf32>
    %35 = vector.broadcast %20 : vector<4x1xf32> to vector<4x32xf32>
    %36 = arith.mulf %35, %28 : vector<4x32xf32>
    %37 = arith.addf %34, %36 : vector<4x32xf32>
    %38 = vector.broadcast %1 : vector<1x32xf32> to vector<4x32xf32>
    %39 = arith.addf %37, %38 : vector<4x32xf32>
    %40 = vector.broadcast %16 : vector<4x1xf32> to vector<4x32xf32>
    %41 = arith.mulf %39, %40 : vector<4x32xf32>
    %cst_35 = arith.constant 0.000000e+00 : f32
    %42 = vector.broadcast %cst_35 : f32 to vector<4x32xf32>
    %43 = arith.maximumf %41, %42 : vector<4x32xf32>
    %c0_36 = arith.constant 0 : index
    %c0_37 = arith.constant 0 : index
    %c0_38 = arith.constant 0 : index
    %44 = vector.load %arg2[%c0_36, %c0_37, %c0_38] : memref<2x4x32xf32, #tpu.memory_space<vmem>>, vector<1x4x32xf32>
    %45 = vector.shape_cast %44 : vector<1x4x32xf32> to vector<4x32xf32>
    %46 = vector.broadcast %6 : vector<1x32xf32> to vector<4x32xf32>
    %47 = arith.subf %45, %46 : vector<4x32xf32>
    %48 = vector.broadcast %7 : vector<1x32xf32> to vector<4x32xf32>
    %49 = arith.mulf %47, %48 : vector<4x32xf32>
    %50 = arith.truncf %49 : vector<4x32xf32> to vector<4x32xbf16>
    %cst_39 = arith.constant dense<0.000000e+00> : vector<4x32xf32>
    %51 = tpu.matmul %50, %4, %cst_39 {dimension_numbers = #tpu.dot_dimension_numbers<[1], [0], [0], [1], [0, 0, 1, 1], [], []>} : vector<4x32xbf16>, vector<32x32xbf16>, vector<4x32xf32> -> vector<4x32xf32>
    %52 = vector.broadcast %18 : vector<4x1xf32> to vector<4x32xf32>
    %53 = arith.mulf %52, %51 : vector<4x32xf32>
    %54 = arith.truncf %53 : vector<4x32xf32> to vector<4x32xbf16>
    %cst_40 = arith.constant dense<0.000000e+00> : vector<4x32xf32>
    %55 = tpu.matmul %14, %54, %cst_40 {dimension_numbers = #tpu.dot_dimension_numbers<[1], [0], [0], [1], [0, 0, 1, 1], [], []>} : vector<4x4xbf16>, vector<4x32xbf16>, vector<4x32xf32> -> vector<4x32xf32>
    %56 = vector.broadcast %18 : vector<4x1xf32> to vector<4x32xf32>
    %57 = arith.mulf %56, %55 : vector<4x32xf32>
    %58 = vector.broadcast %20 : vector<4x1xf32> to vector<4x32xf32>
    %59 = arith.mulf %58, %51 : vector<4x32xf32>
    %60 = arith.addf %57, %59 : vector<4x32xf32>
    %61 = vector.broadcast %5 : vector<1x32xf32> to vector<4x32xf32>
    %62 = arith.addf %60, %61 : vector<4x32xf32>
    %63 = vector.broadcast %16 : vector<4x1xf32> to vector<4x32xf32>
    %64 = arith.mulf %62, %63 : vector<4x32xf32>
    %cst_41 = arith.constant 0.000000e+00 : f32
    %65 = vector.broadcast %cst_41 : f32 to vector<4x32xf32>
    %66 = arith.maximumf %64, %65 : vector<4x32xf32>
    %c0_42 = arith.constant 0 : index
    %c0_43 = arith.constant 0 : index
    %c0_44 = arith.constant 0 : index
    %67 = vector.load %arg15[%c0_42, %c0_43, %c0_44] : memref<2x4x32xf32, #tpu.memory_space<vmem>>, vector<1x4x32xf32>
    %68 = vector.shape_cast %67 : vector<1x4x32xf32> to vector<4x32xf32>
    %69 = vector.shape_cast %43 : vector<4x32xf32> to vector<1x4x32xf32>
    tpu.vector_store %arg15[%c0_42, %c0_43, %c0_44], %69 {strides = array<i32>} : memref<2x4x32xf32, #tpu.memory_space<vmem>>, vector<1x4x32xf32>,
    %c0_45 = arith.constant 0 : index
    %c0_46 = arith.constant 0 : index
    %c0_47 = arith.constant 0 : index
    %70 = vector.load %arg16[%c0_45, %c0_46, %c0_47] : memref<2x4x32xf32, #tpu.memory_space<vmem>>, vector<1x4x32xf32>
    %71 = vector.shape_cast %70 : vector<1x4x32xf32> to vector<4x32xf32>
    %72 = vector.shape_cast %66 : vector<4x32xf32> to vector<1x4x32xf32>
    tpu.vector_store %arg16[%c0_45, %c0_46, %c0_47], %72 {strides = array<i32>} : memref<2x4x32xf32, #tpu.memory_space<vmem>>, vector<1x4x32xf32>,
    %cst_48 = arith.constant dense<0.000000e+00> : vector<32xf32>
    %73 = vector.multi_reduction <add>, %43, %cst_48 [0] : vector<4x32xf32> to vector<32xf32>
    %74 = vector.shape_cast %73 : vector<32xf32> to vector<1x32xf32>
    %75 = arith.addf %8, %74 : vector<1x32xf32>
    %76 = arith.mulf %43, %43 : vector<4x32xf32>
    %cst_49 = arith.constant dense<0.000000e+00> : vector<32xf32>
    %77 = vector.multi_reduction <add>, %76, %cst_49 [0] : vector<4x32xf32> to vector<32xf32>
    %78 = vector.shape_cast %77 : vector<32xf32> to vector<1x32xf32>
    %79 = arith.addf %9, %78 : vector<1x32xf32>
    %cst_50 = arith.constant dense<0.000000e+00> : vector<32xf32>
    %80 = vector.multi_reduction <add>, %66, %cst_50 [0] : vector<4x32xf32> to vector<32xf32>
    %81 = vector.shape_cast %80 : vector<32xf32> to vector<1x32xf32>
    %82 = arith.addf %10, %81 : vector<1x32xf32>
    %83 = arith.mulf %66, %66 : vector<4x32xf32>
    %cst_51 = arith.constant dense<0.000000e+00> : vector<32xf32>
    %84 = vector.multi_reduction <add>, %83, %cst_51 [0] : vector<4x32xf32> to vector<32xf32>
    %85 = vector.shape_cast %84 : vector<32xf32> to vector<1x32xf32>
    %86 = arith.addf %11, %85 : vector<1x32xf32>
    %c1 = arith.constant 1 : index
    %c0_52 = arith.constant 0 : index
    %c0_53 = arith.constant 0 : index
    %87 = vector.load %arg3[%c1, %c0_52, %c0_53] : memref<2x4x4xf32, #tpu.memory_space<vmem>>, vector<1x4x4xf32>
    %88 = vector.shape_cast %87 : vector<1x4x4xf32> to vector<4x4xf32>
    %89 = arith.truncf %88 : vector<4x4xf32> to vector<4x4xbf16>
    %c1_54 = arith.constant 1 : index
    %c0_55 = arith.constant 0 : index
    %c0_56 = arith.constant 0 : index
    %90 = vector.load %arg4[%c1_54, %c0_55, %c0_56] : memref<2x4x1xf32, #tpu.memory_space<vmem>>, vector<1x4x1xf32>
    %91 = vector.shape_cast %90 : vector<1x4x1xf32> to vector<4x1xf32>
    %c1_57 = arith.constant 1 : index
    %c0_58 = arith.constant 0 : index
    %c0_59 = arith.constant 0 : index
    %92 = vector.load %arg5[%c1_57, %c0_58, %c0_59] : memref<2x4x1xf32, #tpu.memory_space<vmem>>, vector<1x4x1xf32>
    %93 = vector.shape_cast %92 : vector<1x4x1xf32> to vector<4x1xf32>
    %c1_60 = arith.constant 1 : index
    %c0_61 = arith.constant 0 : index
    %c0_62 = arith.constant 0 : index
    %94 = vector.load %arg6[%c1_60, %c0_61, %c0_62] : memref<2x4x1xf32, #tpu.memory_space<vmem>>, vector<1x4x1xf32>
    %95 = vector.shape_cast %94 : vector<1x4x1xf32> to vector<4x1xf32>
    %c1_63 = arith.constant 1 : index
    %c0_64 = arith.constant 0 : index
    %c0_65 = arith.constant 0 : index
    %96 = vector.load %arg1[%c1_63, %c0_64, %c0_65] : memref<2x4x32xf32, #tpu.memory_space<vmem>>, vector<1x4x32xf32>
    %97 = vector.shape_cast %96 : vector<1x4x32xf32> to vector<4x32xf32>
    %98 = vector.broadcast %2 : vector<1x32xf32> to vector<4x32xf32>
    %99 = arith.subf %97, %98 : vector<4x32xf32>
    %100 = vector.broadcast %3 : vector<1x32xf32> to vector<4x32xf32>
    %101 = arith.mulf %99, %100 : vector<4x32xf32>
    %102 = arith.truncf %101 : vector<4x32xf32> to vector<4x32xbf16>
    %cst_66 = arith.constant dense<0.000000e+00> : vector<4x32xf32>
    %103 = tpu.matmul %102, %0, %cst_66 {dimension_numbers = #tpu.dot_dimension_numbers<[1], [0], [0], [1], [0, 0, 1, 1], [], []>} : vector<4x32xbf16>, vector<32x32xbf16>, vector<4x32xf32> -> vector<4x32xf32>
    %104 = vector.broadcast %93 : vector<4x1xf32> to vector<4x32xf32>
    %105 = arith.mulf %104, %103 : vector<4x32xf32>
    %106 = arith.truncf %105 : vector<4x32xf32> to vector<4x32xbf16>
    %cst_67 = arith.constant dense<0.000000e+00> : vector<4x32xf32>
    %107 = tpu.matmul %89, %106, %cst_67 {dimension_numbers = #tpu.dot_dimension_numbers<[1], [0], [0], [1], [0, 0, 1, 1], [], []>} : vector<4x4xbf16>, vector<4x32xbf16>, vector<4x32xf32> -> vector<4x32xf32>
    %108 = vector.broadcast %93 : vector<4x1xf32> to vector<4x32xf32>
    %109 = arith.mulf %108, %107 : vector<4x32xf32>
    %110 = vector.broadcast %95 : vector<4x1xf32> to vector<4x32xf32>
    %111 = arith.mulf %110, %103 : vector<4x32xf32>
    %112 = arith.addf %109, %111 : vector<4x32xf32>
    %113 = vector.broadcast %1 : vector<1x32xf32> to vector<4x32xf32>
    %114 = arith.addf %112, %113 : vector<4x32xf32>
    %115 = vector.broadcast %91 : vector<4x1xf32> to vector<4x32xf32>
    %116 = arith.mulf %114, %115 : vector<4x32xf32>
    %cst_68 = arith.constant 0.000000e+00 : f32
    %117 = vector.broadcast %cst_68 : f32 to vector<4x32xf32>
    %118 = arith.maximumf %116, %117 : vector<4x32xf32>
    %c1_69 = arith.constant 1 : index
    %c0_70 = arith.constant 0 : index
    %c0_71 = arith.constant 0 : index
    %119 = vector.load %arg2[%c1_69, %c0_70, %c0_71] : memref<2x4x32xf32, #tpu.memory_space<vmem>>, vector<1x4x32xf32>
    %120 = vector.shape_cast %119 : vector<1x4x32xf32> to vector<4x32xf32>
    %121 = vector.broadcast %6 : vector<1x32xf32> to vector<4x32xf32>
    %122 = arith.subf %120, %121 : vector<4x32xf32>
    %123 = vector.broadcast %7 : vector<1x32xf32> to vector<4x32xf32>
    %124 = arith.mulf %122, %123 : vector<4x32xf32>
    %125 = arith.truncf %124 : vector<4x32xf32> to vector<4x32xbf16>
    %cst_72 = arith.constant dense<0.000000e+00> : vector<4x32xf32>
    %126 = tpu.matmul %125, %4, %cst_72 {dimension_numbers = #tpu.dot_dimension_numbers<[1], [0], [0], [1], [0, 0, 1, 1], [], []>} : vector<4x32xbf16>, vector<32x32xbf16>, vector<4x32xf32> -> vector<4x32xf32>
    %127 = vector.broadcast %93 : vector<4x1xf32> to vector<4x32xf32>
    %128 = arith.mulf %127, %126 : vector<4x32xf32>
    %129 = arith.truncf %128 : vector<4x32xf32> to vector<4x32xbf16>
    %cst_73 = arith.constant dense<0.000000e+00> : vector<4x32xf32>
    %130 = tpu.matmul %89, %129, %cst_73 {dimension_numbers = #tpu.dot_dimension_numbers<[1], [0], [0], [1], [0, 0, 1, 1], [], []>} : vector<4x4xbf16>, vector<4x32xbf16>, vector<4x32xf32> -> vector<4x32xf32>
    %131 = vector.broadcast %93 : vector<4x1xf32> to vector<4x32xf32>
    %132 = arith.mulf %131, %130 : vector<4x32xf32>
    %133 = vector.broadcast %95 : vector<4x1xf32> to vector<4x32xf32>
    %134 = arith.mulf %133, %126 : vector<4x32xf32>
    %135 = arith.addf %132, %134 : vector<4x32xf32>
    %136 = vector.broadcast %5 : vector<1x32xf32> to vector<4x32xf32>
    %137 = arith.addf %135, %136 : vector<4x32xf32>
    %138 = vector.broadcast %91 : vector<4x1xf32> to vector<4x32xf32>
    %139 = arith.mulf %137, %138 : vector<4x32xf32>
    %cst_74 = arith.constant 0.000000e+00 : f32
    %140 = vector.broadcast %cst_74 : f32 to vector<4x32xf32>
    %141 = arith.maximumf %139, %140 : vector<4x32xf32>
    %c1_75 = arith.constant 1 : index
    %c0_76 = arith.constant 0 : index
    %c0_77 = arith.constant 0 : index
    %142 = vector.load %arg15[%c1_75, %c0_76, %c0_77] : memref<2x4x32xf32, #tpu.memory_space<vmem>>, vector<1x4x32xf32>
    %143 = vector.shape_cast %142 : vector<1x4x32xf32> to vector<4x32xf32>
    %144 = vector.shape_cast %118 : vector<4x32xf32> to vector<1x4x32xf32>
    tpu.vector_store %arg15[%c1_75, %c0_76, %c0_77], %144 {strides = array<i32>} : memref<2x4x32xf32, #tpu.memory_space<vmem>>, vector<1x4x32xf32>,
    %c1_78 = arith.constant 1 : index
    %c0_79 = arith.constant 0 : index
    %c0_80 = arith.constant 0 : index
    %145 = vector.load %arg16[%c1_78, %c0_79, %c0_80] : memref<2x4x32xf32, #tpu.memory_space<vmem>>, vector<1x4x32xf32>
    %146 = vector.shape_cast %145 : vector<1x4x32xf32> to vector<4x32xf32>
    %147 = vector.shape_cast %141 : vector<4x32xf32> to vector<1x4x32xf32>
    tpu.vector_store %arg16[%c1_78, %c0_79, %c0_80], %147 {strides = array<i32>} : memref<2x4x32xf32, #tpu.memory_space<vmem>>, vector<1x4x32xf32>,
    %cst_81 = arith.constant dense<0.000000e+00> : vector<32xf32>
    %148 = vector.multi_reduction <add>, %118, %cst_81 [0] : vector<4x32xf32> to vector<32xf32>
    %149 = vector.shape_cast %148 : vector<32xf32> to vector<1x32xf32>
    %150 = arith.addf %75, %149 : vector<1x32xf32>
    %151 = arith.mulf %118, %118 : vector<4x32xf32>
    %cst_82 = arith.constant dense<0.000000e+00> : vector<32xf32>
    %152 = vector.multi_reduction <add>, %151, %cst_82 [0] : vector<4x32xf32> to vector<32xf32>
    %153 = vector.shape_cast %152 : vector<32xf32> to vector<1x32xf32>
    %154 = arith.addf %79, %153 : vector<1x32xf32>
    %cst_83 = arith.constant dense<0.000000e+00> : vector<32xf32>
    %155 = vector.multi_reduction <add>, %141, %cst_83 [0] : vector<4x32xf32> to vector<32xf32>
    %156 = vector.shape_cast %155 : vector<32xf32> to vector<1x32xf32>
    %157 = arith.addf %82, %156 : vector<1x32xf32>
    %158 = arith.mulf %141, %141 : vector<4x32xf32>
    %cst_84 = arith.constant dense<0.000000e+00> : vector<32xf32>
    %159 = vector.multi_reduction <add>, %158, %cst_84 [0] : vector<4x32xf32> to vector<32xf32>
    %160 = vector.shape_cast %159 : vector<32xf32> to vector<1x32xf32>
    %161 = arith.addf %86, %160 : vector<1x32xf32>
    %162 = tpu.concatenate %150, %154 in 0 : vector<1x32xf32>, vector<1x32xf32> -> vector<2x32xf32>
    %c0_85 = arith.constant 0 : index
    %c0_86 = arith.constant 0 : index
    %c0_87 = arith.constant 0 : index
    %163 = vector.load %arg17[%c0_85, %c0_86, %c0_87] : memref<1x2x32xf32, #tpu.memory_space<vmem>>, vector<1x2x32xf32>
    %164 = vector.shape_cast %163 : vector<1x2x32xf32> to vector<2x32xf32>
    %165 = vector.shape_cast %162 : vector<2x32xf32> to vector<1x2x32xf32>
    tpu.vector_store %arg17[%c0_85, %c0_86, %c0_87], %165 {strides = array<i32>} : memref<1x2x32xf32, #tpu.memory_space<vmem>>, vector<1x2x32xf32>,
    %166 = tpu.concatenate %157, %161 in 0 : vector<1x32xf32>, vector<1x32xf32> -> vector<2x32xf32>
    %c0_88 = arith.constant 0 : index
    %c0_89 = arith.constant 0 : index
    %c0_90 = arith.constant 0 : index
    %167 = vector.load %arg18[%c0_88, %c0_89, %c0_90] : memref<1x2x32xf32, #tpu.memory_space<vmem>>, vector<1x2x32xf32>
    %168 = vector.shape_cast %167 : vector<1x2x32xf32> to vector<2x32xf32>
    %169 = vector.shape_cast %166 : vector<2x32xf32> to vector<1x2x32xf32>
    tpu.vector_store %arg18[%c0_88, %c0_89, %c0_90], %169 {strides = array<i32>} : memref<1x2x32xf32, #tpu.memory_space<vmem>>, vector<1x2x32xf32>,
    return
  }
  func.func @transform_0(%arg0: i32) -> (i32, i32, i32) {
    %c0_i32 = arith.constant 0 : i32
    %c0_i32_0 = arith.constant 0 : i32
    %c0_i32_1 = arith.constant 0 : i32
    return %arg0, %c0_i32, %c0_i32_0 : i32, i32, i32
  }
  func.func @transform_1(%arg0: i32) -> (i32, i32, i32) {
    %c0_i32 = arith.constant 0 : i32
    %c0_i32_0 = arith.constant 0 : i32
    %c0_i32_1 = arith.constant 0 : i32
    return %arg0, %c0_i32, %c0_i32_0 : i32, i32, i32
  }
  func.func @transform_2(%arg0: i32) -> (i32, i32, i32) {
    %c0_i32 = arith.constant 0 : i32
    %c0_i32_0 = arith.constant 0 : i32
    %c0_i32_1 = arith.constant 0 : i32
    return %arg0, %c0_i32, %c0_i32_0 : i32, i32, i32
  }
  func.func @transform_3(%arg0: i32) -> (i32, i32, i32) {
    %c0_i32 = arith.constant 0 : i32
    %c0_i32_0 = arith.constant 0 : i32
    %c0_i32_1 = arith.constant 0 : i32
    return %arg0, %c0_i32, %c0_i32_0 : i32, i32, i32
  }
  func.func @transform_4(%arg0: i32) -> (i32, i32, i32) {
    %c0_i32 = arith.constant 0 : i32
    %c0_i32_0 = arith.constant 0 : i32
    %c0_i32_1 = arith.constant 0 : i32
    return %arg0, %c0_i32, %c0_i32_0 : i32, i32, i32
  }
  func.func @transform_5(%arg0: i32) -> (i32, i32, i32) {
    %c0_i32 = arith.constant 0 : i32
    %c0_i32_0 = arith.constant 0 : i32
    %c0_i32_1 = arith.constant 0 : i32
    return %arg0, %c0_i32, %c0_i32_0 : i32, i32, i32
  }
  func.func @transform_6(%arg0: i32) -> (i32, i32) {
    %c0_i32 = arith.constant 0 : i32
    %c0_i32_0 = arith.constant 0 : i32
    %c0_i32_1 = arith.constant 0 : i32
    return %c0_i32, %c0_i32_0 : i32, i32
  }
  func.func @transform_7(%arg0: i32) -> (i32, i32) {
    %c0_i32 = arith.constant 0 : i32
    %c0_i32_0 = arith.constant 0 : i32
    %c0_i32_1 = arith.constant 0 : i32
    return %c0_i32, %c0_i32_0 : i32, i32
  }
  func.func @transform_8(%arg0: i32) -> (i32, i32) {
    %c0_i32 = arith.constant 0 : i32
    %c0_i32_0 = arith.constant 0 : i32
    %c0_i32_1 = arith.constant 0 : i32
    return %c0_i32, %c0_i32_0 : i32, i32
  }
  func.func @transform_9(%arg0: i32) -> (i32, i32) {
    %c0_i32 = arith.constant 0 : i32
    %c0_i32_0 = arith.constant 0 : i32
    %c0_i32_1 = arith.constant 0 : i32
    return %c0_i32, %c0_i32_0 : i32, i32
  }
  func.func @transform_10(%arg0: i32) -> (i32, i32) {
    %c0_i32 = arith.constant 0 : i32
    %c0_i32_0 = arith.constant 0 : i32
    %c0_i32_1 = arith.constant 0 : i32
    return %c0_i32, %c0_i32_0 : i32, i32
  }
  func.func @transform_11(%arg0: i32) -> (i32, i32) {
    %c0_i32 = arith.constant 0 : i32
    %c0_i32_0 = arith.constant 0 : i32
    %c0_i32_1 = arith.constant 0 : i32
    return %c0_i32, %c0_i32_0 : i32, i32
  }
  func.func @transform_12(%arg0: i32) -> (i32, i32) {
    %c0_i32 = arith.constant 0 : i32
    %c0_i32_0 = arith.constant 0 : i32
    %c0_i32_1 = arith.constant 0 : i32
    return %c0_i32, %c0_i32_0 : i32, i32
  }
  func.func @transform_13(%arg0: i32) -> (i32, i32) {
    %c0_i32 = arith.constant 0 : i32
    %c0_i32_0 = arith.constant 0 : i32
    %c0_i32_1 = arith.constant 0 : i32
    return %c0_i32, %c0_i32_0 : i32, i32
  }
  func.func @transform_14(%arg0: i32) -> (i32, i32, i32) {
    %c0_i32 = arith.constant 0 : i32
    %c0_i32_0 = arith.constant 0 : i32
    %c0_i32_1 = arith.constant 0 : i32
    return %arg0, %c0_i32, %c0_i32_0 : i32, i32, i32
  }
  func.func @transform_15(%arg0: i32) -> (i32, i32, i32) {
    %c0_i32 = arith.constant 0 : i32
    %c0_i32_0 = arith.constant 0 : i32
    %c0_i32_1 = arith.constant 0 : i32
    return %arg0, %c0_i32, %c0_i32_0 : i32, i32, i32
  }
  func.func @transform_16(%arg0: i32) -> (i32, i32, i32) {
    %c0_i32 = arith.constant 0 : i32
    %c0_i32_0 = arith.constant 0 : i32
    %c0_i32_1 = arith.constant 0 : i32
    return %arg0, %c0_i32, %c0_i32_0 : i32, i32, i32
  }
  func.func @transform_17(%arg0: i32) -> (i32, i32, i32) {
    %c0_i32 = arith.constant 0 : i32
    %c0_i32_0 = arith.constant 0 : i32
    %c0_i32_1 = arith.constant 0 : i32
    return %arg0, %c0_i32, %c0_i32_0 : i32, i32, i32
  }
}

module attributes {stable_mosaic.version = 11 : i64} {
  func.func @_dual_gcn_kernel(%arg0: i32, %arg1: memref<2x4x32xf32, #tpu.memory_space<vmem>>, %arg2: memref<2x4x32xf32, #tpu.memory_space<vmem>>, %arg3: memref<2x4x4xf32, #tpu.memory_space<vmem>>, %arg4: memref<2x4x1xf32, #tpu.memory_space<vmem>>, %arg5: memref<2x4x1xf32, #tpu.memory_space<vmem>>, %arg6: memref<2x4x1xf32, #tpu.memory_space<vmem>>, %arg7: memref<32x1xbf16, #tpu.memory_space<vmem>>, %arg8: memref<1x1xf32, #tpu.memory_space<vmem>>, %arg9: memref<1x32xf32, #tpu.memory_space<vmem>>, %arg10: memref<1x32xf32, #tpu.memory_space<vmem>>, %arg11: memref<32x32xbf16, #tpu.memory_space<vmem>>, %arg12: memref<1x32xf32, #tpu.memory_space<vmem>>, %arg13: memref<1x32xf32, #tpu.memory_space<vmem>>, %arg14: memref<1x32xf32, #tpu.memory_space<vmem>>, %arg15: memref<2x4x1xf32, #tpu.memory_space<vmem>>, %arg16: memref<2x4x32xf32, #tpu.memory_space<vmem>>, %arg17: memref<1x2x1xf32, #tpu.memory_space<vmem>>, %arg18: memref<1x2x32xf32, #tpu.memory_space<vmem>>) attributes {dimension_semantics = [#tpu.dimension_semantics<parallel>], iteration_bounds = array<i64: 1>, scalar_prefetch = 0 : i64, scratch_operands = 0 : i64, tpu.core_type = #tpu.core_type<tc>, window_params = [{transform_indices = @transform_0, window_bounds = array<i64: 2, 4, 32>}, {transform_indices = @transform_1, window_bounds = array<i64: 2, 4, 32>}, {transform_indices = @transform_2, window_bounds = array<i64: 2, 4, 4>}, {transform_indices = @transform_3, window_bounds = array<i64: 2, 4, 1>}, {transform_indices = @transform_4, window_bounds = array<i64: 2, 4, 1>}, {transform_indices = @transform_5, window_bounds = array<i64: 2, 4, 1>}, {pipeline_mode = #tpu.pipeline_mode<synchronous>, transform_indices = @transform_6, window_bounds = array<i64: 32, 1>}, {pipeline_mode = #tpu.pipeline_mode<synchronous>, transform_indices = @transform_7, window_bounds = array<i64: 1, 1>}, {pipeline_mode = #tpu.pipeline_mode<synchronous>, transform_indices = @transform_8, window_bounds = array<i64: 1, 32>}, {pipeline_mode = #tpu.pipeline_mode<synchronous>, transform_indices = @transform_9, window_bounds = array<i64: 1, 32>}, {pipeline_mode = #tpu.pipeline_mode<synchronous>, transform_indices = @transform_10, window_bounds = array<i64: 32, 32>}, {pipeline_mode = #tpu.pipeline_mode<synchronous>, transform_indices = @transform_11, window_bounds = array<i64: 1, 32>}, {pipeline_mode = #tpu.pipeline_mode<synchronous>, transform_indices = @transform_12, window_bounds = array<i64: 1, 32>}, {pipeline_mode = #tpu.pipeline_mode<synchronous>, transform_indices = @transform_13, window_bounds = array<i64: 1, 32>}, {transform_indices = @transform_14, window_bounds = array<i64: 2, 4, 1>}, {transform_indices = @transform_15, window_bounds = array<i64: 2, 4, 32>}, {transform_indices = @transform_16, window_bounds = array<i64: 1, 2, 1>}, {transform_indices = @transform_17, window_bounds = array<i64: 1, 2, 32>}]} {
    %c0 = arith.constant 0 : index
    %c0_0 = arith.constant 0 : index
    %0 = vector.load %arg7[%c0, %c0_0] : memref<32x1xbf16, #tpu.memory_space<vmem>>, vector<32x1xbf16>
    %c0_1 = arith.constant 0 : index
    %c0_2 = arith.constant 0 : index
    %1 = vector.load %arg8[%c0_1, %c0_2] : memref<1x1xf32, #tpu.memory_space<vmem>>, vector<1x1xf32>
    %c0_3 = arith.constant 0 : index
    %c0_4 = arith.constant 0 : index
    %2 = vector.load %arg9[%c0_3, %c0_4] : memref<1x32xf32, #tpu.memory_space<vmem>>, vector<1x32xf32>
    %c0_5 = arith.constant 0 : index
    %c0_6 = arith.constant 0 : index
    %3 = vector.load %arg10[%c0_5, %c0_6] : memref<1x32xf32, #tpu.memory_space<vmem>>, vector<1x32xf32>
    %c0_7 = arith.constant 0 : index
    %c0_8 = arith.constant 0 : index
    %4 = vector.load %arg11[%c0_7, %c0_8] : memref<32x32xbf16, #tpu.memory_space<vmem>>, vector<32x32xbf16>
    %c0_9 = arith.constant 0 : index
    %c0_10 = arith.constant 0 : index
    %5 = vector.load %arg12[%c0_9, %c0_10] : memref<1x32xf32, #tpu.memory_space<vmem>>, vector<1x32xf32>
    %c0_11 = arith.constant 0 : index
    %c0_12 = arith.constant 0 : index
    %6 = vector.load %arg13[%c0_11, %c0_12] : memref<1x32xf32, #tpu.memory_space<vmem>>, vector<1x32xf32>
    %c0_13 = arith.constant 0 : index
    %c0_14 = arith.constant 0 : index
    %7 = vector.load %arg14[%c0_13, %c0_14] : memref<1x32xf32, #tpu.memory_space<vmem>>, vector<1x32xf32>
    %cst = arith.constant 0.000000e+00 : f32
    %8 = vector.broadcast %cst : f32 to vector<1x1xf32>
    %cst_15 = arith.constant 0.000000e+00 : f32
    %9 = vector.broadcast %cst_15 : f32 to vector<1x1xf32>
    %cst_16 = arith.constant 0.000000e+00 : f32
    %10 = vector.broadcast %cst_16 : f32 to vector<1x32xf32>
    %cst_17 = arith.constant 0.000000e+00 : f32
    %11 = vector.broadcast %cst_17 : f32 to vector<1x32xf32>
    %c0_18 = arith.constant 0 : index
    %c0_19 = arith.constant 0 : index
    %c0_20 = arith.constant 0 : index
    %12 = vector.load %arg3[%c0_18, %c0_19, %c0_20] : memref<2x4x4xf32, #tpu.memory_space<vmem>>, vector<1x4x4xf32>
    %13 = vector.shape_cast %12 : vector<1x4x4xf32> to vector<4x4xf32>
    %14 = arith.truncf %13 : vector<4x4xf32> to vector<4x4xbf16>
    %c0_21 = arith.constant 0 : index
    %c0_22 = arith.constant 0 : index
    %c0_23 = arith.constant 0 : index
    %15 = vector.load %arg4[%c0_21, %c0_22, %c0_23] : memref<2x4x1xf32, #tpu.memory_space<vmem>>, vector<1x4x1xf32>
    %16 = vector.shape_cast %15 : vector<1x4x1xf32> to vector<4x1xf32>
    %c0_24 = arith.constant 0 : index
    %c0_25 = arith.constant 0 : index
    %c0_26 = arith.constant 0 : index
    %17 = vector.load %arg5[%c0_24, %c0_25, %c0_26] : memref<2x4x1xf32, #tpu.memory_space<vmem>>, vector<1x4x1xf32>
    %18 = vector.shape_cast %17 : vector<1x4x1xf32> to vector<4x1xf32>
    %c0_27 = arith.constant 0 : index
    %c0_28 = arith.constant 0 : index
    %c0_29 = arith.constant 0 : index
    %19 = vector.load %arg6[%c0_27, %c0_28, %c0_29] : memref<2x4x1xf32, #tpu.memory_space<vmem>>, vector<1x4x1xf32>
    %20 = vector.shape_cast %19 : vector<1x4x1xf32> to vector<4x1xf32>
    %c0_30 = arith.constant 0 : index
    %c0_31 = arith.constant 0 : index
    %c0_32 = arith.constant 0 : index
    %21 = vector.load %arg1[%c0_30, %c0_31, %c0_32] : memref<2x4x32xf32, #tpu.memory_space<vmem>>, vector<1x4x32xf32>
    %22 = vector.shape_cast %21 : vector<1x4x32xf32> to vector<4x32xf32>
    %23 = vector.broadcast %2 : vector<1x32xf32> to vector<4x32xf32>
    %24 = arith.subf %22, %23 : vector<4x32xf32>
    %25 = vector.broadcast %3 : vector<1x32xf32> to vector<4x32xf32>
    %26 = arith.mulf %24, %25 : vector<4x32xf32>
    %27 = arith.truncf %26 : vector<4x32xf32> to vector<4x32xbf16>
    %cst_33 = arith.constant dense<0.000000e+00> : vector<4x1xf32>
    %28 = tpu.matmul %27, %0, %cst_33 {dimension_numbers = #tpu.dot_dimension_numbers<[1], [0], [0], [1], [0, 0, 1, 1], [], []>} : vector<4x32xbf16>, vector<32x1xbf16>, vector<4x1xf32> -> vector<4x1xf32>
    %29 = arith.mulf %18, %28 : vector<4x1xf32>
    %30 = arith.truncf %29 : vector<4x1xf32> to vector<4x1xbf16>
    %cst_34 = arith.constant dense<0.000000e+00> : vector<4x1xf32>
    %31 = tpu.matmul %14, %30, %cst_34 {dimension_numbers = #tpu.dot_dimension_numbers<[1], [0], [0], [1], [0, 0, 1, 1], [], []>} : vector<4x4xbf16>, vector<4x1xbf16>, vector<4x1xf32> -> vector<4x1xf32>
    %32 = arith.mulf %18, %31 : vector<4x1xf32>
    %33 = arith.mulf %20, %28 : vector<4x1xf32>
    %34 = arith.addf %32, %33 : vector<4x1xf32>
    %35 = vector.broadcast %1 : vector<1x1xf32> to vector<4x1xf32>
    %36 = arith.addf %34, %35 : vector<4x1xf32>
    %37 = arith.mulf %36, %16 : vector<4x1xf32>
    %cst_35 = arith.constant 0.000000e+00 : f32
    %38 = vector.broadcast %cst_35 : f32 to vector<4x1xf32>
    %39 = arith.maximumf %37, %38 : vector<4x1xf32>
    %c0_36 = arith.constant 0 : index
    %c0_37 = arith.constant 0 : index
    %c0_38 = arith.constant 0 : index
    %40 = vector.load %arg2[%c0_36, %c0_37, %c0_38] : memref<2x4x32xf32, #tpu.memory_space<vmem>>, vector<1x4x32xf32>
    %41 = vector.shape_cast %40 : vector<1x4x32xf32> to vector<4x32xf32>
    %42 = vector.broadcast %6 : vector<1x32xf32> to vector<4x32xf32>
    %43 = arith.subf %41, %42 : vector<4x32xf32>
    %44 = vector.broadcast %7 : vector<1x32xf32> to vector<4x32xf32>
    %45 = arith.mulf %43, %44 : vector<4x32xf32>
    %46 = arith.truncf %45 : vector<4x32xf32> to vector<4x32xbf16>
    %cst_39 = arith.constant dense<0.000000e+00> : vector<4x32xf32>
    %47 = tpu.matmul %46, %4, %cst_39 {dimension_numbers = #tpu.dot_dimension_numbers<[1], [0], [0], [1], [0, 0, 1, 1], [], []>} : vector<4x32xbf16>, vector<32x32xbf16>, vector<4x32xf32> -> vector<4x32xf32>
    %48 = vector.broadcast %18 : vector<4x1xf32> to vector<4x32xf32>
    %49 = arith.mulf %48, %47 : vector<4x32xf32>
    %50 = arith.truncf %49 : vector<4x32xf32> to vector<4x32xbf16>
    %cst_40 = arith.constant dense<0.000000e+00> : vector<4x32xf32>
    %51 = tpu.matmul %14, %50, %cst_40 {dimension_numbers = #tpu.dot_dimension_numbers<[1], [0], [0], [1], [0, 0, 1, 1], [], []>} : vector<4x4xbf16>, vector<4x32xbf16>, vector<4x32xf32> -> vector<4x32xf32>
    %52 = vector.broadcast %18 : vector<4x1xf32> to vector<4x32xf32>
    %53 = arith.mulf %52, %51 : vector<4x32xf32>
    %54 = vector.broadcast %20 : vector<4x1xf32> to vector<4x32xf32>
    %55 = arith.mulf %54, %47 : vector<4x32xf32>
    %56 = arith.addf %53, %55 : vector<4x32xf32>
    %57 = vector.broadcast %5 : vector<1x32xf32> to vector<4x32xf32>
    %58 = arith.addf %56, %57 : vector<4x32xf32>
    %59 = vector.broadcast %16 : vector<4x1xf32> to vector<4x32xf32>
    %60 = arith.mulf %58, %59 : vector<4x32xf32>
    %cst_41 = arith.constant 0.000000e+00 : f32
    %61 = vector.broadcast %cst_41 : f32 to vector<4x32xf32>
    %62 = arith.maximumf %60, %61 : vector<4x32xf32>
    %c0_42 = arith.constant 0 : index
    %c0_43 = arith.constant 0 : index
    %c0_44 = arith.constant 0 : index
    %63 = vector.load %arg15[%c0_42, %c0_43, %c0_44] : memref<2x4x1xf32, #tpu.memory_space<vmem>>, vector<1x4x1xf32>
    %64 = vector.shape_cast %63 : vector<1x4x1xf32> to vector<4x1xf32>
    %65 = vector.shape_cast %39 : vector<4x1xf32> to vector<1x4x1xf32>
    tpu.vector_store %arg15[%c0_42, %c0_43, %c0_44], %65 {strides = array<i32>} : memref<2x4x1xf32, #tpu.memory_space<vmem>>, vector<1x4x1xf32>,
    %c0_45 = arith.constant 0 : index
    %c0_46 = arith.constant 0 : index
    %c0_47 = arith.constant 0 : index
    %66 = vector.load %arg16[%c0_45, %c0_46, %c0_47] : memref<2x4x32xf32, #tpu.memory_space<vmem>>, vector<1x4x32xf32>
    %67 = vector.shape_cast %66 : vector<1x4x32xf32> to vector<4x32xf32>
    %68 = vector.shape_cast %62 : vector<4x32xf32> to vector<1x4x32xf32>
    tpu.vector_store %arg16[%c0_45, %c0_46, %c0_47], %68 {strides = array<i32>} : memref<2x4x32xf32, #tpu.memory_space<vmem>>, vector<1x4x32xf32>,
    %cst_48 = arith.constant dense<0.000000e+00> : vector<1xf32>
    %69 = vector.multi_reduction <add>, %39, %cst_48 [0] : vector<4x1xf32> to vector<1xf32>
    %70 = vector.shape_cast %69 : vector<1xf32> to vector<1x1xf32>
    %71 = arith.addf %8, %70 : vector<1x1xf32>
    %72 = arith.mulf %39, %39 : vector<4x1xf32>
    %cst_49 = arith.constant dense<0.000000e+00> : vector<1xf32>
    %73 = vector.multi_reduction <add>, %72, %cst_49 [0] : vector<4x1xf32> to vector<1xf32>
    %74 = vector.shape_cast %73 : vector<1xf32> to vector<1x1xf32>
    %75 = arith.addf %9, %74 : vector<1x1xf32>
    %cst_50 = arith.constant dense<0.000000e+00> : vector<32xf32>
    %76 = vector.multi_reduction <add>, %62, %cst_50 [0] : vector<4x32xf32> to vector<32xf32>
    %77 = vector.shape_cast %76 : vector<32xf32> to vector<1x32xf32>
    %78 = arith.addf %10, %77 : vector<1x32xf32>
    %79 = arith.mulf %62, %62 : vector<4x32xf32>
    %cst_51 = arith.constant dense<0.000000e+00> : vector<32xf32>
    %80 = vector.multi_reduction <add>, %79, %cst_51 [0] : vector<4x32xf32> to vector<32xf32>
    %81 = vector.shape_cast %80 : vector<32xf32> to vector<1x32xf32>
    %82 = arith.addf %11, %81 : vector<1x32xf32>
    %c1 = arith.constant 1 : index
    %c0_52 = arith.constant 0 : index
    %c0_53 = arith.constant 0 : index
    %83 = vector.load %arg3[%c1, %c0_52, %c0_53] : memref<2x4x4xf32, #tpu.memory_space<vmem>>, vector<1x4x4xf32>
    %84 = vector.shape_cast %83 : vector<1x4x4xf32> to vector<4x4xf32>
    %85 = arith.truncf %84 : vector<4x4xf32> to vector<4x4xbf16>
    %c1_54 = arith.constant 1 : index
    %c0_55 = arith.constant 0 : index
    %c0_56 = arith.constant 0 : index
    %86 = vector.load %arg4[%c1_54, %c0_55, %c0_56] : memref<2x4x1xf32, #tpu.memory_space<vmem>>, vector<1x4x1xf32>
    %87 = vector.shape_cast %86 : vector<1x4x1xf32> to vector<4x1xf32>
    %c1_57 = arith.constant 1 : index
    %c0_58 = arith.constant 0 : index
    %c0_59 = arith.constant 0 : index
    %88 = vector.load %arg5[%c1_57, %c0_58, %c0_59] : memref<2x4x1xf32, #tpu.memory_space<vmem>>, vector<1x4x1xf32>
    %89 = vector.shape_cast %88 : vector<1x4x1xf32> to vector<4x1xf32>
    %c1_60 = arith.constant 1 : index
    %c0_61 = arith.constant 0 : index
    %c0_62 = arith.constant 0 : index
    %90 = vector.load %arg6[%c1_60, %c0_61, %c0_62] : memref<2x4x1xf32, #tpu.memory_space<vmem>>, vector<1x4x1xf32>
    %91 = vector.shape_cast %90 : vector<1x4x1xf32> to vector<4x1xf32>
    %c1_63 = arith.constant 1 : index
    %c0_64 = arith.constant 0 : index
    %c0_65 = arith.constant 0 : index
    %92 = vector.load %arg1[%c1_63, %c0_64, %c0_65] : memref<2x4x32xf32, #tpu.memory_space<vmem>>, vector<1x4x32xf32>
    %93 = vector.shape_cast %92 : vector<1x4x32xf32> to vector<4x32xf32>
    %94 = vector.broadcast %2 : vector<1x32xf32> to vector<4x32xf32>
    %95 = arith.subf %93, %94 : vector<4x32xf32>
    %96 = vector.broadcast %3 : vector<1x32xf32> to vector<4x32xf32>
    %97 = arith.mulf %95, %96 : vector<4x32xf32>
    %98 = arith.truncf %97 : vector<4x32xf32> to vector<4x32xbf16>
    %cst_66 = arith.constant dense<0.000000e+00> : vector<4x1xf32>
    %99 = tpu.matmul %98, %0, %cst_66 {dimension_numbers = #tpu.dot_dimension_numbers<[1], [0], [0], [1], [0, 0, 1, 1], [], []>} : vector<4x32xbf16>, vector<32x1xbf16>, vector<4x1xf32> -> vector<4x1xf32>
    %100 = arith.mulf %89, %99 : vector<4x1xf32>
    %101 = arith.truncf %100 : vector<4x1xf32> to vector<4x1xbf16>
    %cst_67 = arith.constant dense<0.000000e+00> : vector<4x1xf32>
    %102 = tpu.matmul %85, %101, %cst_67 {dimension_numbers = #tpu.dot_dimension_numbers<[1], [0], [0], [1], [0, 0, 1, 1], [], []>} : vector<4x4xbf16>, vector<4x1xbf16>, vector<4x1xf32> -> vector<4x1xf32>
    %103 = arith.mulf %89, %102 : vector<4x1xf32>
    %104 = arith.mulf %91, %99 : vector<4x1xf32>
    %105 = arith.addf %103, %104 : vector<4x1xf32>
    %106 = vector.broadcast %1 : vector<1x1xf32> to vector<4x1xf32>
    %107 = arith.addf %105, %106 : vector<4x1xf32>
    %108 = arith.mulf %107, %87 : vector<4x1xf32>
    %cst_68 = arith.constant 0.000000e+00 : f32
    %109 = vector.broadcast %cst_68 : f32 to vector<4x1xf32>
    %110 = arith.maximumf %108, %109 : vector<4x1xf32>
    %c1_69 = arith.constant 1 : index
    %c0_70 = arith.constant 0 : index
    %c0_71 = arith.constant 0 : index
    %111 = vector.load %arg2[%c1_69, %c0_70, %c0_71] : memref<2x4x32xf32, #tpu.memory_space<vmem>>, vector<1x4x32xf32>
    %112 = vector.shape_cast %111 : vector<1x4x32xf32> to vector<4x32xf32>
    %113 = vector.broadcast %6 : vector<1x32xf32> to vector<4x32xf32>
    %114 = arith.subf %112, %113 : vector<4x32xf32>
    %115 = vector.broadcast %7 : vector<1x32xf32> to vector<4x32xf32>
    %116 = arith.mulf %114, %115 : vector<4x32xf32>
    %117 = arith.truncf %116 : vector<4x32xf32> to vector<4x32xbf16>
    %cst_72 = arith.constant dense<0.000000e+00> : vector<4x32xf32>
    %118 = tpu.matmul %117, %4, %cst_72 {dimension_numbers = #tpu.dot_dimension_numbers<[1], [0], [0], [1], [0, 0, 1, 1], [], []>} : vector<4x32xbf16>, vector<32x32xbf16>, vector<4x32xf32> -> vector<4x32xf32>
    %119 = vector.broadcast %89 : vector<4x1xf32> to vector<4x32xf32>
    %120 = arith.mulf %119, %118 : vector<4x32xf32>
    %121 = arith.truncf %120 : vector<4x32xf32> to vector<4x32xbf16>
    %cst_73 = arith.constant dense<0.000000e+00> : vector<4x32xf32>
    %122 = tpu.matmul %85, %121, %cst_73 {dimension_numbers = #tpu.dot_dimension_numbers<[1], [0], [0], [1], [0, 0, 1, 1], [], []>} : vector<4x4xbf16>, vector<4x32xbf16>, vector<4x32xf32> -> vector<4x32xf32>
    %123 = vector.broadcast %89 : vector<4x1xf32> to vector<4x32xf32>
    %124 = arith.mulf %123, %122 : vector<4x32xf32>
    %125 = vector.broadcast %91 : vector<4x1xf32> to vector<4x32xf32>
    %126 = arith.mulf %125, %118 : vector<4x32xf32>
    %127 = arith.addf %124, %126 : vector<4x32xf32>
    %128 = vector.broadcast %5 : vector<1x32xf32> to vector<4x32xf32>
    %129 = arith.addf %127, %128 : vector<4x32xf32>
    %130 = vector.broadcast %87 : vector<4x1xf32> to vector<4x32xf32>
    %131 = arith.mulf %129, %130 : vector<4x32xf32>
    %cst_74 = arith.constant 0.000000e+00 : f32
    %132 = vector.broadcast %cst_74 : f32 to vector<4x32xf32>
    %133 = arith.maximumf %131, %132 : vector<4x32xf32>
    %c1_75 = arith.constant 1 : index
    %c0_76 = arith.constant 0 : index
    %c0_77 = arith.constant 0 : index
    %134 = vector.load %arg15[%c1_75, %c0_76, %c0_77] : memref<2x4x1xf32, #tpu.memory_space<vmem>>, vector<1x4x1xf32>
    %135 = vector.shape_cast %134 : vector<1x4x1xf32> to vector<4x1xf32>
    %136 = vector.shape_cast %110 : vector<4x1xf32> to vector<1x4x1xf32>
    tpu.vector_store %arg15[%c1_75, %c0_76, %c0_77], %136 {strides = array<i32>} : memref<2x4x1xf32, #tpu.memory_space<vmem>>, vector<1x4x1xf32>,
    %c1_78 = arith.constant 1 : index
    %c0_79 = arith.constant 0 : index
    %c0_80 = arith.constant 0 : index
    %137 = vector.load %arg16[%c1_78, %c0_79, %c0_80] : memref<2x4x32xf32, #tpu.memory_space<vmem>>, vector<1x4x32xf32>
    %138 = vector.shape_cast %137 : vector<1x4x32xf32> to vector<4x32xf32>
    %139 = vector.shape_cast %133 : vector<4x32xf32> to vector<1x4x32xf32>
    tpu.vector_store %arg16[%c1_78, %c0_79, %c0_80], %139 {strides = array<i32>} : memref<2x4x32xf32, #tpu.memory_space<vmem>>, vector<1x4x32xf32>,
    %cst_81 = arith.constant dense<0.000000e+00> : vector<1xf32>
    %140 = vector.multi_reduction <add>, %110, %cst_81 [0] : vector<4x1xf32> to vector<1xf32>
    %141 = vector.shape_cast %140 : vector<1xf32> to vector<1x1xf32>
    %142 = arith.addf %71, %141 : vector<1x1xf32>
    %143 = arith.mulf %110, %110 : vector<4x1xf32>
    %cst_82 = arith.constant dense<0.000000e+00> : vector<1xf32>
    %144 = vector.multi_reduction <add>, %143, %cst_82 [0] : vector<4x1xf32> to vector<1xf32>
    %145 = vector.shape_cast %144 : vector<1xf32> to vector<1x1xf32>
    %146 = arith.addf %75, %145 : vector<1x1xf32>
    %cst_83 = arith.constant dense<0.000000e+00> : vector<32xf32>
    %147 = vector.multi_reduction <add>, %133, %cst_83 [0] : vector<4x32xf32> to vector<32xf32>
    %148 = vector.shape_cast %147 : vector<32xf32> to vector<1x32xf32>
    %149 = arith.addf %78, %148 : vector<1x32xf32>
    %150 = arith.mulf %133, %133 : vector<4x32xf32>
    %cst_84 = arith.constant dense<0.000000e+00> : vector<32xf32>
    %151 = vector.multi_reduction <add>, %150, %cst_84 [0] : vector<4x32xf32> to vector<32xf32>
    %152 = vector.shape_cast %151 : vector<32xf32> to vector<1x32xf32>
    %153 = arith.addf %82, %152 : vector<1x32xf32>
    %154 = tpu.concatenate %142, %146 in 0 : vector<1x1xf32>, vector<1x1xf32> -> vector<2x1xf32>
    %c0_85 = arith.constant 0 : index
    %c0_86 = arith.constant 0 : index
    %c0_87 = arith.constant 0 : index
    %155 = vector.load %arg17[%c0_85, %c0_86, %c0_87] : memref<1x2x1xf32, #tpu.memory_space<vmem>>, vector<1x2x1xf32>
    %156 = vector.shape_cast %155 : vector<1x2x1xf32> to vector<2x1xf32>
    %157 = vector.shape_cast %154 : vector<2x1xf32> to vector<1x2x1xf32>
    tpu.vector_store %arg17[%c0_85, %c0_86, %c0_87], %157 {strides = array<i32>} : memref<1x2x1xf32, #tpu.memory_space<vmem>>, vector<1x2x1xf32>,
    %158 = tpu.concatenate %149, %153 in 0 : vector<1x32xf32>, vector<1x32xf32> -> vector<2x32xf32>
    %c0_88 = arith.constant 0 : index
    %c0_89 = arith.constant 0 : index
    %c0_90 = arith.constant 0 : index
    %159 = vector.load %arg18[%c0_88, %c0_89, %c0_90] : memref<1x2x32xf32, #tpu.memory_space<vmem>>, vector<1x2x32xf32>
    %160 = vector.shape_cast %159 : vector<1x2x32xf32> to vector<2x32xf32>
    %161 = vector.shape_cast %158 : vector<2x32xf32> to vector<1x2x32xf32>
    tpu.vector_store %arg18[%c0_88, %c0_89, %c0_90], %161 {strides = array<i32>} : memref<1x2x32xf32, #tpu.memory_space<vmem>>, vector<1x2x32xf32>,
    return
  }
  func.func @transform_0(%arg0: i32) -> (i32, i32, i32) {
    %c0_i32 = arith.constant 0 : i32
    %c0_i32_0 = arith.constant 0 : i32
    %c0_i32_1 = arith.constant 0 : i32
    return %arg0, %c0_i32, %c0_i32_0 : i32, i32, i32
  }
  func.func @transform_1(%arg0: i32) -> (i32, i32, i32) {
    %c0_i32 = arith.constant 0 : i32
    %c0_i32_0 = arith.constant 0 : i32
    %c0_i32_1 = arith.constant 0 : i32
    return %arg0, %c0_i32, %c0_i32_0 : i32, i32, i32
  }
  func.func @transform_2(%arg0: i32) -> (i32, i32, i32) {
    %c0_i32 = arith.constant 0 : i32
    %c0_i32_0 = arith.constant 0 : i32
    %c0_i32_1 = arith.constant 0 : i32
    return %arg0, %c0_i32, %c0_i32_0 : i32, i32, i32
  }
  func.func @transform_3(%arg0: i32) -> (i32, i32, i32) {
    %c0_i32 = arith.constant 0 : i32
    %c0_i32_0 = arith.constant 0 : i32
    %c0_i32_1 = arith.constant 0 : i32
    return %arg0, %c0_i32, %c0_i32_0 : i32, i32, i32
  }
  func.func @transform_4(%arg0: i32) -> (i32, i32, i32) {
    %c0_i32 = arith.constant 0 : i32
    %c0_i32_0 = arith.constant 0 : i32
    %c0_i32_1 = arith.constant 0 : i32
    return %arg0, %c0_i32, %c0_i32_0 : i32, i32, i32
  }
  func.func @transform_5(%arg0: i32) -> (i32, i32, i32) {
    %c0_i32 = arith.constant 0 : i32
    %c0_i32_0 = arith.constant 0 : i32
    %c0_i32_1 = arith.constant 0 : i32
    return %arg0, %c0_i32, %c0_i32_0 : i32, i32, i32
  }
  func.func @transform_6(%arg0: i32) -> (i32, i32) {
    %c0_i32 = arith.constant 0 : i32
    %c0_i32_0 = arith.constant 0 : i32
    %c0_i32_1 = arith.constant 0 : i32
    return %c0_i32, %c0_i32_0 : i32, i32
  }
  func.func @transform_7(%arg0: i32) -> (i32, i32) {
    %c0_i32 = arith.constant 0 : i32
    %c0_i32_0 = arith.constant 0 : i32
    %c0_i32_1 = arith.constant 0 : i32
    return %c0_i32, %c0_i32_0 : i32, i32
  }
  func.func @transform_8(%arg0: i32) -> (i32, i32) {
    %c0_i32 = arith.constant 0 : i32
    %c0_i32_0 = arith.constant 0 : i32
    %c0_i32_1 = arith.constant 0 : i32
    return %c0_i32, %c0_i32_0 : i32, i32
  }
  func.func @transform_9(%arg0: i32) -> (i32, i32) {
    %c0_i32 = arith.constant 0 : i32
    %c0_i32_0 = arith.constant 0 : i32
    %c0_i32_1 = arith.constant 0 : i32
    return %c0_i32, %c0_i32_0 : i32, i32
  }
  func.func @transform_10(%arg0: i32) -> (i32, i32) {
    %c0_i32 = arith.constant 0 : i32
    %c0_i32_0 = arith.constant 0 : i32
    %c0_i32_1 = arith.constant 0 : i32
    return %c0_i32, %c0_i32_0 : i32, i32
  }
  func.func @transform_11(%arg0: i32) -> (i32, i32) {
    %c0_i32 = arith.constant 0 : i32
    %c0_i32_0 = arith.constant 0 : i32
    %c0_i32_1 = arith.constant 0 : i32
    return %c0_i32, %c0_i32_0 : i32, i32
  }
  func.func @transform_12(%arg0: i32) -> (i32, i32) {
    %c0_i32 = arith.constant 0 : i32
    %c0_i32_0 = arith.constant 0 : i32
    %c0_i32_1 = arith.constant 0 : i32
    return %c0_i32, %c0_i32_0 : i32, i32
  }
  func.func @transform_13(%arg0: i32) -> (i32, i32) {
    %c0_i32 = arith.constant 0 : i32
    %c0_i32_0 = arith.constant 0 : i32
    %c0_i32_1 = arith.constant 0 : i32
    return %c0_i32, %c0_i32_0 : i32, i32
  }
  func.func @transform_14(%arg0: i32) -> (i32, i32, i32) {
    %c0_i32 = arith.constant 0 : i32
    %c0_i32_0 = arith.constant 0 : i32
    %c0_i32_1 = arith.constant 0 : i32
    return %arg0, %c0_i32, %c0_i32_0 : i32, i32, i32
  }
  func.func @transform_15(%arg0: i32) -> (i32, i32, i32) {
    %c0_i32 = arith.constant 0 : i32
    %c0_i32_0 = arith.constant 0 : i32
    %c0_i32_1 = arith.constant 0 : i32
    return %arg0, %c0_i32, %c0_i32_0 : i32, i32, i32
  }
  func.func @transform_16(%arg0: i32) -> (i32, i32, i32) {
    %c0_i32 = arith.constant 0 : i32
    %c0_i32_0 = arith.constant 0 : i32
    %c0_i32_1 = arith.constant 0 : i32
    return %arg0, %c0_i32, %c0_i32_0 : i32, i32, i32
  }
  func.func @transform_17(%arg0: i32) -> (i32, i32, i32) {
    %c0_i32 = arith.constant 0 : i32
    %c0_i32_0 = arith.constant 0 : i32
    %c0_i32_1 = arith.constant 0 : i32
    return %arg0, %c0_i32, %c0_i32_0 : i32, i32, i32
  }
}

module attributes {stable_mosaic.version = 11 : i64} {
  func.func @_diff_pool_kernel(%arg0: i32, %arg1: memref<2x4x32xf32, #tpu.memory_space<vmem>>, %arg2: memref<1x32xf32, #tpu.memory_space<vmem>>, %arg3: memref<1x32xf32, #tpu.memory_space<vmem>>, %arg4: memref<2x4x4xf32, #tpu.memory_space<vmem>>, %arg5: memref<2x4x1xf32, #tpu.memory_space<vmem>>, %arg6: memref<1x1xf32, #tpu.memory_space<vmem>>, %arg7: memref<1x1xf32, #tpu.memory_space<vmem>>, %arg8: memref<2x1x32xf32, #tpu.memory_space<vmem>>, %arg9: memref<2x1x1xf32, #tpu.memory_space<vmem>>, %arg10: memref<1x1x2xf32, #tpu.memory_space<vmem>>) attributes {dimension_semantics = [#tpu.dimension_semantics<parallel>], iteration_bounds = array<i64: 1>, scalar_prefetch = 0 : i64, scratch_operands = 0 : i64, tpu.core_type = #tpu.core_type<tc>, window_params = [{transform_indices = @transform_0, window_bounds = array<i64: 2, 4, 32>}, {pipeline_mode = #tpu.pipeline_mode<synchronous>, transform_indices = @transform_1, window_bounds = array<i64: 1, 32>}, {pipeline_mode = #tpu.pipeline_mode<synchronous>, transform_indices = @transform_2, window_bounds = array<i64: 1, 32>}, {transform_indices = @transform_3, window_bounds = array<i64: 2, 4, 4>}, {transform_indices = @transform_4, window_bounds = array<i64: 2, 4, 1>}, {pipeline_mode = #tpu.pipeline_mode<synchronous>, transform_indices = @transform_5, window_bounds = array<i64: 1, 1>}, {pipeline_mode = #tpu.pipeline_mode<synchronous>, transform_indices = @transform_6, window_bounds = array<i64: 1, 1>}, {transform_indices = @transform_7, window_bounds = array<i64: 2, 1, 32>}, {transform_indices = @transform_8, window_bounds = array<i64: 2, 1, 1>}, {transform_indices = @transform_9, window_bounds = array<i64: 1, 1, 2>}]} {
    %c0 = arith.constant 0 : index
    %c0_0 = arith.constant 0 : index
    %0 = vector.load %arg2[%c0, %c0_0] : memref<1x32xf32, #tpu.memory_space<vmem>>, vector<1x32xf32>
    %c0_1 = arith.constant 0 : index
    %c0_2 = arith.constant 0 : index
    %1 = vector.load %arg3[%c0_1, %c0_2] : memref<1x32xf32, #tpu.memory_space<vmem>>, vector<1x32xf32>
    %c0_3 = arith.constant 0 : index
    %c0_4 = arith.constant 0 : index
    %2 = vector.load %arg6[%c0_3, %c0_4] : memref<1x1xf32, #tpu.memory_space<vmem>>, vector<1x1xf32>
    %c0_5 = arith.constant 0 : index
    %c0_6 = arith.constant 0 : index
    %3 = vector.load %arg7[%c0_5, %c0_6] : memref<1x1xf32, #tpu.memory_space<vmem>>, vector<1x1xf32>
    %c0_7 = arith.constant 0 : index
    %c0_8 = arith.constant 0 : index
    %c0_9 = arith.constant 0 : index
    %4 = vector.load %arg1[%c0_7, %c0_8, %c0_9] : memref<2x4x32xf32, #tpu.memory_space<vmem>>, vector<1x4x32xf32>
    %5 = vector.shape_cast %4 : vector<1x4x32xf32> to vector<4x32xf32>
    %6 = vector.broadcast %0 : vector<1x32xf32> to vector<4x32xf32>
    %7 = arith.subf %5, %6 : vector<4x32xf32>
    %8 = vector.broadcast %1 : vector<1x32xf32> to vector<4x32xf32>
    %9 = arith.mulf %7, %8 : vector<4x32xf32>
    %c0_10 = arith.constant 0 : index
    %c0_11 = arith.constant 0 : index
    %c0_12 = arith.constant 0 : index
    %10 = vector.load %arg5[%c0_10, %c0_11, %c0_12] : memref<2x4x1xf32, #tpu.memory_space<vmem>>, vector<1x4x1xf32>
    %11 = vector.shape_cast %10 : vector<1x4x1xf32> to vector<4x1xf32>
    %12 = vector.broadcast %2 : vector<1x1xf32> to vector<4x1xf32>
    %13 = arith.subf %11, %12 : vector<4x1xf32>
    %14 = vector.broadcast %3 : vector<1x1xf32> to vector<4x1xf32>
    %15 = arith.mulf %13, %14 : vector<4x1xf32>
    %c0_13 = arith.constant 0 : index
    %c0_14 = arith.constant 0 : index
    %c0_15 = arith.constant 0 : index
    %16 = vector.load %arg4[%c0_13, %c0_14, %c0_15] : memref<2x4x4xf32, #tpu.memory_space<vmem>>, vector<1x4x4xf32>
    %17 = vector.shape_cast %16 : vector<1x4x4xf32> to vector<4x4xf32>
    %cst = arith.constant dense<0xFF800000> : vector<4xf32>
    %18 = vector.multi_reduction <maximumf>, %15, %cst [1] : vector<4x1xf32> to vector<4xf32>
    %19 = vector.shape_cast %18 : vector<4xf32> to vector<4x1xf32>
    %20 = arith.subf %15, %19 : vector<4x1xf32>
    %21 = math.exp %20 : vector<4x1xf32>
    %cst_16 = arith.constant dense<0.000000e+00> : vector<4xf32>
    %22 = vector.multi_reduction <add>, %21, %cst_16 [1] : vector<4x1xf32> to vector<4xf32>
    %23 = vector.shape_cast %22 : vector<4xf32> to vector<4x1xf32>
    %24 = tpu.reciprocal %23 {approx = true} : vector<4x1xf32> -> vector<4x1xf32>
    %25 = arith.mulf %21, %24 : vector<4x1xf32>
    %26 = arith.truncf %25 : vector<4x1xf32> to vector<4x1xbf16>
    %27 = tpu.transpose %26, [1, 0] : vector<4x1xbf16> -> vector<1x4xbf16>
    %28 = arith.truncf %9 : vector<4x32xf32> to vector<4x32xbf16>
    %c0_17 = arith.constant 0 : index
    %c0_18 = arith.constant 0 : index
    %c0_19 = arith.constant 0 : index
    %29 = vector.load %arg4[%c0_17, %c0_18, %c0_19] : memref<2x4x4xf32, #tpu.memory_space<vmem>>, vector<1x4x4xf32>
    %30 = vector.shape_cast %29 : vector<1x4x4xf32> to vector<4x4xf32>
    %31 = arith.truncf %30 : vector<4x4xf32> to vector<4x4xbf16>
    %cst_20 = arith.constant dense<0.000000e+00> : vector<1x32xf32>
    %32 = tpu.matmul %27, %28, %cst_20 {dimension_numbers = #tpu.dot_dimension_numbers<[1], [0], [0], [1], [0, 0, 1, 1], [], []>} : vector<1x4xbf16>, vector<4x32xbf16>, vector<1x32xf32> -> vector<1x32xf32>
    %cst_21 = arith.constant dense<0.000000e+00> : vector<4x1xf32>
    %33 = tpu.matmul %31, %26, %cst_21 {dimension_numbers = #tpu.dot_dimension_numbers<[1], [0], [0], [1], [0, 0, 1, 1], [], []>} : vector<4x4xbf16>, vector<4x1xbf16>, vector<4x1xf32> -> vector<4x1xf32>
    %34 = arith.truncf %33 : vector<4x1xf32> to vector<4x1xbf16>
    %cst_22 = arith.constant dense<0.000000e+00> : vector<1x1xf32>
    %35 = tpu.matmul %27, %34, %cst_22 {dimension_numbers = #tpu.dot_dimension_numbers<[1], [0], [0], [1], [0, 0, 1, 1], [], []>} : vector<1x4xbf16>, vector<4x1xbf16>, vector<1x1xf32> -> vector<1x1xf32>
    %cst_23 = arith.constant dense<0.000000e+00> : vector<1x1xf32>
    %36 = tpu.matmul %27, %26, %cst_23 {dimension_numbers = #tpu.dot_dimension_numbers<[1], [0], [0], [1], [0, 0, 1, 1], [], []>} : vector<1x4xbf16>, vector<4x1xbf16>, vector<1x1xf32> -> vector<1x1xf32>
    %37 = arith.mulf %25, %33 : vector<4x1xf32>
    %38 = vector.shape_cast %37 : vector<4x1xf32> to vector<1x4x1xf32>
    %cst_24 = arith.constant dense<0.000000e+00> : vector<1xf32>
    %39 = vector.multi_reduction <add>, %38, %cst_24 [1, 2] : vector<1x4x1xf32> to vector<1xf32>
    %40 = vector.shape_cast %39 : vector<1xf32> to vector<1x1x1xf32>
    %41 = vector.extract %40[0, 0, 0] : f32 from vector<1x1x1xf32>
    %42 = arith.mulf %17, %17 : vector<4x4xf32>
    %43 = vector.shape_cast %42 : vector<4x4xf32> to vector<1x4x4xf32>
    %cst_25 = arith.constant dense<0.000000e+00> : vector<1xf32>
    %44 = vector.multi_reduction <add>, %43, %cst_25 [1, 2] : vector<1x4x4xf32> to vector<1xf32>
    %45 = vector.shape_cast %44 : vector<1xf32> to vector<1x1x1xf32>
    %46 = vector.extract %45[0, 0, 0] : f32 from vector<1x1x1xf32>
    %cst_26 = arith.constant 2.000000e+00 : f32
    %47 = arith.mulf %cst_26, %41 : f32
    %48 = arith.subf %46, %47 : f32
    %49 = arith.mulf %36, %36 : vector<1x1xf32>
    %50 = vector.shape_cast %49 : vector<1x1xf32> to vector<1x1x1xf32>
    %cst_27 = arith.constant dense<0.000000e+00> : vector<1xf32>
    %51 = vector.multi_reduction <add>, %50, %cst_27 [1, 2] : vector<1x1x1xf32> to vector<1xf32>
    %52 = vector.shape_cast %51 : vector<1xf32> to vector<1x1x1xf32>
    %53 = vector.extract %52[0, 0, 0] : f32 from vector<1x1x1xf32>
    %54 = arith.addf %48, %53 : f32
    %cst_28 = arith.constant 0.000000e+00 : f32
    %55 = arith.addf %cst_28, %54 : f32
    %cst_29 = arith.constant 0.000000e+00 : f32
    %56 = vector.broadcast %cst_29 : f32 to vector<4x1xf32>
    %57 = arith.subf %56, %25 : vector<4x1xf32>
    %cst_30 = arith.constant 1.000000e-15 : f32
    %58 = vector.broadcast %cst_30 : f32 to vector<4x1xf32>
    %59 = arith.addf %25, %58 : vector<4x1xf32>
    %60 = math.log %59 : vector<4x1xf32>
    %61 = arith.mulf %57, %60 : vector<4x1xf32>
    %62 = vector.shape_cast %61 : vector<4x1xf32> to vector<1x4x1xf32>
    %cst_31 = arith.constant dense<0.000000e+00> : vector<1xf32>
    %63 = vector.multi_reduction <add>, %62, %cst_31 [1, 2] : vector<1x4x1xf32> to vector<1xf32>
    %64 = vector.shape_cast %63 : vector<1xf32> to vector<1x1x1xf32>
    %65 = vector.extract %64[0, 0, 0] : f32 from vector<1x1x1xf32>
    %cst_32 = arith.constant 0.000000e+00 : f32
    %66 = arith.addf %cst_32, %65 : f32
    %c0_33 = arith.constant 0 : index
    %c0_34 = arith.constant 0 : index
    %c0_35 = arith.constant 0 : index
    %67 = vector.load %arg8[%c0_33, %c0_34, %c0_35] : memref<2x1x32xf32, #tpu.memory_space<vmem>>, vector<1x1x32xf32>
    %68 = vector.shape_cast %67 : vector<1x1x32xf32> to vector<1x32xf32>
    %69 = vector.shape_cast %32 : vector<1x32xf32> to vector<1x1x32xf32>
    tpu.vector_store %arg8[%c0_33, %c0_34, %c0_35], %69 {strides = array<i32>} : memref<2x1x32xf32, #tpu.memory_space<vmem>>, vector<1x1x32xf32>,
    %c0_36 = arith.constant 0 : index
    %c0_37 = arith.constant 0 : index
    %c0_38 = arith.constant 0 : index
    %70 = vector.load %arg9[%c0_36, %c0_37, %c0_38] : memref<2x1x1xf32, #tpu.memory_space<vmem>>, vector<1x1x1xf32>
    %71 = vector.shape_cast %70 : vector<1x1x1xf32> to vector<1x1xf32>
    %72 = vector.shape_cast %35 : vector<1x1xf32> to vector<1x1x1xf32>
    tpu.vector_store %arg9[%c0_36, %c0_37, %c0_38], %72 {strides = array<i32>} : memref<2x1x1xf32, #tpu.memory_space<vmem>>, vector<1x1x1xf32>,
    %c1 = arith.constant 1 : index
    %c0_39 = arith.constant 0 : index
    %c0_40 = arith.constant 0 : index
    %73 = vector.load %arg1[%c1, %c0_39, %c0_40] : memref<2x4x32xf32, #tpu.memory_space<vmem>>, vector<1x4x32xf32>
    %74 = vector.shape_cast %73 : vector<1x4x32xf32> to vector<4x32xf32>
    %75 = vector.broadcast %0 : vector<1x32xf32> to vector<4x32xf32>
    %76 = arith.subf %74, %75 : vector<4x32xf32>
    %77 = vector.broadcast %1 : vector<1x32xf32> to vector<4x32xf32>
    %78 = arith.mulf %76, %77 : vector<4x32xf32>
    %c1_41 = arith.constant 1 : index
    %c0_42 = arith.constant 0 : index
    %c0_43 = arith.constant 0 : index
    %79 = vector.load %arg5[%c1_41, %c0_42, %c0_43] : memref<2x4x1xf32, #tpu.memory_space<vmem>>, vector<1x4x1xf32>
    %80 = vector.shape_cast %79 : vector<1x4x1xf32> to vector<4x1xf32>
    %81 = vector.broadcast %2 : vector<1x1xf32> to vector<4x1xf32>
    %82 = arith.subf %80, %81 : vector<4x1xf32>
    %83 = vector.broadcast %3 : vector<1x1xf32> to vector<4x1xf32>
    %84 = arith.mulf %82, %83 : vector<4x1xf32>
    %c1_44 = arith.constant 1 : index
    %c0_45 = arith.constant 0 : index
    %c0_46 = arith.constant 0 : index
    %85 = vector.load %arg4[%c1_44, %c0_45, %c0_46] : memref<2x4x4xf32, #tpu.memory_space<vmem>>, vector<1x4x4xf32>
    %86 = vector.shape_cast %85 : vector<1x4x4xf32> to vector<4x4xf32>
    %cst_47 = arith.constant dense<0xFF800000> : vector<4xf32>
    %87 = vector.multi_reduction <maximumf>, %84, %cst_47 [1] : vector<4x1xf32> to vector<4xf32>
    %88 = vector.shape_cast %87 : vector<4xf32> to vector<4x1xf32>
    %89 = arith.subf %84, %88 : vector<4x1xf32>
    %90 = math.exp %89 : vector<4x1xf32>
    %cst_48 = arith.constant dense<0.000000e+00> : vector<4xf32>
    %91 = vector.multi_reduction <add>, %90, %cst_48 [1] : vector<4x1xf32> to vector<4xf32>
    %92 = vector.shape_cast %91 : vector<4xf32> to vector<4x1xf32>
    %93 = tpu.reciprocal %92 {approx = true} : vector<4x1xf32> -> vector<4x1xf32>
    %94 = arith.mulf %90, %93 : vector<4x1xf32>
    %95 = arith.truncf %94 : vector<4x1xf32> to vector<4x1xbf16>
    %96 = tpu.transpose %95, [1, 0] : vector<4x1xbf16> -> vector<1x4xbf16>
    %97 = arith.truncf %78 : vector<4x32xf32> to vector<4x32xbf16>
    %c1_49 = arith.constant 1 : index
    %c0_50 = arith.constant 0 : index
    %c0_51 = arith.constant 0 : index
    %98 = vector.load %arg4[%c1_49, %c0_50, %c0_51] : memref<2x4x4xf32, #tpu.memory_space<vmem>>, vector<1x4x4xf32>
    %99 = vector.shape_cast %98 : vector<1x4x4xf32> to vector<4x4xf32>
    %100 = arith.truncf %99 : vector<4x4xf32> to vector<4x4xbf16>
    %cst_52 = arith.constant dense<0.000000e+00> : vector<1x32xf32>
    %101 = tpu.matmul %96, %97, %cst_52 {dimension_numbers = #tpu.dot_dimension_numbers<[1], [0], [0], [1], [0, 0, 1, 1], [], []>} : vector<1x4xbf16>, vector<4x32xbf16>, vector<1x32xf32> -> vector<1x32xf32>
    %cst_53 = arith.constant dense<0.000000e+00> : vector<4x1xf32>
    %102 = tpu.matmul %100, %95, %cst_53 {dimension_numbers = #tpu.dot_dimension_numbers<[1], [0], [0], [1], [0, 0, 1, 1], [], []>} : vector<4x4xbf16>, vector<4x1xbf16>, vector<4x1xf32> -> vector<4x1xf32>
    %103 = arith.truncf %102 : vector<4x1xf32> to vector<4x1xbf16>
    %cst_54 = arith.constant dense<0.000000e+00> : vector<1x1xf32>
    %104 = tpu.matmul %96, %103, %cst_54 {dimension_numbers = #tpu.dot_dimension_numbers<[1], [0], [0], [1], [0, 0, 1, 1], [], []>} : vector<1x4xbf16>, vector<4x1xbf16>, vector<1x1xf32> -> vector<1x1xf32>
    %cst_55 = arith.constant dense<0.000000e+00> : vector<1x1xf32>
    %105 = tpu.matmul %96, %95, %cst_55 {dimension_numbers = #tpu.dot_dimension_numbers<[1], [0], [0], [1], [0, 0, 1, 1], [], []>} : vector<1x4xbf16>, vector<4x1xbf16>, vector<1x1xf32> -> vector<1x1xf32>
    %106 = arith.mulf %94, %102 : vector<4x1xf32>
    %107 = vector.shape_cast %106 : vector<4x1xf32> to vector<1x4x1xf32>
    %cst_56 = arith.constant dense<0.000000e+00> : vector<1xf32>
    %108 = vector.multi_reduction <add>, %107, %cst_56 [1, 2] : vector<1x4x1xf32> to vector<1xf32>
    %109 = vector.shape_cast %108 : vector<1xf32> to vector<1x1x1xf32>
    %110 = vector.extract %109[0, 0, 0] : f32 from vector<1x1x1xf32>
    %111 = arith.mulf %86, %86 : vector<4x4xf32>
    %112 = vector.shape_cast %111 : vector<4x4xf32> to vector<1x4x4xf32>
    %cst_57 = arith.constant dense<0.000000e+00> : vector<1xf32>
    %113 = vector.multi_reduction <add>, %112, %cst_57 [1, 2] : vector<1x4x4xf32> to vector<1xf32>
    %114 = vector.shape_cast %113 : vector<1xf32> to vector<1x1x1xf32>
    %115 = vector.extract %114[0, 0, 0] : f32 from vector<1x1x1xf32>
    %cst_58 = arith.constant 2.000000e+00 : f32
    %116 = arith.mulf %cst_58, %110 : f32
    %117 = arith.subf %115, %116 : f32
    %118 = arith.mulf %105, %105 : vector<1x1xf32>
    %119 = vector.shape_cast %118 : vector<1x1xf32> to vector<1x1x1xf32>
    %cst_59 = arith.constant dense<0.000000e+00> : vector<1xf32>
    %120 = vector.multi_reduction <add>, %119, %cst_59 [1, 2] : vector<1x1x1xf32> to vector<1xf32>
    %121 = vector.shape_cast %120 : vector<1xf32> to vector<1x1x1xf32>
    %122 = vector.extract %121[0, 0, 0] : f32 from vector<1x1x1xf32>
    %123 = arith.addf %117, %122 : f32
    %124 = arith.addf %55, %123 : f32
    %cst_60 = arith.constant 0.000000e+00 : f32
    %125 = vector.broadcast %cst_60 : f32 to vector<4x1xf32>
    %126 = arith.subf %125, %94 : vector<4x1xf32>
    %cst_61 = arith.constant 1.000000e-15 : f32
    %127 = vector.broadcast %cst_61 : f32 to vector<4x1xf32>
    %128 = arith.addf %94, %127 : vector<4x1xf32>
    %129 = math.log %128 : vector<4x1xf32>
    %130 = arith.mulf %126, %129 : vector<4x1xf32>
    %131 = vector.shape_cast %130 : vector<4x1xf32> to vector<1x4x1xf32>
    %cst_62 = arith.constant dense<0.000000e+00> : vector<1xf32>
    %132 = vector.multi_reduction <add>, %131, %cst_62 [1, 2] : vector<1x4x1xf32> to vector<1xf32>
    %133 = vector.shape_cast %132 : vector<1xf32> to vector<1x1x1xf32>
    %134 = vector.extract %133[0, 0, 0] : f32 from vector<1x1x1xf32>
    %135 = arith.addf %66, %134 : f32
    %c1_63 = arith.constant 1 : index
    %c0_64 = arith.constant 0 : index
    %c0_65 = arith.constant 0 : index
    %136 = vector.load %arg8[%c1_63, %c0_64, %c0_65] : memref<2x1x32xf32, #tpu.memory_space<vmem>>, vector<1x1x32xf32>
    %137 = vector.shape_cast %136 : vector<1x1x32xf32> to vector<1x32xf32>
    %138 = vector.shape_cast %101 : vector<1x32xf32> to vector<1x1x32xf32>
    tpu.vector_store %arg8[%c1_63, %c0_64, %c0_65], %138 {strides = array<i32>} : memref<2x1x32xf32, #tpu.memory_space<vmem>>, vector<1x1x32xf32>,
    %c1_66 = arith.constant 1 : index
    %c0_67 = arith.constant 0 : index
    %c0_68 = arith.constant 0 : index
    %139 = vector.load %arg9[%c1_66, %c0_67, %c0_68] : memref<2x1x1xf32, #tpu.memory_space<vmem>>, vector<1x1x1xf32>
    %140 = vector.shape_cast %139 : vector<1x1x1xf32> to vector<1x1xf32>
    %141 = vector.shape_cast %104 : vector<1x1xf32> to vector<1x1x1xf32>
    tpu.vector_store %arg9[%c1_66, %c0_67, %c0_68], %141 {strides = array<i32>} : memref<2x1x1xf32, #tpu.memory_space<vmem>>, vector<1x1x1xf32>,
    %142 = vector.broadcast %124 : f32 to vector<1x1xf32>
    %143 = vector.broadcast %135 : f32 to vector<1x1xf32>
    %144 = tpu.concatenate %142, %143 in 1 : vector<1x1xf32>, vector<1x1xf32> -> vector<1x2xf32>
    %c0_69 = arith.constant 0 : index
    %c0_70 = arith.constant 0 : index
    %c0_71 = arith.constant 0 : index
    %145 = vector.load %arg10[%c0_69, %c0_70, %c0_71] : memref<1x1x2xf32, #tpu.memory_space<vmem>>, vector<1x1x2xf32>
    %146 = vector.shape_cast %145 : vector<1x1x2xf32> to vector<1x2xf32>
    %147 = vector.shape_cast %144 : vector<1x2xf32> to vector<1x1x2xf32>
    tpu.vector_store %arg10[%c0_69, %c0_70, %c0_71], %147 {strides = array<i32>} : memref<1x1x2xf32, #tpu.memory_space<vmem>>, vector<1x1x2xf32>,
    return
  }
  func.func @transform_0(%arg0: i32) -> (i32, i32, i32) {
    %c0_i32 = arith.constant 0 : i32
    %c0_i32_0 = arith.constant 0 : i32
    %c0_i32_1 = arith.constant 0 : i32
    return %arg0, %c0_i32, %c0_i32_0 : i32, i32, i32
  }
  func.func @transform_1(%arg0: i32) -> (i32, i32) {
    %c0_i32 = arith.constant 0 : i32
    %c0_i32_0 = arith.constant 0 : i32
    %c0_i32_1 = arith.constant 0 : i32
    return %c0_i32, %c0_i32_0 : i32, i32
  }
  func.func @transform_2(%arg0: i32) -> (i32, i32) {
    %c0_i32 = arith.constant 0 : i32
    %c0_i32_0 = arith.constant 0 : i32
    %c0_i32_1 = arith.constant 0 : i32
    return %c0_i32, %c0_i32_0 : i32, i32
  }
  func.func @transform_3(%arg0: i32) -> (i32, i32, i32) {
    %c0_i32 = arith.constant 0 : i32
    %c0_i32_0 = arith.constant 0 : i32
    %c0_i32_1 = arith.constant 0 : i32
    return %arg0, %c0_i32, %c0_i32_0 : i32, i32, i32
  }
  func.func @transform_4(%arg0: i32) -> (i32, i32, i32) {
    %c0_i32 = arith.constant 0 : i32
    %c0_i32_0 = arith.constant 0 : i32
    %c0_i32_1 = arith.constant 0 : i32
    return %arg0, %c0_i32, %c0_i32_0 : i32, i32, i32
  }
  func.func @transform_5(%arg0: i32) -> (i32, i32) {
    %c0_i32 = arith.constant 0 : i32
    %c0_i32_0 = arith.constant 0 : i32
    %c0_i32_1 = arith.constant 0 : i32
    return %c0_i32, %c0_i32_0 : i32, i32
  }
  func.func @transform_6(%arg0: i32) -> (i32, i32) {
    %c0_i32 = arith.constant 0 : i32
    %c0_i32_0 = arith.constant 0 : i32
    %c0_i32_1 = arith.constant 0 : i32
    return %c0_i32, %c0_i32_0 : i32, i32
  }
  func.func @transform_7(%arg0: i32) -> (i32, i32, i32) {
    %c0_i32 = arith.constant 0 : i32
    %c0_i32_0 = arith.constant 0 : i32
    %c0_i32_1 = arith.constant 0 : i32
    return %arg0, %c0_i32, %c0_i32_0 : i32, i32, i32
  }
  func.func @transform_8(%arg0: i32) -> (i32, i32, i32) {
    %c0_i32 = arith.constant 0 : i32
    %c0_i32_0 = arith.constant 0 : i32
    %c0_i32_1 = arith.constant 0 : i32
    return %arg0, %c0_i32, %c0_i32_0 : i32, i32, i32
  }
  func.func @transform_9(%arg0: i32) -> (i32, i32, i32) {
    %c0_i32 = arith.constant 0 : i32
    %c0_i32_0 = arith.constant 0 : i32
    %c0_i32_1 = arith.constant 0 : i32
    return %arg0, %c0_i32, %c0_i32_0 : i32, i32, i32
  }
}

module attributes {stable_mosaic.version = 11 : i64} {
  func.func @_gcn_kernel(%arg0: i32, %arg1: memref<2x1x32xf32, #tpu.memory_space<vmem>>, %arg2: memref<2x1x1xf32, #tpu.memory_space<vmem>>, %arg3: memref<2x1x1xf32, #tpu.memory_space<vmem>>, %arg4: memref<2x1x1xf32, #tpu.memory_space<vmem>>, %arg5: memref<2x1x1xf32, #tpu.memory_space<vmem>>, %arg6: memref<32x32xbf16, #tpu.memory_space<vmem>>, %arg7: memref<1x32xf32, #tpu.memory_space<vmem>>, %arg8: memref<1x32xf32, #tpu.memory_space<vmem>>, %arg9: memref<1x32xf32, #tpu.memory_space<vmem>>, %arg10: memref<2x1x32xf32, #tpu.memory_space<vmem>>, %arg11: memref<1x2x32xf32, #tpu.memory_space<vmem>>) attributes {dimension_semantics = [#tpu.dimension_semantics<parallel>], iteration_bounds = array<i64: 1>, scalar_prefetch = 0 : i64, scratch_operands = 0 : i64, tpu.core_type = #tpu.core_type<tc>, window_params = [{transform_indices = @transform_0, window_bounds = array<i64: 2, 1, 32>}, {transform_indices = @transform_1, window_bounds = array<i64: 2, 1, 1>}, {transform_indices = @transform_2, window_bounds = array<i64: 2, 1, 1>}, {transform_indices = @transform_3, window_bounds = array<i64: 2, 1, 1>}, {transform_indices = @transform_4, window_bounds = array<i64: 2, 1, 1>}, {pipeline_mode = #tpu.pipeline_mode<synchronous>, transform_indices = @transform_5, window_bounds = array<i64: 32, 32>}, {pipeline_mode = #tpu.pipeline_mode<synchronous>, transform_indices = @transform_6, window_bounds = array<i64: 1, 32>}, {pipeline_mode = #tpu.pipeline_mode<synchronous>, transform_indices = @transform_7, window_bounds = array<i64: 1, 32>}, {pipeline_mode = #tpu.pipeline_mode<synchronous>, transform_indices = @transform_8, window_bounds = array<i64: 1, 32>}, {transform_indices = @transform_9, window_bounds = array<i64: 2, 1, 32>}, {transform_indices = @transform_10, window_bounds = array<i64: 1, 2, 32>}]} {
    %c0 = arith.constant 0 : index
    %c0_0 = arith.constant 0 : index
    %0 = vector.load %arg6[%c0, %c0_0] : memref<32x32xbf16, #tpu.memory_space<vmem>>, vector<32x32xbf16>
    %c0_1 = arith.constant 0 : index
    %c0_2 = arith.constant 0 : index
    %1 = vector.load %arg7[%c0_1, %c0_2] : memref<1x32xf32, #tpu.memory_space<vmem>>, vector<1x32xf32>
    %c0_3 = arith.constant 0 : index
    %c0_4 = arith.constant 0 : index
    %2 = vector.load %arg8[%c0_3, %c0_4] : memref<1x32xf32, #tpu.memory_space<vmem>>, vector<1x32xf32>
    %c0_5 = arith.constant 0 : index
    %c0_6 = arith.constant 0 : index
    %3 = vector.load %arg9[%c0_5, %c0_6] : memref<1x32xf32, #tpu.memory_space<vmem>>, vector<1x32xf32>
    %cst = arith.constant 0.000000e+00 : f32
    %4 = vector.broadcast %cst : f32 to vector<1x32xf32>
    %cst_7 = arith.constant 0.000000e+00 : f32
    %5 = vector.broadcast %cst_7 : f32 to vector<1x32xf32>
    %c0_8 = arith.constant 0 : index
    %c0_9 = arith.constant 0 : index
    %c0_10 = arith.constant 0 : index
    %6 = vector.load %arg1[%c0_8, %c0_9, %c0_10] : memref<2x1x32xf32, #tpu.memory_space<vmem>>, vector<1x1x32xf32>
    %7 = vector.shape_cast %6 : vector<1x1x32xf32> to vector<1x32xf32>
    %c0_11 = arith.constant 0 : index
    %c0_12 = arith.constant 0 : index
    %c0_13 = arith.constant 0 : index
    %8 = vector.load %arg2[%c0_11, %c0_12, %c0_13] : memref<2x1x1xf32, #tpu.memory_space<vmem>>, vector<1x1x1xf32>
    %9 = vector.shape_cast %8 : vector<1x1x1xf32> to vector<1x1xf32>
    %10 = arith.truncf %9 : vector<1x1xf32> to vector<1x1xbf16>
    %c0_14 = arith.constant 0 : index
    %c0_15 = arith.constant 0 : index
    %c0_16 = arith.constant 0 : index
    %11 = vector.load %arg3[%c0_14, %c0_15, %c0_16] : memref<2x1x1xf32, #tpu.memory_space<vmem>>, vector<1x1x1xf32>
    %12 = vector.shape_cast %11 : vector<1x1x1xf32> to vector<1x1xf32>
    %c0_17 = arith.constant 0 : index
    %c0_18 = arith.constant 0 : index
    %c0_19 = arith.constant 0 : index
    %13 = vector.load %arg4[%c0_17, %c0_18, %c0_19] : memref<2x1x1xf32, #tpu.memory_space<vmem>>, vector<1x1x1xf32>
    %14 = vector.shape_cast %13 : vector<1x1x1xf32> to vector<1x1xf32>
    %c0_20 = arith.constant 0 : index
    %c0_21 = arith.constant 0 : index
    %c0_22 = arith.constant 0 : index
    %15 = vector.load %arg5[%c0_20, %c0_21, %c0_22] : memref<2x1x1xf32, #tpu.memory_space<vmem>>, vector<1x1x1xf32>
    %16 = vector.shape_cast %15 : vector<1x1x1xf32> to vector<1x1xf32>
    %17 = arith.subf %7, %2 : vector<1x32xf32>
    %18 = arith.mulf %17, %3 : vector<1x32xf32>
    %19 = arith.truncf %18 : vector<1x32xf32> to vector<1x32xbf16>
    %cst_23 = arith.constant dense<0.000000e+00> : vector<1x32xf32>
    %20 = tpu.matmul %19, %0, %cst_23 {dimension_numbers = #tpu.dot_dimension_numbers<[1], [0], [0], [1], [0, 0, 1, 1], [], []>} : vector<1x32xbf16>, vector<32x32xbf16>, vector<1x32xf32> -> vector<1x32xf32>
    %21 = vector.broadcast %14 : vector<1x1xf32> to vector<1x32xf32>
    %22 = arith.mulf %21, %20 : vector<1x32xf32>
    %23 = arith.truncf %22 : vector<1x32xf32> to vector<1x32xbf16>
    %cst_24 = arith.constant dense<0.000000e+00> : vector<1x32xf32>
    %24 = tpu.matmul %10, %23, %cst_24 {dimension_numbers = #tpu.dot_dimension_numbers<[1], [0], [0], [1], [0, 0, 1, 1], [], []>} : vector<1x1xbf16>, vector<1x32xbf16>, vector<1x32xf32> -> vector<1x32xf32>
    %25 = vector.broadcast %14 : vector<1x1xf32> to vector<1x32xf32>
    %26 = arith.mulf %25, %24 : vector<1x32xf32>
    %27 = vector.broadcast %16 : vector<1x1xf32> to vector<1x32xf32>
    %28 = arith.mulf %27, %20 : vector<1x32xf32>
    %29 = arith.addf %26, %28 : vector<1x32xf32>
    %30 = arith.addf %29, %1 : vector<1x32xf32>
    %31 = vector.broadcast %12 : vector<1x1xf32> to vector<1x32xf32>
    %32 = arith.mulf %30, %31 : vector<1x32xf32>
    %cst_25 = arith.constant 0.000000e+00 : f32
    %33 = vector.broadcast %cst_25 : f32 to vector<1x32xf32>
    %34 = arith.maximumf %32, %33 : vector<1x32xf32>
    %c0_26 = arith.constant 0 : index
    %c0_27 = arith.constant 0 : index
    %c0_28 = arith.constant 0 : index
    %35 = vector.load %arg10[%c0_26, %c0_27, %c0_28] : memref<2x1x32xf32, #tpu.memory_space<vmem>>, vector<1x1x32xf32>
    %36 = vector.shape_cast %35 : vector<1x1x32xf32> to vector<1x32xf32>
    %37 = vector.shape_cast %34 : vector<1x32xf32> to vector<1x1x32xf32>
    tpu.vector_store %arg10[%c0_26, %c0_27, %c0_28], %37 {strides = array<i32>} : memref<2x1x32xf32, #tpu.memory_space<vmem>>, vector<1x1x32xf32>,
    %cst_29 = arith.constant dense<0.000000e+00> : vector<32xf32>
    %38 = vector.multi_reduction <add>, %34, %cst_29 [0] : vector<1x32xf32> to vector<32xf32>
    %39 = vector.shape_cast %38 : vector<32xf32> to vector<1x32xf32>
    %40 = arith.addf %4, %39 : vector<1x32xf32>
    %41 = arith.mulf %34, %34 : vector<1x32xf32>
    %cst_30 = arith.constant dense<0.000000e+00> : vector<32xf32>
    %42 = vector.multi_reduction <add>, %41, %cst_30 [0] : vector<1x32xf32> to vector<32xf32>
    %43 = vector.shape_cast %42 : vector<32xf32> to vector<1x32xf32>
    %44 = arith.addf %5, %43 : vector<1x32xf32>
    %c1 = arith.constant 1 : index
    %c0_31 = arith.constant 0 : index
    %c0_32 = arith.constant 0 : index
    %45 = vector.load %arg1[%c1, %c0_31, %c0_32] : memref<2x1x32xf32, #tpu.memory_space<vmem>>, vector<1x1x32xf32>
    %46 = vector.shape_cast %45 : vector<1x1x32xf32> to vector<1x32xf32>
    %c1_33 = arith.constant 1 : index
    %c0_34 = arith.constant 0 : index
    %c0_35 = arith.constant 0 : index
    %47 = vector.load %arg2[%c1_33, %c0_34, %c0_35] : memref<2x1x1xf32, #tpu.memory_space<vmem>>, vector<1x1x1xf32>
    %48 = vector.shape_cast %47 : vector<1x1x1xf32> to vector<1x1xf32>
    %49 = arith.truncf %48 : vector<1x1xf32> to vector<1x1xbf16>
    %c1_36 = arith.constant 1 : index
    %c0_37 = arith.constant 0 : index
    %c0_38 = arith.constant 0 : index
    %50 = vector.load %arg3[%c1_36, %c0_37, %c0_38] : memref<2x1x1xf32, #tpu.memory_space<vmem>>, vector<1x1x1xf32>
    %51 = vector.shape_cast %50 : vector<1x1x1xf32> to vector<1x1xf32>
    %c1_39 = arith.constant 1 : index
    %c0_40 = arith.constant 0 : index
    %c0_41 = arith.constant 0 : index
    %52 = vector.load %arg4[%c1_39, %c0_40, %c0_41] : memref<2x1x1xf32, #tpu.memory_space<vmem>>, vector<1x1x1xf32>
    %53 = vector.shape_cast %52 : vector<1x1x1xf32> to vector<1x1xf32>
    %c1_42 = arith.constant 1 : index
    %c0_43 = arith.constant 0 : index
    %c0_44 = arith.constant 0 : index
    %54 = vector.load %arg5[%c1_42, %c0_43, %c0_44] : memref<2x1x1xf32, #tpu.memory_space<vmem>>, vector<1x1x1xf32>
    %55 = vector.shape_cast %54 : vector<1x1x1xf32> to vector<1x1xf32>
    %56 = arith.subf %46, %2 : vector<1x32xf32>
    %57 = arith.mulf %56, %3 : vector<1x32xf32>
    %58 = arith.truncf %57 : vector<1x32xf32> to vector<1x32xbf16>
    %cst_45 = arith.constant dense<0.000000e+00> : vector<1x32xf32>
    %59 = tpu.matmul %58, %0, %cst_45 {dimension_numbers = #tpu.dot_dimension_numbers<[1], [0], [0], [1], [0, 0, 1, 1], [], []>} : vector<1x32xbf16>, vector<32x32xbf16>, vector<1x32xf32> -> vector<1x32xf32>
    %60 = vector.broadcast %53 : vector<1x1xf32> to vector<1x32xf32>
    %61 = arith.mulf %60, %59 : vector<1x32xf32>
    %62 = arith.truncf %61 : vector<1x32xf32> to vector<1x32xbf16>
    %cst_46 = arith.constant dense<0.000000e+00> : vector<1x32xf32>
    %63 = tpu.matmul %49, %62, %cst_46 {dimension_numbers = #tpu.dot_dimension_numbers<[1], [0], [0], [1], [0, 0, 1, 1], [], []>} : vector<1x1xbf16>, vector<1x32xbf16>, vector<1x32xf32> -> vector<1x32xf32>
    %64 = vector.broadcast %53 : vector<1x1xf32> to vector<1x32xf32>
    %65 = arith.mulf %64, %63 : vector<1x32xf32>
    %66 = vector.broadcast %55 : vector<1x1xf32> to vector<1x32xf32>
    %67 = arith.mulf %66, %59 : vector<1x32xf32>
    %68 = arith.addf %65, %67 : vector<1x32xf32>
    %69 = arith.addf %68, %1 : vector<1x32xf32>
    %70 = vector.broadcast %51 : vector<1x1xf32> to vector<1x32xf32>
    %71 = arith.mulf %69, %70 : vector<1x32xf32>
    %cst_47 = arith.constant 0.000000e+00 : f32
    %72 = vector.broadcast %cst_47 : f32 to vector<1x32xf32>
    %73 = arith.maximumf %71, %72 : vector<1x32xf32>
    %c1_48 = arith.constant 1 : index
    %c0_49 = arith.constant 0 : index
    %c0_50 = arith.constant 0 : index
    %74 = vector.load %arg10[%c1_48, %c0_49, %c0_50] : memref<2x1x32xf32, #tpu.memory_space<vmem>>, vector<1x1x32xf32>
    %75 = vector.shape_cast %74 : vector<1x1x32xf32> to vector<1x32xf32>
    %76 = vector.shape_cast %73 : vector<1x32xf32> to vector<1x1x32xf32>
    tpu.vector_store %arg10[%c1_48, %c0_49, %c0_50], %76 {strides = array<i32>} : memref<2x1x32xf32, #tpu.memory_space<vmem>>, vector<1x1x32xf32>,
    %cst_51 = arith.constant dense<0.000000e+00> : vector<32xf32>
    %77 = vector.multi_reduction <add>, %73, %cst_51 [0] : vector<1x32xf32> to vector<32xf32>
    %78 = vector.shape_cast %77 : vector<32xf32> to vector<1x32xf32>
    %79 = arith.addf %40, %78 : vector<1x32xf32>
    %80 = arith.mulf %73, %73 : vector<1x32xf32>
    %cst_52 = arith.constant dense<0.000000e+00> : vector<32xf32>
    %81 = vector.multi_reduction <add>, %80, %cst_52 [0] : vector<1x32xf32> to vector<32xf32>
    %82 = vector.shape_cast %81 : vector<32xf32> to vector<1x32xf32>
    %83 = arith.addf %44, %82 : vector<1x32xf32>
    %84 = tpu.concatenate %79, %83 in 0 : vector<1x32xf32>, vector<1x32xf32> -> vector<2x32xf32>
    %c0_53 = arith.constant 0 : index
    %c0_54 = arith.constant 0 : index
    %c0_55 = arith.constant 0 : index
    %85 = vector.load %arg11[%c0_53, %c0_54, %c0_55] : memref<1x2x32xf32, #tpu.memory_space<vmem>>, vector<1x2x32xf32>
    %86 = vector.shape_cast %85 : vector<1x2x32xf32> to vector<2x32xf32>
    %87 = vector.shape_cast %84 : vector<2x32xf32> to vector<1x2x32xf32>
    tpu.vector_store %arg11[%c0_53, %c0_54, %c0_55], %87 {strides = array<i32>} : memref<1x2x32xf32, #tpu.memory_space<vmem>>, vector<1x2x32xf32>,
    return
  }
  func.func @transform_0(%arg0: i32) -> (i32, i32, i32) {
    %c0_i32 = arith.constant 0 : i32
    %c0_i32_0 = arith.constant 0 : i32
    %c0_i32_1 = arith.constant 0 : i32
    return %arg0, %c0_i32, %c0_i32_0 : i32, i32, i32
  }
  func.func @transform_1(%arg0: i32) -> (i32, i32, i32) {
    %c0_i32 = arith.constant 0 : i32
    %c0_i32_0 = arith.constant 0 : i32
    %c0_i32_1 = arith.constant 0 : i32
    return %arg0, %c0_i32, %c0_i32_0 : i32, i32, i32
  }
  func.func @transform_2(%arg0: i32) -> (i32, i32, i32) {
    %c0_i32 = arith.constant 0 : i32
    %c0_i32_0 = arith.constant 0 : i32
    %c0_i32_1 = arith.constant 0 : i32
    return %arg0, %c0_i32, %c0_i32_0 : i32, i32, i32
  }
  func.func @transform_3(%arg0: i32) -> (i32, i32, i32) {
    %c0_i32 = arith.constant 0 : i32
    %c0_i32_0 = arith.constant 0 : i32
    %c0_i32_1 = arith.constant 0 : i32
    return %arg0, %c0_i32, %c0_i32_0 : i32, i32, i32
  }
  func.func @transform_4(%arg0: i32) -> (i32, i32, i32) {
    %c0_i32 = arith.constant 0 : i32
    %c0_i32_0 = arith.constant 0 : i32
    %c0_i32_1 = arith.constant 0 : i32
    return %arg0, %c0_i32, %c0_i32_0 : i32, i32, i32
  }
  func.func @transform_5(%arg0: i32) -> (i32, i32) {
    %c0_i32 = arith.constant 0 : i32
    %c0_i32_0 = arith.constant 0 : i32
    %c0_i32_1 = arith.constant 0 : i32
    return %c0_i32, %c0_i32_0 : i32, i32
  }
  func.func @transform_6(%arg0: i32) -> (i32, i32) {
    %c0_i32 = arith.constant 0 : i32
    %c0_i32_0 = arith.constant 0 : i32
    %c0_i32_1 = arith.constant 0 : i32
    return %c0_i32, %c0_i32_0 : i32, i32
  }
  func.func @transform_7(%arg0: i32) -> (i32, i32) {
    %c0_i32 = arith.constant 0 : i32
    %c0_i32_0 = arith.constant 0 : i32
    %c0_i32_1 = arith.constant 0 : i32
    return %c0_i32, %c0_i32_0 : i32, i32
  }
  func.func @transform_8(%arg0: i32) -> (i32, i32) {
    %c0_i32 = arith.constant 0 : i32
    %c0_i32_0 = arith.constant 0 : i32
    %c0_i32_1 = arith.constant 0 : i32
    return %c0_i32, %c0_i32_0 : i32, i32
  }
  func.func @transform_9(%arg0: i32) -> (i32, i32, i32) {
    %c0_i32 = arith.constant 0 : i32
    %c0_i32_0 = arith.constant 0 : i32
    %c0_i32_1 = arith.constant 0 : i32
    return %arg0, %c0_i32, %c0_i32_0 : i32, i32, i32
  }
  func.func @transform_10(%arg0: i32) -> (i32, i32, i32) {
    %c0_i32 = arith.constant 0 : i32
    %c0_i32_0 = arith.constant 0 : i32
    %c0_i32_1 = arith.constant 0 : i32
    return %arg0, %c0_i32, %c0_i32_0 : i32, i32, i32
  }
}

module attributes {stable_mosaic.version = 11 : i64} {
  func.func @_bn_readout_kernel(%arg0: i32, %arg1: memref<2x1x32xf32, #tpu.memory_space<vmem>>, %arg2: memref<1x32xf32, #tpu.memory_space<vmem>>, %arg3: memref<1x32xf32, #tpu.memory_space<vmem>>, %arg4: memref<32x32xf32, #tpu.memory_space<vmem>>, %arg5: memref<1x32xf32, #tpu.memory_space<vmem>>, %arg6: memref<32x4xf32, #tpu.memory_space<vmem>>, %arg7: memref<1x4xf32, #tpu.memory_space<vmem>>, %arg8: memref<2x1x4xf32, #tpu.memory_space<vmem>>) attributes {dimension_semantics = [#tpu.dimension_semantics<parallel>], iteration_bounds = array<i64: 1>, scalar_prefetch = 0 : i64, scratch_operands = 0 : i64, tpu.core_type = #tpu.core_type<tc>, window_params = [{transform_indices = @transform_0, window_bounds = array<i64: 2, 1, 32>}, {pipeline_mode = #tpu.pipeline_mode<synchronous>, transform_indices = @transform_1, window_bounds = array<i64: 1, 32>}, {pipeline_mode = #tpu.pipeline_mode<synchronous>, transform_indices = @transform_2, window_bounds = array<i64: 1, 32>}, {pipeline_mode = #tpu.pipeline_mode<synchronous>, transform_indices = @transform_3, window_bounds = array<i64: 32, 32>}, {pipeline_mode = #tpu.pipeline_mode<synchronous>, transform_indices = @transform_4, window_bounds = array<i64: 1, 32>}, {pipeline_mode = #tpu.pipeline_mode<synchronous>, transform_indices = @transform_5, window_bounds = array<i64: 32, 4>}, {pipeline_mode = #tpu.pipeline_mode<synchronous>, transform_indices = @transform_6, window_bounds = array<i64: 1, 4>}, {transform_indices = @transform_7, window_bounds = array<i64: 2, 1, 4>}]} {
    %c0 = arith.constant 0 : index
    %c0_0 = arith.constant 0 : index
    %0 = vector.load %arg2[%c0, %c0_0] : memref<1x32xf32, #tpu.memory_space<vmem>>, vector<1x32xf32>
    %c0_1 = arith.constant 0 : index
    %c0_2 = arith.constant 0 : index
    %1 = vector.load %arg3[%c0_1, %c0_2] : memref<1x32xf32, #tpu.memory_space<vmem>>, vector<1x32xf32>
    %c0_3 = arith.constant 0 : index
    %c0_4 = arith.constant 0 : index
    %c0_5 = arith.constant 0 : index
    %2 = vector.load %arg1[%c0_3, %c0_4, %c0_5] : memref<2x1x32xf32, #tpu.memory_space<vmem>>, vector<1x1x32xf32>
    %3 = vector.shape_cast %2 : vector<1x1x32xf32> to vector<1x32xf32>
    %4 = arith.subf %3, %0 : vector<1x32xf32>
    %5 = arith.mulf %4, %1 : vector<1x32xf32>
    %cst = arith.constant dense<0.000000e+00> : vector<32xf32>
    %6 = vector.multi_reduction <add>, %5, %cst [0] : vector<1x32xf32> to vector<32xf32>
    %7 = vector.shape_cast %6 : vector<32xf32> to vector<1x32xf32>
    %cst_6 = arith.constant 1.000000e+00 : f32
    %8 = vector.broadcast %cst_6 : f32 to vector<1x32xf32>
    %9 = arith.divf %7, %8 : vector<1x32xf32>
    %c1 = arith.constant 1 : index
    %c0_7 = arith.constant 0 : index
    %c0_8 = arith.constant 0 : index
    %10 = vector.load %arg1[%c1, %c0_7, %c0_8] : memref<2x1x32xf32, #tpu.memory_space<vmem>>, vector<1x1x32xf32>
    %11 = vector.shape_cast %10 : vector<1x1x32xf32> to vector<1x32xf32>
    %12 = arith.subf %11, %0 : vector<1x32xf32>
    %13 = arith.mulf %12, %1 : vector<1x32xf32>
    %cst_9 = arith.constant dense<0.000000e+00> : vector<32xf32>
    %14 = vector.multi_reduction <add>, %13, %cst_9 [0] : vector<1x32xf32> to vector<32xf32>
    %15 = vector.shape_cast %14 : vector<32xf32> to vector<1x32xf32>
    %cst_10 = arith.constant 1.000000e+00 : f32
    %16 = vector.broadcast %cst_10 : f32 to vector<1x32xf32>
    %17 = arith.divf %15, %16 : vector<1x32xf32>
    %18 = tpu.concatenate %9, %17 in 0 : vector<1x32xf32>, vector<1x32xf32> -> vector<2x32xf32>
    %c0_11 = arith.constant 0 : index
    %c0_12 = arith.constant 0 : index
    %19 = vector.load %arg4[%c0_11, %c0_12] : memref<32x32xf32, #tpu.memory_space<vmem>>, vector<32x32xf32>
    %cst_13 = arith.constant dense<0.000000e+00> : vector<2x32xf32>
    %20 = tpu.matmul %18, %19, %cst_13 {dimension_numbers = #tpu.dot_dimension_numbers<[1], [0], [0], [1], [0, 0, 1, 1], [], []>} : vector<2x32xf32>, vector<32x32xf32>, vector<2x32xf32> -> vector<2x32xf32>
    %c0_14 = arith.constant 0 : index
    %c0_15 = arith.constant 0 : index
    %21 = vector.load %arg5[%c0_14, %c0_15] : memref<1x32xf32, #tpu.memory_space<vmem>>, vector<1x32xf32>
    %22 = vector.broadcast %21 : vector<1x32xf32> to vector<2x32xf32>
    %23 = arith.addf %20, %22 : vector<2x32xf32>
    %cst_16 = arith.constant 0.000000e+00 : f32
    %24 = vector.broadcast %cst_16 : f32 to vector<2x32xf32>
    %25 = arith.maximumf %23, %24 : vector<2x32xf32>
    %c0_17 = arith.constant 0 : index
    %c0_18 = arith.constant 0 : index
    %26 = vector.load %arg6[%c0_17, %c0_18] : memref<32x4xf32, #tpu.memory_space<vmem>>, vector<32x4xf32>
    %cst_19 = arith.constant dense<0.000000e+00> : vector<2x4xf32>
    %27 = tpu.matmul %25, %26, %cst_19 {dimension_numbers = #tpu.dot_dimension_numbers<[1], [0], [0], [1], [0, 0, 1, 1], [], []>} : vector<2x32xf32>, vector<32x4xf32>, vector<2x4xf32> -> vector<2x4xf32>
    %c0_20 = arith.constant 0 : index
    %c0_21 = arith.constant 0 : index
    %28 = vector.load %arg7[%c0_20, %c0_21] : memref<1x4xf32, #tpu.memory_space<vmem>>, vector<1x4xf32>
    %29 = vector.broadcast %28 : vector<1x4xf32> to vector<2x4xf32>
    %30 = arith.addf %27, %29 : vector<2x4xf32>
    %31 = vector.extract_strided_slice %30 {offsets = [0, 0], sizes = [1, 4], strides = [1, 1]} : vector<2x4xf32> to vector<1x4xf32>
    %c0_22 = arith.constant 0 : index
    %c0_23 = arith.constant 0 : index
    %c0_24 = arith.constant 0 : index
    %32 = vector.load %arg8[%c0_22, %c0_23, %c0_24] : memref<2x1x4xf32, #tpu.memory_space<vmem>>, vector<1x1x4xf32>
    %33 = vector.shape_cast %32 : vector<1x1x4xf32> to vector<1x4xf32>
    %34 = vector.shape_cast %31 : vector<1x4xf32> to vector<1x1x4xf32>
    tpu.vector_store %arg8[%c0_22, %c0_23, %c0_24], %34 {strides = array<i32>} : memref<2x1x4xf32, #tpu.memory_space<vmem>>, vector<1x1x4xf32>,
    %35 = vector.extract_strided_slice %30 {offsets = [1, 0], sizes = [1, 4], strides = [1, 1]} : vector<2x4xf32> to vector<1x4xf32>
    %c1_25 = arith.constant 1 : index
    %c0_26 = arith.constant 0 : index
    %c0_27 = arith.constant 0 : index
    %36 = vector.load %arg8[%c1_25, %c0_26, %c0_27] : memref<2x1x4xf32, #tpu.memory_space<vmem>>, vector<1x1x4xf32>
    %37 = vector.shape_cast %36 : vector<1x1x4xf32> to vector<1x4xf32>
    %38 = vector.shape_cast %35 : vector<1x4xf32> to vector<1x1x4xf32>
    tpu.vector_store %arg8[%c1_25, %c0_26, %c0_27], %38 {strides = array<i32>} : memref<2x1x4xf32, #tpu.memory_space<vmem>>, vector<1x1x4xf32>,
    return
  }
  func.func @transform_0(%arg0: i32) -> (i32, i32, i32) {
    %c0_i32 = arith.constant 0 : i32
    %c0_i32_0 = arith.constant 0 : i32
    %c0_i32_1 = arith.constant 0 : i32
    return %arg0, %c0_i32, %c0_i32_0 : i32, i32, i32
  }
  func.func @transform_1(%arg0: i32) -> (i32, i32) {
    %c0_i32 = arith.constant 0 : i32
    %c0_i32_0 = arith.constant 0 : i32
    %c0_i32_1 = arith.constant 0 : i32
    return %c0_i32, %c0_i32_0 : i32, i32
  }
  func.func @transform_2(%arg0: i32) -> (i32, i32) {
    %c0_i32 = arith.constant 0 : i32
    %c0_i32_0 = arith.constant 0 : i32
    %c0_i32_1 = arith.constant 0 : i32
    return %c0_i32, %c0_i32_0 : i32, i32
  }
  func.func @transform_3(%arg0: i32) -> (i32, i32) {
    %c0_i32 = arith.constant 0 : i32
    %c0_i32_0 = arith.constant 0 : i32
    %c0_i32_1 = arith.constant 0 : i32
    return %c0_i32, %c0_i32_0 : i32, i32
  }
  func.func @transform_4(%arg0: i32) -> (i32, i32) {
    %c0_i32 = arith.constant 0 : i32
    %c0_i32_0 = arith.constant 0 : i32
    %c0_i32_1 = arith.constant 0 : i32
    return %c0_i32, %c0_i32_0 : i32, i32
  }
  func.func @transform_5(%arg0: i32) -> (i32, i32) {
    %c0_i32 = arith.constant 0 : i32
    %c0_i32_0 = arith.constant 0 : i32
    %c0_i32_1 = arith.constant 0 : i32
    return %c0_i32, %c0_i32_0 : i32, i32
  }
  func.func @transform_6(%arg0: i32) -> (i32, i32) {
    %c0_i32 = arith.constant 0 : i32
    %c0_i32_0 = arith.constant 0 : i32
    %c0_i32_1 = arith.constant 0 : i32
    return %c0_i32, %c0_i32_0 : i32, i32
  }
  func.func @transform_7(%arg0: i32) -> (i32, i32, i32) {
    %c0_i32 = arith.constant 0 : i32
    %c0_i32_0 = arith.constant 0 : i32
    %c0_i32_1 = arith.constant 0 : i32
    return %arg0, %c0_i32, %c0_i32_0 : i32, i32, i32
  }
}

</mosaic_0001>

<bundles_post_ra>
// kernel: diffpool_forward.13
= control target key start
LH: loop header
LB: loop body
LE: loop exit
PB: predicated region body
PF: predicated region fallthrough
CT: control target
= control target key end

     0   :  { %v897_v0 = vmov 0.0   ;;  %vm898_vm0 = vmmov 0   ;;  %v899_v3 = vmov 0   ;;  %vm105_vm1 = vcmask 261120   ;;  %s1284_s6 = inlined_call_operand.vmem [shape: bf16[32,32], index: 6, kind: input, shape index: {}]   ;;  %s1285_s0 = inlined_call_operand.vmem [shape: f32[2,16,32], index: 0, kind: input, shape index: {}]   ;;  %s1286_s8 = inlined_call_operand.vmem [shape: f32[1,32], index: 8, kind: input, shape index: {}]   ;;  %s1287_s9 = inlined_call_operand.vmem [shape: f32[1,32], index: 9, kind: input, shape index: {}]   ;;  %s1288_s4 = inlined_call_operand.vmem [shape: f32[2,16,1], index: 4, kind: input, shape index: {}]   ;;  %s1289_s5 = inlined_call_operand.vmem [shape: f32[2,16,1], index: 5, kind: input, shape index: {}]   ;;  %s1290_s3 = inlined_call_operand.vmem [shape: f32[2,16,1], index: 3, kind: input, shape index: {}]   ;;  %s1291_s2 = inlined_call_operand.vmem [shape: bf16[2,16,16], index: 2, kind: input, shape index: {}]   ;;  %s1292_s10 = inlined_call_operand.vmem [shape: bf16[32,32], index: 10, kind: input, shape index: {}]   ;;  %s1293_s1 = inlined_call_operand.vmem [shape: f32[2,16,32], index: 1, kind: input, shape index: {}]   ;;  %s1294_s12 = inlined_call_operand.vmem [shape: f32[1,32], index: 12, kind: input, shape index: {}]   ;;  %s1295_s13 = inlined_call_operand.vmem [shape: f32[1,32], index: 13, kind: input, shape index: {}]   ;;  %s1296_s7 = inlined_call_operand.vmem [shape: f32[1,32], index: 7, kind: input, shape index: {}]   ;;  %s1297_s14 = inlined_call_operand.vmem [shape: f32[2,16,32], index: 14, kind: output, shape index: {0}]   ;;  %s1298_s11 = inlined_call_operand.vmem [shape: f32[1,32], index: 11, kind: input, shape index: {}]   ;;  %s1299_s15 = inlined_call_operand.vmem [shape: f32[2,16,32], index: 15, kind: output, shape index: {1}]   ;;  %s1300_s16 = inlined_call_operand.vmem [shape: f32[1,2,32], index: 16, kind: output, shape index: {2}]   ;;  %s1301_s17 = inlined_call_operand.vmem [shape: f32[1,2,32], index: 17, kind: output, shape index: {3}]  }
   0x1   :  { %1304 = sst [smem:[#allocation2_spill]] %s1284_s6  ;;  %830 = vmatprep.subr.bf16.mxu0 %v897_v0  ;;  %834 = vmatprep.mubr.msk.bf16.mxu0 %vm898_vm0, %v897_v0  ;;  %v1007_v4 = vld [vmem:[%s1286_s8] ss:$0 sm:$0xff]  ;;  %v793_v11 = vld [vmem:[%s1288_s4 + $0x10] sm:$0xff]  ;;  %v71_v13 = vld [vmem:[%s1288_s4 + $0x8] sm:$0xff]  ;;  %vm168_vm2 = vcmask 130048  }
   0x2   :  { %1305 = sst [smem:[#allocation3_spill]] %s1285_s0  ;;  %s1306_s26 = sld [smem:[#allocation2_spill]]  ;;  %889 = vset.pattern.permute.xlu0 %v899_v3  ;;  %890 = vset.pattern.permute.xlu1 %v899_v3  ;;  %v1012_v5 = vld [vmem:[%s1287_s9] ss:$0 sm:$0xff]  ;;  %v794_v15 = vld [vmem:[%s1288_s4 + $0x18] sm:$0xff]  ;;  %v73_v18 = vld [vmem:[%s1289_s5 + $0x8] sm:$0xff] }
   0x3   :  { %s1307_s20 = sld [smem:[#allocation3_spill]]  ;;  %838 = vmatprep.subr.bf16.mxu1 %v897_v0  ;;  %v70_v9 = vld [vmem:[%s1288_s4] sm:$0xff]  ;;  %840 = vmatprep.mubr.msk.bf16.mxu1 %vm898_vm0, %v897_v0  ;;  %v795_v19 = vld [vmem:[%s1289_s5 + $0x10] sm:$0xff]  ;;  %v796_v22 = vld [vmem:[%s1289_s5 + $0x18] sm:$0xff]  ;;  %vm752_vm3 = vcmask 1040384   ;;  %vm754_vm4 = vcmask 254976  }
   0x4   :  { %152 = vperm.xlu0 %889, %v70_v9   ;;  %502 = vperm.xlu1 %890, %v793_v11   ;;  %v72_v17 = vld [vmem:[%s1289_s5] sm:$0xff]  ;;  %v791_v21 = vld [vmem:[%s1290_s3 + $0x10] sm:$0xff]  ;;  %v69_v23 = vld [vmem:[%s1290_s3 + $0x8] sm:$0xff] }
   0x5   :  { %v68_v20 = vld [vmem:[%s1290_s3] sm:$0xff]  ;;  %v792_v24 = vld [vmem:[%s1290_s3 + $0x18] sm:$0xff]  ;;  %v252_v35 = vld [vmem:[%s1293_s1 + $0x8] sm:$0xff] }
   0x6   :  { %v782_v33 = vld [vmem:[%s1294_s12] ss:$0 sm:$0xff]  ;;  %v895_v44 = vld [vmem:[%s1292_s10 + $0x8] sm:$0xff]   ;;  %v802_v52 = vld [vmem:[%s1293_s1 + $0x10] sm:$0xff] }
   0x7   :  { %v251_v34 = vld [vmem:[%s1293_s1] sm:$0xff]  ;;  %v260_v39 = vsub.f32 %v252_v35, %v782_v33  ;;  %v803_v53 = vld [vmem:[%s1293_s1 + $0x18] sm:$0xff]  ;;  %v597_v55 = vsub.f32 %v802_v52, %v782_v33 }
   0x8   :  { %v994_v1 = vld [vmem:[%s1306_s26] sm:$0xff]   ;;  %v1001_v2 = vld [vmem:[%s1306_s26 + $0x8] sm:$0xff]   ;;  %157 = vperm.xlu0 %889, %v71_v13   ;;  %507 = vperm.xlu1 %890, %v794_v15   ;;  %v259_v38 = vsub.f32 %v251_v34, %v782_v33  ;;  %v598_v56 = vsub.f32 %v803_v53, %v782_v33 }
   0x9   :  { %831 = vmatpush3.bf16.msra.mxu0 %v994_v1  ;;  %v74_v6 = vld [vmem:[%s1307_s20] sm:$0xff]  ;;  %v75_v7 = vld [vmem:[%s1307_s20 + $0x8] sm:$0xff]  ;;  %v797_v45 = vld [vmem:[%s1307_s20 + $0x10] sm:$0xff] }
   0xa   :  { %832 = vmatprep.subr.bf16.mxu0 %v897_v0  ;;  %v82_v8 = vsub.f32 %v74_v6, %v1007_v4  ;;  %v83_v10 = vsub.f32 %v75_v7, %v1007_v4  ;;  %v1093_v37 = vld [vmem:[%s1291_s2] sm:$0xff]   ;;  %v798_v46 = vld [vmem:[%s1307_s20 + $0x18] sm:$0xff]  ;;  %v451_v48 = vsub.f32 %v797_v45, %v1007_v4 }
   0xb   :  { %v894_v40 = vld [vmem:[%s1292_s10] sm:$0xff]   ;;  %v452_v49 = vsub.f32 %v798_v46, %v1007_v4 }
   0xc   :  { %v90_v12 = vmul.f32 %v1012_v5, %v82_v8  ;;  %v91_v14 = vmul.f32 %v1012_v5, %v83_v10  ;;  %217 = vperm.xlu0 %889, %v72_v17   ;;  %222 = vperm.xlu1 %890, %v73_v18   ;;  %v783_v41 = vld [vmem:[%s1295_s13] ss:$0 sm:$0xff]  ;;  %v453_v50 = vmul.f32 %v1012_v5, %v451_v48 }
   0xd   :  { %833 = vmatpush3.bf16.msra.mxu0 %v1001_v2  ;;  %v267_v42 = vmul.f32 %v783_v41, %v259_v38  ;;  %v268_v43 = vmul.f32 %v783_v41, %v260_v39  ;;  %v454_v51 = vmul.f32 %v1012_v5, %v452_v49  ;;  %v599_v57 = vmul.f32 %v783_v41, %v597_v55  ;;  %v1157_v7 = vld [vmem:[%s1296_s7] ss:$0 sm:$0xff] }
   0xe   :  { %852 = vmatprep.subr.bf16.mxu0 %v897_v0  ;;  %v92_v16 = vpack.c.bf16 %v91_v14, %v90_v12  ;;  %v600_v58 = vmul.f32 %v783_v41, %v598_v56 }
   0xf   :  { %v269_v47 = vpack.c.bf16 %v268_v43, %v267_v42  ;;  %v455_v54 = vpack.c.bf16 %v454_v51, %v453_v50 }
  0x10   :  { %835 = vmatmul.mubr.msk.bf16.vlgmr.msra.gmra.mrb[0].mxu0 %vm105_vm1, %v92_v16  ;;  %566 = vperm.xlu0 %889, %v795_v19   ;;  %v601_v59 = vpack.c.bf16 %v600_v58, %v599_v57  ;;  %v1213_v58 = vld [vmem:[%s1298_s11] ss:$0 sm:$0xff] }
  0x11   :  { %854 = vmatprep.mubr.msk.bf16.mxu0 %vm898_vm0, %v897_v0  ;;  %571 = vperm.xlu1 %890, %v796_v22  }
  0x14   :  { %239 = vperm.xlu0 %889, %v68_v20  }
  0x15   :  { %244 = vperm.xlu1 %890, %v69_v23  }
  0x18   :  { %582 = vperm.xlu0 %889, %v791_v21  }
  0x19   :  { %587 = vperm.xlu1 %890, %v792_v24  }
  0x83   :  { %v1069_v25 = vpop.permute.xlu0 %152  ;;  %v1139_v60 = vpop.permute.xlu1 %502 }
  0x87   :  { %v1073_v28 = vpop.permute.xlu0 %157  ;;  %v1141_v61 = vpop.permute.xlu1 %507 }
  0x8b   :  { %v1143_v62 = vpop.permute.xlu0 %217  ;;  %v1145_v63 = vpop.permute.xlu1 %222 }
  0x90   :  { %v1149_v3 = vpop.permute.xlu1 %571 }
  0x94   :  { %v1165_v16 = vpop.permute.xlu1 %244 }
  0xe3   :  { %v1071_v26 = vpop.f32.mrb[0].mxu0 }
  0xe4   :  { %v836_v27 = vpop.f32.mrb[1].mxu0  ;;  %v160_v30 = vmul.f32 %v1069_v25, %v1071_v26  ;;  %v225_v4 = vmul.f32 %v1143_v62, %v1071_v26 }
  0xe5   :  { %v1075_v29 = vpop.f32.mrb[2].mxu0 }
  0xe6   :  { %v161_v31 = vmul.f32 %v1073_v28, %v1075_v29  ;;  %v837_v32 = vpop.f32.mrb[3].mxu0  ;;  %v226_v9 = vmul.f32 %v1145_v63, %v1075_v29 }
  0xe8   :  { %v162_v36 = vpack.c.bf16 %v161_v31, %v160_v30 }
  0xea   :  { %839 = vmatpush3.bf16.msra.mxu1 %v162_v36 }
  0xeb   :  { %844 = vmatprep.subr.bf16.mxu1 %v897_v0 }
  0xed   :  { %841 = vmatmul.mubr.msk.bf16.vlgmr.msra.gmra.mrb[0].mxu1 %vm168_vm2, %v1093_v37 }
  0xee   :  { %845 = vmatpush3.bf16.msra.mxu1 %v894_v40  ;;  %848 = vmatprep.mubr.msk.bf16.mxu1 %vm898_vm0, %v897_v0 }
  0xef   :  { %846 = vmatprep.subr.bf16.mxu1 %v897_v0 }
  0xf2   :  { %847 = vmatpush3.bf16.msra.mxu1 %v895_v44 }
  0xf3   :  { %858 = vmatprep.subr.bf16.mxu1 %v897_v0 }
  0xf5   :  { %849 = vmatmul.mubr.msk.bf16.vlgmr.msra.gmra.mrb[4].mxu1 %vm105_vm1, %v269_v47  ;;  %v896_v47 = vld [vmem:[%s1291_s2 + $0x8] sm:$0xff]  }
  0xf6   :  { %859 = vmatpush3.bf16.msra.mxu1 %v994_v1  ;;  %862 = vmatprep.mubr.msk.bf16.mxu1 %vm898_vm0, %v897_v0  ;;  %v1147_v1 = vpop.permute.xlu0 %566 }
  0xf7   :  { %860 = vmatprep.subr.bf16.mxu1 %v897_v0 }
  0xfa   :  { %861 = vmatpush3.bf16.msra.mxu1 %v1001_v2  ;;  %v1163_v15 = vpop.permute.xlu0 %239 }
  0xfb   :  { %872 = vmatprep.subr.bf16.mxu1 %v897_v0 }
  0xfd   :  { %863 = vmatmul.mubr.msk.bf16.vlgmr.msra.gmra.mrb[8].mxu1 %vm105_vm1, %v455_v54 }
  0xfe   :  { %873 = vmatpush3.bf16.msra.mxu1 %v894_v40  ;;  %876 = vmatprep.mubr.msk.bf16.mxu1 %vm898_vm0, %v897_v0 }
  0xff   :  { %874 = vmatprep.subr.bf16.mxu1 %v897_v0 }
 0x102   :  { %875 = vmatpush3.bf16.msra.mxu1 %v895_v44 }
 0x105   :  { %877 = vmatmul.mubr.msk.bf16.vlgmr.msra.gmra.mrb[12].mxu1 %vm105_vm1, %v601_v59 }
 0x1c0   :  { %v206_v2 = vpop.f32.mrb[0].mxu1 }
 0x1c1   :  { %v213_v5 = vmul.f32 %v206_v2, %v1069_v25  ;;  %v842_v6 = vpop.f32.mrb[1].mxu1 }
 0x1c2   :  { %v209_v8 = vpop.f32.mrb[2].mxu1 }
 0x1c3   :  { %v227_v10 = vadd.f32 %v225_v4, %v213_v5  ;;  %v214_v11 = vmul.f32 %v209_v8, %v1073_v28  ;;  %v843_v12 = vpop.f32.mrb[3].mxu1 }
 0x1c5   :  { %v235_v13 = vadd.f32 %v1157_v7, %v227_v10  ;;  %v228_v14 = vadd.f32 %v226_v9, %v214_v11 }
 0x1c7   :  { %v247_v17 = vmul.f32 %v1163_v15, %v235_v13  ;;  %v236_v18 = vadd.f32 %v1157_v7, %v228_v14 }
 0x1c8   :  { %v319_v19 = vpop.f32.mrb[4].mxu1 }
 0x1c9   :  { %v249_v20 = vmax.f32 %v247_v17, 0.0  ;;  %v248_v21 = vmul.f32 %v1165_v16, %v236_v18  ;;  %v850_v22 = vpop.f32.mrb[5].mxu1  ;;  %v326_v27 = vmul.f32 %v319_v19, %v1069_v25  ;;  %v372_v55 = vmul.f32 %v319_v19, %v1143_v62 }
 0x1ca   :  { %v322_v23 = vpop.f32.mrb[6].mxu1 }
 0x1cb   :  { %v402_v24 = vmul.f32 %v249_v20, %v249_v20  ;;  %v250_v26 = vmax.f32 %v248_v21, 0.0  ;;  %388 = vst.msk [vmem:[%s1297_s14] sm:$0xff] %vm105_vm1, %v249_v20  ;;  %v327_v29 = vmul.f32 %v322_v23, %v1073_v28  ;;  %v851_v30 = vpop.f32.mrb[7].mxu1  ;;  %v392_v31 = vsel %vm105_vm1, %v249_v20, 0.0 }
 0x1cc   :  { %v373_v2 = vmul.f32 %v322_v23, %v1145_v63 }
 0x1cd   :  { %389 = vst.msk [vmem:[%s1297_s14 + $0x8] sm:$0xff] %vm105_vm1, %v250_v26  ;;  %v393_v32 = vsel %vm105_vm1, %v250_v26, 0.0  ;;  %v403_v33 = vmul.f32 %v250_v26, %v250_v26  ;;  %v328_v34 = vpack.c.bf16 %v327_v29, %v326_v27  ;;  %v404_v36 = vsel %vm105_vm1, %v402_v24, 0.0  ;;  %v583_v26 = vpop.permute.xlu0 %582 }
 0x1ce   :  { %v1182_v35 = vadd.f32 %v393_v32, %v392_v31 }
 0x1cf   :  { %v405_v38 = vsel %vm105_vm1, %v403_v33, 0.0  ;;  %853 = vmatpush3.bf16.msra.mxu0 %v328_v34 }
 0x1d0   :  { %v1186_v39 = vadd.f32 %v405_v38, %v404_v36  ;;  %v493_v40 = vpop.f32.mrb[8].mxu1  ;;  %866 = vmatprep.subr.bf16.mxu0 %v897_v0 }
 0x1d1   :  { %v864_v41 = vpop.f32.mrb[9].mxu1  ;;  %v510_v43 = vmul.f32 %v1139_v60, %v493_v40  ;;  %v574_v10 = vmul.f32 %v1147_v1, %v493_v40 }
 0x1d2   :  { %855 = vmatmul.mubr.msk.bf16.vlgmr.msra.gmra.mrb[4].mxu0 %vm168_vm2, %v1093_v37  ;;  %v496_v42 = vpop.f32.mrb[10].mxu1  ;;  %v407_v34 = vrot.slane %v1186_v39, 4  ;;  %v588_v41 = vpop.permute.xlu1 %587 }
 0x1d3   :  { %v511_v44 = vmul.f32 %v1141_v61, %v496_v42  ;;  %v865_v45 = vpop.f32.mrb[11].mxu1  ;;  %868 = vmatprep.mubr.msk.bf16.mxu0 %vm898_vm0, %v897_v0  ;;  %v575_v20 = vmul.f32 %v1149_v3, %v496_v42 }
 0x1d5   :  { %v512_v46 = vpack.c.bf16 %v511_v44, %v510_v43 }
 0x1d7   :  { %867 = vmatpush3.bf16.msra.mxu0 %v512_v46 }
 0x1d8   :  { %v639_v48 = vpop.f32.mrb[12].mxu1  ;;  %880 = vmatprep.subr.bf16.mxu0 %v897_v0 }
 0x1d9   :  { %v878_v49 = vpop.f32.mrb[13].mxu1  ;;  %v646_v50 = vmul.f32 %v639_v48, %v1139_v60  ;;  %v692_v42 = vmul.f32 %v639_v48, %v1147_v1  ;;  %v408_v1 = vadd.f32 %v407_v34, %v1186_v39 }
 0x1da   :  { %869 = vmatmul.mubr.msk.bf16.vlgmr.msra.gmra.mrb[8].mxu0 %vm168_vm2, %v896_v47  ;;  %v1200_v37 = vpop.f32.mrb[14].mxu1 }
 0x1db   :  { %v647_v51 = vmul.f32 %v1200_v37, %v1141_v61  ;;  %v879_v52 = vpop.f32.mrb[15].mxu1  ;;  %882 = vmatprep.mubr.msk.bf16.mxu0 %vm898_vm0, %v897_v0  ;;  %v693_v49 = vmul.f32 %v1200_v37, %v1149_v3 }
 0x1dd   :  { %v648_v53 = vpack.c.bf16 %v647_v51, %v646_v50 }
 0x1df   :  { %881 = vmatpush3.bf16.msra.mxu0 %v648_v53 }
 0x1e2   :  { %883 = vmatmul.mubr.msk.bf16.vlgmr.msra.gmra.mrb[12].mxu0 %vm168_vm2, %v896_v47 }
 0x2a5   :  { %v363_v54 = vpop.f32.mrb[4].mxu0 }
 0x2a6   :  { %v370_v56 = vmul.f32 %v363_v54, %v1069_v25  ;;  %v856_v57 = vpop.f32.mrb[5].mxu0 }
 0x2a7   :  { %v366_v59 = vpop.f32.mrb[6].mxu0 }
 0x2a8   :  { %v374_v4 = vadd.f32 %v372_v55, %v370_v56  ;;  %v371_v0 = vmul.f32 %v366_v59, %v1073_v28  ;;  %v857_v5 = vpop.f32.mrb[7].mxu0  ;;  %v395_v28 = vrot.slane %v1182_v35, 4  ;;  %v409_v59 = vrot.slane %v408_v1, 2 }
 0x2aa   :  { %v382_v6 = vadd.f32 %v1213_v58, %v374_v4  ;;  %v375_v8 = vadd.f32 %v373_v2, %v371_v0  ;;  %v396_v30 = vadd.f32 %v395_v28, %v1182_v35 }
 0x2ac   :  { %v384_v62 = vmul.f32 %v382_v6, %v1163_v15  ;;  %v383_v25 = vadd.f32 %v1213_v58, %v375_v8  ;;  %v397_v47 = vrot.slane %v396_v30, 2 }
 0x2ad   :  { %v555_v9 = vpop.f32.mrb[8].mxu0 }
 0x2ae   :  { %v386_v11 = vmax.f32 %v384_v62, 0.0  ;;  %v385_v12 = vmul.f32 %v383_v25, %v1165_v16  ;;  %v562_v13 = vmul.f32 %v555_v9, %v1139_v60  ;;  %v870_v63 = vpop.f32.mrb[9].mxu0 }
 0x2af   :  { %v558_v14 = vpop.f32.mrb[10].mxu0 }
 0x2b0   :  { %390 = vst.msk [vmem:[%s1299_s15] sm:$0xff] %vm105_vm1, %v386_v11  ;;  %v424_v15 = vmul.f32 %v386_v11, %v386_v11  ;;  %v387_v17 = vmax.f32 %v385_v12, 0.0  ;;  %v576_v18 = vadd.f32 %v574_v10, %v562_v13  ;;  %v871_v19 = vpop.f32.mrb[11].mxu0  ;;  %v563_v21 = vmul.f32 %v558_v14, %v1141_v61 }
 0x2b1   :  { %v414_v16 = vsel %vm105_vm1, %v386_v11, 0.0  ;;  %v410_v11 = vadd.f32 %v409_v59, %v408_v1 }
 0x2b2   :  { %391 = vst.msk [vmem:[%s1299_s15 + $0x8] sm:$0xff] %vm105_vm1, %v387_v17  ;;  %v415_v22 = vsel %vm105_vm1, %v387_v17, 0.0  ;;  %v425_v23 = vmul.f32 %v387_v17, %v387_v17  ;;  %v578_v24 = vadd.f32 %v1157_v7, %v576_v18  ;;  %v577_v29 = vadd.f32 %v575_v20, %v563_v21 }
 0x2b3   :  { %v416_v27 = vadd.f32 %v415_v22, %v414_v16  ;;  %v426_v31 = vsel %vm105_vm1, %v424_v15, 0.0  ;;  %v411_v22 = vrot.slane %v410_v11, 1 }
 0x2b4   :  { %v427_v32 = vsel %vm105_vm1, %v425_v23, 0.0  ;;  %v590_v33 = vmul.f32 %v583_v26, %v578_v24  ;;  %v579_v38 = vadd.f32 %v1157_v7, %v577_v29 }
 0x2b5   :  { %v428_v36 = vadd.f32 %v427_v32, %v426_v31  ;;  %v683_v40 = vpop.f32.mrb[12].mxu0  ;;  %v417_v54 = vrot.slane %v416_v27, 4 }
 0x2b6   :  { %v592_v43 = vmax.f32 %v590_v33, 0.0  ;;  %v690_v44 = vmul.f32 %v683_v40, %v1139_v60  ;;  %v884_v45 = vpop.f32.mrb[13].mxu0  ;;  %v591_v46 = vmul.f32 %v588_v41, %v579_v38 }
 0x2b7   :  { %v686_v35 = vpop.f32.mrb[14].mxu0  ;;  %v429_v2 = vrot.slane %v428_v36, 4  ;;  %v418_v25 = vadd.f32 %v417_v54, %v416_v27 }
 0x2b8   :  { %806 = vst.msk [vmem:[%s1297_s14 + $0x10] sm:$0xff] %vm105_vm1, %v592_v43  ;;  %v694_v7 = vadd.f32 %v692_v42, %v690_v44  ;;  %v691_v50 = vmul.f32 %v686_v35, %v1141_v61  ;;  %v885_v51 = vpop.f32.mrb[15].mxu0  ;;  %v718_v48 = vmul.f32 %v592_v43, %v592_v43  ;;  %v593_v60 = vmax.f32 %v591_v46, 0.0 }
 0x2b9   :  { %v708_v55 = vsel %vm105_vm1, %v592_v43, 0.0  ;;  %v398_v61 = vadd.f32 %v397_v47, %v396_v30  ;;  %v419_v15 = vrot.slane %v418_v25, 2 }
 0x2ba   :  { %v696_v52 = vadd.f32 %v1213_v58, %v694_v7  ;;  %v695_v53 = vadd.f32 %v693_v49, %v691_v50  ;;  %807 = vst.msk [vmem:[%s1297_s14 + $0x18] sm:$0xff] %vm105_vm1, %v593_v60  ;;  %v709_v3 = vsel %vm105_vm1, %v593_v60, 0.0  ;;  %v719_v37 = vmul.f32 %v593_v60, %v593_v60 }
 0x2bb   :  { %v710_v56 = vadd.f32 %v709_v3, %v708_v55  ;;  %v720_v4 = vsel %vm105_vm1, %v718_v48, 0.0  ;;  %v399_v63 = vrot.slane %v398_v61, 1  ;;  %v420_v33 = vadd.f32 %v419_v15, %v418_v25 }
 0x2bc   :  { %v698_v57 = vmul.f32 %v696_v52, %v583_v26  ;;  %v697_v39 = vadd.f32 %v1213_v58, %v695_v53  ;;  %v721_v0 = vsel %vm105_vm1, %v719_v37, 0.0  ;;  %v430_v58 = vadd.f32 %v429_v2, %v428_v36 }
 0x2bd   :  { %v711_v5 = vrot.slane %v710_v56, 4  ;;  %v722_v6 = vadd.f32 %v721_v0, %v720_v4  ;;  %v400_v32 = vadd.f32 %v399_v63, %v398_v61  ;;  %v421_v35 = vrot.slane %v420_v33, 1 }
 0x2be   :  { %v700_v8 = vmax.f32 %v698_v57, 0.0  ;;  %v699_v62 = vmul.f32 %v697_v39, %v588_v41  ;;  %v431_v23 = vrot.slane %v430_v58, 2  ;;  %v412_v41 = vadd.f32 %v411_v22, %v410_v11 }
 0x2bf   :  { %v712_v9 = vadd.f32 %v711_v5, %v710_v56  ;;  %v723_v10 = vrot.slane %v722_v6, 4  ;;  %v422_v60 = vadd.f32 %v421_v35, %v420_v33 }
 0x2c0   :  { %808 = vst.msk [vmem:[%s1299_s15 + $0x10] sm:$0xff] %vm105_vm1, %v700_v8  ;;  %v740_v12 = vmul.f32 %v700_v8, %v700_v8  ;;  %v701_v13 = vmax.f32 %v699_v62, 0.0  ;;  %v730_v17 = vsel %vm105_vm1, %v700_v8, 0.0  ;;  %v432_v42 = vadd.f32 %v431_v23, %v430_v58 }
 0x2c1   :  { %v713_v14 = vrot.slane %v712_v9, 2  ;;  %v724_v28 = vadd.f32 %v723_v10, %v722_v6 }
 0x2c2   :  { %809 = vst.msk [vmem:[%s1299_s15 + $0x18] sm:$0xff] %vm105_vm1, %v701_v13  ;;  %v731_v18 = vsel %vm105_vm1, %v701_v13, 0.0  ;;  %v741_v19 = vmul.f32 %v701_v13, %v701_v13  ;;  %v742_v24 = vsel %vm105_vm1, %v740_v12, 0.0  ;;  %v433_v50 = vrot.slane %v432_v42, 1 }
 0x2c3   :  { %v714_v20 = vadd.f32 %v713_v14, %v712_v9  ;;  %v725_v21 = vrot.slane %v724_v28, 2  ;;  %v732_v16 = vadd.f32 %v731_v18, %v730_v17 }
 0x2c4   :  { %v743_v26 = vsel %vm105_vm1, %v741_v19, 0.0  ;;  %v434_v54 = vadd.f32 %v433_v50, %v432_v42 }
 0x2c5   :  { %v715_v27 = vrot.slane %v714_v20, 1  ;;  %v726_v29 = vadd.f32 %v725_v21, %v724_v28  ;;  %v733_v30 = vrot.slane %v732_v16, 4  ;;  %v744_v31 = vadd.f32 %v743_v26, %v742_v24 }
 0x2c7   :  { %v716_v34 = vadd.f32 %v715_v27, %v714_v20  ;;  %v727_v36 = vrot.slane %v726_v29, 1  ;;  %v734_v38 = vadd.f32 %v733_v30, %v732_v16  ;;  %v745_v40 = vrot.slane %v744_v31, 4 }
 0x2c9   :  { %v717_v43 = vadd.f32 %v716_v34, %v400_v32  ;;  %v728_v44 = vadd.f32 %v727_v36, %v726_v29  ;;  %v735_v45 = vrot.slane %v734_v38, 2  ;;  %v746_v46 = vadd.f32 %v745_v40, %v744_v31 }
 0x2cb   :  { %v729_v47 = vadd.f32 %v728_v44, %v412_v41  ;;  %v736_v49 = vadd.f32 %v735_v45, %v734_v38  ;;  %v747_v7 = vrot.slane %v746_v46, 2 }
 0x2cd   :  { %v753_v51 = vsel %vm752_vm3, %v717_v43, %v729_v47  ;;  %v737_v1 = vrot.slane %v736_v49, 1  ;;  %v748_v48 = vadd.f32 %v747_v7, %v746_v46 }
 0x2ce   :  { %755 = vst.msk [vmem:[%s1300_s16] sm:$0x3] %vm754_vm4, %v753_v51 }
 0x2cf   :  { %v738_v52 = vadd.f32 %v737_v1, %v736_v49  ;;  %v749_v53 = vrot.slane %v748_v48, 1 }
 0x2d1   :  { %v739_v55 = vadd.f32 %v738_v52, %v422_v60  ;;  %v750_v3 = vadd.f32 %v749_v53, %v748_v48 }
 0x2d3   :  { %v751_v37 = vadd.f32 %v750_v3, %v434_v54 }
 0x2d5   :  { %v756_v61 = vsel %vm752_vm3, %v739_v55, %v751_v37 }
 0x2d6   :  { %757 = vst.msk [vmem:[%s1301_s17] sm:$0x3] %vm754_vm4, %v756_v61 }

// kernel: diffpool_forward.12
= control target key start
LH: loop header
LB: loop body
LE: loop exit
PB: predicated region body
PF: predicated region fallthrough
CT: control target
= control target key end

     0   :  { %vm91_vm0 = vcmask 1043456   ;;  %v855_v0 = vmov 0.0   ;;  %vm856_vm1 = vmmov 0   ;;  %v857_v13 = vmov 0   ;;  %s1200_s6 = inlined_call_operand.vmem [shape: bf16[8,32], index: 6, kind: input, shape index: {}]   ;;  %s1201_s0 = inlined_call_operand.vmem [shape: f32[2,16,8], index: 0, kind: input, shape index: {}, may-alias: {0,1}]   ;;  %s1202_s8 = inlined_call_operand.vmem [shape: f32[1,8], index: 8, kind: input, shape index: {}, may-alias: {8,12}]   ;;  %s1203_s9 = inlined_call_operand.vmem [shape: f32[1,8], index: 9, kind: input, shape index: {}, may-alias: {9,13}]   ;;  %s1204_s1 = inlined_call_operand.vmem [shape: f32[2,16,8], index: 1, kind: input, shape index: {}, may-alias: {0,1}]   ;;  %s1205_s12 = inlined_call_operand.vmem [shape: f32[1,8], index: 12, kind: input, shape index: {}, may-alias: {8,12}]   ;;  %s1206_s10 = inlined_call_operand.vmem [shape: bf16[8,32], index: 10, kind: input, shape index: {}]   ;;  %s1207_s4 = inlined_call_operand.vmem [shape: f32[2,16,1], index: 4, kind: input, shape index: {}]   ;;  %s1208_s13 = inlined_call_operand.vmem [shape: f32[1,8], index: 13, kind: input, shape index: {}, may-alias: {9,13}]   ;;  %s1209_s5 = inlined_call_operand.vmem [shape: f32[2,16,1], index: 5, kind: input, shape index: {}]   ;;  %s1210_s3 = inlined_call_operand.vmem [shape: f32[2,16,1], index: 3, kind: input, shape index: {}]   ;;  %s1211_s2 = inlined_call_operand.vmem [shape: bf16[2,16,16], index: 2, kind: input, shape index: {}]   ;;  %s1212_s7 = inlined_call_operand.vmem [shape: f32[1,32], index: 7, kind: input, shape index: {}]   ;;  %s1213_s11 = inlined_call_operand.vmem [shape: f32[1,32], index: 11, kind: input, shape index: {}]   ;;  %s1214_s14 = inlined_call_operand.vmem [shape: f32[2,16,32], index: 14, kind: output, shape index: {0}]   ;;  %s1215_s15 = inlined_call_operand.vmem [shape: f32[2,16,32], index: 15, kind: output, shape index: {1}]   ;;  %s1216_s16 = inlined_call_operand.vmem [shape: f32[1,2,32], index: 16, kind: output, shape index: {2}]   ;;  %s1217_s17 = inlined_call_operand.vmem [shape: f32[1,2,32], index: 17, kind: output, shape index: {3}]  }
   0x1   :  { %1219 = sst [smem:[#allocation2_spill]] %s1200_s6  ;;  %800 = vmatprep.subr.bf16.mxu0 %v855_v0  ;;  %802 = vmatprep.mubr.msk.bf16.mxu0 %vm856_vm1, %v855_v0  ;;  %v752_v2 = vld [vmem:[%s1202_s8] ss:$0 sm:$0xff]  ;;  %v238_v12 = vld [vmem:[%s1204_s1 + $0x8] sm:$0xff]  ;;  %vm87_vm2 = vcmask 64512   ;;  %v767_v20 = vld [vmem:[%s1207_s4 + $0x10] sm:$0xff] }
   0x2   :  { %1220 = sst [smem:[#allocation3_spill]] %s1201_s0  ;;  %s1221_s26 = sld [smem:[#allocation2_spill]]  ;;  %v753_v4 = vld [vmem:[%s1203_s9] ss:$0 sm:$0xff]  ;;  %806 = vmatprep.subr.bf16.mxu1 %v855_v0  ;;  %808 = vmatprep.mubr.msk.bf16.mxu1 %vm856_vm1, %v855_v0  ;;  %v65_v23 = vld [vmem:[%s1207_s4 + $0x8] sm:$0xff]  ;;  %v768_v26 = vld [vmem:[%s1207_s4 + $0x18] sm:$0xff] }
   0x3   :  { %s1222_s19 = sld [smem:[#allocation3_spill]]  ;;  %v973_v9 = vld [vmem:[%s1205_s12] ss:$0 sm:$0xff]  ;;  %851 = vset.pattern.permute.xlu0 %v857_v13  ;;  %852 = vset.pattern.permute.xlu1 %v857_v13  ;;  %v67_v33 = vld [vmem:[%s1209_s5 + $0x8] sm:$0xff]  ;;  %v769_v34 = vld [vmem:[%s1209_s5 + $0x10] sm:$0xff]  ;;  %vm154_vm3 = vcmask 130048  }
   0x4   :  { %v237_v10 = vld [vmem:[%s1204_s1] sm:$0xff]  ;;  %v246_v17 = vsub.f32 %v238_v12, %v973_v9  ;;  %480 = vperm.xlu1 %852, %v767_v20   ;;  %v770_v37 = vld [vmem:[%s1209_s5 + $0x18] sm:$0xff]  ;;  %v776_v38 = vld [vmem:[%s1204_s1 + $0x10] sm:$0xff]  ;;  %vm365_vm4 = vcmask 261120   ;;  %vm730_vm5 = vcmask 1040384   ;;  %vm732_vm6 = vcmask 254976  }
   0x5   :  { %v56_v11 = vld [vmem:[%s1206_s10] sm:$0xf]  ;;  %v245_v16 = vsub.f32 %v237_v10, %v973_v9  ;;  %v777_v39 = vld [vmem:[%s1204_s1 + $0x18] sm:$0xff]  ;;  %v575_v42 = vsub.f32 %v776_v38, %v973_v9  ;;  %v63_v44 = vld [vmem:[%s1210_s3 + $0x8] sm:$0xff] }
   0x6   :  { %v64_v18 = vld [vmem:[%s1207_s4] sm:$0xff]  ;;  %v260_v21 = vsel %vm91_vm0, %v56_v11, 0  ;;  %v576_v43 = vsub.f32 %v777_v39, %v973_v9  ;;  %v765_v45 = vld [vmem:[%s1210_s3 + $0x10] sm:$0xff]  ;;  %v766_v48 = vld [vmem:[%s1210_s3 + $0x18] sm:$0xff] }
   0x7   :  { %v759_v19 = vld [vmem:[%s1208_s13] ss:$0 sm:$0xff]  ;;  %138 = vperm.xlu0 %851, %v64_v18   ;;  %v854_v13 = vld [vmem:[%s1211_s2 + $0x8] sm:$0xff]  }
   0x8   :  { %v52_v1 = vld [vmem:[%s1221_s26] sm:$0xf]  ;;  %v253_v24 = vmul.f32 %v759_v19, %v245_v16  ;;  %v254_v25 = vmul.f32 %v759_v19, %v246_v17  ;;  %485 = vperm.xlu1 %852, %v768_v26   ;;  %v577_v46 = vmul.f32 %v759_v19, %v575_v42  ;;  %v578_v47 = vmul.f32 %v759_v19, %v576_v43 }
   0x9   :  { %v93_v3 = vsel %vm91_vm0, %v52_v1, 0  ;;  %v68_v5 = vld [vmem:[%s1222_s19] sm:$0xff]  ;;  %v69_v6 = vld [vmem:[%s1222_s19 + $0x8] sm:$0xff]  ;;  %v771_v27 = vld [vmem:[%s1222_s19 + $0x10] sm:$0xff] }
   0xa   :  { %801 = vmatpush3.bf16.msra.mxu0 %v93_v3  ;;  %v76_v7 = vsub.f32 %v68_v5, %v752_v2  ;;  %v77_v8 = vsub.f32 %v69_v6, %v752_v2  ;;  %v772_v28 = vld [vmem:[%s1222_s19 + $0x18] sm:$0xff]  ;;  %v66_v29 = vld [vmem:[%s1209_s5] sm:$0xff]  ;;  %v255_v30 = vpack.c.bf16 %v254_v25, %v253_v24  ;;  %v429_v31 = vsub.f32 %v771_v27, %v752_v2 }
   0xb   :  { %812 = vmatprep.subr.bf16.mxu0 %v855_v0  ;;  %143 = vperm.xlu0 %851, %v65_v23   ;;  %v430_v32 = vsub.f32 %v772_v28, %v752_v2  ;;  %v62_v40 = vld [vmem:[%s1210_s3] sm:$0xff]  ;;  %v579_v49 = vpack.c.bf16 %v578_v47, %v577_v46 }
   0xc   :  { %v84_v14 = vmul.f32 %v753_v4, %v76_v7  ;;  %v85_v15 = vmul.f32 %v753_v4, %v77_v8  ;;  %208 = vperm.xlu1 %852, %v67_v33   ;;  %v431_v35 = vmul.f32 %v753_v4, %v429_v31  ;;  %v853_v59 = vld [vmem:[%s1211_s2] sm:$0xff]  }
   0xd   :  { %v432_v36 = vmul.f32 %v753_v4, %v430_v32  ;;  %v1120_v46 = vld [vmem:[%s1213_s11] ss:$0 sm:$0xff] }
   0xe   :  { %v86_v22 = vpack.c.bf16 %v85_v15, %v84_v14 }
   0xf   :  { %203 = vperm.xlu0 %851, %v66_v29   ;;  %v433_v41 = vpack.c.bf16 %v432_v36, %v431_v35  ;;  %v1111_v29 = vld [vmem:[%s1212_s7] ss:$0 sm:$0xff] }
  0x10   :  { %803 = vmatmul.mubr.msk.bf16.vlgmr.msra.gmra.mrb[0].mxu0 %vm87_vm2, %v86_v22  ;;  %549 = vperm.xlu1 %852, %v770_v37  }
  0x11   :  { %813 = vmatpush3.bf16.msra.mxu0 %v260_v21  ;;  %814 = vmatprep.mubr.msk.bf16.mxu0 %vm856_vm1, %v855_v0 }
  0x12   :  { %824 = vmatprep.subr.bf16.mxu0 %v855_v0 }
  0x13   :  { %544 = vperm.xlu0 %851, %v769_v34  }
  0x14   :  { %230 = vperm.xlu1 %852, %v63_v44  }
  0x17   :  { %225 = vperm.xlu0 %851, %v62_v40  }
  0x18   :  { %815 = vmatmul.mubr.msk.bf16.vlgmr.msra.gmra.mrb[4].mxu0 %vm87_vm2, %v255_v30  ;;  %565 = vperm.xlu1 %852, %v766_v48  }
  0x19   :  { %825 = vmatpush3.bf16.msra.mxu0 %v93_v3  ;;  %826 = vmatprep.mubr.msk.bf16.mxu0 %vm856_vm1, %v855_v0 }
  0x1a   :  { %836 = vmatprep.subr.bf16.mxu0 %v855_v0 }
  0x1b   :  { %560 = vperm.xlu0 %851, %v765_v45  }
  0x20   :  { %827 = vmatmul.mubr.msk.bf16.vlgmr.msra.gmra.mrb[8].mxu0 %vm87_vm2, %v433_v41 }
  0x21   :  { %837 = vmatpush3.bf16.msra.mxu0 %v260_v21  ;;  %838 = vmatprep.mubr.msk.bf16.mxu0 %vm856_vm1, %v855_v0 }
  0x28   :  { %839 = vmatmul.mubr.msk.bf16.vlgmr.msra.gmra.mrb[12].mxu0 %vm87_vm2, %v579_v49 }
  0x83   :  { %v1071_v3 = vpop.permute.xlu1 %480 }
  0x86   :  { %v1053_v50 = vpop.permute.xlu0 %138 }
  0x87   :  { %v1076_v7 = vpop.permute.xlu1 %485 }
  0x8a   :  { %v1055_v53 = vpop.permute.xlu0 %143 }
  0x8b   :  { %v209_v22 = vpop.permute.xlu1 %208 }
  0x8e   :  { %v204_v21 = vpop.permute.xlu0 %203 }
  0x8f   :  { %v1106_v28 = vpop.permute.xlu1 %549 }
  0x92   :  { %v1103_v23 = vpop.permute.xlu0 %544 }
  0x93   :  { %v231_v39 = vpop.permute.xlu1 %230 }
  0x96   :  { %v226_v36 = vpop.permute.xlu0 %225 }
  0xe3   :  { %v129_v51 = vpop.f32.mrb[0].mxu0 }
  0xe4   :  { %v804_v52 = vpop.f32.mrb[1].mxu0  ;;  %v146_v55 = vmul.f32 %v1053_v50, %v129_v51  ;;  %v211_v25 = vmul.f32 %v204_v21, %v129_v51 }
  0xe5   :  { %v132_v54 = vpop.f32.mrb[2].mxu0 }
  0xe6   :  { %v147_v56 = vmul.f32 %v1055_v53, %v132_v54  ;;  %v805_v57 = vpop.f32.mrb[3].mxu0  ;;  %v212_v30 = vmul.f32 %v209_v22, %v132_v54 }
  0xe8   :  { %v148_v58 = vpack.c.bf16 %v147_v56, %v146_v55 }
  0xea   :  { %807 = vmatpush3.bf16.msra.mxu1 %v148_v58 }
  0xeb   :  { %v296_v60 = vpop.f32.mrb[4].mxu0  ;;  %818 = vmatprep.subr.bf16.mxu1 %v855_v0 }
  0xec   :  { %v816_v61 = vpop.f32.mrb[5].mxu0  ;;  %v303_v63 = vmul.f32 %v296_v60, %v1053_v50  ;;  %v349_v41 = vmul.f32 %v296_v60, %v204_v21 }
  0xed   :  { %809 = vmatmul.mubr.msk.bf16.vlgmr.msra.gmra.mrb[0].mxu1 %vm154_vm3, %v853_v59  ;;  %v1064_v62 = vpop.f32.mrb[6].mxu0 }
  0xee   :  { %v304_v1 = vmul.f32 %v1064_v62, %v1055_v53  ;;  %v817_v2 = vpop.f32.mrb[7].mxu0  ;;  %820 = vmatprep.mubr.msk.bf16.mxu1 %vm856_vm1, %v855_v0  ;;  %v350_v54 = vmul.f32 %v1064_v62, %v209_v22 }
  0xf0   :  { %v305_v4 = vpack.c.bf16 %v304_v1, %v303_v63 }
  0xf2   :  { %819 = vmatpush3.bf16.msra.mxu1 %v305_v4 }
  0xf3   :  { %v1073_v5 = vpop.f32.mrb[8].mxu0  ;;  %830 = vmatprep.subr.bf16.mxu1 %v855_v0 }
  0xf4   :  { %v828_v6 = vpop.f32.mrb[9].mxu0  ;;  %v488_v9 = vmul.f32 %v1071_v3, %v1073_v5  ;;  %v552_v4 = vmul.f32 %v1103_v23, %v1073_v5 }
  0xf5   :  { %821 = vmatmul.mubr.msk.bf16.vlgmr.msra.gmra.mrb[4].mxu1 %vm154_vm3, %v853_v59  ;;  %v1079_v8 = vpop.f32.mrb[10].mxu0 }
  0xf6   :  { %v489_v10 = vmul.f32 %v1076_v7, %v1079_v8  ;;  %v829_v11 = vpop.f32.mrb[11].mxu0  ;;  %832 = vmatprep.mubr.msk.bf16.mxu1 %vm856_vm1, %v855_v0 }
  0xf8   :  { %v490_v12 = vpack.c.bf16 %v489_v10, %v488_v9 }
  0xfa   :  { %831 = vmatpush3.bf16.msra.mxu1 %v490_v12 }
  0xfb   :  { %v1090_v14 = vpop.f32.mrb[12].mxu0  ;;  %842 = vmatprep.subr.bf16.mxu1 %v855_v0 }
  0xfc   :  { %v840_v15 = vpop.f32.mrb[13].mxu0  ;;  %v624_v17 = vmul.f32 %v1090_v14, %v1071_v3 }
  0xfd   :  { %833 = vmatmul.mubr.msk.bf16.vlgmr.msra.gmra.mrb[8].mxu1 %vm154_vm3, %v854_v13  ;;  %v1094_v16 = vpop.f32.mrb[14].mxu0 }
  0xfe   :  { %v625_v18 = vmul.f32 %v1094_v16, %v1076_v7  ;;  %v841_v19 = vpop.f32.mrb[15].mxu0  ;;  %844 = vmatprep.mubr.msk.bf16.mxu1 %vm856_vm1, %v855_v0 }
 0x100   :  { %v626_v20 = vpack.c.bf16 %v625_v18, %v624_v17 }
 0x102   :  { %843 = vmatpush3.bf16.msra.mxu1 %v626_v20 }
 0x105   :  { %845 = vmatmul.mubr.msk.bf16.vlgmr.msra.gmra.mrb[12].mxu1 %vm154_vm3, %v854_v13  ;;  %v553_v13 = vmul.f32 %v1106_v28, %v1079_v8 }
 0x1c0   :  { %v192_v24 = vpop.f32.mrb[0].mxu1 }
 0x1c1   :  { %v199_v26 = vmul.f32 %v192_v24, %v1053_v50  ;;  %v810_v27 = vpop.f32.mrb[1].mxu1  ;;  %v561_v24 = vpop.permute.xlu0 %560 }
 0x1c2   :  { %v195_v0 = vpop.f32.mrb[2].mxu1 }
 0x1c3   :  { %v213_v31 = vadd.f32 %v211_v25, %v199_v26  ;;  %v200_v32 = vmul.f32 %v195_v0, %v1055_v53  ;;  %v811_v33 = vpop.f32.mrb[3].mxu1 }
 0x1c5   :  { %v221_v34 = vadd.f32 %v1111_v29, %v213_v31  ;;  %v214_v35 = vadd.f32 %v212_v30, %v200_v32  ;;  %v566_v32 = vpop.permute.xlu1 %565 }
 0x1c7   :  { %v233_v37 = vmul.f32 %v226_v36, %v221_v34  ;;  %v222_v38 = vadd.f32 %v1111_v29, %v214_v35 }
 0x1c8   :  { %v340_v40 = vpop.f32.mrb[4].mxu1 }
 0x1c9   :  { %v235_v42 = vmax.f32 %v233_v37, 0.0  ;;  %v234_v43 = vmul.f32 %v231_v39, %v222_v38  ;;  %v347_v44 = vmul.f32 %v340_v40, %v1053_v50  ;;  %v822_v45 = vpop.f32.mrb[5].mxu1 }
 0x1ca   :  { %v343_v47 = vpop.f32.mrb[6].mxu1 }
 0x1cb   :  { %366 = vst.msk [vmem:[%s1214_s14] sm:$0xff] %vm365_vm4, %v235_v42  ;;  %v380_v48 = vmul.f32 %v235_v42, %v235_v42  ;;  %v236_v49 = vmax.f32 %v234_v43, 0.0  ;;  %v351_v51 = vadd.f32 %v349_v41, %v347_v44  ;;  %v823_v52 = vpop.f32.mrb[7].mxu1  ;;  %v348_v50 = vmul.f32 %v343_v47, %v1055_v53 }
 0x1cc   :  { %v370_v55 = vsel %vm365_vm4, %v235_v42, 0.0  ;;  %v670_v41 = vmul.f32 %v1090_v14, %v1103_v23 }
 0x1cd   :  { %367 = vst.msk [vmem:[%s1214_s14 + $0x8] sm:$0xff] %vm365_vm4, %v236_v49  ;;  %v371_v56 = vsel %vm365_vm4, %v236_v49, 0.0  ;;  %v381_v57 = vmul.f32 %v236_v49, %v236_v49  ;;  %v359_v58 = vadd.f32 %v1120_v46, %v351_v51  ;;  %v352_v60 = vadd.f32 %v350_v54, %v348_v50 }
 0x1ce   :  { %v372_v59 = vadd.f32 %v371_v56, %v370_v55  ;;  %v382_v61 = vsel %vm365_vm4, %v380_v48, 0.0 }
 0x1cf   :  { %v383_v62 = vsel %vm365_vm4, %v381_v57, 0.0  ;;  %v361_v63 = vmul.f32 %v359_v58, %v226_v36  ;;  %v360_v1 = vadd.f32 %v1120_v46, %v352_v60 }
 0x1d0   :  { %v384_v53 = vadd.f32 %v383_v62, %v382_v61  ;;  %v533_v2 = vpop.f32.mrb[8].mxu1  ;;  %v373_v20 = vrot.slane %v372_v59, 4 }
 0x1d1   :  { %v363_v6 = vmax.f32 %v361_v63, 0.0  ;;  %v540_v9 = vmul.f32 %v533_v2, %v1071_v3  ;;  %v834_v10 = vpop.f32.mrb[9].mxu1  ;;  %v362_v11 = vmul.f32 %v360_v1, %v231_v39 }
 0x1d2   :  { %v536_v12 = vpop.f32.mrb[10].mxu1  ;;  %v385_v27 = vrot.slane %v384_v53, 4  ;;  %v374_v36 = vadd.f32 %v373_v20, %v372_v59 }
 0x1d3   :  { %368 = vst.msk [vmem:[%s1215_s15] sm:$0xff] %vm365_vm4, %v363_v6  ;;  %v554_v15 = vadd.f32 %v552_v4, %v540_v9  ;;  %v541_v17 = vmul.f32 %v536_v12, %v1076_v7  ;;  %v835_v18 = vpop.f32.mrb[11].mxu1  ;;  %v402_v19 = vmul.f32 %v363_v6, %v363_v6  ;;  %v364_v5 = vmax.f32 %v362_v11, 0.0 }
 0x1d4   :  { %v392_v25 = vsel %vm365_vm4, %v363_v6, 0.0  ;;  %v386_v44 = vadd.f32 %v385_v27, %v384_v53  ;;  %v375_v52 = vrot.slane %v374_v36, 2 }
 0x1d5   :  { %v556_v21 = vadd.f32 %v1111_v29, %v554_v15  ;;  %v555_v22 = vadd.f32 %v553_v13, %v541_v17  ;;  %369 = vst.msk [vmem:[%s1215_s15 + $0x8] sm:$0xff] %vm365_vm4, %v364_v5  ;;  %v393_v8 = vsel %vm365_vm4, %v364_v5, 0.0  ;;  %v403_v26 = vmul.f32 %v364_v5, %v364_v5 }
 0x1d6   :  { %v394_v0 = vadd.f32 %v393_v8, %v392_v25  ;;  %v404_v33 = vsel %vm365_vm4, %v402_v19, 0.0  ;;  %v387_v50 = vrot.slane %v386_v44, 2  ;;  %v376_v60 = vadd.f32 %v375_v52, %v374_v36 }
 0x1d7   :  { %v568_v30 = vmul.f32 %v561_v24, %v556_v21  ;;  %v557_v31 = vadd.f32 %v1111_v29, %v555_v22  ;;  %v405_v34 = vsel %vm365_vm4, %v403_v26, 0.0  ;;  %v671_v29 = vmul.f32 %v1094_v16, %v1106_v28 }
 0x1d8   :  { %v661_v35 = vpop.f32.mrb[12].mxu1  ;;  %v406_v37 = vadd.f32 %v405_v34, %v404_v33  ;;  %v395_v14 = vrot.slane %v394_v0, 4  ;;  %v388_v6 = vadd.f32 %v387_v50, %v386_v44  ;;  %v377_v12 = vrot.slane %v376_v60, 1 }
 0x1d9   :  { %v570_v38 = vmax.f32 %v568_v30, 0.0  ;;  %v569_v39 = vmul.f32 %v566_v32, %v557_v31  ;;  %v846_v40 = vpop.f32.mrb[13].mxu1  ;;  %v668_v42 = vmul.f32 %v661_v35, %v1071_v3 }
 0x1da   :  { %v664_v43 = vpop.f32.mrb[14].mxu1  ;;  %v407_v55 = vrot.slane %v406_v37, 4  ;;  %v396_v63 = vadd.f32 %v395_v14, %v394_v0  ;;  %v389_v22 = vrot.slane %v388_v6, 1  ;;  %v378_v31 = vadd.f32 %v377_v12, %v376_v60 }
 0x1db   :  { %780 = vst.msk [vmem:[%s1214_s14 + $0x10] sm:$0xff] %vm365_vm4, %v570_v38  ;;  %v847_v45 = vpop.f32.mrb[15].mxu1  ;;  %v696_v47 = vmul.f32 %v570_v38, %v570_v38  ;;  %v571_v48 = vmax.f32 %v569_v39, 0.0  ;;  %v672_v49 = vadd.f32 %v670_v41, %v668_v42  ;;  %v669_v51 = vmul.f32 %v664_v43, %v1076_v7 }
 0x1dc   :  { %v686_v3 = vsel %vm365_vm4, %v570_v38, 0.0  ;;  %v408_v9 = vadd.f32 %v407_v55, %v406_v37  ;;  %v397_v15 = vrot.slane %v396_v63, 2  ;;  %v390_v37 = vadd.f32 %v389_v22, %v388_v6 }
 0x1dd   :  { %781 = vst.msk [vmem:[%s1214_s14 + $0x18] sm:$0xff] %vm365_vm4, %v571_v48  ;;  %v687_v16 = vsel %vm365_vm4, %v571_v48, 0.0  ;;  %v697_v23 = vmul.f32 %v571_v48, %v571_v48  ;;  %v674_v28 = vadd.f32 %v1120_v46, %v672_v49  ;;  %v673_v54 = vadd.f32 %v671_v29, %v669_v51 }
 0x1de   :  { %v688_v56 = vadd.f32 %v687_v16, %v686_v3  ;;  %v698_v7 = vsel %vm365_vm4, %v696_v47, 0.0 }
 0x1df   :  { %v699_v57 = vsel %vm365_vm4, %v697_v23, 0.0  ;;  %v676_v58 = vmul.f32 %v674_v28, %v561_v24  ;;  %v675_v59 = vadd.f32 %v1120_v46, %v673_v54  ;;  %v409_v24 = vrot.slane %v408_v9, 2 }
 0x1e0   :  { %v689_v61 = vrot.slane %v688_v56, 4  ;;  %v700_v62 = vadd.f32 %v699_v57, %v698_v7 }
 0x1e1   :  { %v678_v53 = vmax.f32 %v676_v58, 0.0  ;;  %v677_v1 = vmul.f32 %v675_v59, %v566_v32  ;;  %v398_v32 = vadd.f32 %v397_v15, %v396_v63  ;;  %v410_v38 = vadd.f32 %v409_v24, %v408_v9 }
 0x1e2   :  { %v690_v2 = vadd.f32 %v689_v61, %v688_v56  ;;  %v701_v4 = vrot.slane %v700_v62, 4 }
 0x1e3   :  { %782 = vst.msk [vmem:[%s1215_s15 + $0x10] sm:$0xff] %vm365_vm4, %v678_v53  ;;  %v718_v10 = vmul.f32 %v678_v53, %v678_v53  ;;  %v679_v11 = vmax.f32 %v677_v1, 0.0  ;;  %v708_v17 = vsel %vm365_vm4, %v678_v53, 0.0  ;;  %v399_v43 = vrot.slane %v398_v32, 1 }
 0x1e4   :  { %v691_v13 = vrot.slane %v690_v2, 2  ;;  %v702_v46 = vadd.f32 %v701_v4, %v700_v62  ;;  %v411_v47 = vrot.slane %v410_v38, 1 }
 0x1e5   :  { %783 = vst.msk [vmem:[%s1215_s15 + $0x18] sm:$0xff] %vm365_vm4, %v679_v11  ;;  %v709_v18 = vsel %vm365_vm4, %v679_v11, 0.0  ;;  %v719_v19 = vmul.f32 %v679_v11, %v679_v11  ;;  %v720_v25 = vsel %vm365_vm4, %v718_v10, 0.0  ;;  %v400_v52 = vadd.f32 %v399_v43, %v398_v32 }
 0x1e6   :  { %v692_v5 = vadd.f32 %v691_v13, %v690_v2  ;;  %v703_v20 = vrot.slane %v702_v46, 2  ;;  %v710_v21 = vadd.f32 %v709_v18, %v708_v17  ;;  %v412_v16 = vadd.f32 %v411_v47, %v410_v38 }
 0x1e7   :  { %v721_v8 = vsel %vm365_vm4, %v719_v19, 0.0 }
 0x1e8   :  { %v693_v26 = vrot.slane %v692_v5, 1  ;;  %v704_v27 = vadd.f32 %v703_v20, %v702_v46  ;;  %v711_v0 = vrot.slane %v710_v21, 4  ;;  %v722_v30 = vadd.f32 %v721_v8, %v720_v25 }
 0x1ea   :  { %v694_v33 = vadd.f32 %v693_v26, %v692_v5  ;;  %v705_v34 = vrot.slane %v704_v27, 1  ;;  %v712_v35 = vadd.f32 %v711_v0, %v710_v21  ;;  %v723_v36 = vrot.slane %v722_v30, 4 }
 0x1ec   :  { %v695_v39 = vadd.f32 %v694_v33, %v378_v31  ;;  %v706_v40 = vadd.f32 %v705_v34, %v704_v27  ;;  %v713_v41 = vrot.slane %v712_v35, 2  ;;  %v724_v42 = vadd.f32 %v723_v36, %v722_v30 }
 0x1ee   :  { %v707_v29 = vadd.f32 %v706_v40, %v390_v37  ;;  %v714_v44 = vadd.f32 %v713_v41, %v712_v35  ;;  %v725_v45 = vrot.slane %v724_v42, 2 }
 0x1f0   :  { %v731_v48 = vsel %vm730_vm5, %v695_v39, %v707_v29  ;;  %v715_v49 = vrot.slane %v714_v44, 1  ;;  %v726_v51 = vadd.f32 %v725_v45, %v724_v42 }
 0x1f1   :  { %733 = vst.msk [vmem:[%s1216_s16] sm:$0x3] %vm732_vm6, %v731_v48 }
 0x1f2   :  { %v716_v14 = vadd.f32 %v715_v49, %v714_v44  ;;  %v727_v3 = vrot.slane %v726_v51, 1 }
 0x1f4   :  { %v717_v23 = vadd.f32 %v716_v14, %v400_v52  ;;  %v728_v28 = vadd.f32 %v727_v3, %v726_v51 }
 0x1f6   :  { %v729_v54 = vadd.f32 %v728_v28, %v412_v16 }
 0x1f8   :  { %v734_v50 = vsel %vm730_vm5, %v717_v23, %v729_v54 }
 0x1f9   :  { %735 = vst.msk [vmem:[%s1217_s17] sm:$0x3] %vm732_vm6, %v734_v50 }

// kernel: diffpool_forward.15
= control target key start
LH: loop header
LB: loop body
LE: loop exit
PB: predicated region body
PF: predicated region fallthrough
CT: control target
= control target key end

     0   :  { %vm74_vm0 = vcmask 31744   ;;  %v812_v38 = vmov 0.0   ;;  %vm813_vm1 = vmmov 0   ;;  %vm115_vm2 = vcmask 130048   ;;  %s1015_s4 = inlined_call_operand.vmem [shape: f32[2,16,4], index: 4, kind: input, shape index: {}]   ;;  %s1016_s5 = inlined_call_operand.vmem [shape: f32[1,4], index: 5, kind: input, shape index: {}]   ;;  %s1017_s6 = inlined_call_operand.vmem [shape: f32[1,4], index: 6, kind: input, shape index: {}]   ;;  %s1018_s0 = inlined_call_operand.vmem [shape: f32[2,16,32], index: 0, kind: input, shape index: {}]   ;;  %s1019_s1 = inlined_call_operand.vmem [shape: f32[1,32], index: 1, kind: input, shape index: {}]   ;;  %s1020_s2 = inlined_call_operand.vmem [shape: f32[1,32], index: 2, kind: input, shape index: {}]   ;;  %s1021_s3 = inlined_call_operand.vmem [shape: bf16[2,16,16], index: 3, kind: input, shape index: {}]   ;;  %s1022_s7 = inlined_call_operand.vmem [shape: f32[2,4,32], index: 7, kind: output, shape index: {0}]   ;;  %s1023_s8 = inlined_call_operand.vmem [shape: f32[2,4,4], index: 8, kind: output, shape index: {1}]   ;;  %s1024_s9 = inlined_call_operand.vmem [shape: f32[1,1,2], index: 9, kind: output, shape index: {2}]  }
   0x1   :  { %v681_v0 = vld [vmem:[%s1016_s5] ss:$0 sm:$0xff]  ;;  %v690_v4 = vld [vmem:[%s1015_s4 + $0x10] sm:$0xff]  ;;  %v53_v5 = vld [vmem:[%s1015_s4 + $0x8] sm:$0xff]  ;;  %723 = vmatprep.subr.bf16.mxu1 %v812_v38  ;;  %717 = vmatprep.subr.bf16.mxu0 %v812_v38  ;;  %vm356_vm3 = vcmask 257024   ;;  %vm320_vm4 = vcmask 27648  }
   0x2   :  { %v682_v1 = vld [vmem:[%s1017_s6] ss:$0 sm:$0xff]  ;;  %v691_v6 = vld [vmem:[%s1015_s4 + $0x18] sm:$0xff]  ;;  %v369_v7 = vsub.f32 %v690_v4, %v681_v0  ;;  %v61_v8 = vsub.f32 %v53_v5, %v681_v0  ;;  %725 = vmatprep.mubr.msk.bf16.mxu1 %vm813_vm1, %v812_v38  ;;  %719 = vmatprep.mubr.msk.bf16.mxu0 %vm813_vm1, %v812_v38  ;;  %v35_v42 = vld [vmem:[%s1018_s0 + $0x8] sm:$0xff]  ;;  %vm663_vm5 = vcmask 7168   ;;  %vm665_vm6 = vcmask 8192  }
   0x3   :  { %v52_v2 = vld [vmem:[%s1015_s4] sm:$0xff]  ;;  %v370_v9 = vsub.f32 %v691_v6, %v681_v0 }
   0x4   :  { %v60_v3 = vsub.f32 %v52_v2, %v681_v0  ;;  %v371_v11 = vmul.f32 %v682_v1, %v369_v7  ;;  %v69_v12 = vmul.f32 %v682_v1, %v61_v8  ;;  %v899_v39 = vld [vmem:[%s1019_s1] ss:$0 sm:$0xff]  ;;  %v692_v7 = vld [vmem:[%s1021_s3 + $0x8] sm:$0xff]  }
   0x5   :  { %v372_v13 = vmul.f32 %v682_v1, %v370_v9  ;;  %v904_v40 = vld [vmem:[%s1020_s2] ss:$0 sm:$0xff]  ;;  %v43_v44 = vsub.f32 %v35_v42, %v899_v39  ;;  %v376_v9 = vunpack.c.l.bf16 %v692_v7 }
   0x6   :  { %v68_v10 = vmul.f32 %v682_v1, %v60_v3  ;;  %v378_v15 = vsel %vm74_vm0, %v371_v11, -inf  ;;  %v78_v16 = vsel %vm74_vm0, %v69_v12, -inf  ;;  %v34_v41 = vld [vmem:[%s1018_s0] sm:$0xff] }
   0x7   :  { %379 = vmax.xlane.f32.xlu1 %v378_v15  ;;  %v381_v17 = vsel %vm74_vm0, %v372_v13, -inf  ;;  %v42_v43 = vsub.f32 %v34_v41, %v899_v39  ;;  %v51_v46 = vmul.f32 %v904_v40, %v43_v44  ;;  %v70_v58 = vld [vmem:[%s1021_s3] sm:$0xff]  }
   0x8   :  { %v75_v14 = vsel %vm74_vm0, %v68_v10, -inf  ;;  %v72_v2 = vunpack.c.l.bf16 %v70_v58  ;;  %v73_v3 = vunpack.c.h.bf16 %v70_v58 }
   0x9   :  { %76 = vmax.xlane.f32.xlu0 %v75_v14  ;;  %v50_v45 = vmul.f32 %v904_v40, %v42_v43  ;;  %v377_v14 = vunpack.c.h.bf16 %v692_v7 }
   0xa   :  { %v303_v5 = vmul.f32 %v72_v2, %v72_v2  ;;  %v304_v6 = vmul.f32 %v73_v3, %v73_v3 }
   0xb   :  { %382 = vmax.xlane.f32.xlu1 %v381_v17  ;;  %v114_v47 = vpack.c.bf16 %v51_v46, %v50_v45  ;;  %v688_v45 = vld [vmem:[%s1018_s0 + $0x10] sm:$0xff]  ;;  %v689_v46 = vld [vmem:[%s1018_s0 + $0x18] sm:$0xff] }
   0xd   :  { %79 = vmax.xlane.f32.xlu0 %v78_v16  ;;  %718 = vmatpush3.bf16.msra.mxu0 %v114_v47  ;;  %v362_v47 = vsub.f32 %v688_v45, %v899_v39 }
   0xe   :  { %729 = vmatprep.subr.bf16.mxu0 %v812_v38 }
  0x94   :  { %v380_v20 = vpop.xlane.xlu1 %379 }
  0x95   :  { %v384_v21 = vsub.f32 %v371_v11, %v380_v20  ;;  %v305_v11 = vsel %vm115_vm2, %v303_v5, 0.0  ;;  %v605_v20 = vmul.f32 %v376_v9, %v376_v9 }
  0x96   :  { %v77_v18 = vpop.xlane.xlu0 %76 }
  0x97   :  { %v81_v19 = vsub.f32 %v68_v10, %v77_v18  ;;  %v386_v23 = vmul.f32 1.442695, %v384_v21 }
  0x98   :  { %v383_v26 = vpop.xlane.xlu1 %382 }
  0x99   :  { %v83_v22 = vmul.f32 1.442695, %v81_v19  ;;  %v385_v27 = vsub.f32 %v372_v13, %v383_v26 }
  0x9a   :  { %v80_v24 = vpop.xlane.xlu0 %79 }
  0x9b   :  { %788 = vpow2.f32 %v83_v22  ;;  %v82_v25 = vsub.f32 %v69_v12, %v80_v24  ;;  %v388_v29 = vmul.f32 1.442695, %v385_v27  ;;  %v306_v12 = vsel %vm115_vm2, %v304_v6, 0.0 }
  0x9c   :  { %790 = vpow2.f32 %v386_v23  ;;  %v307_v18 = vadd.f32 %v306_v12, %v305_v11  ;;  %v606_v23 = vmul.f32 %v377_v14, %v377_v14  ;;  %v607_v27 = vsel %vm115_vm2, %v605_v20, 0.0 }
  0x9d   :  { %v85_v28 = vmul.f32 1.442695, %v82_v25 }
  0x9f   :  { %792 = vpow2.f32 %v85_v28 }
  0xa0   :  { %794 = vpow2.f32 %v388_v29  ;;  %v608_v29 = vsel %vm115_vm2, %v606_v23, 0.0 }
  0xa5   :  { %v789_v30 = vpop.eup %788 }
  0xa6   :  { %v791_v31 = vpop.eup %790  ;;  %v87_v32 = vsel %vm74_vm0, %v789_v30, 0.0 }
  0xa7   :  { %88 = vadd.xlane.f32.xlu0 %v87_v32  ;;  %v390_v33 = vsel %vm74_vm0, %v791_v31, 0.0 }
  0xa9   :  { %v793_v34 = vpop.eup %792 }
  0xaa   :  { %v795_v35 = vpop.eup %794  ;;  %v90_v36 = vsel %vm74_vm0, %v793_v34, 0.0 }
  0xab   :  { %391 = vadd.xlane.f32.xlu0 %v390_v33  ;;  %91 = vadd.xlane.f32.xlu1 %v90_v36  ;;  %v393_v37 = vsel %vm74_vm0, %v795_v35, 0.0 }
  0xaf   :  { %394 = vadd.xlane.f32.xlu1 %v393_v37 }
 0x134   :  { %v89_v48 = vpop.xlane.xlu0 %88 }
 0x135   :  { %796 = vrcp.f32 %v89_v48  ;;  %v363_v48 = vsub.f32 %v689_v46, %v899_v39 }
 0x138   :  { %v92_v49 = vpop.xlane.xlu1 %91  ;;  %v392_v50 = vpop.xlane.xlu0 %391 }
 0x139   :  { %798 = vrcp.f32 %v92_v49 }
 0x13a   :  { %800 = vrcp.f32 %v392_v50 }
 0x13c   :  { %v395_v51 = vpop.xlane.xlu1 %394 }
 0x13d   :  { %802 = vrcp.f32 %v395_v51 }
 0x13f   :  { %v797_v52 = vpop.eup %796 }
 0x140   :  { %v917_v53 = vmul.f32 %v797_v52, %v789_v30  ;;  %v364_v52 = vmul.f32 %v904_v40, %v362_v47 }
 0x142   :  { %v335_v54 = vadd.f32 1e-15, %v917_v53  ;;  %v333_v17 = vsub.f32 0.0, %v917_v53 }
 0x143   :  { %v799_v55 = vpop.eup %798 }
 0x144   :  { %v801_v56 = vpop.eup %800  ;;  %v920_v57 = vmul.f32 %v799_v55, %v793_v34  ;;  %804 = vlog2.f32 %v335_v54  ;;  %v365_v54 = vmul.f32 %v904_v40, %v363_v48 }
 0x145   :  { %v925_v59 = vmul.f32 %v801_v56, %v791_v31 }
 0x146   :  { %v97_v60 = vpack.c.bf16 %v920_v57, %v917_v53  ;;  %v336_v61 = vadd.f32 1e-15, %v920_v57  ;;  %v334_v15 = vsub.f32 0.0, %v920_v57 }
 0x147   :  { %v803_v62 = vpop.eup %802  ;;  %v636_v0 = vadd.f32 1e-15, %v925_v59  ;;  %v634_v33 = vsub.f32 0.0, %v925_v59 }
 0x148   :  { %v930_v63 = vmul.f32 %v803_v62, %v795_v35  ;;  %98 = vxpose.xlu0.c.b16.start.end [1/1] (short) (narrow) %v97_v60, 16  ;;  %724 = vmatpush3.bf16.msra.mxu1 %v97_v60  ;;  %806 = vlog2.f32 %v336_v61  ;;  %v609_v35 = vadd.f32 %v608_v29, %v607_v27 }
 0x149   :  { %735 = vmatprep.subr.bf16.mxu1 %v812_v38 }
 0x14a   :  { %v400_v1 = vpack.c.bf16 %v930_v63, %v925_v59  ;;  %v637_v4 = vadd.f32 1e-15, %v930_v63  ;;  %v635_v30 = vsub.f32 0.0, %v930_v63 }
 0x14b   :  { %726 = vmatmul.mubr.msk.bf16.vlgmr.msra.gmra.mrb[0].mxu1 %vm115_vm2, %v70_v58 }
 0x14c   :  { %401 = vxpose.xlu1.c.b16.start.end [1/1] (short) (narrow) %v400_v1, 16  ;;  %736 = vmatpush3.bf16.msra.mxu1 %v97_v60  ;;  %808 = vlog2.f32 %v637_v4 }
 0x14d   :  { %810 = vlog2.f32 %v636_v0  ;;  %737 = vmatprep.mubr.msk.bf16.mxu1 %vm813_vm1, %v812_v38  ;;  %747 = vmatprep.subr.bf16.mxu1 %v812_v38  ;;  %v417_v0 = vpack.c.bf16 %v365_v54, %v364_v52 }
 0x14e   :  { %v805_v8 = vpop.eup %804 }
 0x14f   :  { %v338_v13 = vmul.f32 0.6931472, %v805_v8 }
 0x151   :  { %v341_v22 = vmul.f32 %v338_v13, %v333_v17 }
 0x152   :  { %v807_v10 = vpop.eup %806 }
 0x153   :  { %v340_v16 = vmul.f32 0.6931472, %v807_v10  ;;  %v343_v28 = vsel %vm74_vm0, %v341_v22, 0.0 }
 0x155   :  { %v342_v19 = vmul.f32 %v340_v16, %v334_v15 }
 0x156   :  { %v809_v21 = vpop.eup %808 }
 0x157   :  { %v811_v24 = vpop.eup %810  ;;  %v344_v25 = vsel %vm74_vm0, %v342_v19, 0.0  ;;  %v641_v26 = vmul.f32 0.6931472, %v809_v21 }
 0x158   :  { %v639_v31 = vmul.f32 0.6931472, %v811_v24  ;;  %v345_v32 = vadd.f32 %v344_v25, %v343_v28 }
 0x159   :  { %308 = vadd.xlane.f32.xlu1 %v307_v18  ;;  %v643_v34 = vmul.f32 %v641_v26, %v635_v30 }
 0x15a   :  { %v642_v36 = vmul.f32 %v639_v31, %v634_v33 }
 0x15b   :  { %v645_v37 = vsel %vm74_vm0, %v643_v34, 0.0 }
 0x15c   :  { %v644_v41 = vsel %vm74_vm0, %v642_v36, 0.0 }
 0x15d   :  { %346 = vadd.xlane.f32.xlu1 %v345_v32  ;;  %v646_v42 = vadd.f32 %v645_v37, %v644_v41 }
 0x161   :  { %610 = vadd.xlane.f32.xlu1 %v609_v35 }
 0x165   :  { %647 = vadd.xlane.f32.xlu1 %v646_v42 }
 0x1ae   :  { %v106_v43 = vpop.trf.xlu0 }
 0x1af   :  { %720 = vmatmul.mubr.msk.bf16.vlgmr.msra.gmra.mrb[0].mxu0 %vm115_vm2, %v106_v43  ;;  %738 = vmatmul.mubr.msk.bf16.vlgmr.msra.gmra.mrb[4].mxu1 %vm115_vm2, %v106_v43 }
 0x1b0   :  { %748 = vmatpush3.bf16.msra.mxu1 %v400_v1  ;;  %749 = vmatprep.mubr.msk.bf16.mxu1 %vm813_vm1, %v812_v38 }
 0x1b1   :  { %759 = vmatprep.subr.bf16.mxu1 %v812_v38  ;;  %731 = vmatprep.mubr.msk.bf16.mxu0 %vm813_vm1, %v812_v38 }
 0x1b2   :  { %v409_v44 = vpop.trf.xlu1 }
 0x1b7   :  { %750 = vmatmul.mubr.msk.bf16.vlgmr.msra.gmra.mrb[8].mxu1 %vm115_vm2, %v692_v7 }
 0x1b8   :  { %760 = vmatpush3.bf16.msra.mxu1 %v400_v1  ;;  %761 = vmatprep.mubr.msk.bf16.mxu1 %vm813_vm1, %v812_v38 }
 0x1bf   :  { %762 = vmatmul.mubr.msk.bf16.vlgmr.msra.gmra.mrb[12].mxu1 %vm115_vm2, %v409_v44 }
 0x1e6   :  { %v309_v22 = vpop.xlane.xlu1 %308 }
 0x1ea   :  { %v347_v46 = vpop.xlane.xlu1 %346 }
 0x1eb   :  { %v348_v47 = vrot.slane %v347_v46, 4 }
 0x1ed   :  { %v349_v48 = vadd.f32 %v348_v47, %v347_v46 }
 0x21e   :  { %v201_v49 = vpop.f32.mrb[0].mxu1 }
 0x21f   :  { %v289_v50 = vmul.f32 %v201_v49, %v917_v53  ;;  %v727_v51 = vpop.f32.mrb[1].mxu1 }
 0x220   :  { %v204_v55 = vpop.f32.mrb[2].mxu1 }
 0x221   :  { %v208_v56 = vpack.c.bf16 %v204_v55, %v201_v49  ;;  %v290_v58 = vmul.f32 %v204_v55, %v920_v57  ;;  %v728_v60 = vpop.f32.mrb[3].mxu1  ;;  %v291_v61 = vsel %vm74_vm0, %v289_v50, 0.0  ;;  %v611_v49 = vpop.xlane.xlu1 %610  ;;  %v350_v50 = vrot.slane %v349_v48, 2 }
 0x222   :  { %v612_v55 = vrot.slane %v611_v49, 4 }
 0x223   :  { %730 = vmatpush3.bf16.msra.mxu0 %v208_v56  ;;  %v292_v62 = vsel %vm74_vm0, %v290_v58, 0.0  ;;  %v351_v56 = vadd.f32 %v350_v50, %v349_v48 }
 0x224   :  { %v293_v39 = vadd.f32 %v292_v62, %v291_v61  ;;  %741 = vmatprep.subr.bf16.mxu0 %v812_v38  ;;  %v613_v62 = vadd.f32 %v612_v55, %v611_v49 }
 0x225   :  { %v648_v58 = vpop.xlane.xlu1 %647 }
 0x226   :  { %294 = vadd.xlane.f32.xlu0 %v293_v39  ;;  %732 = vmatmul.mubr.msk.bf16.vlgmr.msra.gmra.mrb[4].mxu0 %vm115_vm2, %v106_v43  ;;  %v352_v39 = vrot.slane %v351_v56, 1 }
 0x227   :  { %742 = vmatpush3.bf16.msra.mxu0 %v417_v0  ;;  %743 = vmatprep.mubr.msk.bf16.mxu0 %vm813_vm1, %v812_v38  ;;  %v649_v0 = vrot.slane %v648_v58, 4 }
 0x228   :  { %753 = vmatprep.subr.bf16.mxu0 %v812_v38 }
 0x22e   :  { %744 = vmatmul.mubr.msk.bf16.vlgmr.msra.gmra.mrb[8].mxu0 %vm115_vm2, %v409_v44 }
 0x22f   :  { %755 = vmatprep.mubr.msk.bf16.mxu0 %vm813_vm1, %v812_v38 }
 0x282   :  { %v153_v40 = vpop.f32.mrb[0].mxu0  ;;  %v283_v53 = vpop.f32.mrb[4].mxu1 }
 0x283   :  { %357 = vst.msk [vmem:[%s1022_s7] sm:$0xf] %vm356_vm3, %v153_v40  ;;  %v319_v57 = vmul.f32 %v283_v53, %v283_v53  ;;  %v721_v1 = vpop.f32.mrb[1].mxu0  ;;  %v739_v2 = vpop.f32.mrb[5].mxu1 }
 0x284   :  { %v156_v3 = vpop.f32.mrb[2].mxu0  ;;  %v286_v4 = vpop.f32.mrb[6].mxu1  ;;  %v650_v1 = vadd.f32 %v649_v0, %v648_v58 }
 0x285   :  { %v722_v5 = vpop.f32.mrb[3].mxu0  ;;  %v740_v6 = vpop.f32.mrb[7].mxu1  ;;  %v321_v7 = vsel %vm320_vm4, %v319_v57, 0.0  ;;  %v614_v57 = vrot.slane %v613_v62, 2  ;;  %v353_v3 = vadd.f32 %v352_v39, %v351_v56 }
 0x286   :  { %322 = vadd.xlane.f32.xlu0 %v321_v7  ;;  %v651_v6 = vrot.slane %v650_v1, 2 }
 0x28a   :  { %v503_v38 = vpop.f32.mrb[8].mxu1 }
 0x28b   :  { %v591_v8 = vmul.f32 %v503_v38, %v925_v59  ;;  %v751_v9 = vpop.f32.mrb[9].mxu1 }
 0x28c   :  { %v506_v10 = vpop.f32.mrb[10].mxu1 }
 0x28d   :  { %v510_v11 = vpack.c.bf16 %v506_v10, %v503_v38  ;;  %v592_v12 = vmul.f32 %v506_v10, %v930_v63  ;;  %v752_v13 = vpop.f32.mrb[11].mxu1  ;;  %v593_v14 = vsel %vm74_vm0, %v591_v8, 0.0  ;;  %v310_v63 = vrot.slane %v309_v22, 4 }
 0x28e   :  { %v615_v38 = vadd.f32 %v614_v57, %v613_v62 }
 0x28f   :  { %754 = vmatpush3.bf16.msra.mxu0 %v510_v11  ;;  %v594_v15 = vsel %vm74_vm0, %v592_v12, 0.0  ;;  %v311_v23 = vadd.f32 %v310_v63, %v309_v22  ;;  %v652_v12 = vadd.f32 %v651_v6, %v650_v1 }
 0x290   :  { %v595_v16 = vadd.f32 %v594_v15, %v593_v14  ;;  %v616_v13 = vrot.slane %v615_v38, 1 }
 0x291   :  { %v312_v24 = vrot.slane %v311_v23, 2 }
 0x292   :  { %596 = vadd.xlane.f32.xlu0 %v595_v16  ;;  %756 = vmatmul.mubr.msk.bf16.vlgmr.msra.gmra.mrb[12].mxu0 %vm115_vm2, %v409_v44  ;;  %v585_v17 = vpop.f32.mrb[12].mxu1 }
 0x293   :  { %v621_v18 = vmul.f32 %v585_v17, %v585_v17  ;;  %v763_v19 = vpop.f32.mrb[13].mxu1  ;;  %v313_v27 = vadd.f32 %v312_v24, %v311_v23 }
 0x294   :  { %v588_v20 = vpop.f32.mrb[14].mxu1  ;;  %v653_v19 = vrot.slane %v652_v12, 1 }
 0x295   :  { %v622_v59 = vsel %vm320_vm4, %v621_v18, 0.0  ;;  %v764_v21 = vpop.f32.mrb[15].mxu1  ;;  %v314_v30 = vrot.slane %v313_v27, 1  ;;  %v617_v18 = vadd.f32 %v616_v13, %v615_v38 }
 0x296   :  { %623 = vadd.xlane.f32.xlu0 %v622_v59  ;;  %v654_v21 = vadd.f32 %v653_v19, %v652_v12 }
 0x297   :  { %v315_v33 = vadd.f32 %v314_v30, %v313_v27 }
 0x2b3   :  { %v295_v25 = vpop.xlane.xlu0 %294 }
 0x2b4   :  { %v296_v26 = vrot.slane %v295_v25, 4 }
 0x2b6   :  { %v297_v28 = vadd.f32 %v296_v26, %v295_v25 }
 0x2b8   :  { %v298_v29 = vrot.slane %v297_v28, 2 }
 0x2ba   :  { %v299_v31 = vadd.f32 %v298_v29, %v297_v28 }
 0x2bc   :  { %v300_v32 = vrot.slane %v299_v31, 1 }
 0x2be   :  { %v301_v34 = vadd.f32 %v300_v32, %v299_v31 }
 0x2c0   :  { %765 = vpush %v301_v34 }
 0x2c1   :  { %767 = vpush %v315_v33 }
 0x2f9   :  { %v243_v35 = vpop.f32.mrb[4].mxu0 }
 0x2fa   :  { %358 = vst.msk [vmem:[%s1023_s8] sm:$0xf] %vm320_vm4, %v243_v35  ;;  %v733_v36 = vpop.f32.mrb[5].mxu0 }
 0x2fb   :  { %v246_v37 = vpop.f32.mrb[6].mxu0 }
 0x2fc   :  { %v734_v41 = vpop.f32.mrb[7].mxu0 }
 0x301   :  { %v455_v42 = vpop.f32.mrb[8].mxu0 }
 0x302   :  { %699 = vst.msk [vmem:[%s1022_s7 + $0x4] sm:$0xf] %vm356_vm3, %v455_v42  ;;  %v745_v43 = vpop.f32.mrb[9].mxu0  ;;  %s766_s7 = spop %765 }
 0x303   :  { %v458_v44 = vpop.f32.mrb[10].mxu0  ;;  %s768_s15 = spop %767  ;;  %s317_s17 = smul.f32 2.0, %s766_s7 }
 0x304   :  { %v746_v45 = vpop.f32.mrb[11].mxu0 }
 0x305   :  { %s318_s4 = ssub.f32 %s768_s15, %s317_s17 }
 0x313   :  { %v323_v51 = vpop.xlane.xlu0 %322 }
 0x314   :  { %v324_v52 = vrot.slane %v323_v51, 4 }
 0x316   :  { %v325_v54 = vadd.f32 %v324_v52, %v323_v51 }
 0x318   :  { %v326_v60 = vrot.slane %v325_v54, 2 }
 0x31a   :  { %v327_v61 = vadd.f32 %v326_v60, %v325_v54 }
 0x31c   :  { %v328_v40 = vrot.slane %v327_v61, 1 }
 0x31e   :  { %v329_v53 = vadd.f32 %v328_v40, %v327_v61 }
 0x31f   :  { %v597_v2 = vpop.xlane.xlu0 %596 }
 0x320   :  { %v598_v4 = vrot.slane %v597_v2, 4  ;;  %769 = vpush %v329_v53 }
 0x321   :  { %771 = vpush %v353_v3 }
 0x322   :  { %v599_v5 = vadd.f32 %v598_v4, %v597_v2 }
 0x323   :  { %v624_v7 = vpop.xlane.xlu0 %623 }
 0x324   :  { %v600_v8 = vrot.slane %v599_v5, 2  ;;  %v625_v9 = vrot.slane %v624_v7, 4 }
 0x326   :  { %v626_v10 = vadd.f32 %v625_v9, %v624_v7  ;;  %v601_v11 = vadd.f32 %v600_v8, %v599_v5 }
 0x328   :  { %v627_v14 = vrot.slane %v626_v10, 2  ;;  %v602_v15 = vrot.slane %v601_v11, 1 }
 0x32a   :  { %v628_v16 = vadd.f32 %v627_v14, %v626_v10  ;;  %v603_v17 = vadd.f32 %v602_v15, %v601_v11 }
 0x32c   :  { %773 = vpush %v603_v17  ;;  %v629_v20 = vrot.slane %v628_v16, 1 }
 0x32d   :  { %775 = vpush %v617_v18 }
 0x32e   :  { %v630_v59 = vadd.f32 %v629_v20, %v628_v16 }
 0x330   :  { %777 = vpush %v630_v59 }
 0x331   :  { %779 = vpush %v654_v21 }
 0x351   :  { %s770_s16 = spop %769 }
 0x352   :  { %s772_s18 = spop %771  ;;  %s331_s21 = sadd.f32 %s770_s16, %s318_s4 }
 0x35d   :  { %s774_s19 = spop %773 }
 0x35e   :  { %s619_s20 = smul.f32 2.0, %s774_s19  ;;  %s776_s5 = spop %775 }
 0x360   :  { %s620_s6 = ssub.f32 %s776_s5, %s619_s20 }
 0x361   :  { %s778_s22 = spop %777 }
 0x362   :  { %s632_s23 = sadd.f32 %s778_s22, %s620_s6  ;;  %s780_s24 = spop %779 }
 0x363   :  { %s656_s25 = sadd.f32 %s780_s24, %s772_s18 }
 0x364   :  { %s633_s1 = sadd.f32 %s632_s23, %s331_s21 }
 0x365   :  { %v545_v22 = vpop.f32.mrb[12].mxu0  ;;  %v662_v23 = vstv %s656_s25 }
 0x366   :  { %v661_v63 = vstv %s633_s1  ;;  %700 = vst.msk [vmem:[%s1023_s8 + $0x4] sm:$0xf] %vm320_vm4, %v545_v22  ;;  %v757_v24 = vpop.f32.mrb[13].mxu0 }
 0x367   :  { %v664_v25 = vsel %vm663_vm5, %v661_v63, %v662_v23  ;;  %v548_v26 = vpop.f32.mrb[14].mxu0 }
 0x368   :  { %666 = vst.msk [vmem:[%s1024_s9] sm:$0x1] %vm665_vm6, %v664_v25  ;;  %v758_v27 = vpop.f32.mrb[15].mxu0 }

// kernel: diffpool_forward.14
= control target key start
LH: loop header
LB: loop body
LE: loop exit
PB: predicated region body
PF: predicated region fallthrough
CT: control target
= control target key end

     0   :  { %v899_v0 = vmov 0.0   ;;  %vm900_vm0 = vmmov 0   ;;  %v901_v3 = vmov 0   ;;  %vm105_vm1 = vcmask 261120   ;;  %s1284_s6 = inlined_call_operand.vmem [shape: bf16[32,4], index: 6, kind: input, shape index: {}]   ;;  %s1285_s0 = inlined_call_operand.vmem [shape: f32[2,16,32], index: 0, kind: input, shape index: {}]   ;;  %s1286_s8 = inlined_call_operand.vmem [shape: f32[1,32], index: 8, kind: input, shape index: {}]   ;;  %s1287_s9 = inlined_call_operand.vmem [shape: f32[1,32], index: 9, kind: input, shape index: {}]   ;;  %s1288_s4 = inlined_call_operand.vmem [shape: f32[2,16,1], index: 4, kind: input, shape index: {}]   ;;  %s1289_s5 = inlined_call_operand.vmem [shape: f32[2,16,1], index: 5, kind: input, shape index: {}]   ;;  %s1290_s3 = inlined_call_operand.vmem [shape: f32[2,16,1], index: 3, kind: input, shape index: {}]   ;;  %s1291_s2 = inlined_call_operand.vmem [shape: bf16[2,16,16], index: 2, kind: input, shape index: {}]   ;;  %s1292_s10 = inlined_call_operand.vmem [shape: bf16[32,32], index: 10, kind: input, shape index: {}]   ;;  %s1293_s1 = inlined_call_operand.vmem [shape: f32[2,16,32], index: 1, kind: input, shape index: {}]   ;;  %s1294_s12 = inlined_call_operand.vmem [shape: f32[1,32], index: 12, kind: input, shape index: {}]   ;;  %s1295_s13 = inlined_call_operand.vmem [shape: f32[1,32], index: 13, kind: input, shape index: {}]   ;;  %s1296_s7 = inlined_call_operand.vmem [shape: f32[1,4], index: 7, kind: input, shape index: {}]   ;;  %s1297_s14 = inlined_call_operand.vmem [shape: f32[2,16,4], index: 14, kind: output, shape index: {0}]   ;;  %s1298_s11 = inlined_call_operand.vmem [shape: f32[1,32], index: 11, kind: input, shape index: {}]   ;;  %s1299_s15 = inlined_call_operand.vmem [shape: f32[2,16,32], index: 15, kind: output, shape index: {1}]   ;;  %s1300_s16 = inlined_call_operand.vmem [shape: f32[1,2,4], index: 16, kind: output, shape index: {2}]   ;;  %s1301_s17 = inlined_call_operand.vmem [shape: f32[1,2,32], index: 17, kind: output, shape index: {3}]  }
   0x1   :  { %1304 = sst [smem:[#allocation2_spill]] %s1284_s6  ;;  %832 = vmatprep.subr.bf16.mxu0 %v899_v0  ;;  %836 = vmatprep.mubr.msk.bf16.mxu0 %vm900_vm0, %v899_v0  ;;  %v1009_v4 = vld [vmem:[%s1286_s8] ss:$0 sm:$0xff]  ;;  %v795_v11 = vld [vmem:[%s1288_s4 + $0x10] sm:$0xff]  ;;  %v71_v13 = vld [vmem:[%s1288_s4 + $0x8] sm:$0xff]  ;;  %vm168_vm2 = vcmask 130048  }
   0x2   :  { %1305 = sst [smem:[#allocation3_spill]] %s1285_s0  ;;  %s1306_s26 = sld [smem:[#allocation2_spill]]  ;;  %891 = vset.pattern.permute.xlu0 %v901_v3  ;;  %892 = vset.pattern.permute.xlu1 %v901_v3  ;;  %v1014_v5 = vld [vmem:[%s1287_s9] ss:$0 sm:$0xff]  ;;  %v796_v15 = vld [vmem:[%s1288_s4 + $0x18] sm:$0xff]  ;;  %v73_v18 = vld [vmem:[%s1289_s5 + $0x8] sm:$0xff] }
   0x3   :  { %s1307_s20 = sld [smem:[#allocation3_spill]]  ;;  %840 = vmatprep.subr.bf16.mxu1 %v899_v0  ;;  %v70_v9 = vld [vmem:[%s1288_s4] sm:$0xff]  ;;  %842 = vmatprep.mubr.msk.bf16.mxu1 %vm900_vm0, %v899_v0  ;;  %v797_v19 = vld [vmem:[%s1289_s5 + $0x10] sm:$0xff]  ;;  %v798_v22 = vld [vmem:[%s1289_s5 + $0x18] sm:$0xff]  ;;  %vm388_vm3 = vcmask 31744   ;;  %vm753_vm4 = vcmask 1040384  }
   0x4   :  { %152 = vperm.xlu0 %891, %v70_v9   ;;  %503 = vperm.xlu1 %892, %v795_v11   ;;  %v72_v17 = vld [vmem:[%s1289_s5] sm:$0xff]  ;;  %v793_v21 = vld [vmem:[%s1290_s3 + $0x10] sm:$0xff]  ;;  %v69_v23 = vld [vmem:[%s1290_s3 + $0x8] sm:$0xff]  ;;  %vm755_vm5 = vcmask 25600   ;;  %vm758_vm6 = vcmask 254976  }
   0x5   :  { %v68_v20 = vld [vmem:[%s1290_s3] sm:$0xff]  ;;  %v794_v24 = vld [vmem:[%s1290_s3 + $0x18] sm:$0xff]  ;;  %v252_v35 = vld [vmem:[%s1293_s1 + $0x8] sm:$0xff] }
   0x6   :  { %v784_v33 = vld [vmem:[%s1294_s12] ss:$0 sm:$0xff]  ;;  %v897_v44 = vld [vmem:[%s1292_s10 + $0x8] sm:$0xff]   ;;  %v804_v52 = vld [vmem:[%s1293_s1 + $0x10] sm:$0xff] }
   0x7   :  { %v251_v34 = vld [vmem:[%s1293_s1] sm:$0xff]  ;;  %v260_v39 = vsub.f32 %v252_v35, %v784_v33  ;;  %v805_v53 = vld [vmem:[%s1293_s1 + $0x18] sm:$0xff]  ;;  %v598_v55 = vsub.f32 %v804_v52, %v784_v33 }
   0x8   :  { %v996_v1 = vld [vmem:[%s1306_s26] sm:$0xff]   ;;  %v1003_v2 = vld [vmem:[%s1306_s26 + $0x8] sm:$0xff]   ;;  %157 = vperm.xlu0 %891, %v71_v13   ;;  %508 = vperm.xlu1 %892, %v796_v15   ;;  %v259_v38 = vsub.f32 %v251_v34, %v784_v33  ;;  %v599_v56 = vsub.f32 %v805_v53, %v784_v33 }
   0x9   :  { %833 = vmatpush3.bf16.msra.mxu0 %v996_v1  ;;  %v74_v6 = vld [vmem:[%s1307_s20] sm:$0xff]  ;;  %v75_v7 = vld [vmem:[%s1307_s20 + $0x8] sm:$0xff]  ;;  %v799_v45 = vld [vmem:[%s1307_s20 + $0x10] sm:$0xff] }
   0xa   :  { %834 = vmatprep.subr.bf16.mxu0 %v899_v0  ;;  %v82_v8 = vsub.f32 %v74_v6, %v1009_v4  ;;  %v83_v10 = vsub.f32 %v75_v7, %v1009_v4  ;;  %v1095_v37 = vld [vmem:[%s1291_s2] sm:$0xff]   ;;  %v800_v46 = vld [vmem:[%s1307_s20 + $0x18] sm:$0xff]  ;;  %v452_v48 = vsub.f32 %v799_v45, %v1009_v4 }
   0xb   :  { %v896_v40 = vld [vmem:[%s1292_s10] sm:$0xff]   ;;  %v453_v49 = vsub.f32 %v800_v46, %v1009_v4 }
   0xc   :  { %v90_v12 = vmul.f32 %v1014_v5, %v82_v8  ;;  %v91_v14 = vmul.f32 %v1014_v5, %v83_v10  ;;  %217 = vperm.xlu0 %891, %v72_v17   ;;  %222 = vperm.xlu1 %892, %v73_v18   ;;  %v785_v41 = vld [vmem:[%s1295_s13] ss:$0 sm:$0xff]  ;;  %v454_v50 = vmul.f32 %v1014_v5, %v452_v48 }
   0xd   :  { %835 = vmatpush3.bf16.msra.mxu0 %v1003_v2  ;;  %v267_v42 = vmul.f32 %v785_v41, %v259_v38  ;;  %v268_v43 = vmul.f32 %v785_v41, %v260_v39  ;;  %v455_v51 = vmul.f32 %v1014_v5, %v453_v49  ;;  %v600_v57 = vmul.f32 %v785_v41, %v598_v55  ;;  %v1159_v7 = vld [vmem:[%s1296_s7] ss:$0 sm:$0xff] }
   0xe   :  { %854 = vmatprep.subr.bf16.mxu0 %v899_v0  ;;  %v92_v16 = vpack.c.bf16 %v91_v14, %v90_v12  ;;  %v601_v58 = vmul.f32 %v785_v41, %v599_v56 }
   0xf   :  { %v269_v47 = vpack.c.bf16 %v268_v43, %v267_v42  ;;  %v456_v54 = vpack.c.bf16 %v455_v51, %v454_v50 }
  0x10   :  { %837 = vmatmul.mubr.msk.bf16.vlgmr.msra.gmra.mrb[0].mxu0 %vm105_vm1, %v92_v16  ;;  %567 = vperm.xlu0 %891, %v797_v19   ;;  %v602_v59 = vpack.c.bf16 %v601_v58, %v600_v57  ;;  %v1215_v58 = vld [vmem:[%s1298_s11] ss:$0 sm:$0xff] }
  0x11   :  { %856 = vmatprep.mubr.msk.bf16.mxu0 %vm900_vm0, %v899_v0  ;;  %572 = vperm.xlu1 %892, %v798_v22  }
  0x14   :  { %239 = vperm.xlu0 %891, %v68_v20  }
  0x15   :  { %244 = vperm.xlu1 %892, %v69_v23  }
  0x18   :  { %583 = vperm.xlu0 %891, %v793_v21  }
  0x19   :  { %588 = vperm.xlu1 %892, %v794_v24  }
  0x83   :  { %v1071_v25 = vpop.permute.xlu0 %152  ;;  %v1141_v60 = vpop.permute.xlu1 %503 }
  0x87   :  { %v1075_v28 = vpop.permute.xlu0 %157  ;;  %v1143_v61 = vpop.permute.xlu1 %508 }
  0x8b   :  { %v1145_v62 = vpop.permute.xlu0 %217  ;;  %v1147_v63 = vpop.permute.xlu1 %222 }
  0x90   :  { %v1151_v3 = vpop.permute.xlu1 %572 }
  0x94   :  { %v1167_v16 = vpop.permute.xlu1 %244 }
  0xe3   :  { %v1073_v26 = vpop.f32.mrb[0].mxu0 }
  0xe4   :  { %v838_v27 = vpop.f32.mrb[1].mxu0  ;;  %v160_v30 = vmul.f32 %v1071_v25, %v1073_v26  ;;  %v225_v4 = vmul.f32 %v1145_v62, %v1073_v26 }
  0xe5   :  { %v1077_v29 = vpop.f32.mrb[2].mxu0 }
  0xe6   :  { %v161_v31 = vmul.f32 %v1075_v28, %v1077_v29  ;;  %v839_v32 = vpop.f32.mrb[3].mxu0  ;;  %v226_v9 = vmul.f32 %v1147_v63, %v1077_v29 }
  0xe8   :  { %v162_v36 = vpack.c.bf16 %v161_v31, %v160_v30 }
  0xea   :  { %841 = vmatpush3.bf16.msra.mxu1 %v162_v36 }
  0xeb   :  { %846 = vmatprep.subr.bf16.mxu1 %v899_v0 }
  0xed   :  { %843 = vmatmul.mubr.msk.bf16.vlgmr.msra.gmra.mrb[0].mxu1 %vm168_vm2, %v1095_v37 }
  0xee   :  { %847 = vmatpush3.bf16.msra.mxu1 %v896_v40  ;;  %850 = vmatprep.mubr.msk.bf16.mxu1 %vm900_vm0, %v899_v0 }
  0xef   :  { %848 = vmatprep.subr.bf16.mxu1 %v899_v0 }
  0xf2   :  { %849 = vmatpush3.bf16.msra.mxu1 %v897_v44 }
  0xf3   :  { %860 = vmatprep.subr.bf16.mxu1 %v899_v0 }
  0xf5   :  { %851 = vmatmul.mubr.msk.bf16.vlgmr.msra.gmra.mrb[4].mxu1 %vm105_vm1, %v269_v47  ;;  %v898_v47 = vld [vmem:[%s1291_s2 + $0x8] sm:$0xff]  }
  0xf6   :  { %861 = vmatpush3.bf16.msra.mxu1 %v996_v1  ;;  %864 = vmatprep.mubr.msk.bf16.mxu1 %vm900_vm0, %v899_v0  ;;  %v1149_v1 = vpop.permute.xlu0 %567 }
  0xf7   :  { %862 = vmatprep.subr.bf16.mxu1 %v899_v0 }
  0xfa   :  { %863 = vmatpush3.bf16.msra.mxu1 %v1003_v2  ;;  %v1165_v15 = vpop.permute.xlu0 %239 }
  0xfb   :  { %874 = vmatprep.subr.bf16.mxu1 %v899_v0 }
  0xfd   :  { %865 = vmatmul.mubr.msk.bf16.vlgmr.msra.gmra.mrb[8].mxu1 %vm105_vm1, %v456_v54 }
  0xfe   :  { %875 = vmatpush3.bf16.msra.mxu1 %v896_v40  ;;  %878 = vmatprep.mubr.msk.bf16.mxu1 %vm900_vm0, %v899_v0 }
  0xff   :  { %876 = vmatprep.subr.bf16.mxu1 %v899_v0 }
 0x102   :  { %877 = vmatpush3.bf16.msra.mxu1 %v897_v44 }
 0x105   :  { %879 = vmatmul.mubr.msk.bf16.vlgmr.msra.gmra.mrb[12].mxu1 %vm105_vm1, %v602_v59 }
 0x1c0   :  { %v206_v2 = vpop.f32.mrb[0].mxu1 }
 0x1c1   :  { %v213_v5 = vmul.f32 %v206_v2, %v1071_v25  ;;  %v844_v6 = vpop.f32.mrb[1].mxu1 }
 0x1c2   :  { %v209_v8 = vpop.f32.mrb[2].mxu1 }
 0x1c3   :  { %v227_v10 = vadd.f32 %v225_v4, %v213_v5  ;;  %v214_v11 = vmul.f32 %v209_v8, %v1075_v28  ;;  %v845_v12 = vpop.f32.mrb[3].mxu1 }
 0x1c5   :  { %v235_v13 = vadd.f32 %v1159_v7, %v227_v10  ;;  %v228_v14 = vadd.f32 %v226_v9, %v214_v11 }
 0x1c7   :  { %v247_v17 = vmul.f32 %v1165_v15, %v235_v13  ;;  %v236_v18 = vadd.f32 %v1159_v7, %v228_v14 }
 0x1c8   :  { %v319_v19 = vpop.f32.mrb[4].mxu1 }
 0x1c9   :  { %v249_v20 = vmax.f32 %v247_v17, 0.0  ;;  %v248_v21 = vmul.f32 %v1167_v16, %v236_v18  ;;  %v852_v22 = vpop.f32.mrb[5].mxu1  ;;  %v326_v27 = vmul.f32 %v319_v19, %v1071_v25  ;;  %v372_v55 = vmul.f32 %v319_v19, %v1145_v62 }
 0x1ca   :  { %v322_v23 = vpop.f32.mrb[6].mxu1 }
 0x1cb   :  { %v403_v24 = vmul.f32 %v249_v20, %v249_v20  ;;  %v250_v26 = vmax.f32 %v248_v21, 0.0  ;;  %389 = vst.msk [vmem:[%s1297_s14] sm:$0xff] %vm388_vm3, %v249_v20  ;;  %v327_v29 = vmul.f32 %v322_v23, %v1075_v28  ;;  %v853_v30 = vpop.f32.mrb[7].mxu1  ;;  %v393_v31 = vsel %vm388_vm3, %v249_v20, 0.0 }
 0x1cc   :  { %v373_v2 = vmul.f32 %v322_v23, %v1147_v63 }
 0x1cd   :  { %390 = vst.msk [vmem:[%s1297_s14 + $0x8] sm:$0xff] %vm388_vm3, %v250_v26  ;;  %v394_v32 = vsel %vm388_vm3, %v250_v26, 0.0  ;;  %v404_v33 = vmul.f32 %v250_v26, %v250_v26  ;;  %v328_v34 = vpack.c.bf16 %v327_v29, %v326_v27  ;;  %v405_v36 = vsel %vm388_vm3, %v403_v24, 0.0  ;;  %v584_v26 = vpop.permute.xlu0 %583 }
 0x1ce   :  { %v1184_v35 = vadd.f32 %v394_v32, %v393_v31 }
 0x1cf   :  { %v406_v38 = vsel %vm388_vm3, %v404_v33, 0.0  ;;  %855 = vmatpush3.bf16.msra.mxu0 %v328_v34 }
 0x1d0   :  { %v1188_v39 = vadd.f32 %v406_v38, %v405_v36  ;;  %v494_v40 = vpop.f32.mrb[8].mxu1  ;;  %868 = vmatprep.subr.bf16.mxu0 %v899_v0 }
 0x1d1   :  { %v866_v41 = vpop.f32.mrb[9].mxu1  ;;  %v511_v43 = vmul.f32 %v1141_v60, %v494_v40  ;;  %v575_v10 = vmul.f32 %v1149_v1, %v494_v40 }
 0x1d2   :  { %857 = vmatmul.mubr.msk.bf16.vlgmr.msra.gmra.mrb[4].mxu0 %vm168_vm2, %v1095_v37  ;;  %v497_v42 = vpop.f32.mrb[10].mxu1  ;;  %v408_v34 = vrot.slane %v1188_v39, 4  ;;  %v589_v41 = vpop.permute.xlu1 %588 }
 0x1d3   :  { %v512_v44 = vmul.f32 %v1143_v61, %v497_v42  ;;  %v867_v45 = vpop.f32.mrb[11].mxu1  ;;  %870 = vmatprep.mubr.msk.bf16.mxu0 %vm900_vm0, %v899_v0  ;;  %v576_v20 = vmul.f32 %v1151_v3, %v497_v42 }
 0x1d5   :  { %v513_v46 = vpack.c.bf16 %v512_v44, %v511_v43 }
 0x1d7   :  { %869 = vmatpush3.bf16.msra.mxu0 %v513_v46 }
 0x1d8   :  { %v640_v48 = vpop.f32.mrb[12].mxu1  ;;  %882 = vmatprep.subr.bf16.mxu0 %v899_v0 }
 0x1d9   :  { %v880_v49 = vpop.f32.mrb[13].mxu1  ;;  %v647_v50 = vmul.f32 %v640_v48, %v1141_v60  ;;  %v693_v42 = vmul.f32 %v640_v48, %v1149_v1  ;;  %v409_v1 = vadd.f32 %v408_v34, %v1188_v39 }
 0x1da   :  { %871 = vmatmul.mubr.msk.bf16.vlgmr.msra.gmra.mrb[8].mxu0 %vm168_vm2, %v898_v47  ;;  %v1202_v37 = vpop.f32.mrb[14].mxu1 }
 0x1db   :  { %v648_v51 = vmul.f32 %v1202_v37, %v1143_v61  ;;  %v881_v52 = vpop.f32.mrb[15].mxu1  ;;  %884 = vmatprep.mubr.msk.bf16.mxu0 %vm900_vm0, %v899_v0  ;;  %v694_v49 = vmul.f32 %v1202_v37, %v1151_v3 }
 0x1dd   :  { %v649_v53 = vpack.c.bf16 %v648_v51, %v647_v50 }
 0x1df   :  { %883 = vmatpush3.bf16.msra.mxu0 %v649_v53 }
 0x1e2   :  { %885 = vmatmul.mubr.msk.bf16.vlgmr.msra.gmra.mrb[12].mxu0 %vm168_vm2, %v898_v47 }
 0x2a5   :  { %v363_v54 = vpop.f32.mrb[4].mxu0 }
 0x2a6   :  { %v370_v56 = vmul.f32 %v363_v54, %v1071_v25  ;;  %v858_v57 = vpop.f32.mrb[5].mxu0 }
 0x2a7   :  { %v366_v59 = vpop.f32.mrb[6].mxu0 }
 0x2a8   :  { %v374_v4 = vadd.f32 %v372_v55, %v370_v56  ;;  %v371_v0 = vmul.f32 %v366_v59, %v1075_v28  ;;  %v859_v5 = vpop.f32.mrb[7].mxu0  ;;  %v396_v28 = vrot.slane %v1184_v35, 4  ;;  %v410_v59 = vrot.slane %v409_v1, 2 }
 0x2aa   :  { %v382_v6 = vadd.f32 %v1215_v58, %v374_v4  ;;  %v375_v8 = vadd.f32 %v373_v2, %v371_v0  ;;  %v397_v30 = vadd.f32 %v396_v28, %v1184_v35 }
 0x2ac   :  { %v384_v62 = vmul.f32 %v382_v6, %v1165_v15  ;;  %v383_v25 = vadd.f32 %v1215_v58, %v375_v8  ;;  %v398_v47 = vrot.slane %v397_v30, 2 }
 0x2ad   :  { %v556_v9 = vpop.f32.mrb[8].mxu0 }
 0x2ae   :  { %v386_v11 = vmax.f32 %v384_v62, 0.0  ;;  %v385_v12 = vmul.f32 %v383_v25, %v1167_v16  ;;  %v563_v13 = vmul.f32 %v556_v9, %v1141_v60  ;;  %v872_v63 = vpop.f32.mrb[9].mxu0 }
 0x2af   :  { %v559_v14 = vpop.f32.mrb[10].mxu0 }
 0x2b0   :  { %391 = vst.msk [vmem:[%s1299_s15] sm:$0xff] %vm105_vm1, %v386_v11  ;;  %v425_v15 = vmul.f32 %v386_v11, %v386_v11  ;;  %v387_v17 = vmax.f32 %v385_v12, 0.0  ;;  %v577_v18 = vadd.f32 %v575_v10, %v563_v13  ;;  %v873_v19 = vpop.f32.mrb[11].mxu0  ;;  %v564_v21 = vmul.f32 %v559_v14, %v1143_v61 }
 0x2b1   :  { %v415_v16 = vsel %vm105_vm1, %v386_v11, 0.0  ;;  %v411_v11 = vadd.f32 %v410_v59, %v409_v1 }
 0x2b2   :  { %392 = vst.msk [vmem:[%s1299_s15 + $0x8] sm:$0xff] %vm105_vm1, %v387_v17  ;;  %v416_v22 = vsel %vm105_vm1, %v387_v17, 0.0  ;;  %v426_v23 = vmul.f32 %v387_v17, %v387_v17  ;;  %v579_v24 = vadd.f32 %v1159_v7, %v577_v18  ;;  %v578_v29 = vadd.f32 %v576_v20, %v564_v21 }
 0x2b3   :  { %v417_v27 = vadd.f32 %v416_v22, %v415_v16  ;;  %v427_v31 = vsel %vm105_vm1, %v425_v15, 0.0  ;;  %v412_v22 = vrot.slane %v411_v11, 1 }
 0x2b4   :  { %v428_v32 = vsel %vm105_vm1, %v426_v23, 0.0  ;;  %v591_v33 = vmul.f32 %v584_v26, %v579_v24  ;;  %v580_v38 = vadd.f32 %v1159_v7, %v578_v29 }
 0x2b5   :  { %v429_v36 = vadd.f32 %v428_v32, %v427_v31  ;;  %v684_v40 = vpop.f32.mrb[12].mxu0  ;;  %v418_v54 = vrot.slane %v417_v27, 4 }
 0x2b6   :  { %v593_v43 = vmax.f32 %v591_v33, 0.0  ;;  %v691_v44 = vmul.f32 %v684_v40, %v1141_v60  ;;  %v886_v45 = vpop.f32.mrb[13].mxu0  ;;  %v592_v46 = vmul.f32 %v589_v41, %v580_v38 }
 0x2b7   :  { %v687_v35 = vpop.f32.mrb[14].mxu0  ;;  %v430_v2 = vrot.slane %v429_v36, 4  ;;  %v419_v25 = vadd.f32 %v418_v54, %v417_v27 }
 0x2b8   :  { %808 = vst.msk [vmem:[%s1297_s14 + $0x10] sm:$0xff] %vm388_vm3, %v593_v43  ;;  %v695_v7 = vadd.f32 %v693_v42, %v691_v44  ;;  %v692_v50 = vmul.f32 %v687_v35, %v1143_v61  ;;  %v887_v51 = vpop.f32.mrb[15].mxu0  ;;  %v719_v48 = vmul.f32 %v593_v43, %v593_v43  ;;  %v594_v60 = vmax.f32 %v592_v46, 0.0 }
 0x2b9   :  { %v709_v55 = vsel %vm388_vm3, %v593_v43, 0.0  ;;  %v399_v61 = vadd.f32 %v398_v47, %v397_v30  ;;  %v420_v15 = vrot.slane %v419_v25, 2 }
 0x2ba   :  { %v697_v52 = vadd.f32 %v1215_v58, %v695_v7  ;;  %v696_v53 = vadd.f32 %v694_v49, %v692_v50  ;;  %809 = vst.msk [vmem:[%s1297_s14 + $0x18] sm:$0xff] %vm388_vm3, %v594_v60  ;;  %v710_v3 = vsel %vm388_vm3, %v594_v60, 0.0  ;;  %v720_v37 = vmul.f32 %v594_v60, %v594_v60 }
 0x2bb   :  { %v711_v56 = vadd.f32 %v710_v3, %v709_v55  ;;  %v721_v4 = vsel %vm388_vm3, %v719_v48, 0.0  ;;  %v400_v63 = vrot.slane %v399_v61, 1  ;;  %v421_v33 = vadd.f32 %v420_v15, %v419_v25 }
 0x2bc   :  { %v699_v57 = vmul.f32 %v697_v52, %v584_v26  ;;  %v698_v39 = vadd.f32 %v1215_v58, %v696_v53  ;;  %v722_v0 = vsel %vm388_vm3, %v720_v37, 0.0  ;;  %v431_v58 = vadd.f32 %v430_v2, %v429_v36 }
 0x2bd   :  { %v712_v5 = vrot.slane %v711_v56, 4  ;;  %v723_v6 = vadd.f32 %v722_v0, %v721_v4  ;;  %v401_v32 = vadd.f32 %v400_v63, %v399_v61  ;;  %v422_v35 = vrot.slane %v421_v33, 1 }
 0x2be   :  { %v701_v8 = vmax.f32 %v699_v57, 0.0  ;;  %v700_v62 = vmul.f32 %v698_v39, %v589_v41  ;;  %v432_v23 = vrot.slane %v431_v58, 2  ;;  %v413_v41 = vadd.f32 %v412_v22, %v411_v11 }
 0x2bf   :  { %v713_v9 = vadd.f32 %v712_v5, %v711_v56  ;;  %v724_v10 = vrot.slane %v723_v6, 4  ;;  %v423_v60 = vadd.f32 %v422_v35, %v421_v33 }
 0x2c0   :  { %810 = vst.msk [vmem:[%s1299_s15 + $0x10] sm:$0xff] %vm105_vm1, %v701_v8  ;;  %v741_v12 = vmul.f32 %v701_v8, %v701_v8  ;;  %v702_v13 = vmax.f32 %v700_v62, 0.0  ;;  %v731_v17 = vsel %vm105_vm1, %v701_v8, 0.0  ;;  %v433_v42 = vadd.f32 %v432_v23, %v431_v58 }
 0x2c1   :  { %v714_v14 = vrot.slane %v713_v9, 2  ;;  %v725_v28 = vadd.f32 %v724_v10, %v723_v6 }
 0x2c2   :  { %811 = vst.msk [vmem:[%s1299_s15 + $0x18] sm:$0xff] %vm105_vm1, %v702_v13  ;;  %v732_v18 = vsel %vm105_vm1, %v702_v13, 0.0  ;;  %v742_v19 = vmul.f32 %v702_v13, %v702_v13  ;;  %v743_v24 = vsel %vm105_vm1, %v741_v12, 0.0  ;;  %v434_v50 = vrot.slane %v433_v42, 1 }
 0x2c3   :  { %v715_v20 = vadd.f32 %v714_v14, %v713_v9  ;;  %v726_v21 = vrot.slane %v725_v28, 2  ;;  %v733_v16 = vadd.f32 %v732_v18, %v731_v17 }
 0x2c4   :  { %v744_v26 = vsel %vm105_vm1, %v742_v19, 0.0  ;;  %v435_v54 = vadd.f32 %v434_v50, %v433_v42 }
 0x2c5   :  { %v716_v27 = vrot.slane %v715_v20, 1  ;;  %v727_v29 = vadd.f32 %v726_v21, %v725_v28  ;;  %v734_v30 = vrot.slane %v733_v16, 4  ;;  %v745_v31 = vadd.f32 %v744_v26, %v743_v24 }
 0x2c7   :  { %v717_v34 = vadd.f32 %v716_v27, %v715_v20  ;;  %v728_v36 = vrot.slane %v727_v29, 1  ;;  %v735_v38 = vadd.f32 %v734_v30, %v733_v16  ;;  %v746_v40 = vrot.slane %v745_v31, 4 }
 0x2c9   :  { %v718_v43 = vadd.f32 %v717_v34, %v401_v32  ;;  %v729_v44 = vadd.f32 %v728_v36, %v727_v29  ;;  %v736_v45 = vrot.slane %v735_v38, 2  ;;  %v747_v46 = vadd.f32 %v746_v40, %v745_v31 }
 0x2cb   :  { %v730_v47 = vadd.f32 %v729_v44, %v413_v41  ;;  %v737_v49 = vadd.f32 %v736_v45, %v735_v38  ;;  %v748_v7 = vrot.slane %v747_v46, 2 }
 0x2cd   :  { %v754_v51 = vsel %vm753_vm4, %v718_v43, %v730_v47  ;;  %v738_v1 = vrot.slane %v737_v49, 1  ;;  %v749_v48 = vadd.f32 %v748_v7, %v747_v46 }
 0x2ce   :  { %756 = vst.msk [vmem:[%s1300_s16] sm:$0x3] %vm755_vm5, %v754_v51 }
 0x2cf   :  { %v739_v52 = vadd.f32 %v738_v1, %v737_v49  ;;  %v750_v53 = vrot.slane %v749_v48, 1 }
 0x2d1   :  { %v740_v55 = vadd.f32 %v739_v52, %v423_v60  ;;  %v751_v3 = vadd.f32 %v750_v53, %v749_v48 }
 0x2d3   :  { %v752_v37 = vadd.f32 %v751_v3, %v435_v54 }
 0x2d5   :  { %v757_v61 = vsel %vm753_vm4, %v740_v55, %v752_v37 }
 0x2d6   :  { %759 = vst.msk [vmem:[%s1301_s17] sm:$0x3] %vm758_vm6, %v757_v61 }

// kernel: diffpool_forward.20
= control target key start
LH: loop header
LB: loop body
LE: loop exit
PB: predicated region body
PF: predicated region fallthrough
CT: control target
= control target key end

     0   :  { %v415_v0 = vmov 0.0   ;;  %vm416_vm0 = vmmov 0   ;;  %v417_v3 = vmov 0   ;;  %vm63_vm1 = vcmask 261120   ;;  %s547_s5 = inlined_call_operand.vmem [shape: bf16[32,32], index: 5, kind: input, shape index: {}]   ;;  %s548_s0 = inlined_call_operand.vmem [shape: f32[2,1,32], index: 0, kind: input, shape index: {}]   ;;  %s549_s7 = inlined_call_operand.vmem [shape: f32[1,32], index: 7, kind: input, shape index: {}]   ;;  %s550_s8 = inlined_call_operand.vmem [shape: f32[1,32], index: 8, kind: input, shape index: {}]   ;;  %s551_s3 = inlined_call_operand.vmem [shape: f32[2,1,1], index: 3, kind: input, shape index: {}]   ;;  %s552_s4 = inlined_call_operand.vmem [shape: f32[2,1,1], index: 4, kind: input, shape index: {}]   ;;  %s553_s2 = inlined_call_operand.vmem [shape: f32[2,1,1], index: 2, kind: input, shape index: {}]   ;;  %s554_s1 = inlined_call_operand.vmem [shape: f32[2,1,1], index: 1, kind: input, shape index: {}]   ;;  %s555_s6 = inlined_call_operand.vmem [shape: f32[1,32], index: 6, kind: input, shape index: {}]   ;;  %s556_s9 = inlined_call_operand.vmem [shape: f32[2,1,32], index: 9, kind: output, shape index: {0}]   ;;  %s557_s10 = inlined_call_operand.vmem [shape: f32[1,2,32], index: 10, kind: output, shape index: {1}]  }
   0x1   :  { %380 = vmatprep.subr.bf16.mxu0 %v415_v0  ;;  %v413_v1 = vld [vmem:[%s547_s5] sm:$0xff]   ;;  %384 = vmatprep.mubr.msk.bf16.mxu0 %vm416_vm0, %v415_v0  ;;  %v414_v2 = vld [vmem:[%s547_s5 + $0x8] sm:$0xff]   ;;  %v112_v18 = vlaneseq  ;;  %vm122_vm2 = vcmask 1040384   ;;  %vm118_vm3 = vcmask 7168   ;;  %vm192_vm4 = vcmask 253952  }
   0x2   :  { %411 = vset.pattern.permute.xlu0 %v417_v3  ;;  %412 = vset.pattern.permute.xlu1 %v417_v3  ;;  %v40_v4 = vld [vmem:[%s549_s7] sm:$0x1]  ;;  %v362_v8 = vld [vmem:[%s548_s0 + $0x1] sm:$0x1]  ;;  %v124_v27 = vsel %vm122_vm2, 65535, %v417_v3  ;;  %vm348_vm5 = vcmask 254976  }
   0x3   :  { %381 = vmatpush3.bf16.msra.mxu0 %v413_v1  ;;  %v41_v5 = vld [vmem:[%s550_s8] sm:$0x1]  ;;  %388 = vmatprep.subr.bf16.mxu1 %v415_v0  ;;  %v210_v10 = vsub.f32 %v362_v8, %v40_v4  ;;  %v365_v13 = vld [vmem:[%s551_s3 + $0x1] sm:$0x1]  ;;  %v113_v19 = vshrl.u32 %v112_v18, 7 }
   0x4   :  { %v42_v6 = vld [vmem:[%s548_s0] sm:$0x1]  ;;  %382 = vmatprep.subr.bf16.mxu0 %v415_v0  ;;  %390 = vmatprep.mubr.msk.bf16.mxu1 %vm416_vm0, %v415_v0  ;;  %v366_v17 = vld [vmem:[%s552_s4 + $0x1] sm:$0x1] }
   0x5   :  { %v48_v7 = vsub.f32 %v42_v6, %v40_v4  ;;  %v46_v9 = vld [vmem:[%s551_s3] sm:$0x1]  ;;  %v211_v14 = vmul.f32 %v210_v10, %v41_v5  ;;  %v510_v20 = vsub.s32 0, %v113_v19  ;;  %v364_v34 = vld [vmem:[%s553_s2 + $0x1] sm:$0x1] }
   0x6   :  { %109 = vperm.xlu0 %411, %v46_v9   ;;  %v47_v11 = vld [vmem:[%s552_s4] sm:$0x1]  ;;  %v363_v56 = vld [vmem:[%s554_s1 + $0x1] sm:$0x1] }
   0x7   :  { %v49_v12 = vmul.f32 %v48_v7, %v41_v5  ;;  %171 = vperm.xlu1 %412, %v47_v11   ;;  %383 = vmatpush3.bf16.msra.mxu0 %v414_v2  ;;  %v45_v16 = vld [vmem:[%s553_s2] sm:$0x1]  ;;  %v212_v33 = vpack.c.bf16 %v211_v14, %v211_v14  ;;  %v203_v60 = vpack.c.bf16 %v363_v56, %v363_v56 }
   0x8   :  { %402 = vmatprep.subr.bf16.mxu0 %v415_v0  ;;  %v43_v30 = vld [vmem:[%s554_s1] sm:$0x1] }
   0x9   :  { %v50_v15 = vpack.c.bf16 %v49_v12, %v49_v12  ;;  %v44_v32 = vpack.c.bf16 %v43_v30, %v43_v30  ;;  %v39_v43 = vld [vmem:[%s555_s6] sm:$0x1] }
   0xa   :  { %258 = vperm.xlu0 %411, %v365_v13  }
   0xb   :  { %385 = vmatmul.mubr.msk.bf16.vlgmr.msra.gmra.mrb[0].mxu0 %vm63_vm1, %v50_v15  ;;  %316 = vperm.xlu1 %412, %v366_v17  }
   0xc   :  { %404 = vmatprep.mubr.msk.bf16.mxu0 %vm416_vm0, %v415_v0 }
   0xe   :  { %183 = vperm.xlu0 %411, %v45_v16  }
   0xf   :  { %328 = vperm.xlu1 %412, %v364_v34  }
  0x85   :  { %v110_v21 = vpop.permute.xlu0 %109 }
  0x86   :  { %v115_v22 = vrot.slane %v110_v21, %v510_v20  ;;  %v172_v35 = vpop.permute.xlu1 %171 }
  0x87   :  { %v177_v37 = vrot.slane %v172_v35, %v510_v20 }
  0x89   :  { %v259_v36 = vpop.permute.xlu0 %258 }
  0x8a   :  { %v264_v49 = vrot.slane %v259_v36, %v510_v20  ;;  %v317_v61 = vpop.permute.xlu1 %316 }
  0x8b   :  { %v322_v62 = vrot.slane %v317_v61, %v510_v20 }
  0x8d   :  { %v184_v42 = vpop.permute.xlu0 %183 }
  0x8e   :  { %v189_v47 = vrot.slane %v184_v42, %v510_v20  ;;  %v329_v3 = vpop.permute.xlu1 %328 }
  0x8f   :  { %v334_v7 = vrot.slane %v329_v3, %v510_v20 }
  0xde   :  { %v101_v23 = vpop.f32.mrb[0].mxu0 }
  0xdf   :  { %v116_v24 = vmul.f32 %v115_v22, %v101_v23  ;;  %v386_v25 = vpop.f32.mrb[1].mxu0  ;;  %v178_v39 = vmul.f32 %v177_v37, %v101_v23 }
  0xe0   :  { %v104_v26 = vpop.f32.mrb[2].mxu0 }
  0xe1   :  { %v117_v28 = vpack.c.bf16 %v116_v24, %v116_v24  ;;  %v387_v29 = vpop.f32.mrb[3].mxu0 }
  0xe3   :  { %v126_v31 = vand.u32 %v124_v27, %v117_v28 }
  0xe5   :  { %389 = vmatpush3.bf16.msra.mxu1 %v126_v31 }
  0xe6   :  { %394 = vmatprep.subr.bf16.mxu1 %v415_v0 }
  0xe8   :  { %391 = vmatmul.mubr.msk.bf16.vlgmr.msra.gmra.mrb[0].mxu1 %vm118_vm3, %v44_v32 }
  0xe9   :  { %395 = vmatpush3.bf16.msra.mxu1 %v413_v1  ;;  %398 = vmatprep.mubr.msk.bf16.mxu1 %vm416_vm0, %v415_v0 }
  0xea   :  { %396 = vmatprep.subr.bf16.mxu1 %v415_v0 }
  0xed   :  { %397 = vmatpush3.bf16.msra.mxu1 %v414_v2 }
  0xf0   :  { %399 = vmatmul.mubr.msk.bf16.vlgmr.msra.gmra.mrb[4].mxu1 %vm63_vm1, %v212_v33 }
 0x1bb   :  { %v162_v38 = vpop.f32.mrb[0].mxu1 }
 0x1bc   :  { %v168_v40 = vmul.f32 %v162_v38, %v115_v22  ;;  %v392_v41 = vpop.f32.mrb[1].mxu1 }
 0x1bd   :  { %v165_v44 = vpop.f32.mrb[2].mxu1 }
 0x1be   :  { %v179_v45 = vadd.f32 %v178_v39, %v168_v40  ;;  %v393_v46 = vpop.f32.mrb[3].mxu1 }
 0x1c0   :  { %v180_v48 = vadd.f32 %v179_v45, %v39_v43 }
 0x1c2   :  { %v190_v50 = vmul.f32 %v189_v47, %v180_v48 }
 0x1c3   :  { %v250_v51 = vpop.f32.mrb[4].mxu1 }
 0x1c4   :  { %v191_v52 = vmax.f32 %v190_v50, 0.0  ;;  %v265_v53 = vmul.f32 %v264_v49, %v250_v51  ;;  %v400_v54 = vpop.f32.mrb[5].mxu1  ;;  %v323_v0 = vmul.f32 %v322_v62, %v250_v51 }
 0x1c5   :  { %v253_v55 = vpop.f32.mrb[6].mxu1 }
 0x1c6   :  { %193 = vst.msk [vmem:[%s556_s9] sm:$0x1] %vm192_vm4, %v191_v52  ;;  %v266_v57 = vpack.c.bf16 %v265_v53, %v265_v53  ;;  %v401_v58 = vpop.f32.mrb[7].mxu1  ;;  %v196_v11 = vmul.f32 %v191_v52, %v191_v52 }
 0x1c8   :  { %v271_v59 = vand.u32 %v266_v57, %v124_v27 }
 0x1ca   :  { %403 = vmatpush3.bf16.msra.mxu0 %v271_v59 }
 0x1cd   :  { %405 = vmatmul.mubr.msk.bf16.vlgmr.msra.gmra.mrb[4].mxu0 %vm118_vm3, %v203_v60 }
 0x2a0   :  { %v307_v63 = vpop.f32.mrb[4].mxu0 }
 0x2a1   :  { %v313_v1 = vmul.f32 %v307_v63, %v264_v49  ;;  %v406_v2 = vpop.f32.mrb[5].mxu0 }
 0x2a2   :  { %v310_v4 = vpop.f32.mrb[6].mxu0 }
 0x2a3   :  { %v324_v5 = vadd.f32 %v323_v0, %v313_v1  ;;  %v407_v6 = vpop.f32.mrb[7].mxu0 }
 0x2a5   :  { %v325_v8 = vadd.f32 %v324_v5, %v39_v43 }
 0x2a7   :  { %v335_v9 = vmul.f32 %v334_v7, %v325_v8 }
 0x2a9   :  { %v336_v10 = vmax.f32 %v335_v9, 0.0 }
 0x2ab   :  { %369 = vst.msk [vmem:[%s556_s9 + $0x1] sm:$0x1] %vm192_vm4, %v336_v10  ;;  %v341_v12 = vmul.f32 %v336_v10, %v336_v10  ;;  %v340_v14 = vadd.f32 %v336_v10, %v191_v52 }
 0x2ad   :  { %v343_v13 = vadd.f32 %v341_v12, %v196_v11 }
 0x2af   :  { %v345_v15 = vrot.slane %v343_v13, 7 }
 0x2b1   :  { %v347_v16 = vsel %vm122_vm2, %v340_v14, %v345_v15 }
 0x2b2   :  { %349 = vst.msk [vmem:[%s557_s10] sm:$0x3] %vm348_vm5, %v347_v16 }

// kernel: diffpool_forward.16
= control target key start
LH: loop header
LB: loop body
LE: loop exit
PB: predicated region body
PF: predicated region fallthrough
CT: control target
= control target key end

     0   :  { %v781_v0 = vmov 0.0   ;;  %vm782_vm0 = vmmov 0   ;;  %v783_v3 = vmov 0   ;;  %vm99_vm1 = vcmask 261120   ;;  %s1042_s6 = inlined_call_operand.vmem [shape: bf16[32,32], index: 6, kind: input, shape index: {}]   ;;  %s1043_s0 = inlined_call_operand.vmem [shape: f32[2,4,32], index: 0, kind: input, shape index: {}, may-alias: {0,1}]   ;;  %s1044_s8 = inlined_call_operand.vmem [shape: f32[1,32], index: 8, kind: input, shape index: {}, may-alias: {8,12}]   ;;  %s1045_s9 = inlined_call_operand.vmem [shape: f32[1,32], index: 9, kind: input, shape index: {}, may-alias: {9,13}]   ;;  %s1046_s4 = inlined_call_operand.vmem [shape: f32[2,4,1], index: 4, kind: input, shape index: {}]   ;;  %s1047_s5 = inlined_call_operand.vmem [shape: f32[2,4,1], index: 5, kind: input, shape index: {}]   ;;  %s1048_s3 = inlined_call_operand.vmem [shape: f32[2,4,1], index: 3, kind: input, shape index: {}]   ;;  %s1049_s10 = inlined_call_operand.vmem [shape: bf16[32,32], index: 10, kind: input, shape index: {}]   ;;  %s1050_s2 = inlined_call_operand.vmem [shape: f32[2,4,4], index: 2, kind: input, shape index: {}]   ;;  %s1051_s1 = inlined_call_operand.vmem [shape: f32[2,4,32], index: 1, kind: input, shape index: {}, may-alias: {0,1}]   ;;  %s1052_s12 = inlined_call_operand.vmem [shape: f32[1,32], index: 12, kind: input, shape index: {}, may-alias: {8,12}]   ;;  %s1053_s13 = inlined_call_operand.vmem [shape: f32[1,32], index: 13, kind: input, shape index: {}, may-alias: {9,13}]   ;;  %s1054_s7 = inlined_call_operand.vmem [shape: f32[1,32], index: 7, kind: input, shape index: {}]   ;;  %s1055_s14 = inlined_call_operand.vmem [shape: f32[2,4,32], index: 14, kind: output, shape index: {0}]   ;;  %s1056_s11 = inlined_call_operand.vmem [shape: f32[1,32], index: 11, kind: input, shape index: {}]   ;;  %s1057_s15 = inlined_call_operand.vmem [shape: f32[2,4,32], index: 15, kind: output, shape index: {1}]   ;;  %s1058_s16 = inlined_call_operand.vmem [shape: f32[1,2,32], index: 16, kind: output, shape index: {2}]   ;;  %s1059_s17 = inlined_call_operand.vmem [shape: f32[1,2,32], index: 17, kind: output, shape index: {3}]  }
   0x1   :  { %1062 = sst [smem:[#allocation2_spill]] %s1042_s6  ;;  %716 = vmatprep.subr.bf16.mxu0 %v781_v0  ;;  %720 = vmatprep.mubr.msk.bf16.mxu0 %vm782_vm0, %v781_v0  ;;  %v670_v4 = vld [vmem:[%s1044_s8] ss:$0 sm:$0xff]  ;;  %v686_v13 = vld [vmem:[%s1046_s4 + $0x4] sm:$0xf]  ;;  %vm154_vm2 = vcmask 1041408  }
   0x2   :  { %1063 = sst [smem:[#allocation3_spill]] %s1043_s0  ;;  %s1064_s26 = sld [smem:[#allocation2_spill]]  ;;  %775 = vset.pattern.permute.xlu0 %v783_v3  ;;  %776 = vset.pattern.permute.xlu1 %v783_v3  ;;  %v671_v5 = vld [vmem:[%s1045_s9] ss:$0 sm:$0xff]  ;;  %v687_v17 = vld [vmem:[%s1047_s5 + $0x4] sm:$0xf] }
   0x3   :  { %s1065_s20 = sld [smem:[#allocation3_spill]]  ;;  %724 = vmatprep.subr.bf16.mxu1 %v781_v0  ;;  %v69_v9 = vld [vmem:[%s1046_s4] sm:$0xf]  ;;  %726 = vmatprep.mubr.msk.bf16.mxu1 %vm782_vm0, %v781_v0  ;;  %vm150_vm3 = vcmask 31744   ;;  %v780_v34 = vld [vmem:[%s1049_s10 + $0x8] sm:$0xff]   ;;  %vm348_vm4 = vcmask 257024  }
   0x4   :  { %145 = vperm.xlu0 %775, %v69_v9   ;;  %v70_v11 = vld [vmem:[%s1047_s5] sm:$0xf]  ;;  %v691_v36 = vld [vmem:[%s1051_s1 + $0x4] sm:$0xf]  ;;  %vm648_vm5 = vcmask 1040384   ;;  %vm650_vm6 = vcmask 254976  }
   0x5   :  { %201 = vperm.xlu1 %776, %v70_v11   ;;  %v68_v16 = vld [vmem:[%s1048_s3] sm:$0xf]  ;;  %v685_v41 = vld [vmem:[%s1048_s3 + $0x4] sm:$0xf] }
   0x6   :  { %v66_v22 = vld [vmem:[%s1050_s2] sm:$0xf]  ;;  %v684_v3 = vld [vmem:[%s1050_s2 + $0x4] sm:$0xf] }
   0x7   :  { %v677_v24 = vld [vmem:[%s1052_s12] ss:$0 sm:$0xff]  ;;  %v937_v29 = vpack.c.bf16 %v66_v22, %v66_v22 }
   0x8   :  { %v878_v1 = vld [vmem:[%s1064_s26] sm:$0xff]   ;;  %v885_v2 = vld [vmem:[%s1064_s26 + $0x8] sm:$0xff]   ;;  %444 = vperm.xlu0 %775, %v686_v13   ;;  %v513_v38 = vsub.f32 %v691_v36, %v677_v24 }
   0x9   :  { %717 = vmatpush3.bf16.msra.mxu0 %v878_v1  ;;  %v71_v6 = vld [vmem:[%s1065_s20] sm:$0xf]  ;;  %v688_v8 = vld [vmem:[%s1065_s20 + $0x4] sm:$0xf]  ;;  %498 = vperm.xlu1 %776, %v687_v17  }
   0xa   :  { %718 = vmatprep.subr.bf16.mxu0 %v781_v0  ;;  %v78_v7 = vsub.f32 %v71_v6, %v670_v4  ;;  %v396_v10 = vsub.f32 %v688_v8, %v670_v4  ;;  %v220_v25 = vld [vmem:[%s1051_s1] sm:$0xf] }
   0xb   :  { %v227_v30 = vsub.f32 %v220_v25, %v677_v24  ;;  %v779_v31 = vld [vmem:[%s1049_s10] sm:$0xff]  }
   0xc   :  { %v85_v12 = vmul.f32 %v671_v5, %v78_v7  ;;  %v397_v14 = vmul.f32 %v671_v5, %v396_v10  ;;  %215 = vperm.xlu0 %775, %v68_v16   ;;  %v678_v32 = vld [vmem:[%s1053_s13] ss:$0 sm:$0xff]  ;;  %v387_v7 = vpack.c.bf16 %v684_v3, %v684_v3 }
   0xd   :  { %719 = vmatpush3.bf16.msra.mxu0 %v885_v2  ;;  %v234_v33 = vmul.f32 %v678_v32, %v227_v30  ;;  %v514_v39 = vmul.f32 %v678_v32, %v513_v38  ;;  %506 = vperm.xlu1 %776, %v685_v41   ;;  %v979_v49 = vld [vmem:[%s1054_s7] ss:$0 sm:$0xff] }
   0xe   :  { %v86_v15 = vpack.c.bf16 %v85_v12, %v85_v12  ;;  %738 = vmatprep.subr.bf16.mxu0 %v781_v0  ;;  %v398_v37 = vpack.c.bf16 %v397_v14, %v397_v14 }
   0xf   :  { %v235_v35 = vpack.c.bf16 %v234_v33, %v234_v33  ;;  %v515_v40 = vpack.c.bf16 %v514_v39, %v514_v39 }
  0x10   :  { %721 = vmatmul.mubr.msk.bf16.vlgmr.msra.gmra.mrb[0].mxu0 %vm99_vm1, %v86_v15 }
  0x11   :  { %740 = vmatprep.mubr.msk.bf16.mxu0 %vm782_vm0, %v781_v0 }
  0x83   :  { %v924_v18 = vpop.permute.xlu0 %145 }
  0x84   :  { %v202_v42 = vpop.permute.xlu1 %201 }
  0x87   :  { %v973_v43 = vpop.permute.xlu0 %444 }
  0x8b   :  { %v216_v53 = vpop.permute.xlu0 %215 }
  0xe3   :  { %v137_v19 = vpop.f32.mrb[0].mxu0 }
  0xe4   :  { %v148_v20 = vmul.f32 %v924_v18, %v137_v19  ;;  %v722_v21 = vpop.f32.mrb[1].mxu0  ;;  %v204_v45 = vmul.f32 %v202_v42, %v137_v19 }
  0xe5   :  { %v140_v23 = vpop.f32.mrb[2].mxu0  ;;  %v683_v21 = vld [vmem:[%s1056_s11] ss:$0 sm:$0xff] }
  0xe6   :  { %v149_v26 = vpack.c.bf16 %v148_v20, %v148_v20  ;;  %v723_v27 = vpop.f32.mrb[3].mxu0 }
  0xe7   :  { %v499_v27 = vpop.permute.xlu1 %498 }
  0xe8   :  { %v156_v28 = vsel %vm154_vm2, %v149_v26, 0 }
  0xe9   :  { %725 = vmatpush3.bf16.msra.mxu1 %v156_v28 }
  0xea   :  { %730 = vmatprep.subr.bf16.mxu1 %v781_v0 }
  0xec   :  { %727 = vmatmul.mubr.msk.bf16.vlgmr.msra.gmra.mrb[0].mxu1 %vm150_vm3, %v937_v29 }
  0xed   :  { %731 = vmatpush3.bf16.msra.mxu1 %v779_v31  ;;  %734 = vmatprep.mubr.msk.bf16.mxu1 %vm782_vm0, %v781_v0 }
  0xee   :  { %732 = vmatprep.subr.bf16.mxu1 %v781_v0 }
  0xf1   :  { %733 = vmatpush3.bf16.msra.mxu1 %v780_v34 }
  0xf2   :  { %744 = vmatprep.subr.bf16.mxu1 %v781_v0 }
  0xf4   :  { %735 = vmatmul.mubr.msk.bf16.vlgmr.msra.gmra.mrb[4].mxu1 %vm99_vm1, %v235_v35 }
  0xf5   :  { %745 = vmatpush3.bf16.msra.mxu1 %v878_v1  ;;  %748 = vmatprep.mubr.msk.bf16.mxu1 %vm782_vm0, %v781_v0 }
  0xf6   :  { %746 = vmatprep.subr.bf16.mxu1 %v781_v0 }
  0xf9   :  { %747 = vmatpush3.bf16.msra.mxu1 %v885_v2 }
  0xfa   :  { %758 = vmatprep.subr.bf16.mxu1 %v781_v0 }
  0xfc   :  { %749 = vmatmul.mubr.msk.bf16.vlgmr.msra.gmra.mrb[8].mxu1 %vm99_vm1, %v398_v37 }
  0xfd   :  { %759 = vmatpush3.bf16.msra.mxu1 %v779_v31  ;;  %762 = vmatprep.mubr.msk.bf16.mxu1 %vm782_vm0, %v781_v0 }
  0xfe   :  { %760 = vmatprep.subr.bf16.mxu1 %v781_v0 }
 0x101   :  { %761 = vmatpush3.bf16.msra.mxu1 %v780_v34 }
 0x104   :  { %763 = vmatmul.mubr.msk.bf16.vlgmr.msra.gmra.mrb[12].mxu1 %vm99_vm1, %v515_v40 }
 0x1bf   :  { %v192_v44 = vpop.f32.mrb[0].mxu1 }
 0x1c0   :  { %v198_v46 = vmul.f32 %v192_v44, %v924_v18  ;;  %v728_v47 = vpop.f32.mrb[1].mxu1  ;;  %v507_v44 = vpop.permute.xlu1 %506 }
 0x1c1   :  { %v195_v48 = vpop.f32.mrb[2].mxu1 }
 0x1c2   :  { %v205_v50 = vadd.f32 %v204_v45, %v198_v46  ;;  %v729_v51 = vpop.f32.mrb[3].mxu1 }
 0x1c4   :  { %v212_v52 = vadd.f32 %v979_v49, %v205_v50 }
 0x1c6   :  { %v218_v54 = vmul.f32 %v216_v53, %v212_v52 }
 0x1c7   :  { %v285_v55 = vpop.f32.mrb[4].mxu1 }
 0x1c8   :  { %v291_v56 = vmul.f32 %v285_v55, %v924_v18  ;;  %v736_v57 = vpop.f32.mrb[5].mxu1  ;;  %v219_v58 = vmax.f32 %v218_v54, 0.0  ;;  %v337_v17 = vmul.f32 %v285_v55, %v202_v42 }
 0x1c9   :  { %v288_v59 = vpop.f32.mrb[6].mxu1 }
 0x1ca   :  { %v292_v60 = vpack.c.bf16 %v291_v56, %v291_v56  ;;  %v737_v61 = vpop.f32.mrb[7].mxu1  ;;  %349 = vst.msk [vmem:[%s1055_s14] sm:$0xf] %vm348_vm4, %v219_v58  ;;  %v351_v26 = vsel %vm348_vm4, %v219_v58, 0.0 }
 0x1cb   :  { %v352_v31 = vrot.slane %v351_v26, 4 }
 0x1cc   :  { %v294_v62 = vsel %vm154_vm2, %v292_v60, 0 }
 0x1cd   :  { %739 = vmatpush3.bf16.msra.mxu0 %v294_v62  ;;  %v353_v40 = vadd.f32 %v352_v31, %v351_v26 }
 0x1ce   :  { %752 = vmatprep.subr.bf16.mxu0 %v781_v0 }
 0x1cf   :  { %v436_v63 = vpop.f32.mrb[8].mxu1  ;;  %v354_v48 = vrot.slane %v353_v40, 2 }
 0x1d0   :  { %v447_v1 = vmul.f32 %v973_v43, %v436_v63  ;;  %741 = vmatmul.mubr.msk.bf16.vlgmr.msra.gmra.mrb[4].mxu0 %vm150_vm3, %v937_v29  ;;  %v750_v2 = vpop.f32.mrb[9].mxu1  ;;  %v501_v32 = vmul.f32 %v499_v27, %v436_v63 }
 0x1d1   :  { %v439_v4 = vpop.f32.mrb[10].mxu1  ;;  %754 = vmatprep.mubr.msk.bf16.mxu0 %vm782_vm0, %v781_v0 }
 0x1d2   :  { %v448_v5 = vpack.c.bf16 %v447_v1, %v447_v1  ;;  %v751_v6 = vpop.f32.mrb[11].mxu1  ;;  %v355_v1 = vadd.f32 %v354_v48, %v353_v40 }
 0x1d4   :  { %v453_v8 = vsel %vm154_vm2, %v448_v5, 0 }
 0x1d5   :  { %753 = vmatpush3.bf16.msra.mxu0 %v453_v8 }
 0x1d6   :  { %766 = vmatprep.subr.bf16.mxu0 %v781_v0 }
 0x1d7   :  { %v553_v9 = vpop.f32.mrb[12].mxu1 }
 0x1d8   :  { %v559_v10 = vmul.f32 %v553_v9, %v973_v43  ;;  %755 = vmatmul.mubr.msk.bf16.vlgmr.msra.gmra.mrb[8].mxu0 %vm150_vm3, %v387_v7  ;;  %v764_v11 = vpop.f32.mrb[13].mxu1  ;;  %v605_v51 = vmul.f32 %v553_v9, %v499_v27 }
 0x1d9   :  { %v556_v12 = vpop.f32.mrb[14].mxu1  ;;  %768 = vmatprep.mubr.msk.bf16.mxu0 %vm782_vm0, %v781_v0  ;;  %v359_v0 = vmul.f32 %v219_v58, %v219_v58  ;;  %v356_v11 = vrot.slane %v355_v1, 1 }
 0x1da   :  { %v560_v13 = vpack.c.bf16 %v559_v10, %v559_v10  ;;  %v765_v14 = vpop.f32.mrb[15].mxu1 }
 0x1db   :  { %v360_v29 = vsel %vm348_vm4, %v359_v0, 0.0 }
 0x1dc   :  { %v562_v15 = vsel %vm154_vm2, %v560_v13, 0  ;;  %v361_v36 = vrot.slane %v360_v29, 4 }
 0x1dd   :  { %767 = vmatpush3.bf16.msra.mxu0 %v562_v15 }
 0x1de   :  { %v362_v45 = vadd.f32 %v361_v36, %v360_v29 }
 0x1e0   :  { %769 = vmatmul.mubr.msk.bf16.vlgmr.msra.gmra.mrb[12].mxu0 %vm150_vm3, %v387_v7  ;;  %v363_v56 = vrot.slane %v362_v45, 2 }
 0x1e2   :  { %v364_v6 = vadd.f32 %v363_v56, %v362_v45 }
 0x2a3   :  { %v330_v16 = vpop.f32.mrb[4].mxu0 }
 0x2a4   :  { %v336_v19 = vmul.f32 %v330_v16, %v924_v18  ;;  %v742_v20 = vpop.f32.mrb[5].mxu0  ;;  %v365_v16 = vrot.slane %v364_v6, 1 }
 0x2a5   :  { %v333_v22 = vpop.f32.mrb[6].mxu0 }
 0x2a6   :  { %v338_v23 = vadd.f32 %v337_v17, %v336_v19  ;;  %v743_v24 = vpop.f32.mrb[7].mxu0 }
 0x2a7   :  { %v357_v24 = vadd.f32 %v356_v11, %v355_v1 }
 0x2a8   :  { %v345_v25 = vadd.f32 %v683_v21, %v338_v23 }
 0x2aa   :  { %v346_v28 = vmul.f32 %v345_v25, %v216_v53 }
 0x2ab   :  { %v489_v30 = vpop.f32.mrb[8].mxu0 }
 0x2ac   :  { %v347_v18 = vmax.f32 %v346_v28, 0.0  ;;  %v495_v33 = vmul.f32 %v489_v30, %v973_v43  ;;  %v756_v34 = vpop.f32.mrb[9].mxu0  ;;  %v366_v30 = vadd.f32 %v365_v16, %v364_v6 }
 0x2ad   :  { %v492_v35 = vpop.f32.mrb[10].mxu0 }
 0x2ae   :  { %350 = vst.msk [vmem:[%s1057_s15] sm:$0xf] %vm348_vm4, %v347_v18  ;;  %v502_v37 = vadd.f32 %v501_v32, %v495_v33  ;;  %v757_v38 = vpop.f32.mrb[11].mxu0  ;;  %v376_v39 = vmul.f32 %v347_v18, %v347_v18  ;;  %v368_v42 = vsel %vm348_vm4, %v347_v18, 0.0 }
 0x2af   :  { %v369_v52 = vrot.slane %v368_v42, 4 }
 0x2b0   :  { %v503_v41 = vadd.f32 %v979_v49, %v502_v37  ;;  %v377_v47 = vsel %vm348_vm4, %v376_v39, 0.0 }
 0x2b1   :  { %v378_v58 = vrot.slane %v377_v47, 4  ;;  %v370_v63 = vadd.f32 %v369_v52, %v368_v42 }
 0x2b2   :  { %v509_v46 = vmul.f32 %v507_v44, %v503_v41 }
 0x2b3   :  { %v598_v50 = vpop.f32.mrb[12].mxu0  ;;  %v379_v5 = vadd.f32 %v378_v58, %v377_v47  ;;  %v371_v10 = vrot.slane %v370_v63, 2 }
 0x2b4   :  { %v510_v53 = vmax.f32 %v509_v46, 0.0  ;;  %v604_v54 = vmul.f32 %v598_v50, %v973_v43  ;;  %v770_v55 = vpop.f32.mrb[13].mxu0 }
 0x2b5   :  { %v601_v57 = vpop.f32.mrb[14].mxu0  ;;  %v380_v15 = vrot.slane %v379_v5, 2  ;;  %v372_v23 = vadd.f32 %v371_v10, %v370_v63 }
 0x2b6   :  { %694 = vst.msk [vmem:[%s1055_s14 + $0x4] sm:$0xf] %vm348_vm4, %v510_v53  ;;  %v614_v49 = vsel %vm348_vm4, %v510_v53, 0.0  ;;  %v622_v59 = vmul.f32 %v510_v53, %v510_v53  ;;  %v606_v60 = vadd.f32 %v605_v51, %v604_v54  ;;  %v771_v61 = vpop.f32.mrb[15].mxu0 }
 0x2b7   :  { %v615_v62 = vrot.slane %v614_v49, 4  ;;  %v381_v29 = vadd.f32 %v380_v15, %v379_v5  ;;  %v373_v34 = vrot.slane %v372_v23, 1 }
 0x2b8   :  { %v623_v2 = vsel %vm348_vm4, %v622_v59, 0.0  ;;  %v607_v43 = vadd.f32 %v683_v21, %v606_v60 }
 0x2b9   :  { %v616_v3 = vadd.f32 %v615_v62, %v614_v49  ;;  %v624_v4 = vrot.slane %v623_v2, 4  ;;  %v382_v38 = vrot.slane %v381_v29, 1  ;;  %v374_v42 = vadd.f32 %v373_v34, %v372_v23 }
 0x2ba   :  { %v608_v7 = vmul.f32 %v607_v43, %v507_v44 }
 0x2bb   :  { %v617_v8 = vrot.slane %v616_v3, 2  ;;  %v625_v9 = vadd.f32 %v624_v4, %v623_v2  ;;  %v383_v46 = vadd.f32 %v382_v38, %v381_v29 }
 0x2bc   :  { %v609_v12 = vmax.f32 %v608_v7, 0.0 }
 0x2bd   :  { %v618_v13 = vadd.f32 %v617_v8, %v616_v3  ;;  %v626_v14 = vrot.slane %v625_v9, 2 }
 0x2be   :  { %695 = vst.msk [vmem:[%s1057_s15 + $0x4] sm:$0xf] %vm348_vm4, %v609_v12  ;;  %v631_v17 = vsel %vm348_vm4, %v609_v12, 0.0  ;;  %v639_v19 = vmul.f32 %v609_v12, %v609_v12 }
 0x2bf   :  { %v619_v20 = vrot.slane %v618_v13, 1  ;;  %v627_v21 = vadd.f32 %v626_v14, %v625_v9  ;;  %v632_v22 = vrot.slane %v631_v17, 4 }
 0x2c0   :  { %v640_v0 = vsel %vm348_vm4, %v639_v19, 0.0 }
 0x2c1   :  { %v620_v25 = vadd.f32 %v619_v20, %v618_v13  ;;  %v628_v26 = vrot.slane %v627_v21, 1  ;;  %v633_v27 = vadd.f32 %v632_v22, %v631_v17  ;;  %v641_v28 = vrot.slane %v640_v0, 4 }
 0x2c3   :  { %v621_v31 = vadd.f32 %v620_v25, %v357_v24  ;;  %v629_v32 = vadd.f32 %v628_v26, %v627_v21  ;;  %v634_v18 = vrot.slane %v633_v27, 2  ;;  %v642_v33 = vadd.f32 %v641_v28, %v640_v0 }
 0x2c5   :  { %v630_v35 = vadd.f32 %v629_v32, %v366_v30  ;;  %v635_v36 = vadd.f32 %v634_v18, %v633_v27  ;;  %v643_v37 = vrot.slane %v642_v33, 2 }
 0x2c7   :  { %v649_v39 = vsel %vm648_vm5, %v621_v31, %v630_v35  ;;  %v636_v40 = vrot.slane %v635_v36, 1  ;;  %v644_v41 = vadd.f32 %v643_v37, %v642_v33 }
 0x2c8   :  { %651 = vst.msk [vmem:[%s1058_s16] sm:$0x3] %vm650_vm6, %v649_v39 }
 0x2c9   :  { %v637_v44 = vadd.f32 %v636_v40, %v635_v36  ;;  %v645_v45 = vrot.slane %v644_v41, 1 }
 0x2cb   :  { %v638_v47 = vadd.f32 %v637_v44, %v374_v42  ;;  %v646_v48 = vadd.f32 %v645_v45, %v644_v41 }
 0x2cd   :  { %v647_v50 = vadd.f32 %v646_v48, %v383_v46 }
 0x2cf   :  { %v652_v51 = vsel %vm648_vm5, %v638_v47, %v647_v50 }
 0x2d0   :  { %653 = vst.msk [vmem:[%s1059_s17] sm:$0x3] %vm650_vm6, %v652_v51 }

// kernel: diffpool_forward.19
= control target key start
LH: loop header
LB: loop body
LE: loop exit
PB: predicated region body
PF: predicated region fallthrough
CT: control target
= control target key end

     0   :  { %v713_v0 = vmov 0.0   ;;  %vm714_vm0 = vmmov 0   ;;  %vm98_vm1 = vcmask 1041408   ;;  %vm285_vm2 = vcmask 27648   ;;  %s869_s5 = inlined_call_operand.<no memory space> [shape: f32[1,1], index: 5, kind: input, shape index: {}]   ;;  %s870_s6 = inlined_call_operand.<no memory space> [shape: f32[1,1], index: 6, kind: input, shape index: {}]   ;;  %s871_s0 = inlined_call_operand.vmem [shape: f32[2,4,32], index: 0, kind: input, shape index: {}]   ;;  %s872_s1 = inlined_call_operand.vmem [shape: f32[1,32], index: 1, kind: input, shape index: {}]   ;;  %s873_s2 = inlined_call_operand.vmem [shape: f32[1,32], index: 2, kind: input, shape index: {}]   ;;  %s874_s4 = inlined_call_operand.vmem [shape: f32[2,4,1], index: 4, kind: input, shape index: {}]   ;;  %s875_s3 = inlined_call_operand.vmem [shape: f32[2,4,4], index: 3, kind: input, shape index: {}]   ;;  %s876_s7 = inlined_call_operand.vmem [shape: f32[2,1,32], index: 7, kind: output, shape index: {0}]   ;;  %s877_s8 = inlined_call_operand.vmem [shape: f32[2,1,1], index: 8, kind: output, shape index: {1}]   ;;  %s878_s9 = inlined_call_operand.vmem [shape: f32[1,1,2], index: 9, kind: output, shape index: {2}]  }
   0x1   :  { %640 = vmatprep.subr.bf16.mxu1 %v713_v0  ;;  %v15_v1 = vstv %s869_s5  ;;  %v17_v2 = vstv %s870_s6  ;;  %642 = vmatprep.mubr.msk.bf16.mxu1 %vm714_vm0, %v713_v0  ;;  %v601_v3 = vld [vmem:[%s872_s1] ss:$0 sm:$0xff]  ;;  %v609_v6 = vld [vmem:[%s871_s0 + $0x4] sm:$0xf]  ;;  %vm94_vm3 = vcmask 31744   ;;  %vm273_vm4 = vcmask 3072  }
   0x2   :  { %16 = vst [vmem:[#allocation2] sm:$0x1] %v15_v1  ;;  %18 = vst [vmem:[#allocation3] sm:$0x1] %v17_v2  ;;  %634 = vmatprep.subr.bf16.mxu0 %v713_v0  ;;  %636 = vmatprep.mubr.msk.bf16.mxu0 %vm714_vm0, %v713_v0  ;;  %v602_v4 = vld [vmem:[%s873_s2] ss:$0 sm:$0xff]  ;;  %v325_v8 = vsub.f32 %v609_v6, %v601_v3 }
   0x3   :  { %v38_v5 = vld [vmem:[%s871_s0] sm:$0xf]  ;;  %v610_v12 = vld [vmem:[%s874_s4 + $0x4] sm:$0xf]  ;;  %vm319_vm5 = vcmask 253952   ;;  %vm321_vm6 = vcmask 0  }
   0x4   :  { %v45_v7 = vsub.f32 %v38_v5, %v601_v3  ;;  %v789_v10 = vmul.f32 %v602_v4, %v325_v8  ;;  %v53_v11 = vld [vmem:[%s874_s4] sm:$0xf]  ;;  %v611_v40 = vld [vmem:[%s875_s3 + $0x4] sm:$0xf]  ;;  %vm585_vm7 = vcmask 7168   ;;  %vm587_vm8 = vcmask 8192  }
   0x5   :  { %v68_v25 = vld [vmem:[%s875_s3] sm:$0xf]  ;;  %v357_v41 = vpack.c.bf16 %v611_v40, %v611_v40 }
   0x6   :  { %v52_v9 = vmul.f32 %v602_v4, %v45_v7  ;;  %v284_v26 = vmul.f32 %v68_v25, %v68_v25  ;;  %v93_v36 = vpack.c.bf16 %v68_v25, %v68_v25  ;;  %v356_v52 = vpack.c.bf16 %v789_v10, %v789_v10 }
   0x8   :  { %v92_v13 = vpack.c.bf16 %v52_v9, %v52_v9  ;;  %v286_v29 = vsel %vm285_vm2, %v284_v26, 0.0  ;;  %v362_v58 = vsel %vm98_vm1, %v356_v52, 0 }
   0x9   :  { %v603_v14 = vld [vmem:[#allocation2] ss:$0 sm:$0xff]  ;;  %v604_v15 = vld [vmem:[#allocation3] ss:$0 sm:$0xff]  ;;  %287 = vadd.xlane.f32.xlu1 %v286_v29 }
   0xa   :  { %v60_v16 = vsub.f32 %v53_v11, %v603_v14  ;;  %v329_v17 = vsub.f32 %v610_v12, %v603_v14  ;;  %v100_v18 = vsel %vm98_vm1, %v92_v13, 0 }
   0xb   :  { %635 = vmatpush3.bf16.msra.mxu0 %v100_v18 }
   0xc   :  { %v67_v19 = vmul.f32 %v604_v15, %v60_v16  ;;  %v330_v20 = vmul.f32 %v604_v15, %v329_v17  ;;  %646 = vmatprep.subr.bf16.mxu0 %v713_v0 }
   0xe   :  { %v69_v21 = vsub.f32 %v67_v19, %v67_v19  ;;  %v333_v22 = vsub.f32 %v330_v20, %v330_v20 }
  0x10   :  { %v70_v23 = vmul.f32 1.442695, %v69_v21  ;;  %v334_v24 = vmul.f32 1.442695, %v333_v22 }
  0x12   :  { %701 = vpow2.f32 %v70_v23 }
  0x13   :  { %703 = vpow2.f32 %v334_v24 }
  0x1c   :  { %v702_v27 = vpop.eup %701 }
  0x1d   :  { %v704_v28 = vpop.eup %703  ;;  %705 = vrcp.f32 %v702_v27 }
  0x1e   :  { %707 = vrcp.f32 %v704_v28 }
  0x27   :  { %v706_v30 = vpop.eup %705 }
  0x28   :  { %v708_v31 = vpop.eup %707  ;;  %v74_v32 = vmul.f32 %v706_v30, %v702_v27 }
  0x29   :  { %v803_v34 = vmul.f32 %v708_v31, %v704_v28 }
  0x2a   :  { %v75_v33 = vpack.c.bf16 %v74_v32, %v74_v32  ;;  %v304_v43 = vadd.f32 1e-15, %v74_v32  ;;  %v303_v45 = vsub.f32 0.0, %v74_v32 }
  0x2b   :  { %v339_v37 = vpack.c.bf16 %v803_v34, %v803_v34  ;;  %v564_v59 = vadd.f32 1e-15, %v803_v34  ;;  %v563_v10 = vsub.f32 0.0, %v803_v34 }
  0x2c   :  { %76 = vxpose.xlu0.c.b16.start.end [1/1] (short) (narrow) %v75_v33, 16  ;;  %v146_v35 = vsel %vm98_vm1, %v75_v33, 0  ;;  %709 = vlog2.f32 %v304_v43 }
  0x2d   :  { %641 = vmatpush3.bf16.msra.mxu1 %v146_v35  ;;  %v408_v38 = vsel %vm98_vm1, %v339_v37, 0  ;;  %711 = vlog2.f32 %v564_v59 }
  0x2e   :  { %652 = vmatprep.subr.bf16.mxu1 %v713_v0 }
  0x30   :  { %643 = vmatmul.mubr.msk.bf16.vlgmr.msra.gmra.mrb[0].mxu1 %vm94_vm3, %v93_v36  ;;  %340 = vxpose.xlu0.c.b16.start.end [1/1] (short) (narrow) %v339_v37, 16 }
  0x31   :  { %653 = vmatpush3.bf16.msra.mxu1 %v146_v35  ;;  %654 = vmatprep.mubr.msk.bf16.mxu1 %vm714_vm0, %v713_v0 }
  0x32   :  { %664 = vmatprep.subr.bf16.mxu1 %v713_v0 }
  0x36   :  { %v710_v44 = vpop.eup %709 }
  0x37   :  { %v306_v46 = vmul.f32 0.6931472, %v710_v44  ;;  %v712_v5 = vpop.eup %711 }
  0x38   :  { %v566_v11 = vmul.f32 0.6931472, %v712_v5 }
  0x39   :  { %v307_v47 = vmul.f32 %v306_v46, %v303_v45 }
  0x3a   :  { %v567_v17 = vmul.f32 %v566_v11, %v563_v10 }
  0x3b   :  { %v308_v48 = vsel %vm273_vm4, %v307_v47, 0.0 }
  0x3c   :  { %v568_v18 = vsel %vm273_vm4, %v567_v17, 0.0 }
  0x3d   :  { %309 = vadd.xlane.f32.xlu0 %v308_v48 }
  0x92   :  { %v84_v39 = vpop.trf.xlu0 }
  0x93   :  { %637 = vmatmul.mubr.msk.bf16.vlgmr.msra.gmra.mrb[0].mxu0 %vm94_vm3, %v84_v39  ;;  %655 = vmatmul.mubr.msk.bf16.vlgmr.msra.gmra.mrb[4].mxu1 %vm94_vm3, %v84_v39 }
  0x94   :  { %665 = vmatpush3.bf16.msra.mxu1 %v408_v38  ;;  %666 = vmatprep.mubr.msk.bf16.mxu1 %vm714_vm0, %v713_v0 }
  0x95   :  { %648 = vmatprep.mubr.msk.bf16.mxu0 %vm714_vm0, %v713_v0  ;;  %676 = vmatprep.subr.bf16.mxu1 %v713_v0 }
  0x96   :  { %v348_v42 = vpop.trf.xlu0  ;;  %v288_v19 = vpop.xlane.xlu1 %287 }
  0x97   :  { %v289_v21 = vrot.slane %v288_v19, 4 }
  0x99   :  { %v290_v23 = vadd.f32 %v289_v21, %v288_v19 }
  0x9b   :  { %667 = vmatmul.mubr.msk.bf16.vlgmr.msra.gmra.mrb[8].mxu1 %vm94_vm3, %v357_v41  ;;  %v291_v29 = vrot.slane %v290_v23, 2 }
  0x9c   :  { %677 = vmatpush3.bf16.msra.mxu1 %v408_v38  ;;  %678 = vmatprep.mubr.msk.bf16.mxu1 %vm714_vm0, %v713_v0 }
  0x9d   :  { %v292_v33 = vadd.f32 %v291_v29, %v290_v23 }
  0x9f   :  { %v293_v37 = vrot.slane %v292_v33, 1 }
  0xa1   :  { %v294_v41 = vadd.f32 %v293_v37, %v292_v33 }
  0xa3   :  { %679 = vmatmul.mubr.msk.bf16.vlgmr.msra.gmra.mrb[12].mxu1 %vm94_vm3, %v348_v42 }
  0xca   :  { %v310_v20 = vpop.xlane.xlu0 %309 }
  0xcb   :  { %v311_v22 = vrot.slane %v310_v20, 4 }
  0xcd   :  { %v312_v26 = vadd.f32 %v311_v22, %v310_v20 }
  0xcf   :  { %v313_v31 = vrot.slane %v312_v26, 2 }
  0xd1   :  { %v314_v35 = vadd.f32 %v313_v31, %v312_v26 }
 0x103   :  { %v182_v49 = vpop.f32.mrb[0].mxu1 }
 0x104   :  { %v188_v50 = vpack.c.bf16 %v182_v49, %v182_v49  ;;  %v272_v51 = vmul.f32 %v182_v49, %v74_v32  ;;  %v644_v53 = vpop.f32.mrb[1].mxu1 }
 0x105   :  { %v185_v54 = vpop.f32.mrb[2].mxu1 }
 0x106   :  { %v274_v55 = vsel %vm273_vm4, %v272_v51, 0.0  ;;  %v190_v56 = vsel %vm98_vm1, %v188_v50, 0  ;;  %v645_v57 = vpop.f32.mrb[3].mxu1 }
 0x107   :  { %275 = vadd.xlane.f32.xlu1 %v274_v55  ;;  %647 = vmatpush3.bf16.msra.mxu0 %v190_v56 }
 0x108   :  { %658 = vmatprep.subr.bf16.mxu0 %v713_v0 }
 0x10a   :  { %649 = vmatmul.mubr.msk.bf16.vlgmr.msra.gmra.mrb[4].mxu0 %vm94_vm3, %v84_v39  ;;  %v315_v39 = vrot.slane %v314_v35, 1 }
 0x10b   :  { %659 = vmatpush3.bf16.msra.mxu0 %v362_v58  ;;  %660 = vmatprep.mubr.msk.bf16.mxu0 %vm714_vm0, %v713_v0 }
 0x10c   :  { %670 = vmatprep.subr.bf16.mxu0 %v713_v0  ;;  %v316_v43 = vadd.f32 %v315_v39, %v314_v35 }
 0x112   :  { %661 = vmatmul.mubr.msk.bf16.vlgmr.msra.gmra.mrb[8].mxu0 %vm94_vm3, %v348_v42 }
 0x113   :  { %672 = vmatprep.mubr.msk.bf16.mxu0 %vm714_vm0, %v713_v0  ;;  %v545_v0 = vmul.f32 %v611_v40, %v611_v40 }
 0x115   :  { %v546_v16 = vsel %vm285_vm2, %v545_v0, 0.0 }
 0x166   :  { %v136_v60 = vpop.f32.mrb[0].mxu0  ;;  %v266_v61 = vpop.f32.mrb[4].mxu1 }
 0x167   :  { %320 = vst.msk [vmem:[%s876_s7] sm:$0x1] %vm319_vm5, %v136_v60  ;;  %v638_v62 = vpop.f32.mrb[1].mxu0  ;;  %v656_v63 = vpop.f32.mrb[5].mxu1  ;;  %v298_v44 = vmul.f32 %v266_v61, %v266_v61 }
 0x168   :  { %v139_v1 = vpop.f32.mrb[2].mxu0  ;;  %v269_v2 = vpop.f32.mrb[6].mxu1 }
 0x169   :  { %v639_v3 = vpop.f32.mrb[3].mxu0  ;;  %v657_v4 = vpop.f32.mrb[7].mxu1 }
 0x16e   :  { %v444_v6 = vpop.f32.mrb[8].mxu1 }
 0x16f   :  { %v450_v7 = vpack.c.bf16 %v444_v6, %v444_v6  ;;  %v534_v8 = vmul.f32 %v444_v6, %v803_v34  ;;  %v668_v9 = vpop.f32.mrb[9].mxu1 }
 0x170   :  { %v447_v12 = vpop.f32.mrb[10].mxu1 }
 0x171   :  { %v669_v13 = vpop.f32.mrb[11].mxu1  ;;  %v535_v14 = vsel %vm273_vm4, %v534_v8, 0.0  ;;  %v452_v15 = vsel %vm98_vm1, %v450_v7, 0 }
 0x172   :  { %536 = vadd.xlane.f32.xlu1 %v535_v14  ;;  %671 = vmatpush3.bf16.msra.mxu0 %v452_v15 }
 0x175   :  { %673 = vmatmul.mubr.msk.bf16.vlgmr.msra.gmra.mrb[12].mxu0 %vm94_vm3, %v348_v42 }
 0x176   :  { %547 = vadd.xlane.f32.xlu1 %v546_v16  ;;  %v528_v24 = vpop.f32.mrb[12].mxu1 }
 0x177   :  { %v680_v25 = vpop.f32.mrb[13].mxu1  ;;  %v558_v0 = vmul.f32 %v528_v24, %v528_v24 }
 0x178   :  { %v531_v27 = vpop.f32.mrb[14].mxu1 }
 0x179   :  { %v681_v28 = vpop.f32.mrb[15].mxu1 }
 0x17a   :  { %569 = vadd.xlane.f32.xlu1 %v568_v18 }
 0x194   :  { %v276_v30 = vpop.xlane.xlu1 %275 }
 0x195   :  { %v277_v32 = vrot.slane %v276_v30, 4 }
 0x197   :  { %v278_v34 = vadd.f32 %v277_v32, %v276_v30 }
 0x199   :  { %v279_v36 = vrot.slane %v278_v34, 2 }
 0x19b   :  { %v280_v38 = vadd.f32 %v279_v36, %v278_v34 }
 0x19d   :  { %v281_v40 = vrot.slane %v280_v38, 1 }
 0x19f   :  { %v282_v42 = vadd.f32 %v281_v40, %v280_v38 }
 0x1a1   :  { %682 = vpush %v282_v42 }
 0x1a2   :  { %684 = vpush %v294_v41 }
 0x1a3   :  { %686 = vpush %v298_v44 }
 0x1a4   :  { %688 = vpush %v316_v43 }
 0x1dd   :  { %v226_v45 = vpop.f32.mrb[4].mxu0 }
 0x1de   :  { %322 = vst.msk [vmem:[%s877_s8] sm:$0x1] %vm321_vm6, %v226_v45  ;;  %v650_v46 = vpop.f32.mrb[5].mxu0 }
 0x1df   :  { %v229_v47 = vpop.f32.mrb[6].mxu0 }
 0x1e0   :  { %v651_v48 = vpop.f32.mrb[7].mxu0 }
 0x1e5   :  { %v398_v49 = vpop.f32.mrb[8].mxu0 }
 0x1e6   :  { %616 = vst.msk [vmem:[%s876_s7 + $0x1] sm:$0x1] %vm319_vm5, %v398_v49  ;;  %v662_v50 = vpop.f32.mrb[9].mxu0  ;;  %s683_s7 = spop %682 }
 0x1e7   :  { %v401_v51 = vpop.f32.mrb[10].mxu0  ;;  %s685_s28 = spop %684  ;;  %s296_s29 = smul.f32 2.0, %s683_s7 }
 0x1e8   :  { %v663_v52 = vpop.f32.mrb[11].mxu0  ;;  %s687_s30 = spop %686 }
 0x1e9   :  { %s689_s10 = spop %688  ;;  %s297_s12 = ssub.f32 %s685_s28, %s296_s29 }
 0x1eb   :  { %s301_s6 = sadd.f32 %s687_s30, %s297_s12 }
 0x1ff   :  { %v537_v53 = vpop.xlane.xlu1 %536 }
 0x200   :  { %v538_v54 = vrot.slane %v537_v53, 4 }
 0x202   :  { %v539_v55 = vadd.f32 %v538_v54, %v537_v53 }
 0x203   :  { %v548_v56 = vpop.xlane.xlu1 %547 }
 0x204   :  { %v540_v57 = vrot.slane %v539_v55, 2  ;;  %v549_v58 = vrot.slane %v548_v56, 4 }
 0x206   :  { %v550_v59 = vadd.f32 %v549_v58, %v548_v56  ;;  %v541_v60 = vadd.f32 %v540_v57, %v539_v55 }
 0x207   :  { %v570_v61 = vpop.xlane.xlu1 %569 }
 0x208   :  { %v551_v62 = vrot.slane %v550_v59, 2  ;;  %v571_v63 = vrot.slane %v570_v61, 4  ;;  %v542_v1 = vrot.slane %v541_v60, 1 }
 0x20a   :  { %v572_v2 = vadd.f32 %v571_v63, %v570_v61  ;;  %v543_v3 = vadd.f32 %v542_v1, %v541_v60  ;;  %v552_v4 = vadd.f32 %v551_v62, %v550_v59 }
 0x20c   :  { %v573_v5 = vrot.slane %v572_v2, 2  ;;  %690 = vpush %v543_v3  ;;  %v553_v6 = vrot.slane %v552_v4, 1 }
 0x20e   :  { %v574_v7 = vadd.f32 %v573_v5, %v572_v2  ;;  %v554_v8 = vadd.f32 %v553_v6, %v552_v4 }
 0x210   :  { %692 = vpush %v554_v8  ;;  %v575_v9 = vrot.slane %v574_v7, 1 }
 0x211   :  { %694 = vpush %v558_v0 }
 0x212   :  { %v576_v10 = vadd.f32 %v575_v9, %v574_v7 }
 0x214   :  { %696 = vpush %v576_v10 }
 0x23d   :  { %s691_s11 = spop %690 }
 0x23e   :  { %s556_s13 = smul.f32 2.0, %s691_s11 }
 0x241   :  { %s693_s14 = spop %692 }
 0x242   :  { %s557_s5 = ssub.f32 %s693_s14, %s556_s13  ;;  %s695_s15 = spop %694 }
 0x244   :  { %s561_s16 = sadd.f32 %s695_s15, %s557_s5 }
 0x245   :  { %s697_s17 = spop %696 }
 0x246   :  { %s562_s18 = sadd.f32 %s561_s16, %s301_s6 }
 0x247   :  { %s578_s1 = sadd.f32 %s697_s17, %s689_s10 }
 0x248   :  { %v583_v11 = vstv %s562_s18  ;;  %v488_v12 = vpop.f32.mrb[12].mxu0 }
 0x249   :  { %v584_v13 = vstv %s578_s1  ;;  %617 = vst.msk [vmem:[%s877_s8 + $0x1] sm:$0x1] %vm321_vm6, %v488_v12  ;;  %v674_v14 = vpop.f32.mrb[13].mxu0 }
 0x24a   :  { %v586_v15 = vsel %vm585_vm7, %v583_v11, %v584_v13  ;;  %v491_v16 = vpop.f32.mrb[14].mxu0 }
 0x24b   :  { %588 = vst.msk [vmem:[%s878_s9] sm:$0x1] %vm587_vm8, %v586_v15  ;;  %v675_v17 = vpop.f32.mrb[15].mxu0 }

// kernel: diffpool_forward.18
= control target key start
LH: loop header
LB: loop body
LE: loop exit
PB: predicated region body
PF: predicated region fallthrough
CT: control target
= control target key end

     0   :  { %v785_v0 = vmov 0.0   ;;  %vm786_vm0 = vmmov 0   ;;  %vm101_vm1 = vcmask 261120   ;;  %v787_v13 = vmov 0   ;;  %s1054_s6 = inlined_call_operand.vmem [shape: bf16[32,1], index: 6, kind: input, shape index: {}]   ;;  %s1055_s0 = inlined_call_operand.vmem [shape: f32[2,4,32], index: 0, kind: input, shape index: {}]   ;;  %s1056_s8 = inlined_call_operand.vmem [shape: f32[1,32], index: 8, kind: input, shape index: {}]   ;;  %s1057_s9 = inlined_call_operand.vmem [shape: f32[1,32], index: 9, kind: input, shape index: {}]   ;;  %s1058_s10 = inlined_call_operand.vmem [shape: bf16[32,32], index: 10, kind: input, shape index: {}]   ;;  %s1059_s4 = inlined_call_operand.vmem [shape: f32[2,4,1], index: 4, kind: input, shape index: {}]   ;;  %s1060_s5 = inlined_call_operand.vmem [shape: f32[2,4,1], index: 5, kind: input, shape index: {}]   ;;  %s1061_s7 = inlined_call_operand.<no memory space> [shape: f32[1,1], index: 7, kind: input, shape index: {}]   ;;  %s1062_s3 = inlined_call_operand.vmem [shape: f32[2,4,1], index: 3, kind: input, shape index: {}]   ;;  %s1063_s2 = inlined_call_operand.vmem [shape: f32[2,4,4], index: 2, kind: input, shape index: {}]   ;;  %s1064_s1 = inlined_call_operand.vmem [shape: f32[2,4,32], index: 1, kind: input, shape index: {}]   ;;  %s1065_s12 = inlined_call_operand.vmem [shape: f32[1,32], index: 12, kind: input, shape index: {}]   ;;  %s1066_s13 = inlined_call_operand.vmem [shape: f32[1,32], index: 13, kind: input, shape index: {}]   ;;  %s1067_s14 = inlined_call_operand.vmem [shape: f32[2,4,1], index: 14, kind: output, shape index: {0}]   ;;  %s1068_s11 = inlined_call_operand.vmem [shape: f32[1,32], index: 11, kind: input, shape index: {}]   ;;  %s1069_s15 = inlined_call_operand.vmem [shape: f32[2,4,32], index: 15, kind: output, shape index: {1}]   ;;  %s1070_s16 = inlined_call_operand.vmem [shape: f32[1,2,1], index: 16, kind: output, shape index: {2}]   ;;  %s1071_s17 = inlined_call_operand.vmem [shape: f32[1,2,32], index: 17, kind: output, shape index: {3}]  }
   0x1   :  { %1074 = sst [smem:[#allocation3_spill]] %s1054_s6  ;;  %720 = vmatprep.subr.bf16.mxu0 %v785_v0  ;;  %724 = vmatprep.mubr.msk.bf16.mxu0 %vm786_vm0, %v785_v0  ;;  %v674_v3 = vld [vmem:[%s1056_s8] ss:$0 sm:$0xff]  ;;  %v23_v15 = vstv %s1061_s7  ;;  %v933_v16 = vld [vmem:[%s1059_s4 + $0x4] sm:$0xf]  ;;  %vm151_vm2 = vcmask 1041408  }
   0x2   :  { %1075 = sst [smem:[#allocation4_spill]] %s1055_s0  ;;  %s1076_s26 = sld [smem:[#allocation3_spill]]  ;;  %728 = vmatprep.subr.bf16.mxu1 %v785_v0  ;;  %730 = vmatprep.mubr.msk.bf16.mxu1 %vm786_vm0, %v785_v0  ;;  %v675_v4 = vld [vmem:[%s1057_s9] ss:$0 sm:$0xff]  ;;  %v938_v17 = vld [vmem:[%s1060_s5 + $0x4] sm:$0xf] }
   0x3   :  { %s1077_s20 = sld [smem:[#allocation4_spill]]  ;;  %v918_v12 = vld [vmem:[%s1059_s4] sm:$0xf]  ;;  %779 = vset.pattern.permute.xlu0 %v787_v13  ;;  %780 = vset.pattern.permute.xlu1 %v787_v13  ;;  %24 = vst [vmem:[#allocation2] sm:$0x1] %v23_v15  ;;  %vm147_vm3 = vcmask 31744  }
   0x4   :  { %v923_v14 = vld [vmem:[%s1060_s5] sm:$0xf]  ;;  %280 = vperm.xlu0 %779, %v918_v12   ;;  %v784_v34 = vld [vmem:[%s1058_s10 + $0x8] sm:$0xff]   ;;  %v695_v36 = vld [vmem:[%s1064_s1 + $0x4] sm:$0xf]  ;;  %vm350_vm4 = vcmask 3072  }
   0x5   :  { %331 = vperm.xlu1 %780, %v923_v14   ;;  %v70_v18 = vld [vmem:[%s1062_s3] sm:$0xf]  ;;  %v991_v41 = vld [vmem:[%s1062_s3 + $0x4] sm:$0xf]  ;;  %vm352_vm5 = vcmask 257024   ;;  %vm651_vm6 = vcmask 1040384  }
   0x6   :  { %v68_v22 = vld [vmem:[%s1063_s2] sm:$0xf]  ;;  %vm653_vm7 = vcmask 1024   ;;  %vm656_vm8 = vcmask 254976  }
   0x7   :  { %v681_v24 = vld [vmem:[%s1065_s12] ss:$0 sm:$0xff]  ;;  %v69_v29 = vpack.c.bf16 %v68_v22, %v68_v22 }
   0x8   :  { %v882_v1 = vld [vmem:[%s1076_s26] sm:$0xff]   ;;  %v889_v2 = vld [vmem:[%s1076_s26 + $0x8] sm:$0xff]   ;;  %549 = vperm.xlu0 %779, %v933_v16   ;;  %v501_v38 = vsub.f32 %v695_v36, %v681_v24 }
   0x9   :  { %721 = vmatpush3.bf16.msra.mxu0 %v882_v1  ;;  %v73_v5 = vld [vmem:[%s1077_s20] sm:$0xf]  ;;  %v692_v7 = vld [vmem:[%s1077_s20 + $0x4] sm:$0xf]  ;;  %600 = vperm.xlu1 %780, %v938_v17  }
   0xa   :  { %722 = vmatprep.subr.bf16.mxu0 %v785_v0  ;;  %v80_v6 = vsub.f32 %v73_v5, %v674_v3  ;;  %v399_v8 = vsub.f32 %v692_v7, %v674_v3  ;;  %v207_v25 = vld [vmem:[%s1064_s1] sm:$0xf] }
   0xb   :  { %v214_v30 = vsub.f32 %v207_v25, %v681_v24  ;;  %v783_v31 = vld [vmem:[%s1058_s10] sm:$0xff]  }
   0xc   :  { %v87_v9 = vmul.f32 %v675_v4, %v80_v6  ;;  %v909_v10 = vmul.f32 %v675_v4, %v399_v8  ;;  %345 = vperm.xlu0 %779, %v70_v18   ;;  %v682_v32 = vld [vmem:[%s1066_s13] ss:$0 sm:$0xff] }
   0xd   :  { %723 = vmatpush3.bf16.msra.mxu0 %v889_v2  ;;  %v221_v33 = vmul.f32 %v682_v32, %v214_v30  ;;  %v502_v39 = vmul.f32 %v682_v32, %v501_v38  ;;  %608 = vperm.xlu1 %780, %v991_v41   ;;  %v996_v46 = vld [vmem:[#allocation2] ss:$0 sm:$0xff] }
   0xe   :  { %v88_v11 = vpack.c.bf16 %v87_v9, %v87_v9  ;;  %742 = vmatprep.subr.bf16.mxu0 %v785_v0  ;;  %v401_v37 = vpack.c.bf16 %v909_v10, %v909_v10 }
   0xf   :  { %v222_v35 = vpack.c.bf16 %v221_v33, %v221_v33  ;;  %v503_v40 = vpack.c.bf16 %v502_v39, %v502_v39 }
  0x10   :  { %725 = vmatmul.mubr.msk.bf16.vlgmr.msra.gmra.mrb[0].mxu0 %vm101_vm1, %v88_v11 }
  0x11   :  { %744 = vmatprep.mubr.msk.bf16.mxu0 %vm786_vm0, %v785_v0 }
  0x83   :  { %v281_v52 = vpop.permute.xlu0 %280 }
  0x84   :  { %v332_v15 = vpop.permute.xlu1 %331 }
  0x87   :  { %v550_v7 = vpop.permute.xlu0 %549 }
  0xe3   :  { %v139_v19 = vpop.f32.mrb[0].mxu0 }
  0xe4   :  { %v145_v20 = vmul.f32 %v139_v19, %v918_v12  ;;  %v726_v21 = vpop.f32.mrb[1].mxu0  ;;  %v196_v43 = vmul.f32 %v139_v19, %v923_v14 }
  0xe5   :  { %v142_v23 = vpop.f32.mrb[2].mxu0 }
  0xe6   :  { %v146_v26 = vpack.c.bf16 %v145_v20, %v145_v20  ;;  %v727_v27 = vpop.f32.mrb[3].mxu0  ;;  %v687_v23 = vld [vmem:[%s1068_s11] ss:$0 sm:$0xff] }
  0xe8   :  { %v153_v28 = vsel %vm151_vm2, %v146_v26, 0 }
  0xe9   :  { %729 = vmatpush3.bf16.msra.mxu1 %v153_v28  ;;  %v346_v28 = vpop.permute.xlu0 %345 }
  0xea   :  { %734 = vmatprep.subr.bf16.mxu1 %v785_v0 }
  0xec   :  { %731 = vmatmul.mubr.msk.bf16.vlgmr.msra.gmra.mrb[0].mxu1 %vm147_vm3, %v69_v29 }
  0xed   :  { %735 = vmatpush3.bf16.msra.mxu1 %v783_v31  ;;  %738 = vmatprep.mubr.msk.bf16.mxu1 %vm786_vm0, %v785_v0 }
  0xee   :  { %736 = vmatprep.subr.bf16.mxu1 %v785_v0 }
  0xf1   :  { %737 = vmatpush3.bf16.msra.mxu1 %v784_v34 }
  0xf2   :  { %748 = vmatprep.subr.bf16.mxu1 %v785_v0 }
  0xf4   :  { %739 = vmatmul.mubr.msk.bf16.vlgmr.msra.gmra.mrb[4].mxu1 %vm101_vm1, %v222_v35 }
  0xf5   :  { %749 = vmatpush3.bf16.msra.mxu1 %v882_v1  ;;  %752 = vmatprep.mubr.msk.bf16.mxu1 %vm786_vm0, %v785_v0  ;;  %v688_v1 = vld [vmem:[%s1063_s2 + $0x4] sm:$0xf] }
  0xf6   :  { %750 = vmatprep.subr.bf16.mxu1 %v785_v0  ;;  %v390_v5 = vpack.c.bf16 %v688_v1, %v688_v1 }
  0xf9   :  { %751 = vmatpush3.bf16.msra.mxu1 %v889_v2 }
  0xfa   :  { %762 = vmatprep.subr.bf16.mxu1 %v785_v0 }
  0xfc   :  { %753 = vmatmul.mubr.msk.bf16.vlgmr.msra.gmra.mrb[8].mxu1 %vm101_vm1, %v401_v37 }
  0xfd   :  { %763 = vmatpush3.bf16.msra.mxu1 %v783_v31  ;;  %766 = vmatprep.mubr.msk.bf16.mxu1 %vm786_vm0, %v785_v0 }
  0xfe   :  { %764 = vmatprep.subr.bf16.mxu1 %v785_v0 }
 0x101   :  { %765 = vmatpush3.bf16.msra.mxu1 %v784_v34 }
 0x104   :  { %767 = vmatmul.mubr.msk.bf16.vlgmr.msra.gmra.mrb[12].mxu1 %vm101_vm1, %v503_v40 }
 0x1bf   :  { %v189_v42 = vpop.f32.mrb[0].mxu1 }
 0x1c0   :  { %v195_v44 = vmul.f32 %v189_v42, %v918_v12  ;;  %v732_v45 = vpop.f32.mrb[1].mxu1 }
 0x1c1   :  { %v192_v47 = vpop.f32.mrb[2].mxu1 }
 0x1c2   :  { %v197_v48 = vadd.f32 %v196_v43, %v195_v44  ;;  %v733_v49 = vpop.f32.mrb[3].mxu1  ;;  %v601_v47 = vpop.permute.xlu1 %600 }
 0x1c4   :  { %v204_v50 = vadd.f32 %v996_v46, %v197_v48 }
 0x1c6   :  { %v205_v51 = vmul.f32 %v204_v50, %v70_v18 }
 0x1c7   :  { %v272_v53 = vpop.f32.mrb[4].mxu1 }
 0x1c8   :  { %v206_v54 = vmax.f32 %v205_v51, 0.0  ;;  %v283_v55 = vmul.f32 %v281_v52, %v272_v53  ;;  %v740_v56 = vpop.f32.mrb[5].mxu1  ;;  %v334_v19 = vmul.f32 %v332_v15, %v272_v53 }
 0x1c9   :  { %v275_v57 = vpop.f32.mrb[6].mxu1 }
 0x1ca   :  { %351 = vst.msk [vmem:[%s1067_s14] sm:$0xf] %vm350_vm4, %v206_v54  ;;  %v284_v58 = vpack.c.bf16 %v283_v55, %v283_v55  ;;  %v741_v59 = vpop.f32.mrb[7].mxu1  ;;  %v362_v24 = vmul.f32 %v206_v54, %v206_v54  ;;  %v354_v26 = vsel %vm350_vm4, %v206_v54, 0.0 }
 0x1cb   :  { %v355_v31 = vrot.slane %v354_v26, 4 }
 0x1cc   :  { %v286_v60 = vsel %vm151_vm2, %v284_v58, 0 }
 0x1cd   :  { %743 = vmatpush3.bf16.msra.mxu0 %v286_v60  ;;  %v356_v42 = vadd.f32 %v355_v31, %v354_v26 }
 0x1ce   :  { %756 = vmatprep.subr.bf16.mxu0 %v785_v0 }
 0x1cf   :  { %v439_v61 = vpop.f32.mrb[8].mxu1  ;;  %v357_v48 = vrot.slane %v356_v42, 2 }
 0x1d0   :  { %v445_v62 = vmul.f32 %v933_v16, %v439_v61  ;;  %745 = vmatmul.mubr.msk.bf16.vlgmr.msra.gmra.mrb[4].mxu0 %vm147_vm3, %v69_v29  ;;  %v754_v63 = vpop.f32.mrb[9].mxu1  ;;  %v363_v29 = vsel %vm350_vm4, %v362_v24, 0.0  ;;  %v494_v33 = vmul.f32 %v938_v17, %v439_v61 }
 0x1d1   :  { %v442_v2 = vpop.f32.mrb[10].mxu1  ;;  %758 = vmatprep.mubr.msk.bf16.mxu0 %vm786_vm0, %v785_v0  ;;  %v364_v37 = vrot.slane %v363_v29, 4 }
 0x1d2   :  { %v446_v3 = vpack.c.bf16 %v445_v62, %v445_v62  ;;  %v755_v4 = vpop.f32.mrb[11].mxu1  ;;  %v358_v62 = vadd.f32 %v357_v48, %v356_v42 }
 0x1d3   :  { %v365_v45 = vadd.f32 %v364_v37, %v363_v29 }
 0x1d4   :  { %v451_v6 = vsel %vm151_vm2, %v446_v3, 0 }
 0x1d5   :  { %757 = vmatpush3.bf16.msra.mxu0 %v451_v6  ;;  %v366_v56 = vrot.slane %v365_v45, 2 }
 0x1d6   :  { %770 = vmatprep.subr.bf16.mxu0 %v785_v0 }
 0x1d7   :  { %v541_v8 = vpop.f32.mrb[12].mxu1  ;;  %v367_v6 = vadd.f32 %v366_v56, %v365_v45 }
 0x1d8   :  { %v552_v9 = vmul.f32 %v550_v7, %v541_v8  ;;  %759 = vmatmul.mubr.msk.bf16.vlgmr.msra.gmra.mrb[8].mxu0 %vm147_vm3, %v390_v5  ;;  %v768_v10 = vpop.f32.mrb[13].mxu1  ;;  %v603_v51 = vmul.f32 %v601_v47, %v541_v8 }
 0x1d9   :  { %v544_v11 = vpop.f32.mrb[14].mxu1  ;;  %772 = vmatprep.mubr.msk.bf16.mxu0 %vm786_vm0, %v785_v0 }
 0x1da   :  { %v553_v12 = vpack.c.bf16 %v552_v9, %v552_v9  ;;  %v769_v13 = vpop.f32.mrb[15].mxu1  ;;  %v359_v11 = vrot.slane %v358_v62, 1 }
 0x1dc   :  { %v555_v14 = vsel %vm151_vm2, %v553_v12, 0 }
 0x1dd   :  { %771 = vmatpush3.bf16.msra.mxu0 %v555_v14 }
 0x1e0   :  { %773 = vmatmul.mubr.msk.bf16.vlgmr.msra.gmra.mrb[12].mxu0 %vm147_vm3, %v390_v5  ;;  %v609_v5 = vpop.permute.xlu1 %608 }
 0x2a3   :  { %v322_v18 = vpop.f32.mrb[4].mxu0 }
 0x2a4   :  { %v328_v20 = vmul.f32 %v322_v18, %v281_v52  ;;  %v746_v21 = vpop.f32.mrb[5].mxu0  ;;  %v368_v18 = vrot.slane %v367_v6, 1 }
 0x2a5   :  { %v325_v22 = vpop.f32.mrb[6].mxu0 }
 0x2a6   :  { %v335_v25 = vadd.f32 %v334_v19, %v328_v20  ;;  %v747_v0 = vpop.f32.mrb[7].mxu0  ;;  %v369_v31 = vadd.f32 %v368_v18, %v367_v6 }
 0x2a8   :  { %v342_v27 = vadd.f32 %v687_v23, %v335_v25  ;;  %v360_v25 = vadd.f32 %v359_v11, %v358_v62 }
 0x2aa   :  { %v348_v30 = vmul.f32 %v346_v28, %v342_v27 }
 0x2ab   :  { %v487_v32 = vpop.f32.mrb[8].mxu0 }
 0x2ac   :  { %v493_v34 = vmul.f32 %v933_v16, %v487_v32  ;;  %v760_v35 = vpop.f32.mrb[9].mxu0  ;;  %v349_v36 = vmax.f32 %v348_v30, 0.0 }
 0x2ad   :  { %v490_v38 = vpop.f32.mrb[10].mxu0 }
 0x2ae   :  { %v495_v39 = vadd.f32 %v494_v33, %v493_v34  ;;  %v761_v40 = vpop.f32.mrb[11].mxu0  ;;  %353 = vst.msk [vmem:[%s1069_s15] sm:$0xf] %vm352_vm5, %v349_v36  ;;  %v379_v43 = vmul.f32 %v349_v36, %v349_v36  ;;  %v371_v17 = vsel %vm352_vm5, %v349_v36, 0.0 }
 0x2af   :  { %v372_v54 = vrot.slane %v371_v17, 4 }
 0x2b0   :  { %v496_v44 = vadd.f32 %v996_v46, %v495_v39  ;;  %v380_v50 = vsel %vm352_vm5, %v379_v43, 0.0 }
 0x2b1   :  { %v381_v59 = vrot.slane %v380_v50, 4  ;;  %v373_v1 = vadd.f32 %v372_v54, %v371_v17 }
 0x2b2   :  { %v497_v16 = vmul.f32 %v991_v41, %v496_v44 }
 0x2b3   :  { %v591_v49 = vpop.f32.mrb[12].mxu0  ;;  %v374_v12 = vrot.slane %v373_v1, 2 }
 0x2b4   :  { %v498_v52 = vmax.f32 %v497_v16, 0.0  ;;  %v597_v53 = vmul.f32 %v591_v49, %v550_v7  ;;  %v774_v55 = vpop.f32.mrb[13].mxu0  ;;  %v382_v7 = vadd.f32 %v381_v59, %v380_v50 }
 0x2b5   :  { %v594_v57 = vpop.f32.mrb[14].mxu0  ;;  %v375_v0 = vadd.f32 %v374_v12, %v373_v1 }
 0x2b6   :  { %698 = vst.msk [vmem:[%s1067_s14 + $0x4] sm:$0xf] %vm350_vm4, %v498_v52  ;;  %v617_v46 = vsel %vm350_vm4, %v498_v52, 0.0  ;;  %v625_v58 = vmul.f32 %v498_v52, %v498_v52  ;;  %v604_v41 = vadd.f32 %v603_v51, %v597_v53  ;;  %v775_v60 = vpop.f32.mrb[15].mxu0  ;;  %v383_v19 = vrot.slane %v382_v7, 2 }
 0x2b7   :  { %v618_v61 = vrot.slane %v617_v46, 4  ;;  %v376_v38 = vrot.slane %v375_v0, 1 }
 0x2b8   :  { %v626_v63 = vsel %vm350_vm4, %v625_v58, 0.0  ;;  %v605_v2 = vadd.f32 %v687_v23, %v604_v41  ;;  %v384_v32 = vadd.f32 %v383_v19, %v382_v7 }
 0x2b9   :  { %v619_v3 = vadd.f32 %v618_v61, %v617_v46  ;;  %v627_v4 = vrot.slane %v626_v63, 4  ;;  %v377_v47 = vadd.f32 %v376_v38, %v375_v0 }
 0x2ba   :  { %v611_v8 = vmul.f32 %v609_v5, %v605_v2  ;;  %v385_v42 = vrot.slane %v384_v32, 1 }
 0x2bb   :  { %v620_v9 = vrot.slane %v619_v3, 2  ;;  %v628_v10 = vadd.f32 %v627_v4, %v626_v63 }
 0x2bc   :  { %v612_v13 = vmax.f32 %v611_v8, 0.0  ;;  %v386_v48 = vadd.f32 %v385_v42, %v384_v32 }
 0x2bd   :  { %v621_v14 = vadd.f32 %v620_v9, %v619_v3  ;;  %v629_v15 = vrot.slane %v628_v10, 2 }
 0x2be   :  { %699 = vst.msk [vmem:[%s1069_s15 + $0x4] sm:$0xf] %vm352_vm5, %v612_v13  ;;  %v634_v20 = vsel %vm352_vm5, %v612_v13, 0.0  ;;  %v642_v21 = vmul.f32 %v612_v13, %v612_v13 }
 0x2bf   :  { %v622_v22 = vrot.slane %v621_v14, 1  ;;  %v630_v23 = vadd.f32 %v629_v15, %v628_v10  ;;  %v635_v24 = vrot.slane %v634_v20, 4 }
 0x2c0   :  { %v643_v26 = vsel %vm352_vm5, %v642_v21, 0.0 }
 0x2c1   :  { %v623_v27 = vadd.f32 %v622_v22, %v621_v14  ;;  %v631_v28 = vrot.slane %v630_v23, 1  ;;  %v636_v29 = vadd.f32 %v635_v24, %v634_v20  ;;  %v644_v30 = vrot.slane %v643_v26, 4 }
 0x2c3   :  { %v624_v33 = vadd.f32 %v623_v27, %v360_v25  ;;  %v632_v34 = vadd.f32 %v631_v28, %v630_v23  ;;  %v637_v35 = vrot.slane %v636_v29, 2  ;;  %v645_v36 = vadd.f32 %v644_v30, %v643_v26 }
 0x2c5   :  { %v633_v37 = vadd.f32 %v632_v34, %v369_v31  ;;  %v638_v39 = vadd.f32 %v637_v35, %v636_v29  ;;  %v646_v40 = vrot.slane %v645_v36, 2 }
 0x2c7   :  { %v639_v43 = vrot.slane %v638_v39, 1  ;;  %v647_v44 = vadd.f32 %v646_v40, %v645_v36  ;;  %v652_v45 = vsel %vm651_vm6, %v624_v33, %v633_v37 }
 0x2c8   :  { %654 = vst.msk [vmem:[%s1070_s16] sm:$0x3] %vm653_vm7, %v652_v45 }
 0x2c9   :  { %v640_v17 = vadd.f32 %v639_v43, %v638_v39  ;;  %v648_v16 = vrot.slane %v647_v44, 1 }
 0x2cb   :  { %v641_v49 = vadd.f32 %v640_v17, %v377_v47  ;;  %v649_v50 = vadd.f32 %v648_v16, %v647_v44 }
 0x2cd   :  { %v650_v51 = vadd.f32 %v649_v50, %v386_v48 }
 0x2cf   :  { %v655_v52 = vsel %vm651_vm6, %v641_v49, %v650_v51 }
 0x2d0   :  { %657 = vst.msk [vmem:[%s1071_s17] sm:$0x3] %vm656_vm8, %v655_v52 }

// kernel: diffpool_forward.23
= control target key start
LH: loop header
LB: loop body
LE: loop exit
PB: predicated region body
PF: predicated region fallthrough
CT: control target
= control target key end

     0   :  { %v39_v3 = vlaneseq  ;;  %v316_v4 = vmov 0.0|0.0   ;;  %vm317_vm0 = vmmov 0   ;;  %v318_v7 = vmov 0.0   ;;  %s416_s0 = inlined_call_operand.vmem [shape: f32[2,1,32], index: 0, kind: input, shape index: {}]   ;;  %s417_s1 = inlined_call_operand.vmem [shape: f32[1,32], index: 1, kind: input, shape index: {}]   ;;  %s418_s2 = inlined_call_operand.vmem [shape: f32[1,32], index: 2, kind: input, shape index: {}]   ;;  %s419_s3 = inlined_call_operand.vmem [shape: f32[32,32], index: 3, kind: input, shape index: {}]   ;;  %s420_s4 = inlined_call_operand.vmem [shape: f32[1,32], index: 4, kind: input, shape index: {}]   ;;  %s421_s5 = inlined_call_operand.vmem [shape: f32[32,4], index: 5, kind: input, shape index: {}]   ;;  %s422_s6 = inlined_call_operand.vmem [shape: f32[1,4], index: 6, kind: input, shape index: {}]   ;;  %s423_s7 = inlined_call_operand.hbm [shape: f32[2,1,4], index: 7, kind: output, shape index: {}]  }
   0x1   :  { %v46_v0 = vld [vmem:[%s419_s3] sm:$0xff]  ;;  %v47_v1 = vld [vmem:[%s419_s3 + $0x8] sm:$0xff]  ;;  %v48_v2 = vld [vmem:[%s419_s3 + $0x10] sm:$0xff]  ;;  %274 = vmatprep.subr.bf16.mxu0 %v316_v4  ;;  %260 = vmatprep.mubr.msk.f32.mxu0 %vm317_vm0, %v318_v7 }
   0x2   :  { %v275_v5 = vpack.c.bf16 %v47_v1, %v46_v0  ;;  %v49_v6 = vld [vmem:[%s419_s3 + $0x18] sm:$0xff]  ;;  %v27_v8 = vld [vmem:[%s417_s1] sm:$0x1]  ;;  %v237_v11 = vld [vmem:[%s416_s0 + $0x1] sm:$0x1]  ;;  %v40_v12 = vshrl.u32 %v39_v3, 7  ;;  %280 = vmatprep.subr.bf16.mxu1 %v316_v4  ;;  %271 = vmatprep.mubr.msk.f32.mxu1 %vm317_vm0, %v318_v7 }
   0x3   :  { %v28_v9 = vld [vmem:[%s418_s2] sm:$0x1]  ;;  %v278_v13 = vpack.c.bf16 %v49_v6, %v48_v2  ;;  %v35_v15 = vsub.f32 %v237_v11, %v27_v8  ;;  %v133_v17 = vld [vmem:[%s421_s5 + $0x8] sm:$0xff] }
   0x4   :  { %v29_v10 = vld [vmem:[%s416_s0] sm:$0x1]  ;;  %276 = vmatpush3.bf16.msra.mxu0 %v275_v5  ;;  %v41_v18 = vsub.s32 0, %v40_v12 }
   0x5   :  { %v30_v14 = vsub.f32 %v29_v10, %v27_v8  ;;  %v132_v16 = vld [vmem:[%s421_s5] sm:$0xff]  ;;  %277 = vmatprep.subr.bf16.mxu0 %v316_v4 }
   0x6   :  { %v281_v19 = vpack.c.bf16 %v133_v17, %v132_v16 }
   0x7   :  { %12 = vsyncpa [#allocation3], 0  ;;  %v31_v20 = vmul.f32 %v30_v14, %v28_v9  ;;  %v36_v21 = vmul.f32 %v35_v15, %v28_v9  ;;  %vm44_vm1 = vcmask 1040384   ;;  %vm57_vm2 = vcmask 261120   ;;  %v134_v24 = vld [vmem:[%s421_s5 + $0x10] sm:$0xff]  ;;  %v135_v25 = vld [vmem:[%s421_s5 + $0x18] sm:$0xff] }
   0x8   :  { %282 = vmatpush3.bf16.msra.mxu1 %v281_v19  ;;  %279 = vmatpush3.bf16.msra.mxu0 %v278_v13  ;;  %v284_v26 = vpack.c.bf16 %v135_v25, %v134_v24  ;;  %v238_v27 = vld [vmem:[%s420_s4] ss:$0 sm:$0xff]  ;;  %s319_s23 = smov [#allocation2]   ;;  %vm216_vm3 = vcmask 24576   ;;  %vm219_vm4 = vcmask 25601  }
   0x9   :  { %v42_v22 = vrot.slane %v36_v21, %v41_v18  ;;  %283 = vmatprep.subr.bf16.mxu1 %v316_v4  ;;  %s226_s24 = sshll.u32 %s319_s23, 4  ;;  %v240_v32 = vld [vmem:[%s422_s6] ss:$0 sm:$0xff]  ;;  %s227_s24 = int_to_ptr.vmem [resolvable:$true] %s226_s24 }
   0xa   :  { %s292_s4 = scalar_lea.vmem %s227_s24, 32  ;;  %p297_p1 = scmp.lt.s32.totalorder %s227_s24, %s227_s24 }
   0xb   :  { %v45_v23 = vsel %vm44_vm1, %v31_v20, %v42_v22  ;;  %p293_p0 = scmp.ne.s32.totalorder %s227_s24, %s292_s4  ;;  %p298_p2 = scmp.lt.s32.totalorder %s292_s4, %s292_s4 }
   0xc   :  { %261 = vmatmul.mubr.msk.f32.vlgmr.msra.gmra.mrb[0].mxu0 %vm57_vm2, %v45_v23  ;;  %285 = vmatpush3.bf16.msra.mxu1 %v284_v26 }
   0xd   :  { %p299_p3 = por %p298_p2, %p297_p1 }
   0xf   :  { %p300_p4 = pnand %p299_p3, %p293_p0 }
  0xdf   :  { %v127_v28 = vpop.f32.mrb[0].mxu0 }
  0xe0   :  { %v128_v29 = vadd.f32 %v238_v27, %v127_v28  ;;  %v262_v30 = vpop.f32.mrb[1].mxu0 }
  0xe2   :  { %v131_v31 = vmax.f32 %v128_v29, 0.0 }
  0xe4   :  { %272 = vmatmul.mubr.msk.f32.vlgmr.msra.gmra.mrb[0].mxu1 %vm57_vm2, %v131_v31 }
 0x1b7   :  { %v212_v33 = vpop.f32.mrb[0].mxu1 }
 0x1b8   :  { %v213_v34 = vadd.f32 %v240_v32, %v212_v33  ;;  %v273_v35 = vpop.f32.mrb[1].mxu1 }
 0x1ba   :  { %217 = vst.msk [vmem:[#allocation2] sm:$0x1] %vm216_vm3, %v213_v34 }
 0x1bb   :  { %220 = vst.msk [vmem:[#allocation2] sm:$0x2] %vm219_vm4, %v213_v34 }
 0x1bc   :  { %303 = shalt.err (!%p300_p4)
}
 0x1bd   :  { %s304_s28 = scalar_lea.hbm %s423_s7, 32 }
 0x1be   :  { %p305_p5 = scmp.ne.s32.totalorder %s423_s7, %s304_s28  ;;  %p308_p6 = scmp.lt.u32.totalorder %s304_s28, %s423_s7 }
 0x1c0   :  { %p310_p7 = pnand %p308_p6, %p305_p5 }
 0x1c2   :  { %313 = shalt.err (!%p310_p7)
}
 0x1c3   :  { %s320_s9 = smov 16   ;;  %s321_s10 = smov 1  }
 0x1c4   :  { %232 = dma.vmem_to_hbm [thread:$0]  %s227_s24, 32, %s423_s7, [#allocation3], %s320_s9, %s320_s9, %s321_s10  }
 0x1c5   :  { %314 = dma.done.wait [#allocation3], 32  }
 0x1c6   :  { %315 = vsyncadd [#allocation3], 4294967264 }
 0x1c7   :  { %236 = vsyncpa [#allocation3], 1 }

</bundles_post_ra>
